<compile_context>
chip_gen: v6e
topology: v6e:2x2x1
jax: 0.10.0
libtpu: 0.0.40
codegen_flags: <defaults>
</compile_context>

<pallas_src>
import jax
import jax.numpy as jnp
from jax.experimental import pallas as pl
from jax.experimental.pallas import tpu as pltpu

# Python-float constants only (jnp scalars at module scope become captured kernel constants).
NEG_SLOPE = 0.2
MASK_BIAS = -1e30     # finite (not -inf) so masked softmax never produces inf - inf = NaN
BN_EPS = 1e-5


def _leaky(x):
    return jnp.where(x > 0, x, NEG_SLOPE * x)


def _bf16(x):
    return x.astype(jnp.bfloat16)


# ---------------------------------------------------------------------------
# In-kernel GATv2 layer (dense adjacency, single head) -> LeakyReLU -> folded BN
# ---------------------------------------------------------------------------
def _gat_layer(x, mask_bias, wlr, vec, e_l=None):
    """x[N,Cin]; mask_bias[N,N] additive (0 on edges+self-loops, -1e30 elsewhere);
    wlr[Cin,2C] bf16 = [lin_r (target) | lin_l (source)];
    vec[6,C] f32 rows = (br, bl, att, bias, bn_scale, bn_shift); e_l[N,N,C] optional."""
    n = x.shape[0]
    c = vec.shape[-1]
    xlr = jnp.dot(_bf16(x), wlr, preferred_element_type=jnp.float32)   # one MXU push for both
    xr = xlr[:, :c] + vec[0:1]          # target transform
    xl = xlr[:, c:] + vec[1:2]          # source transform (also the message)

    t = xr[:, None, :] + xl[None, :, :]
    if e_l is not None:
        t = t + e_l
    t = _leaky(t)

    # attention logits + additive adjacency mask (masked entries underflow to 0 after exp)
    s = jnp.sum(t * vec[2:3][None, :, :], axis=-1) + mask_bias          # [N, N]
    m = jnp.max(s, axis=1, keepdims=True)
    p = jnp.exp(s - m)
    alpha = p * pl.reciprocal(jnp.sum(p, axis=1, keepdims=True), approx=True)

    out = jnp.dot(_bf16(alpha), _bf16(xl), preferred_element_type=jnp.float32) + vec[3:4]
    out = _leaky(out)
    return out * vec[4:5] + vec[5:6]    # folded eval-mode BatchNorm


# ---------------------------------------------------------------------------
# Fully fused forward kernel (one grid step = one sample)
# ---------------------------------------------------------------------------
def _make_kernel(n_global, n_seg, n_dense):
    def kernel(*refs):
        o_ref = refs[-1]
        it = iter(refs[:-1])
        nxt = lambda: next(it)

        (g_ref, sx_ref, sbias_ref, seflat_ref, spool_ref,
         dx_ref, dbias_ref, dpool_ref) = [nxt() for _ in range(8)]
        g = g_ref[0]
        sx, sbias, seflat, spool = sx_ref[0], sbias_ref[0], seflat_ref[0], spool_ref[0]
        dx, dbias, dpool = dx_ref[0], dbias_ref[0], dpool_ref[0]

        # ---- global path: (Linear -> LeakyReLU -> BN(folded) -> Dropout(id)) x n ----
        g_w0 = nxt()
        g_wr = nxt() if n_global > 1 else None
        gv = nxt()[...]                                    # [n_global, 3, C]
        for l in range(n_global):
            w = g_w0[...] if l == 0 else g_wr[l - 1]
            g = _leaky(jnp.dot(_bf16(g), w, preferred_element_type=jnp.float32)
                       + gv[l, 0:1]) * gv[l, 1:2] + gv[l, 2:3]

        # ---- segment path: GATv2 with edge attributes x n ----
        s_wlr0 = nxt()
        s_wlr_r = nxt() if n_seg > 1 else None
        s_we = nxt()                                       # [E, n_seg*C]
        sv = nxt()[...]                                    # [n_seg, 6, C]
        c = sv.shape[-1]
        ns = sx.shape[0]
        # edge-attribute transform for ALL segment layers in one MXU matmul
        e_all = jnp.dot(seflat, s_we[...], preferred_element_type=jnp.float32)  # [N*N, n_seg*C]
        for l in range(n_seg):
            wlr = s_wlr0[...] if l == 0 else s_wlr_r[l - 1]
            e_l = e_all[:, l * c:(l + 1) * c].reshape(ns, ns, c)
            sx = _gat_layer(sx, sbias, wlr, sv[l], e_l=e_l)

        # ---- dense path: GATv2 without edge attributes x n ----
        d_wlr0 = nxt()
        d_wlr_r = nxt() if n_dense > 1 else None
        dv = nxt()[...]                                    # [n_dense, 6, C]
        for l in range(n_dense):
            wlr = d_wlr0[...] if l == 0 else d_wlr_r[l - 1]
            dx = _gat_layer(dx, dbias, wlr, dv[l])

        # ---- global_max_pool per graph (padded nodes removed via -1e30 additive bias) ----
        seg_pool = jnp.max(sx[None, :, :] + spool[:, :, None], axis=1)   # [B, C]
        den_pool = jnp.max(dx[None, :, :] + dpool[:, :, None], axis=1)   # [B, C]

        # ---- output Linear on concat([global, segment, dense]) via stacked weights ----
        ow = nxt()                                         # [3, C, out_dim] bf16
        ob = nxt()[...]                                    # [1, out_dim]   f32
        o_ref[0] = (jnp.dot(_bf16(g), ow[0], preferred_element_type=jnp.float32)
                    + jnp.dot(_bf16(seg_pool), ow[1], preferred_element_type=jnp.float32)
                    + jnp.dot(_bf16(den_pool), ow[2], preferred_element_type=jnp.float32)
                    + ob)
    return kernel


# ---------------------------------------------------------------------------
# pallas_call wrapper: sample-parallel grid, VMEM-resident weights
# ---------------------------------------------------------------------------
def _const_spec(a):
    # same block index every grid step -> DMA'd once, stays VMEM-resident
    return pl.BlockSpec(a.shape, lambda s, nd=a.ndim: (0,) * nd)


def _sample_spec(a):
    # leading sample axis advances with the grid
    return pl.BlockSpec((1,) + a.shape[1:], lambda s, nd=a.ndim: (s,) + (0,) * (nd - 1))


def arterialnet_forward(params, inputs):
    n_global, n_seg, n_dense = params["n_global"], params["n_seg"], params["n_dense"]
    assert n_global >= 1 and n_seg >= 1 and n_dense >= 1

    per_sample = [inputs[k] for k in ("global", "seg_x", "seg_bias", "seg_eflat", "seg_pool",
                                      "dense_x", "dense_bias", "dense_pool")]
    weights = [params["g_w0"]]
    if n_global > 1:
        weights.append(params["g_wr"])
    weights.append(params["g_vec"])
    weights.append(params["s_wlr0"])
    if n_seg > 1:
        weights.append(params["s_wlr_r"])
    weights += [params["s_we"], params["s_vec"], params["d_wlr0"]]
    if n_dense > 1:
        weights.append(params["d_wlr_r"])
    weights += [params["d_vec"], params["out_w"], params["out_b"]]
    args = per_sample + weights

    S, B = inputs["global"].shape[:2]
    out_dim = params["out_w"].shape[-1]
    C = params["s_vec"].shape[-1]
    ns, nd_ = inputs["seg_x"].shape[1], inputs["dense_x"].shape[1]
    e = params["s_we"].shape[0]

    # advisory cost estimate (per-sample x S)
    fl = 2 * B * params["g_w0"].shape[0] * C + 2 * B * C * C * max(n_global - 1, 0)
    fl += n_seg * (4 * ns * C * C + 12 * ns * ns * C) + 2 * ns * ns * e * n_seg * C
    fl += n_dense * (4 * nd_ * C * C + 12 * nd_ * nd_ * C)
    fl += 6 * B * C * out_dim
    tr = n_seg * (ns * ns + ns) + n_dense * (nd_ * nd_ + nd_)
    bytes_accessed = sum(int(a.size) * a.dtype.itemsize for a in args) + S * B * out_dim * 4

    return pl.pallas_call(
        _make_kernel(n_global, n_seg, n_dense),
        out_shape=jax.ShapeDtypeStruct((S, B, out_dim), jnp.float32),
        grid=(S,),
        in_specs=[_sample_spec(a) for a in per_sample] + [_const_spec(a) for a in weights],
        out_specs=pl.BlockSpec((1, B, out_dim), lambda s: (s, 0, 0)),
        compiler_params=pltpu.CompilerParams(dimension_semantics=("parallel",)),
        cost_estimate=pl.CostEstimate(flops=int(S * fl), transcendentals=int(S * tr),
                                      bytes_accessed=int(bytes_accessed)),
    )(*args)


# ---------------------------------------------------------------------------
# Host-side graph preprocessing (padding, additive masks, dense edge attrs)
# ---------------------------------------------------------------------------
def round_up(n, m):
    return ((n + m - 1) // m) * m


def pad_batch(batch, padded):
    return jnp.full((padded,), -1, jnp.int32).at[:batch.shape[0]].set(batch)


def adjacency_bias(padded, edge_index):
    """Additive attention mask: 0 on edges + self-loops (all rows, incl. padded), -1e30 else."""
    src, tgt = edge_index[0], edge_index[1]
    adj = jnp.zeros((padded, padded), jnp.float32).at[tgt, src].set(1.0)
    ar = jnp.arange(padded)
    adj = adj.at[ar, ar].set(1.0)
    return jnp.where(adj > 0, 0.0, MASK_BIAS).astype(jnp.float32)


def edge_attr_dense_flat(padded, edge_index, edge_attr):
    """[padded*padded, edge_dim] dense edge attrs (target-major); self-loop attr = mean of
    incoming edge attrs (PyG fill_value='mean'); bf16 for the MXU."""
    src, tgt = edge_index[0], edge_index[1]
    e_dim = edge_attr.shape[1]
    ea = jnp.zeros((padded, padded, e_dim), jnp.float32).at[tgt, src, :].set(edge_attr)
    sums = jnp.zeros((padded, e_dim), jnp.float32).at[tgt].add(edge_attr)
    counts = jnp.zeros((padded,), jnp.float32).at[tgt].add(1.0)
    ar = jnp.arange(padded)
    ea = ea.at[ar, ar, :].set(sums / jnp.maximum(counts, 1.0)[:, None])
    return ea.reshape(padded * padded, e_dim).astype(jnp.bfloat16)


def pool_bias(batch_padded, n_graphs):
    """[B, N_padded] additive max-pool mask: 0 for a graph's own nodes, -1e30 otherwise."""
    return jnp.where(batch_padded[None, :] == jnp.arange(n_graphs)[:, None],
                     0.0, MASK_BIAS).astype(jnp.float32)


# ---------------------------------------------------------------------------
# Deterministic parameter construction (eval-mode BN folded into scale/shift, bf16 weights)
# ---------------------------------------------------------------------------
class ParamGen:
    def __init__(self, key):
        self.key = key

    def take(self, shape, scale=0.1):
        self.key, sub = jax.random.split(self.key)
        return scale * jax.random.normal(sub, shape, dtype=jnp.float32)


def _folded_bn(out_dim):
    # default running stats: mean=0, var=1, gamma=1, beta=0
    scale = jnp.full((out_dim,), 1.0 / float(jnp.sqrt(1.0 + BN_EPS)), jnp.float32)
    shift = jnp.zeros((out_dim,), jnp.float32)
    return scale, shift


def build_params(pg, n_global, n_seg, n_dense, g_in, s_in, e_in, d_in, hidden, out_dim):
    params = {"n_global": n_global, "n_seg": n_seg, "n_dense": n_dense}

    # global path
    params["g_w0"] = pg.take((g_in, hidden)).astype(jnp.bfloat16)
    g_wr, g_vec = [], []
    for l in range(n_global):
        if l > 0:
            g_wr.append(pg.take((hidden, hidden)))
        sc, sh = _folded_bn(hidden)
        g_vec.append(jnp.stack([pg.take((hidden,)), sc, sh]))
    if n_global > 1:
        params["g_wr"] = jnp.stack(g_wr).astype(jnp.bfloat16)
    params["g_vec"] = jnp.stack(g_vec)

    # segment path (with edge transform); wlr = [lin_r | lin_l]
    params["s_wlr0"] = pg.take((s_in, 2 * hidden)).astype(jnp.bfloat16)
    s_wlr_r, s_we_cols, s_vec = [], [], []
    for l in range(n_seg):
        if l > 0:
            s_wlr_r.append(pg.take((hidden, 2 * hidden)))
        s_we_cols.append(pg.take((e_in, hidden)))
        sc, sh = _folded_bn(hidden)
        s_vec.append(jnp.stack([pg.take((hidden,)), pg.take((hidden,)), pg.take((hidden,)),
                                pg.take((hidden,)), sc, sh]))
    if n_seg > 1:
        params["s_wlr_r"] = jnp.stack(s_wlr_r).astype(jnp.bfloat16)
    params["s_we"] = jnp.concatenate(s_we_cols, axis=1).astype(jnp.bfloat16)  # [E, n_seg*C]
    params["s_vec"] = jnp.stack(s_vec)

    # dense path (no edge transform)
    params["d_wlr0"] = pg.take((d_in, 2 * hidden)).astype(jnp.bfloat16)
    d_wlr_r, d_vec = [], []
    for l in range(n_dense):
        if l > 0:
            d_wlr_r.append(pg.take((hidden, 2 * hidden)))
        sc, sh = _folded_bn(hidden)
        d_vec.append(jnp.stack([pg.take((hidden,)), pg.take((hidden,)), pg.take((hidden,)),
                                pg.take((hidden,)), sc, sh]))
    if n_dense > 1:
        params["d_wlr_r"] = jnp.stack(d_wlr_r).astype(jnp.bfloat16)
    params["d_vec"] = jnp.stack(d_vec)

    # output head: stacked [global | segment | dense] weights
    params["out_w"] = pg.take((3, hidden, out_dim)).astype(jnp.bfloat16)
    params["out_b"] = pg.take((1, out_dim))
    return params


# ---------------------------------------------------------------------------
# Example run
# ---------------------------------------------------------------------------
if __name__ == "__main__":
    S = 4                       # samples (grid axis; parallel across TCs on v7x)
    B = 2                       # graphs per sample
    GLOBAL_IN, SEG_IN, SEG_EDGE_IN, DENSE_IN = 6, 5, 4, 7
    HIDDEN = 32                 # hidden_dim == hidden_dim_dense (regression head requires this)
    OUT_DIM = 3
    N_GLOBAL_L = N_SEG_L = N_DENSE_L = 2
    NS, ND = 10, 12             # segment / dense node counts per sample
    NSP, NDP = round_up(NS, 8), round_up(ND, 8)   # sublane-aligned padding

    key = jax.random.PRNGKey(0)
    kd, kp = jax.random.split(key)
    dkeys = jax.random.split(kd, 4)

    # segment graph: two 5-node bidirectional chains (graphs 0 / 1 inside each sample)
    seg_edges = []
    for base in (0, 5):
        for i in range(4):
            seg_edges += [(base + i, base + i + 1), (base + i + 1, base + i)]
    seg_edge_index = jnp.asarray(seg_edges, dtype=jnp.int32).T
    seg_batch = jnp.asarray([0] * 5 + [1] * 5, dtype=jnp.int32)

    # dense graph: two 6-node bidirectional chains
    dense_edges = []
    for base in (0, 6):
        for i in range(5):
            dense_edges += [(base + i, base + i + 1), (base + i + 1, base + i)]
    dense_edge_index = jnp.asarray(dense_edges, dtype=jnp.int32).T
    dense_batch = jnp.asarray([0] * 6 + [1] * 6, dtype=jnp.int32)

    # per-sample inputs (leading sample axis S); node features zero-padded to NSP/NDP rows
    global_data = jax.random.normal(dkeys[0], (S, B, GLOBAL_IN), jnp.float32).astype(jnp.bfloat16)
    seg_x = jnp.zeros((S, NSP, SEG_IN), jnp.float32).at[:, :NS, :].set(
        jax.random.normal(dkeys[1], (S, NS, SEG_IN), jnp.float32)).astype(jnp.bfloat16)
    dense_x = jnp.zeros((S, NDP, DENSE_IN), jnp.float32).at[:, :ND, :].set(
        jax.random.normal(dkeys[2], (S, ND, DENSE_IN), jnp.float32)).astype(jnp.bfloat16)
    seg_edge_attr = jax.random.normal(dkeys[3], (S, seg_edge_index.shape[1], SEG_EDGE_IN),
                                      jnp.float32)

    seg_bias_1 = adjacency_bias(NSP, seg_edge_index)
    dense_bias_1 = adjacency_bias(NDP, dense_edge_index)
    seg_pool_1 = pool_bias(pad_batch(seg_batch, NSP), B)
    dense_pool_1 = pool_bias(pad_batch(dense_batch, NDP), B)
    seg_eflat = jnp.stack([edge_attr_dense_flat(NSP, seg_edge_index, seg_edge_attr[s])
                           for s in range(S)])

    inputs = {
        "global": global_data,
        "seg_x": seg_x,
        "seg_bias": jnp.tile(seg_bias_1[None], (S, 1, 1)),
        "seg_eflat": seg_eflat,
        "seg_pool": jnp.tile(seg_pool_1[None], (S, 1, 1)),
        "dense_x": dense_x,
        "dense_bias": jnp.tile(dense_bias_1[None], (S, 1, 1)),
        "dense_pool": jnp.tile(dense_pool_1[None], (S, 1, 1)),
    }

    params = build_params(ParamGen(kp), N_GLOBAL_L, N_SEG_L, N_DENSE_L,
                          GLOBAL_IN, SEG_IN, SEG_EDGE_IN, DENSE_IN, HIDDEN, OUT_DIM)

    out = arterialnet_forward(params, inputs)
    out = jax.block_until_ready(out)
    assert out.shape == (S, B, OUT_DIM) and bool(jnp.all(jnp.isfinite(out)))
    print("KERNEL_OK")
</pallas_src>

<mosaic_0001>
module attributes {stable_mosaic.version = 11 : i64} {
  func.func @kernel(%arg0: i32, %arg1: memref<1x2x6xbf16, #tpu.memory_space<vmem>>, %arg2: memref<1x16x5xbf16, #tpu.memory_space<vmem>>, %arg3: memref<1x16x16xf32, #tpu.memory_space<vmem>>, %arg4: memref<1x256x4xbf16, #tpu.memory_space<vmem>>, %arg5: memref<1x2x16xf32, #tpu.memory_space<vmem>>, %arg6: memref<1x16x7xbf16, #tpu.memory_space<vmem>>, %arg7: memref<1x16x16xf32, #tpu.memory_space<vmem>>, %arg8: memref<1x2x16xf32, #tpu.memory_space<vmem>>, %arg9: memref<6x32xbf16, #tpu.memory_space<vmem>>, %arg10: memref<1x32x32xbf16, #tpu.memory_space<vmem>>, %arg11: memref<2x3x32xf32, #tpu.memory_space<vmem>>, %arg12: memref<5x64xbf16, #tpu.memory_space<vmem>>, %arg13: memref<1x32x64xbf16, #tpu.memory_space<vmem>>, %arg14: memref<4x64xbf16, #tpu.memory_space<vmem>>, %arg15: memref<2x6x32xf32, #tpu.memory_space<vmem>>, %arg16: memref<7x64xbf16, #tpu.memory_space<vmem>>, %arg17: memref<1x32x64xbf16, #tpu.memory_space<vmem>>, %arg18: memref<2x6x32xf32, #tpu.memory_space<vmem>>, %arg19: memref<3x32x3xbf16, #tpu.memory_space<vmem>>, %arg20: memref<1x3xf32, #tpu.memory_space<vmem>>, %arg21: memref<1x2x3xf32, #tpu.memory_space<vmem>>) attributes {dimension_semantics = [#tpu.dimension_semantics<parallel>], iteration_bounds = array<i64: 4>, scalar_prefetch = 0 : i64, scratch_operands = 0 : i64, tpu.core_type = #tpu.core_type<tc>, window_params = [{transform_indices = @transform_0, window_bounds = array<i64: 1, 2, 6>}, {transform_indices = @transform_1, window_bounds = array<i64: 1, 16, 5>}, {transform_indices = @transform_2, window_bounds = array<i64: 1, 16, 16>}, {transform_indices = @transform_3, window_bounds = array<i64: 1, 256, 4>}, {transform_indices = @transform_4, window_bounds = array<i64: 1, 2, 16>}, {transform_indices = @transform_5, window_bounds = array<i64: 1, 16, 7>}, {transform_indices = @transform_6, window_bounds = array<i64: 1, 16, 16>}, {transform_indices = @transform_7, window_bounds = array<i64: 1, 2, 16>}, {pipeline_mode = #tpu.pipeline_mode<synchronous>, transform_indices = @transform_8, window_bounds = array<i64: 6, 32>}, {pipeline_mode = #tpu.pipeline_mode<synchronous>, transform_indices = @transform_9, window_bounds = array<i64: 1, 32, 32>}, {pipeline_mode = #tpu.pipeline_mode<synchronous>, transform_indices = @transform_10, window_bounds = array<i64: 2, 3, 32>}, {pipeline_mode = #tpu.pipeline_mode<synchronous>, transform_indices = @transform_11, window_bounds = array<i64: 5, 64>}, {pipeline_mode = #tpu.pipeline_mode<synchronous>, transform_indices = @transform_12, window_bounds = array<i64: 1, 32, 64>}, {pipeline_mode = #tpu.pipeline_mode<synchronous>, transform_indices = @transform_13, window_bounds = array<i64: 4, 64>}, {pipeline_mode = #tpu.pipeline_mode<synchronous>, transform_indices = @transform_14, window_bounds = array<i64: 2, 6, 32>}, {pipeline_mode = #tpu.pipeline_mode<synchronous>, transform_indices = @transform_15, window_bounds = array<i64: 7, 64>}, {pipeline_mode = #tpu.pipeline_mode<synchronous>, transform_indices = @transform_16, window_bounds = array<i64: 1, 32, 64>}, {pipeline_mode = #tpu.pipeline_mode<synchronous>, transform_indices = @transform_17, window_bounds = array<i64: 2, 6, 32>}, {pipeline_mode = #tpu.pipeline_mode<synchronous>, transform_indices = @transform_18, window_bounds = array<i64: 3, 32, 3>}, {pipeline_mode = #tpu.pipeline_mode<synchronous>, transform_indices = @transform_19, window_bounds = array<i64: 1, 3>}, {transform_indices = @transform_20, window_bounds = array<i64: 1, 2, 3>}]} {
    %c0 = arith.constant 0 : index
    %c0_0 = arith.constant 0 : index
    %c0_1 = arith.constant 0 : index
    %0 = vector.load %arg1[%c0, %c0_0, %c0_1] : memref<1x2x6xbf16, #tpu.memory_space<vmem>>, vector<1x2x6xbf16>
    %1 = vector.shape_cast %0 : vector<1x2x6xbf16> to vector<2x6xbf16>
    %c0_2 = arith.constant 0 : index
    %c0_3 = arith.constant 0 : index
    %c0_4 = arith.constant 0 : index
    %2 = vector.load %arg2[%c0_2, %c0_3, %c0_4] : memref<1x16x5xbf16, #tpu.memory_space<vmem>>, vector<1x16x5xbf16>
    %3 = vector.shape_cast %2 : vector<1x16x5xbf16> to vector<16x5xbf16>
    %c0_5 = arith.constant 0 : index
    %c0_6 = arith.constant 0 : index
    %c0_7 = arith.constant 0 : index
    %4 = vector.load %arg3[%c0_5, %c0_6, %c0_7] : memref<1x16x16xf32, #tpu.memory_space<vmem>>, vector<1x16x16xf32>
    %5 = vector.shape_cast %4 : vector<1x16x16xf32> to vector<16x16xf32>
    %c0_8 = arith.constant 0 : index
    %c0_9 = arith.constant 0 : index
    %c0_10 = arith.constant 0 : index
    %6 = vector.load %arg4[%c0_8, %c0_9, %c0_10] : memref<1x256x4xbf16, #tpu.memory_space<vmem>>, vector<1x256x4xbf16>
    %7 = vector.shape_cast %6 : vector<1x256x4xbf16> to vector<256x4xbf16>
    %c0_11 = arith.constant 0 : index
    %c0_12 = arith.constant 0 : index
    %c0_13 = arith.constant 0 : index
    %8 = vector.load %arg5[%c0_11, %c0_12, %c0_13] : memref<1x2x16xf32, #tpu.memory_space<vmem>>, vector<1x2x16xf32>
    %9 = vector.shape_cast %8 : vector<1x2x16xf32> to vector<2x16xf32>
    %c0_14 = arith.constant 0 : index
    %c0_15 = arith.constant 0 : index
    %c0_16 = arith.constant 0 : index
    %10 = vector.load %arg6[%c0_14, %c0_15, %c0_16] : memref<1x16x7xbf16, #tpu.memory_space<vmem>>, vector<1x16x7xbf16>
    %11 = vector.shape_cast %10 : vector<1x16x7xbf16> to vector<16x7xbf16>
    %c0_17 = arith.constant 0 : index
    %c0_18 = arith.constant 0 : index
    %c0_19 = arith.constant 0 : index
    %12 = vector.load %arg7[%c0_17, %c0_18, %c0_19] : memref<1x16x16xf32, #tpu.memory_space<vmem>>, vector<1x16x16xf32>
    %13 = vector.shape_cast %12 : vector<1x16x16xf32> to vector<16x16xf32>
    %c0_20 = arith.constant 0 : index
    %c0_21 = arith.constant 0 : index
    %c0_22 = arith.constant 0 : index
    %14 = vector.load %arg8[%c0_20, %c0_21, %c0_22] : memref<1x2x16xf32, #tpu.memory_space<vmem>>, vector<1x2x16xf32>
    %15 = vector.shape_cast %14 : vector<1x2x16xf32> to vector<2x16xf32>
    %c0_23 = arith.constant 0 : index
    %c0_24 = arith.constant 0 : index
    %c0_25 = arith.constant 0 : index
    %16 = vector.load %arg11[%c0_23, %c0_24, %c0_25] : memref<2x3x32xf32, #tpu.memory_space<vmem>>, vector<2x3x32xf32>
    %c0_26 = arith.constant 0 : index
    %c0_27 = arith.constant 0 : index
    %17 = vector.load %arg9[%c0_26, %c0_27] : memref<6x32xbf16, #tpu.memory_space<vmem>>, vector<6x32xbf16>
    %cst = arith.constant dense<0.000000e+00> : vector<2x32xf32>
    %18 = tpu.matmul %1, %17, %cst {dimension_numbers = #tpu.dot_dimension_numbers<[1], [0], [0], [1], [0, 0, 1, 1], [], []>} : vector<2x6xbf16>, vector<6x32xbf16>, vector<2x32xf32> -> vector<2x32xf32>
    %19 = vector.extract_strided_slice %16 {offsets = [0, 0, 0], sizes = [1, 1, 32], strides = [1, 1, 1]} : vector<2x3x32xf32> to vector<1x1x32xf32>
    %20 = vector.shape_cast %19 : vector<1x1x32xf32> to vector<1x32xf32>
    %21 = vector.broadcast %20 : vector<1x32xf32> to vector<2x32xf32>
    %22 = arith.addf %18, %21 : vector<2x32xf32>
    %cst_28 = arith.constant 0.000000e+00 : f32
    %23 = vector.broadcast %cst_28 : f32 to vector<2x32xf32>
    %24 = arith.cmpf ogt, %22, %23 : vector<2x32xf32>
    %cst_29 = arith.constant 2.000000e-01 : f32
    %25 = vector.broadcast %cst_29 : f32 to vector<2x32xf32>
    %26 = arith.mulf %25, %22 : vector<2x32xf32>
    %27 = arith.select %24, %22, %26 : vector<2x32xi1>, vector<2x32xf32>
    %28 = vector.extract_strided_slice %16 {offsets = [0, 1, 0], sizes = [1, 1, 32], strides = [1, 1, 1]} : vector<2x3x32xf32> to vector<1x1x32xf32>
    %29 = vector.shape_cast %28 : vector<1x1x32xf32> to vector<1x32xf32>
    %30 = vector.broadcast %29 : vector<1x32xf32> to vector<2x32xf32>
    %31 = arith.mulf %27, %30 : vector<2x32xf32>
    %32 = vector.extract_strided_slice %16 {offsets = [0, 2, 0], sizes = [1, 1, 32], strides = [1, 1, 1]} : vector<2x3x32xf32> to vector<1x1x32xf32>
    %33 = vector.shape_cast %32 : vector<1x1x32xf32> to vector<1x32xf32>
    %34 = vector.broadcast %33 : vector<1x32xf32> to vector<2x32xf32>
    %35 = arith.addf %31, %34 : vector<2x32xf32>
    %c0_30 = arith.constant 0 : index
    %c0_31 = arith.constant 0 : index
    %c0_32 = arith.constant 0 : index
    %36 = vector.load %arg10[%c0_30, %c0_31, %c0_32] : memref<1x32x32xbf16, #tpu.memory_space<vmem>>, vector<1x32x32xbf16>
    %37 = vector.shape_cast %36 : vector<1x32x32xbf16> to vector<32x32xbf16>
    %38 = arith.truncf %35 : vector<2x32xf32> to vector<2x32xbf16>
    %cst_33 = arith.constant dense<0.000000e+00> : vector<2x32xf32>
    %39 = tpu.matmul %38, %37, %cst_33 {dimension_numbers = #tpu.dot_dimension_numbers<[1], [0], [0], [1], [0, 0, 1, 1], [], []>} : vector<2x32xbf16>, vector<32x32xbf16>, vector<2x32xf32> -> vector<2x32xf32>
    %40 = vector.extract_strided_slice %16 {offsets = [1, 0, 0], sizes = [1, 1, 32], strides = [1, 1, 1]} : vector<2x3x32xf32> to vector<1x1x32xf32>
    %41 = vector.shape_cast %40 : vector<1x1x32xf32> to vector<1x32xf32>
    %42 = vector.broadcast %41 : vector<1x32xf32> to vector<2x32xf32>
    %43 = arith.addf %39, %42 : vector<2x32xf32>
    %cst_34 = arith.constant 0.000000e+00 : f32
    %44 = vector.broadcast %cst_34 : f32 to vector<2x32xf32>
    %45 = arith.cmpf ogt, %43, %44 : vector<2x32xf32>
    %cst_35 = arith.constant 2.000000e-01 : f32
    %46 = vector.broadcast %cst_35 : f32 to vector<2x32xf32>
    %47 = arith.mulf %46, %43 : vector<2x32xf32>
    %48 = arith.select %45, %43, %47 : vector<2x32xi1>, vector<2x32xf32>
    %49 = vector.extract_strided_slice %16 {offsets = [1, 1, 0], sizes = [1, 1, 32], strides = [1, 1, 1]} : vector<2x3x32xf32> to vector<1x1x32xf32>
    %50 = vector.shape_cast %49 : vector<1x1x32xf32> to vector<1x32xf32>
    %51 = vector.broadcast %50 : vector<1x32xf32> to vector<2x32xf32>
    %52 = arith.mulf %48, %51 : vector<2x32xf32>
    %53 = vector.extract_strided_slice %16 {offsets = [1, 2, 0], sizes = [1, 1, 32], strides = [1, 1, 1]} : vector<2x3x32xf32> to vector<1x1x32xf32>
    %54 = vector.shape_cast %53 : vector<1x1x32xf32> to vector<1x32xf32>
    %55 = vector.broadcast %54 : vector<1x32xf32> to vector<2x32xf32>
    %56 = arith.addf %52, %55 : vector<2x32xf32>
    %c0_36 = arith.constant 0 : index
    %c0_37 = arith.constant 0 : index
    %c0_38 = arith.constant 0 : index
    %57 = vector.load %arg15[%c0_36, %c0_37, %c0_38] : memref<2x6x32xf32, #tpu.memory_space<vmem>>, vector<2x6x32xf32>
    %c0_39 = arith.constant 0 : index
    %c0_40 = arith.constant 0 : index
    %58 = vector.load %arg14[%c0_39, %c0_40] : memref<4x64xbf16, #tpu.memory_space<vmem>>, vector<4x64xbf16>
    %cst_41 = arith.constant dense<0.000000e+00> : vector<256x64xf32>
    %59 = tpu.matmul %7, %58, %cst_41 {dimension_numbers = #tpu.dot_dimension_numbers<[1], [0], [0], [1], [0, 0, 1, 1], [], []>} : vector<256x4xbf16>, vector<4x64xbf16>, vector<256x64xf32> -> vector<256x64xf32>
    %c0_42 = arith.constant 0 : index
    %c0_43 = arith.constant 0 : index
    %60 = vector.load %arg12[%c0_42, %c0_43] : memref<5x64xbf16, #tpu.memory_space<vmem>>, vector<5x64xbf16>
    %61 = vector.extract_strided_slice %59 {offsets = [0, 0], sizes = [256, 32], strides = [1, 1]} : vector<256x64xf32> to vector<256x32xf32>
    %62 = vector.shape_cast %61 : vector<256x32xf32> to vector<16x16x32xf32>
    %63 = vector.extract_strided_slice %57 {offsets = [0, 0, 0], sizes = [1, 6, 32], strides = [1, 1, 1]} : vector<2x6x32xf32> to vector<1x6x32xf32>
    %64 = vector.shape_cast %63 : vector<1x6x32xf32> to vector<6x32xf32>
    %cst_44 = arith.constant dense<0.000000e+00> : vector<16x64xf32>
    %65 = tpu.matmul %3, %60, %cst_44 {dimension_numbers = #tpu.dot_dimension_numbers<[1], [0], [0], [1], [0, 0, 1, 1], [], []>} : vector<16x5xbf16>, vector<5x64xbf16>, vector<16x64xf32> -> vector<16x64xf32>
    %66 = vector.extract_strided_slice %65 {offsets = [0, 0], sizes = [16, 32], strides = [1, 1]} : vector<16x64xf32> to vector<16x32xf32>
    %67 = vector.extract_strided_slice %64 {offsets = [0, 0], sizes = [1, 32], strides = [1, 1]} : vector<6x32xf32> to vector<1x32xf32>
    %68 = vector.broadcast %67 : vector<1x32xf32> to vector<16x32xf32>
    %69 = arith.addf %66, %68 : vector<16x32xf32>
    %70 = vector.extract_strided_slice %65 {offsets = [0, 32], sizes = [16, 32], strides = [1, 1]} : vector<16x64xf32> to vector<16x32xf32>
    %71 = vector.extract_strided_slice %64 {offsets = [1, 0], sizes = [1, 32], strides = [1, 1]} : vector<6x32xf32> to vector<1x32xf32>
    %72 = vector.broadcast %71 : vector<1x32xf32> to vector<16x32xf32>
    %73 = arith.addf %70, %72 : vector<16x32xf32>
    %74 = vector.shape_cast %69 : vector<16x32xf32> to vector<16x1x32xf32>
    %75 = vector.shape_cast %73 : vector<16x32xf32> to vector<1x16x32xf32>
    %76 = vector.broadcast %74 : vector<16x1x32xf32> to vector<16x16x32xf32>
    %77 = vector.broadcast %75 : vector<1x16x32xf32> to vector<16x16x32xf32>
    %78 = arith.addf %76, %77 : vector<16x16x32xf32>
    %79 = arith.addf %78, %62 : vector<16x16x32xf32>
    %cst_45 = arith.constant 0.000000e+00 : f32
    %80 = vector.broadcast %cst_45 : f32 to vector<16x16x32xf32>
    %81 = arith.cmpf ogt, %79, %80 : vector<16x16x32xf32>
    %cst_46 = arith.constant 2.000000e-01 : f32
    %82 = vector.broadcast %cst_46 : f32 to vector<16x16x32xf32>
    %83 = arith.mulf %82, %79 : vector<16x16x32xf32>
    %84 = arith.select %81, %79, %83 : vector<16x16x32xi1>, vector<16x16x32xf32>
    %85 = vector.extract_strided_slice %64 {offsets = [2, 0], sizes = [1, 32], strides = [1, 1]} : vector<6x32xf32> to vector<1x32xf32>
    %86 = vector.shape_cast %85 : vector<1x32xf32> to vector<1x1x32xf32>
    %87 = vector.broadcast %86 : vector<1x1x32xf32> to vector<16x16x32xf32>
    %88 = arith.mulf %84, %87 : vector<16x16x32xf32>
    %cst_47 = arith.constant dense<0.000000e+00> : vector<16x16xf32>
    %89 = vector.multi_reduction <add>, %88, %cst_47 [2] : vector<16x16x32xf32> to vector<16x16xf32>
    %90 = arith.addf %89, %5 : vector<16x16xf32>
    %cst_48 = arith.constant dense<0xFF800000> : vector<16xf32>
    %91 = vector.multi_reduction <maximumf>, %90, %cst_48 [1] : vector<16x16xf32> to vector<16xf32>
    %92 = vector.shape_cast %91 : vector<16xf32> to vector<16x1xf32>
    %93 = vector.broadcast %92 : vector<16x1xf32> to vector<16x16xf32>
    %94 = arith.subf %90, %93 : vector<16x16xf32>
    %95 = math.exp %94 : vector<16x16xf32>
    %cst_49 = arith.constant dense<0.000000e+00> : vector<16xf32>
    %96 = vector.multi_reduction <add>, %95, %cst_49 [1] : vector<16x16xf32> to vector<16xf32>
    %97 = vector.shape_cast %96 : vector<16xf32> to vector<16x1xf32>
    %98 = tpu.reciprocal %97 {approx = true} : vector<16x1xf32> -> vector<16x1xf32>
    %99 = vector.broadcast %98 : vector<16x1xf32> to vector<16x16xf32>
    %100 = arith.mulf %95, %99 : vector<16x16xf32>
    %101 = arith.truncf %100 : vector<16x16xf32> to vector<16x16xbf16>
    %102 = arith.truncf %73 : vector<16x32xf32> to vector<16x32xbf16>
    %cst_50 = arith.constant dense<0.000000e+00> : vector<16x32xf32>
    %103 = tpu.matmul %101, %102, %cst_50 {dimension_numbers = #tpu.dot_dimension_numbers<[1], [0], [0], [1], [0, 0, 1, 1], [], []>} : vector<16x16xbf16>, vector<16x32xbf16>, vector<16x32xf32> -> vector<16x32xf32>
    %104 = vector.extract_strided_slice %64 {offsets = [3, 0], sizes = [1, 32], strides = [1, 1]} : vector<6x32xf32> to vector<1x32xf32>
    %105 = vector.broadcast %104 : vector<1x32xf32> to vector<16x32xf32>
    %106 = arith.addf %103, %105 : vector<16x32xf32>
    %cst_51 = arith.constant 0.000000e+00 : f32
    %107 = vector.broadcast %cst_51 : f32 to vector<16x32xf32>
    %108 = arith.cmpf ogt, %106, %107 : vector<16x32xf32>
    %cst_52 = arith.constant 2.000000e-01 : f32
    %109 = vector.broadcast %cst_52 : f32 to vector<16x32xf32>
    %110 = arith.mulf %109, %106 : vector<16x32xf32>
    %111 = arith.select %108, %106, %110 : vector<16x32xi1>, vector<16x32xf32>
    %112 = vector.extract_strided_slice %64 {offsets = [4, 0], sizes = [1, 32], strides = [1, 1]} : vector<6x32xf32> to vector<1x32xf32>
    %113 = vector.broadcast %112 : vector<1x32xf32> to vector<16x32xf32>
    %114 = arith.mulf %111, %113 : vector<16x32xf32>
    %115 = vector.extract_strided_slice %64 {offsets = [5, 0], sizes = [1, 32], strides = [1, 1]} : vector<6x32xf32> to vector<1x32xf32>
    %116 = vector.broadcast %115 : vector<1x32xf32> to vector<16x32xf32>
    %117 = arith.addf %114, %116 : vector<16x32xf32>
    %c0_53 = arith.constant 0 : index
    %c0_54 = arith.constant 0 : index
    %c0_55 = arith.constant 0 : index
    %118 = vector.load %arg13[%c0_53, %c0_54, %c0_55] : memref<1x32x64xbf16, #tpu.memory_space<vmem>>, vector<1x32x64xbf16>
    %119 = vector.shape_cast %118 : vector<1x32x64xbf16> to vector<32x64xbf16>
    %120 = vector.extract_strided_slice %59 {offsets = [0, 32], sizes = [256, 32], strides = [1, 1]} : vector<256x64xf32> to vector<256x32xf32>
    %121 = vector.shape_cast %120 : vector<256x32xf32> to vector<16x16x32xf32>
    %122 = vector.extract_strided_slice %57 {offsets = [1, 0, 0], sizes = [1, 6, 32], strides = [1, 1, 1]} : vector<2x6x32xf32> to vector<1x6x32xf32>
    %123 = vector.shape_cast %122 : vector<1x6x32xf32> to vector<6x32xf32>
    %124 = arith.truncf %117 : vector<16x32xf32> to vector<16x32xbf16>
    %cst_56 = arith.constant dense<0.000000e+00> : vector<16x64xf32>
    %125 = tpu.matmul %124, %119, %cst_56 {dimension_numbers = #tpu.dot_dimension_numbers<[1], [0], [0], [1], [0, 0, 1, 1], [], []>} : vector<16x32xbf16>, vector<32x64xbf16>, vector<16x64xf32> -> vector<16x64xf32>
    %126 = vector.extract_strided_slice %125 {offsets = [0, 0], sizes = [16, 32], strides = [1, 1]} : vector<16x64xf32> to vector<16x32xf32>
    %127 = vector.extract_strided_slice %123 {offsets = [0, 0], sizes = [1, 32], strides = [1, 1]} : vector<6x32xf32> to vector<1x32xf32>
    %128 = vector.broadcast %127 : vector<1x32xf32> to vector<16x32xf32>
    %129 = arith.addf %126, %128 : vector<16x32xf32>
    %130 = vector.extract_strided_slice %125 {offsets = [0, 32], sizes = [16, 32], strides = [1, 1]} : vector<16x64xf32> to vector<16x32xf32>
    %131 = vector.extract_strided_slice %123 {offsets = [1, 0], sizes = [1, 32], strides = [1, 1]} : vector<6x32xf32> to vector<1x32xf32>
    %132 = vector.broadcast %131 : vector<1x32xf32> to vector<16x32xf32>
    %133 = arith.addf %130, %132 : vector<16x32xf32>
    %134 = vector.shape_cast %129 : vector<16x32xf32> to vector<16x1x32xf32>
    %135 = vector.shape_cast %133 : vector<16x32xf32> to vector<1x16x32xf32>
    %136 = vector.broadcast %134 : vector<16x1x32xf32> to vector<16x16x32xf32>
    %137 = vector.broadcast %135 : vector<1x16x32xf32> to vector<16x16x32xf32>
    %138 = arith.addf %136, %137 : vector<16x16x32xf32>
    %139 = arith.addf %138, %121 : vector<16x16x32xf32>
    %cst_57 = arith.constant 0.000000e+00 : f32
    %140 = vector.broadcast %cst_57 : f32 to vector<16x16x32xf32>
    %141 = arith.cmpf ogt, %139, %140 : vector<16x16x32xf32>
    %cst_58 = arith.constant 2.000000e-01 : f32
    %142 = vector.broadcast %cst_58 : f32 to vector<16x16x32xf32>
    %143 = arith.mulf %142, %139 : vector<16x16x32xf32>
    %144 = arith.select %141, %139, %143 : vector<16x16x32xi1>, vector<16x16x32xf32>
    %145 = vector.extract_strided_slice %123 {offsets = [2, 0], sizes = [1, 32], strides = [1, 1]} : vector<6x32xf32> to vector<1x32xf32>
    %146 = vector.shape_cast %145 : vector<1x32xf32> to vector<1x1x32xf32>
    %147 = vector.broadcast %146 : vector<1x1x32xf32> to vector<16x16x32xf32>
    %148 = arith.mulf %144, %147 : vector<16x16x32xf32>
    %cst_59 = arith.constant dense<0.000000e+00> : vector<16x16xf32>
    %149 = vector.multi_reduction <add>, %148, %cst_59 [2] : vector<16x16x32xf32> to vector<16x16xf32>
    %150 = arith.addf %149, %5 : vector<16x16xf32>
    %cst_60 = arith.constant dense<0xFF800000> : vector<16xf32>
    %151 = vector.multi_reduction <maximumf>, %150, %cst_60 [1] : vector<16x16xf32> to vector<16xf32>
    %152 = vector.shape_cast %151 : vector<16xf32> to vector<16x1xf32>
    %153 = vector.broadcast %152 : vector<16x1xf32> to vector<16x16xf32>
    %154 = arith.subf %150, %153 : vector<16x16xf32>
    %155 = math.exp %154 : vector<16x16xf32>
    %cst_61 = arith.constant dense<0.000000e+00> : vector<16xf32>
    %156 = vector.multi_reduction <add>, %155, %cst_61 [1] : vector<16x16xf32> to vector<16xf32>
    %157 = vector.shape_cast %156 : vector<16xf32> to vector<16x1xf32>
    %158 = tpu.reciprocal %157 {approx = true} : vector<16x1xf32> -> vector<16x1xf32>
    %159 = vector.broadcast %158 : vector<16x1xf32> to vector<16x16xf32>
    %160 = arith.mulf %155, %159 : vector<16x16xf32>
    %161 = arith.truncf %160 : vector<16x16xf32> to vector<16x16xbf16>
    %162 = arith.truncf %133 : vector<16x32xf32> to vector<16x32xbf16>
    %cst_62 = arith.constant dense<0.000000e+00> : vector<16x32xf32>
    %163 = tpu.matmul %161, %162, %cst_62 {dimension_numbers = #tpu.dot_dimension_numbers<[1], [0], [0], [1], [0, 0, 1, 1], [], []>} : vector<16x16xbf16>, vector<16x32xbf16>, vector<16x32xf32> -> vector<16x32xf32>
    %164 = vector.extract_strided_slice %123 {offsets = [3, 0], sizes = [1, 32], strides = [1, 1]} : vector<6x32xf32> to vector<1x32xf32>
    %165 = vector.broadcast %164 : vector<1x32xf32> to vector<16x32xf32>
    %166 = arith.addf %163, %165 : vector<16x32xf32>
    %cst_63 = arith.constant 0.000000e+00 : f32
    %167 = vector.broadcast %cst_63 : f32 to vector<16x32xf32>
    %168 = arith.cmpf ogt, %166, %167 : vector<16x32xf32>
    %cst_64 = arith.constant 2.000000e-01 : f32
    %169 = vector.broadcast %cst_64 : f32 to vector<16x32xf32>
    %170 = arith.mulf %169, %166 : vector<16x32xf32>
    %171 = arith.select %168, %166, %170 : vector<16x32xi1>, vector<16x32xf32>
    %172 = vector.extract_strided_slice %123 {offsets = [4, 0], sizes = [1, 32], strides = [1, 1]} : vector<6x32xf32> to vector<1x32xf32>
    %173 = vector.broadcast %172 : vector<1x32xf32> to vector<16x32xf32>
    %174 = arith.mulf %171, %173 : vector<16x32xf32>
    %175 = vector.extract_strided_slice %123 {offsets = [5, 0], sizes = [1, 32], strides = [1, 1]} : vector<6x32xf32> to vector<1x32xf32>
    %176 = vector.broadcast %175 : vector<1x32xf32> to vector<16x32xf32>
    %177 = arith.addf %174, %176 : vector<16x32xf32>
    %c0_65 = arith.constant 0 : index
    %c0_66 = arith.constant 0 : index
    %c0_67 = arith.constant 0 : index
    %178 = vector.load %arg18[%c0_65, %c0_66, %c0_67] : memref<2x6x32xf32, #tpu.memory_space<vmem>>, vector<2x6x32xf32>
    %c0_68 = arith.constant 0 : index
    %c0_69 = arith.constant 0 : index
    %179 = vector.load %arg16[%c0_68, %c0_69] : memref<7x64xbf16, #tpu.memory_space<vmem>>, vector<7x64xbf16>
    %180 = vector.extract_strided_slice %178 {offsets = [0, 0, 0], sizes = [1, 6, 32], strides = [1, 1, 1]} : vector<2x6x32xf32> to vector<1x6x32xf32>
    %181 = vector.shape_cast %180 : vector<1x6x32xf32> to vector<6x32xf32>
    %cst_70 = arith.constant dense<0.000000e+00> : vector<16x64xf32>
    %182 = tpu.matmul %11, %179, %cst_70 {dimension_numbers = #tpu.dot_dimension_numbers<[1], [0], [0], [1], [0, 0, 1, 1], [], []>} : vector<16x7xbf16>, vector<7x64xbf16>, vector<16x64xf32> -> vector<16x64xf32>
    %183 = vector.extract_strided_slice %182 {offsets = [0, 0], sizes = [16, 32], strides = [1, 1]} : vector<16x64xf32> to vector<16x32xf32>
    %184 = vector.extract_strided_slice %181 {offsets = [0, 0], sizes = [1, 32], strides = [1, 1]} : vector<6x32xf32> to vector<1x32xf32>
    %185 = vector.broadcast %184 : vector<1x32xf32> to vector<16x32xf32>
    %186 = arith.addf %183, %185 : vector<16x32xf32>
    %187 = vector.extract_strided_slice %182 {offsets = [0, 32], sizes = [16, 32], strides = [1, 1]} : vector<16x64xf32> to vector<16x32xf32>
    %188 = vector.extract_strided_slice %181 {offsets = [1, 0], sizes = [1, 32], strides = [1, 1]} : vector<6x32xf32> to vector<1x32xf32>
    %189 = vector.broadcast %188 : vector<1x32xf32> to vector<16x32xf32>
    %190 = arith.addf %187, %189 : vector<16x32xf32>
    %191 = vector.shape_cast %186 : vector<16x32xf32> to vector<16x1x32xf32>
    %192 = vector.shape_cast %190 : vector<16x32xf32> to vector<1x16x32xf32>
    %193 = vector.broadcast %191 : vector<16x1x32xf32> to vector<16x16x32xf32>
    %194 = vector.broadcast %192 : vector<1x16x32xf32> to vector<16x16x32xf32>
    %195 = arith.addf %193, %194 : vector<16x16x32xf32>
    %cst_71 = arith.constant 0.000000e+00 : f32
    %196 = vector.broadcast %cst_71 : f32 to vector<16x16x32xf32>
    %197 = arith.cmpf ogt, %195, %196 : vector<16x16x32xf32>
    %cst_72 = arith.constant 2.000000e-01 : f32
    %198 = vector.broadcast %cst_72 : f32 to vector<16x16x32xf32>
    %199 = arith.mulf %198, %195 : vector<16x16x32xf32>
    %200 = arith.select %197, %195, %199 : vector<16x16x32xi1>, vector<16x16x32xf32>
    %201 = vector.extract_strided_slice %181 {offsets = [2, 0], sizes = [1, 32], strides = [1, 1]} : vector<6x32xf32> to vector<1x32xf32>
    %202 = vector.shape_cast %201 : vector<1x32xf32> to vector<1x1x32xf32>
    %203 = vector.broadcast %202 : vector<1x1x32xf32> to vector<16x16x32xf32>
    %204 = arith.mulf %200, %203 : vector<16x16x32xf32>
    %cst_73 = arith.constant dense<0.000000e+00> : vector<16x16xf32>
    %205 = vector.multi_reduction <add>, %204, %cst_73 [2] : vector<16x16x32xf32> to vector<16x16xf32>
    %206 = arith.addf %205, %13 : vector<16x16xf32>
    %cst_74 = arith.constant dense<0xFF800000> : vector<16xf32>
    %207 = vector.multi_reduction <maximumf>, %206, %cst_74 [1] : vector<16x16xf32> to vector<16xf32>
    %208 = vector.shape_cast %207 : vector<16xf32> to vector<16x1xf32>
    %209 = vector.broadcast %208 : vector<16x1xf32> to vector<16x16xf32>
    %210 = arith.subf %206, %209 : vector<16x16xf32>
    %211 = math.exp %210 : vector<16x16xf32>
    %cst_75 = arith.constant dense<0.000000e+00> : vector<16xf32>
    %212 = vector.multi_reduction <add>, %211, %cst_75 [1] : vector<16x16xf32> to vector<16xf32>
    %213 = vector.shape_cast %212 : vector<16xf32> to vector<16x1xf32>
    %214 = tpu.reciprocal %213 {approx = true} : vector<16x1xf32> -> vector<16x1xf32>
    %215 = vector.broadcast %214 : vector<16x1xf32> to vector<16x16xf32>
    %216 = arith.mulf %211, %215 : vector<16x16xf32>
    %217 = arith.truncf %216 : vector<16x16xf32> to vector<16x16xbf16>
    %218 = arith.truncf %190 : vector<16x32xf32> to vector<16x32xbf16>
    %cst_76 = arith.constant dense<0.000000e+00> : vector<16x32xf32>
    %219 = tpu.matmul %217, %218, %cst_76 {dimension_numbers = #tpu.dot_dimension_numbers<[1], [0], [0], [1], [0, 0, 1, 1], [], []>} : vector<16x16xbf16>, vector<16x32xbf16>, vector<16x32xf32> -> vector<16x32xf32>
    %220 = vector.extract_strided_slice %181 {offsets = [3, 0], sizes = [1, 32], strides = [1, 1]} : vector<6x32xf32> to vector<1x32xf32>
    %221 = vector.broadcast %220 : vector<1x32xf32> to vector<16x32xf32>
    %222 = arith.addf %219, %221 : vector<16x32xf32>
    %cst_77 = arith.constant 0.000000e+00 : f32
    %223 = vector.broadcast %cst_77 : f32 to vector<16x32xf32>
    %224 = arith.cmpf ogt, %222, %223 : vector<16x32xf32>
    %cst_78 = arith.constant 2.000000e-01 : f32
    %225 = vector.broadcast %cst_78 : f32 to vector<16x32xf32>
    %226 = arith.mulf %225, %222 : vector<16x32xf32>
    %227 = arith.select %224, %222, %226 : vector<16x32xi1>, vector<16x32xf32>
    %228 = vector.extract_strided_slice %181 {offsets = [4, 0], sizes = [1, 32], strides = [1, 1]} : vector<6x32xf32> to vector<1x32xf32>
    %229 = vector.broadcast %228 : vector<1x32xf32> to vector<16x32xf32>
    %230 = arith.mulf %227, %229 : vector<16x32xf32>
    %231 = vector.extract_strided_slice %181 {offsets = [5, 0], sizes = [1, 32], strides = [1, 1]} : vector<6x32xf32> to vector<1x32xf32>
    %232 = vector.broadcast %231 : vector<1x32xf32> to vector<16x32xf32>
    %233 = arith.addf %230, %232 : vector<16x32xf32>
    %c0_79 = arith.constant 0 : index
    %c0_80 = arith.constant 0 : index
    %c0_81 = arith.constant 0 : index
    %234 = vector.load %arg17[%c0_79, %c0_80, %c0_81] : memref<1x32x64xbf16, #tpu.memory_space<vmem>>, vector<1x32x64xbf16>
    %235 = vector.shape_cast %234 : vector<1x32x64xbf16> to vector<32x64xbf16>
    %236 = vector.extract_strided_slice %178 {offsets = [1, 0, 0], sizes = [1, 6, 32], strides = [1, 1, 1]} : vector<2x6x32xf32> to vector<1x6x32xf32>
    %237 = vector.shape_cast %236 : vector<1x6x32xf32> to vector<6x32xf32>
    %238 = arith.truncf %233 : vector<16x32xf32> to vector<16x32xbf16>
    %cst_82 = arith.constant dense<0.000000e+00> : vector<16x64xf32>
    %239 = tpu.matmul %238, %235, %cst_82 {dimension_numbers = #tpu.dot_dimension_numbers<[1], [0], [0], [1], [0, 0, 1, 1], [], []>} : vector<16x32xbf16>, vector<32x64xbf16>, vector<16x64xf32> -> vector<16x64xf32>
    %240 = vector.extract_strided_slice %239 {offsets = [0, 0], sizes = [16, 32], strides = [1, 1]} : vector<16x64xf32> to vector<16x32xf32>
    %241 = vector.extract_strided_slice %237 {offsets = [0, 0], sizes = [1, 32], strides = [1, 1]} : vector<6x32xf32> to vector<1x32xf32>
    %242 = vector.broadcast %241 : vector<1x32xf32> to vector<16x32xf32>
    %243 = arith.addf %240, %242 : vector<16x32xf32>
    %244 = vector.extract_strided_slice %239 {offsets = [0, 32], sizes = [16, 32], strides = [1, 1]} : vector<16x64xf32> to vector<16x32xf32>
    %245 = vector.extract_strided_slice %237 {offsets = [1, 0], sizes = [1, 32], strides = [1, 1]} : vector<6x32xf32> to vector<1x32xf32>
    %246 = vector.broadcast %245 : vector<1x32xf32> to vector<16x32xf32>
    %247 = arith.addf %244, %246 : vector<16x32xf32>
    %248 = vector.shape_cast %243 : vector<16x32xf32> to vector<16x1x32xf32>
    %249 = vector.shape_cast %247 : vector<16x32xf32> to vector<1x16x32xf32>
    %250 = vector.broadcast %248 : vector<16x1x32xf32> to vector<16x16x32xf32>
    %251 = vector.broadcast %249 : vector<1x16x32xf32> to vector<16x16x32xf32>
    %252 = arith.addf %250, %251 : vector<16x16x32xf32>
    %cst_83 = arith.constant 0.000000e+00 : f32
    %253 = vector.broadcast %cst_83 : f32 to vector<16x16x32xf32>
    %254 = arith.cmpf ogt, %252, %253 : vector<16x16x32xf32>
    %cst_84 = arith.constant 2.000000e-01 : f32
    %255 = vector.broadcast %cst_84 : f32 to vector<16x16x32xf32>
    %256 = arith.mulf %255, %252 : vector<16x16x32xf32>
    %257 = arith.select %254, %252, %256 : vector<16x16x32xi1>, vector<16x16x32xf32>
    %258 = vector.extract_strided_slice %237 {offsets = [2, 0], sizes = [1, 32], strides = [1, 1]} : vector<6x32xf32> to vector<1x32xf32>
    %259 = vector.shape_cast %258 : vector<1x32xf32> to vector<1x1x32xf32>
    %260 = vector.broadcast %259 : vector<1x1x32xf32> to vector<16x16x32xf32>
    %261 = arith.mulf %257, %260 : vector<16x16x32xf32>
    %cst_85 = arith.constant dense<0.000000e+00> : vector<16x16xf32>
    %262 = vector.multi_reduction <add>, %261, %cst_85 [2] : vector<16x16x32xf32> to vector<16x16xf32>
    %263 = arith.addf %262, %13 : vector<16x16xf32>
    %cst_86 = arith.constant dense<0xFF800000> : vector<16xf32>
    %264 = vector.multi_reduction <maximumf>, %263, %cst_86 [1] : vector<16x16xf32> to vector<16xf32>
    %265 = vector.shape_cast %264 : vector<16xf32> to vector<16x1xf32>
    %266 = vector.broadcast %265 : vector<16x1xf32> to vector<16x16xf32>
    %267 = arith.subf %263, %266 : vector<16x16xf32>
    %268 = math.exp %267 : vector<16x16xf32>
    %cst_87 = arith.constant dense<0.000000e+00> : vector<16xf32>
    %269 = vector.multi_reduction <add>, %268, %cst_87 [1] : vector<16x16xf32> to vector<16xf32>
    %270 = vector.shape_cast %269 : vector<16xf32> to vector<16x1xf32>
    %271 = tpu.reciprocal %270 {approx = true} : vector<16x1xf32> -> vector<16x1xf32>
    %272 = vector.broadcast %271 : vector<16x1xf32> to vector<16x16xf32>
    %273 = arith.mulf %268, %272 : vector<16x16xf32>
    %274 = arith.truncf %273 : vector<16x16xf32> to vector<16x16xbf16>
    %275 = arith.truncf %247 : vector<16x32xf32> to vector<16x32xbf16>
    %cst_88 = arith.constant dense<0.000000e+00> : vector<16x32xf32>
    %276 = tpu.matmul %274, %275, %cst_88 {dimension_numbers = #tpu.dot_dimension_numbers<[1], [0], [0], [1], [0, 0, 1, 1], [], []>} : vector<16x16xbf16>, vector<16x32xbf16>, vector<16x32xf32> -> vector<16x32xf32>
    %277 = vector.extract_strided_slice %237 {offsets = [3, 0], sizes = [1, 32], strides = [1, 1]} : vector<6x32xf32> to vector<1x32xf32>
    %278 = vector.broadcast %277 : vector<1x32xf32> to vector<16x32xf32>
    %279 = arith.addf %276, %278 : vector<16x32xf32>
    %cst_89 = arith.constant 0.000000e+00 : f32
    %280 = vector.broadcast %cst_89 : f32 to vector<16x32xf32>
    %281 = arith.cmpf ogt, %279, %280 : vector<16x32xf32>
    %cst_90 = arith.constant 2.000000e-01 : f32
    %282 = vector.broadcast %cst_90 : f32 to vector<16x32xf32>
    %283 = arith.mulf %282, %279 : vector<16x32xf32>
    %284 = arith.select %281, %279, %283 : vector<16x32xi1>, vector<16x32xf32>
    %285 = vector.extract_strided_slice %237 {offsets = [4, 0], sizes = [1, 32], strides = [1, 1]} : vector<6x32xf32> to vector<1x32xf32>
    %286 = vector.broadcast %285 : vector<1x32xf32> to vector<16x32xf32>
    %287 = arith.mulf %284, %286 : vector<16x32xf32>
    %288 = vector.extract_strided_slice %237 {offsets = [5, 0], sizes = [1, 32], strides = [1, 1]} : vector<6x32xf32> to vector<1x32xf32>
    %289 = vector.broadcast %288 : vector<1x32xf32> to vector<16x32xf32>
    %290 = arith.addf %287, %289 : vector<16x32xf32>
    %291 = vector.shape_cast %177 : vector<16x32xf32> to vector<1x16x32xf32>
    %292 = vector.shape_cast %9 : vector<2x16xf32> to vector<2x16x1xf32>
    %293 = vector.broadcast %291 : vector<1x16x32xf32> to vector<2x16x32xf32>
    %294 = vector.broadcast %292 : vector<2x16x1xf32> to vector<2x16x32xf32>
    %295 = arith.addf %293, %294 : vector<2x16x32xf32>
    %cst_91 = arith.constant dense<0xFF800000> : vector<2x32xf32>
    %296 = vector.multi_reduction <maximumf>, %295, %cst_91 [1] : vector<2x16x32xf32> to vector<2x32xf32>
    %297 = vector.shape_cast %290 : vector<16x32xf32> to vector<1x16x32xf32>
    %298 = vector.shape_cast %15 : vector<2x16xf32> to vector<2x16x1xf32>
    %299 = vector.broadcast %297 : vector<1x16x32xf32> to vector<2x16x32xf32>
    %300 = vector.broadcast %298 : vector<2x16x1xf32> to vector<2x16x32xf32>
    %301 = arith.addf %299, %300 : vector<2x16x32xf32>
    %cst_92 = arith.constant dense<0xFF800000> : vector<2x32xf32>
    %302 = vector.multi_reduction <maximumf>, %301, %cst_92 [1] : vector<2x16x32xf32> to vector<2x32xf32>
    %c0_93 = arith.constant 0 : index
    %c0_94 = arith.constant 0 : index
    %303 = vector.load %arg20[%c0_93, %c0_94] : memref<1x3xf32, #tpu.memory_space<vmem>>, vector<1x3xf32>
    %304 = arith.truncf %56 : vector<2x32xf32> to vector<2x32xbf16>
    %c0_95 = arith.constant 0 : index
    %c0_96 = arith.constant 0 : index
    %c0_97 = arith.constant 0 : index
    %305 = vector.load %arg19[%c0_95, %c0_96, %c0_97] : memref<3x32x3xbf16, #tpu.memory_space<vmem>>, vector<1x32x3xbf16>
    %306 = vector.shape_cast %305 : vector<1x32x3xbf16> to vector<32x3xbf16>
    %cst_98 = arith.constant dense<0.000000e+00> : vector<2x3xf32>
    %307 = tpu.matmul %304, %306, %cst_98 {dimension_numbers = #tpu.dot_dimension_numbers<[1], [0], [0], [1], [0, 0, 1, 1], [], []>} : vector<2x32xbf16>, vector<32x3xbf16>, vector<2x3xf32> -> vector<2x3xf32>
    %308 = arith.truncf %296 : vector<2x32xf32> to vector<2x32xbf16>
    %c1 = arith.constant 1 : index
    %c0_99 = arith.constant 0 : index
    %c0_100 = arith.constant 0 : index
    %309 = vector.load %arg19[%c1, %c0_99, %c0_100] : memref<3x32x3xbf16, #tpu.memory_space<vmem>>, vector<1x32x3xbf16>
    %310 = vector.shape_cast %309 : vector<1x32x3xbf16> to vector<32x3xbf16>
    %cst_101 = arith.constant dense<0.000000e+00> : vector<2x3xf32>
    %311 = tpu.matmul %308, %310, %cst_101 {dimension_numbers = #tpu.dot_dimension_numbers<[1], [0], [0], [1], [0, 0, 1, 1], [], []>} : vector<2x32xbf16>, vector<32x3xbf16>, vector<2x3xf32> -> vector<2x3xf32>
    %312 = arith.addf %307, %311 : vector<2x3xf32>
    %313 = arith.truncf %302 : vector<2x32xf32> to vector<2x32xbf16>
    %c2 = arith.constant 2 : index
    %c0_102 = arith.constant 0 : index
    %c0_103 = arith.constant 0 : index
    %314 = vector.load %arg19[%c2, %c0_102, %c0_103] : memref<3x32x3xbf16, #tpu.memory_space<vmem>>, vector<1x32x3xbf16>
    %315 = vector.shape_cast %314 : vector<1x32x3xbf16> to vector<32x3xbf16>
    %cst_104 = arith.constant dense<0.000000e+00> : vector<2x3xf32>
    %316 = tpu.matmul %313, %315, %cst_104 {dimension_numbers = #tpu.dot_dimension_numbers<[1], [0], [0], [1], [0, 0, 1, 1], [], []>} : vector<2x32xbf16>, vector<32x3xbf16>, vector<2x3xf32> -> vector<2x3xf32>
    %317 = arith.addf %312, %316 : vector<2x3xf32>
    %318 = vector.broadcast %303 : vector<1x3xf32> to vector<2x3xf32>
    %319 = arith.addf %317, %318 : vector<2x3xf32>
    %c0_105 = arith.constant 0 : index
    %c0_106 = arith.constant 0 : index
    %c0_107 = arith.constant 0 : index
    %320 = vector.load %arg21[%c0_105, %c0_106, %c0_107] : memref<1x2x3xf32, #tpu.memory_space<vmem>>, vector<1x2x3xf32>
    %321 = vector.shape_cast %320 : vector<1x2x3xf32> to vector<2x3xf32>
    %322 = vector.shape_cast %319 : vector<2x3xf32> to vector<1x2x3xf32>
    tpu.vector_store %arg21[%c0_105, %c0_106, %c0_107], %322 {strides = array<i32>} : memref<1x2x3xf32, #tpu.memory_space<vmem>>, vector<1x2x3xf32>,
    return
  }
  func.func @transform_0(%arg0: i32) -> (i32, i32, i32) {
    %c0_i32 = arith.constant 0 : i32
    %c0_i32_0 = arith.constant 0 : i32
    %c0_i32_1 = arith.constant 0 : i32
    return %arg0, %c0_i32, %c0_i32_0 : i32, i32, i32
  }
  func.func @transform_1(%arg0: i32) -> (i32, i32, i32) {
    %c0_i32 = arith.constant 0 : i32
    %c0_i32_0 = arith.constant 0 : i32
    %c0_i32_1 = arith.constant 0 : i32
    return %arg0, %c0_i32, %c0_i32_0 : i32, i32, i32
  }
  func.func @transform_2(%arg0: i32) -> (i32, i32, i32) {
    %c0_i32 = arith.constant 0 : i32
    %c0_i32_0 = arith.constant 0 : i32
    %c0_i32_1 = arith.constant 0 : i32
    return %arg0, %c0_i32, %c0_i32_0 : i32, i32, i32
  }
  func.func @transform_3(%arg0: i32) -> (i32, i32, i32) {
    %c0_i32 = arith.constant 0 : i32
    %c0_i32_0 = arith.constant 0 : i32
    %c0_i32_1 = arith.constant 0 : i32
    return %arg0, %c0_i32, %c0_i32_0 : i32, i32, i32
  }
  func.func @transform_4(%arg0: i32) -> (i32, i32, i32) {
    %c0_i32 = arith.constant 0 : i32
    %c0_i32_0 = arith.constant 0 : i32
    %c0_i32_1 = arith.constant 0 : i32
    return %arg0, %c0_i32, %c0_i32_0 : i32, i32, i32
  }
  func.func @transform_5(%arg0: i32) -> (i32, i32, i32) {
    %c0_i32 = arith.constant 0 : i32
    %c0_i32_0 = arith.constant 0 : i32
    %c0_i32_1 = arith.constant 0 : i32
    return %arg0, %c0_i32, %c0_i32_0 : i32, i32, i32
  }
  func.func @transform_6(%arg0: i32) -> (i32, i32, i32) {
    %c0_i32 = arith.constant 0 : i32
    %c0_i32_0 = arith.constant 0 : i32
    %c0_i32_1 = arith.constant 0 : i32
    return %arg0, %c0_i32, %c0_i32_0 : i32, i32, i32
  }
  func.func @transform_7(%arg0: i32) -> (i32, i32, i32) {
    %c0_i32 = arith.constant 0 : i32
    %c0_i32_0 = arith.constant 0 : i32
    %c0_i32_1 = arith.constant 0 : i32
    return %arg0, %c0_i32, %c0_i32_0 : i32, i32, i32
  }
  func.func @transform_8(%arg0: i32) -> (i32, i32) {
    %c0_i32 = arith.constant 0 : i32
    %c0_i32_0 = arith.constant 0 : i32
    %c0_i32_1 = arith.constant 0 : i32
    return %c0_i32, %c0_i32_0 : i32, i32
  }
  func.func @transform_9(%arg0: i32) -> (i32, i32, i32) {
    %c0_i32 = arith.constant 0 : i32
    %c0_i32_0 = arith.constant 0 : i32
    %c0_i32_1 = arith.constant 0 : i32
    %c0_i32_2 = arith.constant 0 : i32
    return %c0_i32, %c0_i32_0, %c0_i32_1 : i32, i32, i32
  }
  func.func @transform_10(%arg0: i32) -> (i32, i32, i32) {
    %c0_i32 = arith.constant 0 : i32
    %c0_i32_0 = arith.constant 0 : i32
    %c0_i32_1 = arith.constant 0 : i32
    %c0_i32_2 = arith.constant 0 : i32
    return %c0_i32, %c0_i32_0, %c0_i32_1 : i32, i32, i32
  }
  func.func @transform_11(%arg0: i32) -> (i32, i32) {
    %c0_i32 = arith.constant 0 : i32
    %c0_i32_0 = arith.constant 0 : i32
    %c0_i32_1 = arith.constant 0 : i32
    return %c0_i32, %c0_i32_0 : i32, i32
  }
  func.func @transform_12(%arg0: i32) -> (i32, i32, i32) {
    %c0_i32 = arith.constant 0 : i32
    %c0_i32_0 = arith.constant 0 : i32
    %c0_i32_1 = arith.constant 0 : i32
    %c0_i32_2 = arith.constant 0 : i32
    return %c0_i32, %c0_i32_0, %c0_i32_1 : i32, i32, i32
  }
  func.func @transform_13(%arg0: i32) -> (i32, i32) {
    %c0_i32 = arith.constant 0 : i32
    %c0_i32_0 = arith.constant 0 : i32
    %c0_i32_1 = arith.constant 0 : i32
    return %c0_i32, %c0_i32_0 : i32, i32
  }
  func.func @transform_14(%arg0: i32) -> (i32, i32, i32) {
    %c0_i32 = arith.constant 0 : i32
    %c0_i32_0 = arith.constant 0 : i32
    %c0_i32_1 = arith.constant 0 : i32
    %c0_i32_2 = arith.constant 0 : i32
    return %c0_i32, %c0_i32_0, %c0_i32_1 : i32, i32, i32
  }
  func.func @transform_15(%arg0: i32) -> (i32, i32) {
    %c0_i32 = arith.constant 0 : i32
    %c0_i32_0 = arith.constant 0 : i32
    %c0_i32_1 = arith.constant 0 : i32
    return %c0_i32, %c0_i32_0 : i32, i32
  }
  func.func @transform_16(%arg0: i32) -> (i32, i32, i32) {
    %c0_i32 = arith.constant 0 : i32
    %c0_i32_0 = arith.constant 0 : i32
    %c0_i32_1 = arith.constant 0 : i32
    %c0_i32_2 = arith.constant 0 : i32
    return %c0_i32, %c0_i32_0, %c0_i32_1 : i32, i32, i32
  }
  func.func @transform_17(%arg0: i32) -> (i32, i32, i32) {
    %c0_i32 = arith.constant 0 : i32
    %c0_i32_0 = arith.constant 0 : i32
    %c0_i32_1 = arith.constant 0 : i32
    %c0_i32_2 = arith.constant 0 : i32
    return %c0_i32, %c0_i32_0, %c0_i32_1 : i32, i32, i32
  }
  func.func @transform_18(%arg0: i32) -> (i32, i32, i32) {
    %c0_i32 = arith.constant 0 : i32
    %c0_i32_0 = arith.constant 0 : i32
    %c0_i32_1 = arith.constant 0 : i32
    %c0_i32_2 = arith.constant 0 : i32
    return %c0_i32, %c0_i32_0, %c0_i32_1 : i32, i32, i32
  }
  func.func @transform_19(%arg0: i32) -> (i32, i32) {
    %c0_i32 = arith.constant 0 : i32
    %c0_i32_0 = arith.constant 0 : i32
    %c0_i32_1 = arith.constant 0 : i32
    return %c0_i32, %c0_i32_0 : i32, i32
  }
  func.func @transform_20(%arg0: i32) -> (i32, i32, i32) {
    %c0_i32 = arith.constant 0 : i32
    %c0_i32_0 = arith.constant 0 : i32
    %c0_i32_1 = arith.constant 0 : i32
    return %arg0, %c0_i32, %c0_i32_0 : i32, i32, i32
  }
}

</mosaic_0001>

<bundles_post_ra>
// kernel: tpu_custom_call.1
= control target key start
LH: loop header
LB: loop body
LE: loop exit
PB: predicated region body
PF: predicated region fallthrough
CT: control target
= control target key end

     0   :  { %s14272_s0 = inlined_call_operand.vmem [shape: bf16[4,2,6], index: 0, kind: input, shape index: {}]   ;;  %s14273_s1 = inlined_call_operand.vmem [shape: bf16[4,16,5], index: 1, kind: input, shape index: {}]   ;;  %s14274_s2 = inlined_call_operand.vmem [shape: f32[4,16,16], index: 2, kind: input, shape index: {}]   ;;  %s14275_s3 = inlined_call_operand.vmem [shape: bf16[4,256,4], index: 3, kind: input, shape index: {}]   ;;  %s14276_s4 = inlined_call_operand.vmem [shape: f32[4,2,16], index: 4, kind: input, shape index: {}]   ;;  %s14277_s5 = inlined_call_operand.vmem [shape: bf16[4,16,7], index: 5, kind: input, shape index: {}]   ;;  %s14278_s6 = inlined_call_operand.vmem [shape: f32[4,16,16], index: 6, kind: input, shape index: {}]   ;;  %s14279_s7 = inlined_call_operand.vmem [shape: f32[4,2,16], index: 7, kind: input, shape index: {}]   ;;  %s14280_s8 = inlined_call_operand.vmem [shape: bf16[6,32], index: 8, kind: input, shape index: {}]   ;;  %s14281_s9 = inlined_call_operand.vmem [shape: bf16[1,32,32], index: 9, kind: input, shape index: {}]   ;;  %s14282_s10 = inlined_call_operand.vmem [shape: f32[2,3,32], index: 10, kind: input, shape index: {}]   ;;  %s14283_s11 = inlined_call_operand.vmem [shape: bf16[5,64], index: 11, kind: input, shape index: {}]   ;;  %s14284_s12 = inlined_call_operand.vmem [shape: bf16[1,32,64], index: 12, kind: input, shape index: {}]   ;;  %s14285_s13 = inlined_call_operand.vmem [shape: bf16[4,64], index: 13, kind: input, shape index: {}]   ;;  %s14286_s14 = inlined_call_operand.vmem [shape: f32[2,6,32], index: 14, kind: input, shape index: {}]   ;;  %s14287_s15 = inlined_call_operand.vmem [shape: bf16[7,64], index: 15, kind: input, shape index: {}]   ;;  %s14288_s16 = inlined_call_operand.vmem [shape: bf16[1,32,64], index: 16, kind: input, shape index: {}]   ;;  %s14289_s17 = inlined_call_operand.vmem [shape: f32[2,6,32], index: 17, kind: input, shape index: {}]   ;;  %s14290_s18 = inlined_call_operand.vmem [shape: bf16[3,32,3], index: 18, kind: input, shape index: {}]   ;;  %s14291_s19 = inlined_call_operand.vmem [shape: f32[1,3], index: 19, kind: input, shape index: {}]   ;;  %s14292_s20 = inlined_call_operand.vmem [shape: f32[4,2,3], index: 20, kind: output, shape index: {}]  }
   0x1   :  { %14536 = sst [smem:[#allocation92_spill]] %s14272_s0 }
   0x2   :  { %14537 = sst [smem:[#allocation93_spill]] %s14273_s1  ;;  %s10315_s1 = smov 0  }
   0x3   :  { %14538 = sst [smem:[#allocation94_spill]] %s14274_s2 }
   0x4   :  { %14539 = sst [smem:[#allocation95_spill]] %s14275_s3 }
   0x5   :  { %14540 = sst [smem:[#allocation96_spill]] %s14276_s4 }
   0x6 LB: > { %s9605_s22 = sadd.s32 4294967295, %s10201_s1   ;;  %p9609_p0 = scmp.ge.s32.totalorder %s10201_s1, 1  ;;  %s10201_s1 = sphi %s10315_s1, %s30_s1  }
   0x7   : > { %p628_p1 = scmp.lt.s32.totalorder %s10201_s1, 5 }
   0x9   : > { %p629_p2 = pnand %p9609_p0, %p628_p1 }
   0xb   : > { %632 = sbr.rel (%p629_p2) target bundleno = 6524 (0x197c), region = 100 }
  0x10   : > { %v802_v0 = vld [vmem:[%s14280_s8] sm:$0x7]  ;;  %vm811_vm0 = vcmask 1042432   ;;  %v14293_v1 = vmov 0.0   ;;  %v10204_v3 = vmov 65535   ;;  %p716_p3 = scmp.lt.s32.totalorder %s9605_s22, 3  ;;  %v14295_v8 = vlaneseq }
  0x11   : > { %9747 = vmatprep.subr.bf16.mxu0 %v14293_v1  ;;  %v813_v2 = vsel %vm811_vm0, %v802_v0, 0  ;;  %9753 = vmatprep.subr.bf16.mxu1 %v14293_v1  ;;  %v10331_v4 = vsel %vm811_vm0, 4294967295, %v10204_v3  ;;  %vm10205_vm1 = vmmov 0   ;;  %vm807_vm2 = vcmask 48128   ;;  %s14542_s3 = sld [smem:[#allocation92_spill]]  ;;  %v9889_v6 = vld [vmem:[%s14281_s9 + $0x8] sm:$0xff]  }
  0x12   : > { %9748 = vmatpush3.bf16.msra.mxu0 %v813_v2  ;;  %14541 = vst [vmem:[#allocation2_spill] sm:$0xff] %v10331_v4  ;;  %9749 = vmatprep.mubr.msk.bf16.mxu0 %vm10205_vm1, %v14293_v1  ;;  %s15032_s22 = smov (!%p716_p3, %s9605_s22), 3  ;;  %s14543_s29 = sld [smem:[#allocation95_spill]]  ;;  %v9890_v7 = vld [vmem:[%s14281_s9] sm:$0xff]   ;;  %v10366_v9 = vshrl.u32 %v14295_v8, 7  ;;  %vm1078_vm3 = vcmask 1041408  }
  0x13   : > { %9757 = vmatprep.mubr.msk.bf16.mxu1 %vm10205_vm1, %v14293_v1  ;;  %s9695_s27 = sshll.u32 %s15032_s22, 7  ;;  %9754 = vmatpush3.bf16.msra.mxu1 %v9889_v6  ;;  %s9693_s2 = sshll.u32 %s15032_s22, 3  ;;  %v948_v10 = vld [vmem:[%s14285_s13] sm:$0x3]  ;;  %vm1029_vm4 = vcmask 31744   ;;  %v1253_v59 = vsel %vm1078_vm3, 4294967295, %v10204_v3 }
  0x14   : > { %9755 = vmatprep.subr.bf16.mxu1 %v14293_v1  ;;  %14545 = vst [vmem:[#allocation3_spill] sm:$0xff] %v10366_v9  ;;  %v10373_v12 = vsub.s32 1, %v10366_v9  ;;  %9871 = vmatprep.subr.msk.bf16.mxu0 %vm1078_vm3, %v948_v10  ;;  %v1080_v13 = vsel %vm1078_vm3, %v948_v10, 0  ;;  %v10384_v16 = vld [vmem:[%s14286_s14] sm:$0x3f]  ;;  %s14547_s25 = sld [smem:[#allocation94_spill]]  ;;  %s12377_s23 = scalar_lea.vmem %s14277_s5, %s9693_s2 }
  0x15   : > { %v10395_v18 = vsub.s32 0, %v10366_v9  ;;  %v10419_v29 = vsub.s32 2, %v10366_v9  ;;  %v10429_v33 = vsub.s32 3, %v10366_v9  ;;  %v10440_v38 = vsub.s32 4, %v10366_v9  ;;  %v800_v53 = vld [vmem:[%s14282_s10] sm:$0x7] }
  0x16   : > { %14546 = vst [vmem:[#allocation4_spill] sm:$0xff] %v10373_v12  ;;  %v1308_v17 = vrot.slane %v10384_v16, %v10373_v12  ;;  %v10451_v43 = vsub.s32 5, %v10366_v9  ;;  %v10462_v48 = vsub.s32 6, %v10366_v9  ;;  %v861_v57 = vrot.slane %v800_v53, %v10373_v12  ;;  %v1243_v0 = vld [vmem:[%s14283_s11] sm:$0x7] }
  0x17   : > { %s718_s26 = scalar_lea.vmem %s14542_s3, %s15032_s22  ;;  %9756 = vmatpush3.bf16.msra.mxu1 %v9890_v7  ;;  %14548 = vst [vmem:[#allocation5_spill] sm:$0xff] %v10419_v29  ;;  %14549 = vst [vmem:[#allocation6_spill] sm:$0xff] %v10429_v33  ;;  %v806_v54 = vrot.slane %v800_v53, %v10395_v18  ;;  %v866_v61 = vrot.slane %v800_v53, %v10419_v29  ;;  %v1254_v2 = vsel %vm811_vm0, %v1253_v59, 0  ;;  %vm889_vm6 = vcmask 261120  }
  0x18   : > { %s10347_s30 = scalar_lea.vmem %s14543_s29, %s9695_s27  ;;  %v757_v5 = vld [vmem:[%s718_s26] sm:$0x1]  ;;  %9795 = vmatprep.subr.bf16.mxu1 %v14293_v1  ;;  %s14544_s26 = sld [smem:[#allocation93_spill]]  ;;  %14550 = vst [vmem:[#allocation7_spill] sm:$0xff] %v10440_v38  ;;  %14551 = vst [vmem:[#allocation8_spill] sm:$0xff] %v10451_v43  ;;  %v1256_v10 = vand.u32 %v1254_v2, %v1243_v0  ;;  %vm1249_vm7 = vcmask 39936  }
  0x19   : > { %9750 = vmatmul.mubr.msk.bf16.vlgmr.msra.gmra.mxu0 %vm807_vm2, %v757_v5  ;;  %v9892_v11 = vld [vmem:[%s10347_s30] sm:$0xff]   ;;  %v9893_v14 = vld [vmem:[%s10347_s30 + $0x8] sm:$0xff]   ;;  %s9694_s29 = sshll.u32 %s15032_s22, 4  ;;  %v9894_v15 = vld [vmem:[%s10347_s30 + $0x10] sm:$0xff]   ;;  %14552 = vst [vmem:[#allocation9_spill] sm:$0xff] %v10462_v48 }
  0x1a   : > { %9762 = vmatpush3.bf16.msra.mxu0 %v1080_v13  ;;  %9763 = vmatprep.mubr.msk.bf16.mxu0 %vm1029_vm4, %v9892_v11  ;;  %s728_s3 = scalar_lea.vmem %s14547_s25, %s9694_s29  ;;  %v9895_v21 = vld [vmem:[%s10347_s30 + $0x18] sm:$0xff]   ;;  %v9896_v23 = vld [vmem:[%s10347_s30 + $0x20] sm:$0xff]   ;;  %v9897_v26 = vld [vmem:[%s10347_s30 + $0x28] sm:$0xff]   ;;  %v10495_v13 = vsub.s32 7, %v10366_v9 }
  0x1b   : > { %9847 = vmatprep.subr.bf16.mxu0 %v14293_v1  ;;  %v10400_v19 = vld [vmem:[%s728_s3] sm:$0xff]  ;;  %v10408_v24 = vld [vmem:[%s728_s3 + $0x8] sm:$0xff]  ;;  %v9898_v28 = vld [vmem:[%s10347_s30 + $0x30] sm:$0xff]   ;;  %s747_s3 = scalar_lea.vmem %s14278_s6, %s9694_s29  ;;  %s15023_s29 = sld [smem:[#allocation96_spill]] }
  0x1c   : > { %v1800_v20 = vrot.slane %v10400_v19, %v10395_v18  ;;  %v1811_v22 = vrot.slane %v10400_v19, %v10373_v12  ;;  %v1888_v25 = vrot.slane %v10408_v24, %v10395_v18  ;;  %v1899_v27 = vrot.slane %v10408_v24, %v10373_v12  ;;  %v9899_v31 = vld [vmem:[%s10347_s30 + $0x38] sm:$0xff]   ;;  %v9900_v34 = vld [vmem:[%s10347_s30 + $0x40] sm:$0xff]   ;;  %v9901_v36 = vld [vmem:[%s10347_s30 + $0x48] sm:$0xff]   ;;  %14553 = vst [vmem:[#allocation10_spill] sm:$0xff] %v10495_v13 }
  0x1d   : > { %v1822_v30 = vrot.slane %v10400_v19, %v10419_v29  ;;  %v1910_v32 = vrot.slane %v10408_v24, %v10419_v29  ;;  %v1833_v35 = vrot.slane %v10400_v19, %v10429_v33  ;;  %v1921_v37 = vrot.slane %v10408_v24, %v10429_v33  ;;  %v9902_v39 = vld [vmem:[%s10347_s30 + $0x50] sm:$0xff]   ;;  %v9903_v41 = vld [vmem:[%s10347_s30 + $0x58] sm:$0xff]   ;;  %v9904_v44 = vld [vmem:[%s10347_s30 + $0x60] sm:$0xff]  }
  0x1e   : > { %s10363_s27 = scalar_lea.vmem %s14544_s26, %s9693_s2  ;;  %s10206_s26 = smov 32   ;;  %1806 = vbcast.lane.b32.xlu1 %v1800_v20, 264  ;;  %v1844_v40 = vrot.slane %v10400_v19, %v10440_v38  ;;  %v1932_v42 = vrot.slane %v10408_v24, %v10440_v38  ;;  %v1855_v45 = vrot.slane %v10400_v19, %v10451_v43  ;;  %v9905_v46 = vld [vmem:[%s10347_s30 + $0x68] sm:$0xff]   ;;  %v1943_v47 = vrot.slane %v10408_v24, %v10451_v43  ;;  %v9906_v49 = vld [vmem:[%s10347_s30 + $0x70] sm:$0xff]   ;;  %v9907_v51 = vld [vmem:[%s10347_s30 + $0x78] sm:$0xff]  }
  0x1f   : > { %1310 = vrot.lane.b32.xlu0 %v1308_v17, %s10206_s26  ;;  %v1866_v50 = vrot.slane %v10400_v19, %v10462_v48  ;;  %v1954_v52 = vrot.slane %v10408_v24, %v10462_v48  ;;  %v9891_v3 = vld [vmem:[%s10363_s27] sm:$0xff]   ;;  %s10207_s27 = smov 96  }
  0x21   : > { %9764 = vmatmul.mubr.msk.bf16.vlgmr.msra.gmra.mxu0 %vm1029_vm4, %v9893_v14  ;;  %v1877_v14 = vrot.slane %v10400_v19, %v10495_v13 }
  0x22   : > { %9767 = vmatprep.mubr.msk.bf16.mxu0 %vm1029_vm4, %v9894_v15  ;;  %1813 = vbcast.lane.b32.xlu1 %v1811_v22, 256  ;;  %v1965_v15 = vrot.slane %v10408_v24, %v10495_v13 }
  0x23   : > { %1802 = vbcast.lane.b32.xlu0 %v1800_v20, 256 }
  0x26   : > { %1890 = vbcast.lane.b32.xlu1 %v1888_v25, 256 }
  0x27   : > { %1817 = vbcast.lane.b32.xlu0 %v1811_v22, 264 }
  0x29   : > { %9768 = vmatmul.mubr.msk.bf16.gmra.mxu0 %vm1029_vm4, %v9895_v21 }
  0x2a   : > { %9771 = vmatprep.mubr.msk.bf16.mxu0 %vm1029_vm4, %v9896_v23  ;;  %1901 = vbcast.lane.b32.xlu1 %v1899_v27, 256 }
  0x2b   : > { %1894 = vbcast.lane.b32.xlu0 %v1888_v25, 264 }
  0x2e   : > { %1824 = vbcast.lane.b32.xlu1 %v1822_v30, 256 }
  0x2f   : > { %1905 = vbcast.lane.b32.xlu0 %v1899_v27, 264 }
  0x31   : > { %9772 = vmatmul.mubr.msk.bf16.gmra.mxu0 %vm1029_vm4, %v9897_v26 }
  0x32   : > { %9775 = vmatprep.mubr.msk.bf16.mxu0 %vm1029_vm4, %v9898_v28  ;;  %1912 = vbcast.lane.b32.xlu1 %v1910_v32, 256 }
  0x33   : > { %1828 = vbcast.lane.b32.xlu0 %v1822_v30, 264 }
  0x36   : > { %1835 = vbcast.lane.b32.xlu1 %v1833_v35, 256 }
  0x37   : > { %1916 = vbcast.lane.b32.xlu0 %v1910_v32, 264 }
  0x39   : > { %9776 = vmatmul.mubr.msk.bf16.gmra.mxu0 %vm1029_vm4, %v9899_v31 }
  0x3a   : > { %9779 = vmatprep.mubr.msk.bf16.mxu0 %vm1029_vm4, %v9900_v34  ;;  %1923 = vbcast.lane.b32.xlu1 %v1921_v37, 256 }
  0x3b   : > { %1839 = vbcast.lane.b32.xlu0 %v1833_v35, 264 }
  0x3e   : > { %1846 = vbcast.lane.b32.xlu1 %v1844_v40, 256 }
  0x3f   : > { %1927 = vbcast.lane.b32.xlu0 %v1921_v37, 264 }
  0x41   : > { %9780 = vmatmul.mubr.msk.bf16.gmra.mxu0 %vm1029_vm4, %v9901_v36 }
  0x42   : > { %9783 = vmatprep.mubr.msk.bf16.mxu0 %vm1029_vm4, %v9902_v39  ;;  %1934 = vbcast.lane.b32.xlu1 %v1932_v42, 256 }
  0x43   : > { %1850 = vbcast.lane.b32.xlu0 %v1844_v40, 264 }
  0x46   : > { %1857 = vbcast.lane.b32.xlu1 %v1855_v45, 256 }
  0x47   : > { %1938 = vbcast.lane.b32.xlu0 %v1932_v42, 264 }
  0x49   : > { %9784 = vmatmul.mubr.msk.bf16.gmra.mxu0 %vm1029_vm4, %v9903_v41 }
  0x4a   : > { %9787 = vmatprep.mubr.msk.bf16.mxu0 %vm1029_vm4, %v9904_v44  ;;  %1945 = vbcast.lane.b32.xlu1 %v1943_v47, 256 }
  0x4b   : > { %1861 = vbcast.lane.b32.xlu0 %v1855_v45, 264 }
  0x4e   : > { %1868 = vbcast.lane.b32.xlu1 %v1866_v50, 256 }
  0x4f   : > { %1949 = vbcast.lane.b32.xlu0 %v1943_v47, 264 }
  0x51   : > { %9788 = vmatmul.mubr.msk.bf16.gmra.mxu0 %vm1029_vm4, %v9905_v46 }
  0x52   : > { %9791 = vmatprep.mubr.msk.bf16.mxu0 %vm1029_vm4, %v9906_v49  ;;  %1956 = vbcast.lane.b32.xlu1 %v1954_v52, 256 }
  0x53   : > { %1872 = vbcast.lane.b32.xlu0 %v1866_v50, 264 }
  0x56   : > { %1879 = vbcast.lane.b32.xlu1 %v1877_v14, 256 }
  0x57   : > { %1960 = vbcast.lane.b32.xlu0 %v1954_v52, 264 }
  0x59   : > { %9792 = vmatmul.mubr.msk.bf16.gmra.mxu0 %vm1029_vm4, %v9907_v51 }
  0x5a   : > { %9851 = vmatprep.mubr.msk.bf16.mxu0 %vm10205_vm1, %v14293_v1  ;;  %1967 = vbcast.lane.b32.xlu1 %v1965_v15, 256 }
  0x5b   : > { %1883 = vbcast.lane.b32.xlu0 %v1877_v14, 264 }
  0x5f   : > { %1971 = vbcast.lane.b32.xlu0 %v1965_v15, 264 }
  0x90   : > { %v10515_v32 = vpop.permute.xlu1 %1806 }
  0x91   : > { %v1311_v23 = vpop.permute.xlu0 %1310  ;;  %14558 = vst [vmem:[#allocation15_spill] sm:$0xff] %v10515_v32 }
  0x94   : > { %v10519_v35 = vpop.permute.xlu1 %1813 }
  0x95   : > { %v10513_v31 = vpop.permute.xlu0 %1802  ;;  %14560 = vst [vmem:[#allocation17_spill] sm:$0xff] %v10519_v35 }
  0x96   : > { %14557 = vst [vmem:[#allocation14_spill] sm:$0xff] %v10513_v31 }
  0x98   : > { %v10523_v37 = vpop.permute.xlu1 %1890 }
  0x99   : > { %v10517_v34 = vpop.permute.xlu0 %1817  ;;  %14562 = vst [vmem:[#allocation19_spill] sm:$0xff] %v10523_v37 }
  0x9a   : > { %14559 = vst [vmem:[#allocation16_spill] sm:$0xff] %v10517_v34 }
  0x9c   : > { %v10531_v42 = vpop.permute.xlu1 %1901 }
  0x9d   : > { %v10521_v36 = vpop.permute.xlu0 %1894  ;;  %14566 = vst [vmem:[#allocation23_spill] sm:$0xff] %v10531_v42 }
  0x9e   : > { %14561 = vst [vmem:[#allocation18_spill] sm:$0xff] %v10521_v36 }
  0xa0   : > { %v10537_v46 = vpop.permute.xlu1 %1824 }
  0xa1   : > { %v10525_v39 = vpop.permute.xlu0 %1905  ;;  %14569 = vst [vmem:[#allocation26_spill] sm:$0xff] %v10537_v46 }
  0xa2   : > { %14563 = vst [vmem:[#allocation20_spill] sm:$0xff] %v10525_v39 }
  0xa4   : > { %v10545_v51 = vpop.permute.xlu1 %1912 }
  0xa5   : > { %v10533_v44 = vpop.permute.xlu0 %1828  ;;  %14573 = vst [vmem:[#allocation30_spill] sm:$0xff] %v10545_v51 }
  0xa6   : > { %14567 = vst [vmem:[#allocation24_spill] sm:$0xff] %v10533_v44 }
  0xa9   : > { %v10539_v47 = vpop.permute.xlu0 %1916 }
  0xaa   : > { %14570 = vst [vmem:[#allocation27_spill] sm:$0xff] %v10539_v47 }
  0xad   : > { %v10547_v52 = vpop.permute.xlu0 %1839 }
  0xae   : > { %14574 = vst [vmem:[#allocation31_spill] sm:$0xff] %v10547_v52 }
  0xd9   : > { %v849_v55 = vpop.f32.mrf.mxu0 }
  0xda   : > { %v850_v56 = vadd.f32 %v849_v55, %v806_v54  ;;  %v10551_v54 = vpop.permute.xlu1 %1835  ;;  %v10553_v55 = vpop.permute.xlu0 %1927 }
  0xdb   : > { %v9751_v58 = vpop.f32.mrf.mxu0  ;;  %14576 = vst [vmem:[#allocation33_spill] sm:$0xff] %v10551_v54  ;;  %14577 = vst [vmem:[#allocation34_spill] sm:$0xff] %v10553_v55 }
  0xdc   : > { %vm855_vm5 = vcmp.gt.f32.partialorder %v850_v56, 0.0  ;;  %v856_v60 = vmul.f32 0.2, %v850_v56 }
  0xdd   : > { %v852_v62 = vpop.f32.mrf.mxu0 }
  0xde   : > { %v857_v63 = vsel %vm855_vm5, %v850_v56, %v856_v60  ;;  %v10559_v58 = vpop.permute.xlu1 %1923  ;;  %v10561_v59 = vpop.permute.xlu0 %1850 }
  0xdf   : > { %v862_v5 = vmul.f32 %v861_v57, %v857_v63  ;;  %v9752_v6 = vpop.f32.mrf.mxu0  ;;  %14580 = vst [vmem:[#allocation37_spill] sm:$0xff] %v10559_v58  ;;  %14581 = vst [vmem:[#allocation38_spill] sm:$0xff] %v10561_v59 }
  0xe1   : > { %v867_v7 = vadd.f32 %v866_v61, %v862_v5  ;;  %v10527_v40 = vpop.f32.mrf.mxu0 }
  0xe2   : > { %14564 = vst [vmem:[#allocation21_spill] sm:$0xff] %v10527_v40  ;;  %v10565_v61 = vpop.permute.xlu1 %1846  ;;  %v10567_v62 = vpop.permute.xlu0 %1938 }
  0xe3   : > { %v872_v11 = vpack.c.bf16 %v867_v7, %v867_v7  ;;  %v10529_v41 = vpop.f32.mrf.mxu0  ;;  %14583 = vst [vmem:[#allocation40_spill] sm:$0xff] %v10565_v61  ;;  %14584 = vst [vmem:[#allocation41_spill] sm:$0xff] %v10567_v62 }
  0xe4   : > { %14565 = vst [vmem:[#allocation22_spill] sm:$0xff] %v10529_v41 }
  0xe5   : > { %9758 = vmatmul.mubr.msk.bf16.vlgmr.msra.gmra.mxu1 %vm889_vm6, %v872_v11  ;;  %v10535_v45 = vpop.f32.mrf.mxu0 }
  0xe6   : > { %9796 = vmatpush3.bf16.msra.mxu1 %v1256_v10  ;;  %9797 = vmatprep.mubr.msk.bf16.mxu1 %vm10205_vm1, %v14293_v1  ;;  %14568 = vst [vmem:[#allocation25_spill] sm:$0xff] %v10535_v45  ;;  %v10573_v2 = vpop.permute.xlu1 %1934  ;;  %v10575_v5 = vpop.permute.xlu0 %1861 }
  0xe7   : > { %9801 = vmatprep.subr.bf16.mxu1 %v14293_v1  ;;  %v10541_v49 = vpop.f32.mrf.mxu0  ;;  %14587 = vst [vmem:[#allocation44_spill] sm:$0xff] %v10573_v2  ;;  %14588 = vst [vmem:[#allocation45_spill] sm:$0xff] %v10575_v5 }
  0xe8   : > { %14571 = vst [vmem:[#allocation28_spill] sm:$0xff] %v10541_v49 }
  0xe9   : > { %v10543_v50 = vpop.f32.mrf.mxu0 }
  0xea   : > { %14572 = vst [vmem:[#allocation29_spill] sm:$0xff] %v10543_v50  ;;  %v10579_v7 = vpop.permute.xlu1 %1857  ;;  %v10581_v10 = vpop.permute.xlu0 %1949 }
  0xeb   : > { %v10549_v53 = vpop.f32.mrf.mxu0  ;;  %14590 = vst [vmem:[#allocation47_spill] sm:$0xff] %v10579_v7  ;;  %14591 = vst [vmem:[#allocation48_spill] sm:$0xff] %v10581_v10 }
  0xec   : > { %14575 = vst [vmem:[#allocation32_spill] sm:$0xff] %v10549_v53 }
  0xed   : > { %9798 = vmatmul.mubr.msk.bf16.vlgmr.msra.gmra.mxu1 %vm1249_vm7, %v9891_v3  ;;  %v10555_v56 = vpop.f32.mrf.mxu0  ;;  %v10208_v3 = vmov 1966171168  }
  0xee   : > { %9803 = vmatprep.mubr.msk.bf16.mxu1 %vm10205_vm1, %v14293_v1  ;;  %14578 = vst [vmem:[#allocation35_spill] sm:$0xff] %v10555_v56  ;;  %v1319_v14 = vunpack.c.l.s4 %v10208_v3 }
  0xef   : > { %v10557_v57 = vpop.f32.mrf.mxu0 }
  0xf0   : > { %14579 = vst [vmem:[#allocation36_spill] sm:$0xff] %v10557_v57 }
  0xf1   : > { %v10563_v60 = vpop.f32.mrf.mxu0 }
  0xf2   : > { %14582 = vst [vmem:[#allocation39_spill] sm:$0xff] %v10563_v60 }
  0xf3   : > { %v10569_v63 = vpop.f32.mrf.mxu0 }
  0xf4   : > { %14585 = vst [vmem:[#allocation42_spill] sm:$0xff] %v10569_v63 }
  0xf5   : > { %v10571_v0 = vpop.f32.mrf.mxu0 }
  0xf6   : > { %14586 = vst [vmem:[#allocation43_spill] sm:$0xff] %v10571_v0 }
  0xf7   : > { %v10577_v6 = vpop.f32.mrf.mxu0 }
  0xf8   : > { %14589 = vst [vmem:[#allocation46_spill] sm:$0xff] %v10577_v6 }
  0xf9   : > { %v10583_v11 = vpop.f32.mrf.mxu0 }
  0xfa   : > { %14592 = vst [vmem:[#allocation49_spill] sm:$0xff] %v10583_v11 }
  0xfb   : > { %v10585_v15 = vpop.f32.mrf.mxu0 }
  0xfc   : > { %14593 = vst [vmem:[#allocation50_spill] sm:$0xff] %v10585_v15 }
 0x1a5   : > { %v10501_v17 = vpop.f32.mrf.mxu1 }
 0x1a6   : > { %14554 = vst [vmem:[#allocation11_spill] sm:$0xff] %v10501_v17 }
 0x1a7   : > { %v9759_v20 = vpop.f32.mrf.mxu1 }
 0x1a8   : > { %v10587_v20 = vpop.permute.xlu1 %1945 }
 0x1a9   : > { %v930_v21 = vpop.f32.mrf.mxu1  ;;  %14594 = vst [vmem:[#allocation51_spill] sm:$0xff] %v10587_v20 }
 0x1aa   : > { %v10589_v21 = vpop.permute.xlu0 %1872 }
 0x1ab   : > { %v9760_v22 = vpop.f32.mrf.mxu1  ;;  %14595 = vst [vmem:[#allocation52_spill] sm:$0xff] %v10589_v21 }
 0x1ac   : > { %v1320_v22 = vunpack.c.0.s8 %v1319_v14 }
 0x1ad   : > { %v1292_v25 = vpop.f32.mrf.mxu1 }
 0x1ae   : > { %v10503_v26 = vadd.f32 %v1311_v23, %v1292_v25  ;;  %v10597_v1 = vpop.permute.xlu0 %1960  ;;  %v10600_v30 = vsub.s32 %v1320_v22, %v10366_v9 }
 0x1af   : > { %v9799_v27 = vpop.f32.mrf.mxu1  ;;  %14598 = vst [vmem:[#allocation55_spill] sm:$0xff] %v10597_v1 }
 0x1b0   : > { %14555 = vst [vmem:[#allocation12_spill] sm:$0xff] %v10503_v26  ;;  %1497 = vrot.lane.b32.xlu0 %v10503_v26, %s10207_s27  ;;  %v10593_v27 = vpop.f32.mrf.mxu0  ;;  %14599 = vst [vmem:[#allocation56_spill] sm:$0xff] %v10600_v30 }
 0x1b1   : > { %v1295_v19 = vpop.f32.mrf.mxu1  ;;  %14596 = vst [vmem:[#allocation53_spill] sm:$0xff] %v10593_v27 }
 0x1b2   : > { %v10507_v28 = vadd.f32 %v1311_v23, %v1295_v19  ;;  %v1302_v23 = vrot.slane %v10384_v16, %v10395_v18  ;;  %v10602_v8 = vpop.f32.mrf.mxu0  ;;  %v10610_v48 = vpop.permute.xlu0 %1883 }
 0x1b3   : > { %v9800_v24 = vpop.f32.mrf.mxu1  ;;  %14600 = vst [vmem:[#allocation57_spill] sm:$0xff] %v10602_v8  ;;  %14603 = vst [vmem:[#allocation60_spill] sm:$0xff] %v10610_v48 }
 0x1b4   : > { %14556 = vst [vmem:[#allocation13_spill] sm:$0xff] %v10507_v28  ;;  %1499 = vrot.lane.b32.xlu1 %v10507_v28, %s10207_s27  ;;  %v10595_v24 = vpop.permute.xlu1 %1868  ;;  %v1303_v3 = vadd.f32 %v1302_v23, %v1292_v25  ;;  %v1304_v17 = vadd.f32 %v1302_v23, %v1295_v19  ;;  %v10605_v14 = vpop.f32.mrf.mxu0 }
 0x1b5   : > { %14597 = vst [vmem:[#allocation54_spill] sm:$0xff] %v10595_v24  ;;  %14601 = vst [vmem:[#allocation58_spill] sm:$0xff] %v10605_v14 }
 0x1b6   : > { %v1317_v4 = vcombine.high %v1303_v3, %v1303_v3  ;;  %v1324_v26 = vrot.slane %v1303_v3, %v10600_v30  ;;  %v1373_v13 = vrot.slane %v1304_v17, %v10600_v30  ;;  %v10613_v22 = vpop.f32.mrf.mxu0  ;;  %v10618_v23 = vpop.permute.xlu0 %1971  ;;  %v1366_v21 = vcombine.high %v1304_v17, %v1304_v17 }
 0x1b7   : > { %14604 = vst [vmem:[#allocation61_spill] sm:$0xff] %v10613_v22  ;;  %14606 = vst [vmem:[#allocation63_spill] sm:$0xff] %v10618_v23 }
 0x1b8   : > { %v10607_v28 = vpop.permute.xlu1 %1956  ;;  %v1331_v43 = vrot.slane %v1317_v4, %v10600_v30  ;;  %v1332_v38 = vcombine.high %v1324_v26, %v1324_v26  ;;  %v1381_v25 = vcombine.high %v1373_v13, %v1373_v13  ;;  %v1340_v19 = vrot.slane %v1324_v26, %v10600_v30  ;;  %v10621_v9 = vpop.f32.mrf.mxu0 }
 0x1b9   : > { %14602 = vst [vmem:[#allocation59_spill] sm:$0xff] %v10607_v28  ;;  %14607 = vst [vmem:[#allocation64_spill] sm:$0xff] %v10621_v9  ;;  %v1389_v32 = vrot.slane %v1373_v13, %v10600_v30  ;;  %v10643_v13 = vrot.slane %v10384_v16, %v10419_v29  ;;  %v1380_v29 = vrot.slane %v1366_v21, %v10600_v30 }
 0x1ba   : > { %v1333_v3 = vcombine.high %v1331_v43, %v1331_v43  ;;  %v1354_v12 = vrot.slane %v1332_v38, %v10600_v30  ;;  %v10625_v48 = vrot.slane %v1381_v25, %v10600_v30  ;;  %v10628_v4 = vrot.slane %v1331_v43, %v10600_v30  ;;  %v10637_v23 = vpop.f32.mrf.mxu0 }
 0x1bb   : > { %v1362_v1 = vcombine.high %v1340_v19, %v1340_v19  ;;  %v10634_v26 = vrot.slane %v1340_v19, %v10395_v18  ;;  %14608 = vst [vmem:[#allocation65_spill] sm:$0xff] %v10637_v23  ;;  %v1411_v43 = vcombine.high %v1389_v32, %v1389_v32  ;;  %v1450_v25 = vrot.slane %v1389_v32, %v10395_v18 }
 0x1bc   : > { %v10615_v33 = vpop.permute.xlu1 %1879  ;;  %v1422_v38 = vrot.slane %v1354_v12, %v10395_v18  ;;  %v1454_v17 = vrot.slane %v10625_v48, %v10395_v18  ;;  %v1364_v10 = vcombine.high %v1354_v12, %v1354_v12  ;;  %v10663_v19 = vrot.slane %v10628_v4, %v10395_v18  ;;  %v10665_v12 = vpop.f32.mrf.mxu0 }
 0x1bd   : > { %14605 = vst [vmem:[#allocation62_spill] sm:$0xff] %v10615_v33  ;;  %v10631_v33 = vrot.slane %v1333_v3, %v10600_v30  ;;  %v1426_v16 = vrot.slane %v1362_v1, %v10395_v18  ;;  %14610 = vst [vmem:[#allocation67_spill] sm:$0xff] %v10665_v12  ;;  %v10670_v1 = vrot.slane %v1411_v43, %v10395_v18 }
 0x1be   : > { %v10676_v20 = vrot.slane %v1364_v10, %v10395_v18 }
 0x1bf   : > { %v10680_v55 = vrot.slane %v10631_v33, %v10395_v18 }
 0x1c0   : > { %v10639_v28 = vpop.permute.xlu1 %1967 }
 0x1c1   : > { %14609 = vst [vmem:[#allocation66_spill] sm:$0xff] %v10639_v28 }
 0x222   : > { %v10648_v3 = vpop.permute.xlu0 %1497 }
 0x223   : > { %v1505_v24 = vadd.f32 %v10648_v3, %v1422_v38  ;;  %v1503_v28 = vadd.f32 %v10648_v3, %v10634_v26  ;;  %v1519_v32 = vadd.f32 %v10648_v3, %v1450_v25  ;;  %v1521_v5 = vadd.f32 %v10648_v3, %v1454_v17 }
 0x224   : > { %v1507_v2 = vadd.f32 %v10648_v3, %v1426_v16 }
 0x225   : > { %v1537_v62 = vadd.f32 %v10527_v40, %v1505_v24  ;;  %v1535_v7 = vadd.f32 %v1503_v28, %v10529_v41  ;;  %v1551_v21 = vadd.f32 %v1519_v32, %v10613_v22  ;;  %v1553_v59 = vadd.f32 %v10605_v14, %v1521_v5  ;;  %v10689_v14 = vpop.f32.mrf.mxu0 }
 0x226   : > { %v10682_v61 = vpop.permute.xlu1 %1499  ;;  %v1382_v28 = vcombine.high %v1380_v29, %v1380_v29  ;;  %v1523_v32 = vadd.f32 %v10648_v3, %v10670_v1  ;;  %v10687_v5 = vrot.slane %v1380_v29, %v10600_v30  ;;  %14611 = vst [vmem:[#allocation68_spill] sm:$0xff] %v10689_v14  ;;  %v1539_v52 = vadd.f32 %v1507_v2, %v10549_v53 }
 0x227   : > { %vm1569_vm8 = vcmp.gt.f32.partialorder %v1537_v62, 0.0  ;;  %vm1567_vm9 = vcmp.gt.f32.partialorder %v1535_v7, 0.0  ;;  %v1601_v24 = vmul.f32 0.2, %v1537_v62  ;;  %v1599_v43 = vmul.f32 0.2, %v1535_v7 }
 0x228   : > { %v1506_v10 = vadd.f32 %v10682_v61, %v1422_v38  ;;  %vm1583_vm10 = vcmp.gt.f32.partialorder %v1551_v21, 0.0  ;;  %v1615_v22 = vmul.f32 0.2, %v1551_v21  ;;  %vm1585_vm11 = vcmp.gt.f32.partialorder %v1553_v59, 0.0 }
 0x229   : > { %v1633_v40 = vsel %vm1569_vm8, %v1537_v62, %v1601_v24  ;;  %v1631_v41 = vsel %vm1567_vm9, %v1535_v7, %v1599_v43  ;;  %v1413_v29 = vcombine.high %v10625_v48, %v10625_v48  ;;  %v1617_v38 = vmul.f32 0.2, %v1553_v59  ;;  %v10700_v62 = vpop.f32.mrf.mxu0 }
 0x22a   : > { %v1669_v58 = vmul.f32 %v10643_v13, %v1633_v40  ;;  %v1667_v47 = vmul.f32 %v10643_v13, %v1631_v41  ;;  %v1538_v54 = vadd.f32 %v10535_v45, %v1506_v10  ;;  %v1647_v44 = vsel %vm1583_vm10, %v1551_v21, %v1615_v22  ;;  %14612 = vst [vmem:[#allocation69_spill] sm:$0xff] %v10700_v62 }
 0x22b   : > { %v1683_v51 = vmul.f32 %v10643_v13, %v1647_v44  ;;  %v1555_v39 = vadd.f32 %v1523_v32, %v10689_v14  ;;  %v10705_v41 = vrot.slane %v1382_v28, %v10600_v30  ;;  %v1649_v48 = vsel %vm1585_vm11, %v1553_v59, %v1617_v38  ;;  %v10715_v10 = vpop.f32.mrf.mxu0 }
 0x22c   : > { %v1705_v7 = vsel %vm889_vm6, %v1669_v58, 0.0  ;;  %v1699_v2 = vsel %vm889_vm6, %v1667_v47, 0.0  ;;  %vm1570_vm12 = vcmp.gt.f32.partialorder %v1538_v54, 0.0  ;;  %v1602_v40 = vmul.f32 0.2, %v1538_v54  ;;  %14613 = vst [vmem:[#allocation70_spill] sm:$0xff] %v10715_v10 }
 0x22d   : > { %1706 = vadd.xlane.f32.xlu0 %v1705_v7  ;;  %1700 = vadd.xlane.f32.xlu1 %v1699_v2  ;;  %v1520_v44 = vadd.f32 %v10682_v61, %v1450_v25  ;;  %vm1571_vm13 = vcmp.gt.f32.partialorder %v1539_v52, 0.0  ;;  %v1685_v21 = vmul.f32 %v10643_v13, %v1649_v48  ;;  %v1603_v24 = vmul.f32 0.2, %v1539_v52 }
 0x22e   : > { %v1634_v22 = vsel %vm1570_vm12, %v1538_v54, %v1602_v40  ;;  %v1522_v58 = vadd.f32 %v10682_v61, %v1454_v17  ;;  %v1747_v43 = vsel %vm889_vm6, %v1683_v51, 0.0  ;;  %v1508_v32 = vadd.f32 %v10682_v61, %v1426_v16 }
 0x22f   : > { %v1670_v47 = vmul.f32 %v10643_v13, %v1634_v22  ;;  %v1552_v28 = vadd.f32 %v1520_v44, %v10637_v23  ;;  %v1635_v59 = vsel %vm1571_vm13, %v1539_v52, %v1603_v24  ;;  %vm1587_vm14 = vcmp.gt.f32.partialorder %v1555_v39, 0.0 }
 0x230   : > { %v1554_v25 = vadd.f32 %v10621_v9, %v1522_v58  ;;  %v1619_v54 = vmul.f32 0.2, %v1555_v39  ;;  %v1462_v38 = vrot.slane %v1413_v29, %v10395_v18  ;;  %v1753_v51 = vsel %vm889_vm6, %v1685_v21, 0.0  ;;  %v10725_v29 = vpop.f32.mrf.mxu0  ;;  %v14657_v9 = vld [vmem:[#allocation3_spill] sm:$0xff] }
 0x231   : > { %v1708_v7 = vsel %vm889_vm6, %v1670_v47, 0.0  ;;  %1748 = vadd.xlane.f32.xlu0 %v1747_v43  ;;  %vm1584_vm15 = vcmp.gt.f32.partialorder %v1552_v28, 0.0  ;;  %v1616_v17 = vmul.f32 0.2, %v1552_v28  ;;  %v1540_v16 = vadd.f32 %v1508_v32, %v10557_v57  ;;  %14614 = vst [vmem:[#allocation71_spill] sm:$0xff] %v10725_v29 }
 0x232   : > { %1709 = vadd.xlane.f32.xlu1 %v1708_v7  ;;  %vm1586_vm0 = vcmp.gt.f32.partialorder %v1554_v25, 0.0  ;;  %v1618_v2 = vmul.f32 0.2, %v1554_v25  ;;  %v1671_v52 = vmul.f32 %v10643_v13, %v1635_v59  ;;  %v1651_v48 = vsel %vm1587_vm14, %v1555_v39, %v1619_v54 }
 0x233   : > { %v1648_v40 = vsel %vm1584_vm15, %v1552_v28, %v1616_v17  ;;  %v1509_v44 = vadd.f32 %v10648_v3, %v10676_v20  ;;  %vm1572_vm2 = vcmp.gt.f32.partialorder %v1540_v16, 0.0  ;;  %v1604_v58 = vmul.f32 0.2, %v1540_v16 }
 0x234   : > { %v1684_v22 = vmul.f32 %v10643_v13, %v1648_v40  ;;  %v1650_v24 = vsel %vm1586_vm0, %v1554_v25, %v1618_v2  ;;  %v1412_v21 = vcombine.high %v10687_v5, %v10687_v5  ;;  %v1524_v39 = vadd.f32 %v10682_v61, %v10670_v1 }
 0x235   : > { %1754 = vadd.xlane.f32.xlu0 %v1753_v51  ;;  %v1686_v47 = vmul.f32 %v10643_v13, %v1650_v24  ;;  %v1541_v43 = vadd.f32 %v10543_v50, %v1509_v44  ;;  %v1636_v32 = vsel %vm1572_vm2, %v1540_v16, %v1604_v58  ;;  %v1525_v59 = vadd.f32 %v10648_v3, %v1462_v38  ;;  %v10740_v51 = vpop.f32.mrf.mxu0 }
 0x236   : > { %v1750_v28 = vsel %vm889_vm6, %v1684_v22, 0.0  ;;  %v1510_v25 = vadd.f32 %v10682_v61, %v10676_v20  ;;  %v1711_v54 = vsel %vm889_vm6, %v1671_v52, 0.0  ;;  %v1687_v7 = vmul.f32 %v10643_v13, %v1651_v48  ;;  %14615 = vst [vmem:[#allocation72_spill] sm:$0xff] %v10740_v51 }
 0x237   : > { %1751 = vadd.xlane.f32.xlu1 %v1750_v28  ;;  %vm1573_vm3 = vcmp.gt.f32.partialorder %v1541_v43, 0.0  ;;  %v1605_v17 = vmul.f32 0.2, %v1541_v43  ;;  %v1556_v2 = vadd.f32 %v1524_v39, %v10715_v10  ;;  %v1557_v1 = vadd.f32 %v10665_v12, %v1525_v59  ;;  %v10753_v59 = vpop.f32.mrf.mxu0 }
 0x238   : > { %v1542_v16 = vadd.f32 %v10555_v56, %v1510_v25  ;;  %v1511_v40 = vadd.f32 %v10648_v3, %v10663_v19  ;;  %v1756_v20 = vsel %vm889_vm6, %v1686_v47, 0.0  ;;  %v1672_v52 = vmul.f32 %v10643_v13, %v1636_v32  ;;  %14616 = vst [vmem:[#allocation73_spill] sm:$0xff] %v10753_v59 }
 0x239   : > { %1712 = vadd.xlane.f32.xlu0 %v1711_v54  ;;  %v1637_v44 = vsel %vm1573_vm3, %v1541_v43, %v1605_v17  ;;  %v1526_v48 = vadd.f32 %v10682_v61, %v1462_v38  ;;  %vm1588_vm4 = vcmp.gt.f32.partialorder %v1556_v2, 0.0  ;;  %v1620_v22 = vmul.f32 0.2, %v1556_v2 }
 0x23a   : > { %vm1589_vm5 = vcmp.gt.f32.partialorder %v1557_v1, 0.0  ;;  %v1512_v24 = vadd.f32 %v10682_v61, %v10663_v19  ;;  %v1621_v58 = vmul.f32 0.2, %v1557_v1  ;;  %vm1574_vm7 = vcmp.gt.f32.partialorder %v1542_v16, 0.0 }
 0x23b   : > { %1757 = vadd.xlane.f32.xlu1 %v1756_v20  ;;  %v1606_v39 = vmul.f32 0.2, %v1542_v16  ;;  %v1543_v28 = vadd.f32 %v1511_v40, %v10569_v63  ;;  %v1759_v47 = vsel %vm889_vm6, %v1687_v7, 0.0  ;;  %v1673_v43 = vmul.f32 %v10643_v13, %v1637_v44 }
 0x23c   : > { %v1652_v32 = vsel %vm1588_vm4, %v1556_v2, %v1620_v22  ;;  %v1558_v38 = vadd.f32 %v10700_v62, %v1526_v48  ;;  %v1466_v25 = vrot.slane %v10687_v5, %v10395_v18  ;;  %v1714_v19 = vsel %vm889_vm6, %v1672_v52, 0.0 }
 0x23d   : > { %1760 = vadd.xlane.f32.xlu0 %v1759_v47  ;;  %v1688_v54 = vmul.f32 %v10643_v13, %v1652_v32  ;;  %v1653_v17 = vsel %vm1589_vm5, %v1557_v1, %v1621_v58  ;;  %v1638_v40 = vsel %vm1574_vm7, %v1542_v16, %v1606_v39  ;;  %vm1575_vm8 = vcmp.gt.f32.partialorder %v1543_v28, 0.0  ;;  %v10775_v1 = vpop.f32.mrf.mxu0 }
 0x23e   : > { %v1607_v20 = vmul.f32 0.2, %v1543_v28  ;;  %v1544_v7 = vadd.f32 %v1512_v24, %v10577_v6  ;;  %v14617_v2 = vcombine.high %v10628_v4, %v10628_v4  ;;  %v1470_v5 = vrot.slane %v10705_v41, %v10395_v18  ;;  %14618 = vst [vmem:[#allocation74_spill] sm:$0xff] %v10775_v1 }
 0x23f   : > { %v10773_v52 = vrot.slane %v1412_v21, %v10395_v18  ;;  %1715 = vadd.xlane.f32.xlu1 %v1714_v19  ;;  %v1622_v48 = vmul.f32 0.2, %v1558_v38  ;;  %v1717_v16 = vsel %vm889_vm6, %v1673_v43, 0.0  ;;  %v1689_v22 = vmul.f32 %v10643_v13, %v1653_v17 }
 0x240   : > { %v10768_v44 = vrot.slane %v14617_v2, %v10395_v18  ;;  %vm1590_vm9 = vcmp.gt.f32.partialorder %v1558_v38, 0.0  ;;  %v1527_v24 = vadd.f32 %v10648_v3, %v1466_v25  ;;  %v1762_v4 = vsel %vm889_vm6, %v1688_v54, 0.0 }
 0x241   : > { %1718 = vadd.xlane.f32.xlu0 %v1717_v16  ;;  %v1674_v58 = vmul.f32 %v10643_v13, %v1638_v40  ;;  %v1639_v39 = vsel %vm1575_vm8, %v1543_v28, %v1607_v20  ;;  %v1513_v21 = vadd.f32 %v10648_v3, %v10680_v55  ;;  %vm1576_vm10 = vcmp.gt.f32.partialorder %v1544_v7, 0.0  ;;  %v10791_v40 = vpop.f32.mrf.mxu0 }
 0x242   : > { %v1608_v47 = vmul.f32 0.2, %v1544_v7  ;;  %v1559_v32 = vadd.f32 %v1527_v24, %v10740_v51  ;;  %v1528_v43 = vadd.f32 %v10682_v61, %v1466_v25  ;;  %v1654_v19 = vsel %vm1590_vm9, %v1558_v38, %v1622_v48  ;;  %14619 = vst [vmem:[#allocation75_spill] sm:$0xff] %v10791_v40 }
 0x243   : > { %1763 = vadd.xlane.f32.xlu1 %v1762_v4  ;;  %v1545_v17 = vadd.f32 %v10563_v60, %v1513_v21  ;;  %v1529_v2 = vadd.f32 %v10648_v3, %v1470_v5  ;;  %v1514_v54 = vadd.f32 %v10682_v61, %v10680_v55  ;;  %v1765_v28 = vsel %vm889_vm6, %v1689_v22, 0.0  ;;  %v10806_v30 = vpop.f32.mrf.mxu0 }
 0x244   : > { %v1675_v20 = vmul.f32 %v10643_v13, %v1639_v39  ;;  %vm1591_vm11 = vcmp.gt.f32.partialorder %v1559_v32, 0.0  ;;  %v1623_v16 = vmul.f32 0.2, %v1559_v32  ;;  %v1720_v25 = vsel %vm889_vm6, %v1674_v58, 0.0  ;;  %14620 = vst [vmem:[#allocation76_spill] sm:$0xff] %v10806_v30 }
 0x245   : > { %1766 = vadd.xlane.f32.xlu0 %v1765_v28  ;;  %v1609_v24 = vmul.f32 0.2, %v1545_v17  ;;  %v1560_v38 = vadd.f32 %v1528_v43, %v10775_v1  ;;  %v1561_v48 = vadd.f32 %v10725_v29, %v1529_v2  ;;  %v1690_v4 = vmul.f32 %v10643_v13, %v1654_v19 }
 0x246   : > { %v1655_v21 = vsel %vm1591_vm11, %v1559_v32, %v1623_v16  ;;  %vm1577_vm12 = vcmp.gt.f32.partialorder %v1545_v17, 0.0  ;;  %v1515_v55 = vadd.f32 %v10648_v3, %v10768_v44  ;;  %v1640_v22 = vsel %vm1576_vm10, %v1544_v7, %v1608_v47 }
 0x247   : > { %1721 = vadd.xlane.f32.xlu1 %v1720_v25  ;;  %v1624_v39 = vmul.f32 0.2, %v1560_v38  ;;  %v1546_v28 = vadd.f32 %v10571_v0, %v1514_v54  ;;  %v1530_v58 = vadd.f32 %v10682_v61, %v1470_v5  ;;  %v1414_v43 = vcombine.high %v10705_v41, %v10705_v41 }
 0x248   : > { %v1723_v19 = vsel %vm889_vm6, %v1675_v20, 0.0  ;;  %v1691_v32 = vmul.f32 %v10643_v13, %v1655_v21  ;;  %vm1592_vm13 = vcmp.gt.f32.partialorder %v1560_v38, 0.0  ;;  %v1531_v2 = vadd.f32 %v10648_v3, %v10773_v52 }
 0x249   : > { %1724 = vadd.xlane.f32.xlu0 %v1723_v19  ;;  %v1641_v7 = vsel %vm1577_vm12, %v1545_v17, %v1609_v24  ;;  %v1625_v47 = vmul.f32 0.2, %v1561_v48  ;;  %v1547_v54 = vadd.f32 %v1515_v55, %v10585_v15  ;;  %v1768_v5 = vsel %vm889_vm6, %v1690_v4, 0.0  ;;  %v10821_v24 = vpop.f32.mrf.mxu0 }
 0x24a   : > { %v1676_v16 = vmul.f32 %v10643_v13, %v1640_v22  ;;  %vm1593_vm14 = vcmp.gt.f32.partialorder %v1561_v48, 0.0  ;;  %v1656_v41 = vsel %vm1592_vm13, %v1560_v38, %v1624_v39  ;;  %v1610_v25 = vmul.f32 0.2, %v1546_v28  ;;  %14622 = vst [vmem:[#allocation77_spill] sm:$0xff] %v10821_v24 }
 0x24b   : > { %1769 = vadd.xlane.f32.xlu1 %v1768_v5  ;;  %v1562_v20 = vadd.f32 %v10753_v59, %v1530_v58  ;;  %v14621_v21 = vcombine.high %v10631_v33, %v10631_v33  ;;  %v1478_v17 = vrot.slane %v1414_v43, %v10395_v18  ;;  %v1771_v55 = vsel %vm889_vm6, %v1691_v32, 0.0 }
 0x24c   : > { %v1677_v4 = vmul.f32 %v10643_v13, %v1641_v7  ;;  %vm1578_vm15 = vcmp.gt.f32.partialorder %v1546_v28, 0.0  ;;  %v1563_v22 = vadd.f32 %v1531_v2, %v10806_v30  ;;  %v1657_v38 = vsel %vm1593_vm14, %v1561_v48, %v1625_v47  ;;  %v10834_v48 = vpop.f32.mrf.mxu0 }
 0x24d   : > { %v1446_v29 = vrot.slane %v14621_v21, %v10395_v18  ;;  %1772 = vadd.xlane.f32.xlu0 %v1771_v55  ;;  %v1611_v39 = vmul.f32 0.2, %v1547_v54  ;;  %v1516_v58 = vadd.f32 %v10682_v61, %v10768_v44  ;;  %v1532_v33 = vadd.f32 %v10682_v61, %v10773_v52  ;;  %14623 = vst [vmem:[#allocation78_spill] sm:$0xff] %v10834_v48 }
 0x24e   : > { %v1726_v43 = vsel %vm889_vm6, %v1676_v16, 0.0  ;;  %v1692_v19 = vmul.f32 %v10643_v13, %v1656_v41  ;;  %vm1579_vm0 = vcmp.gt.f32.partialorder %v1547_v54, 0.0  ;;  %v1642_v32 = vsel %vm1578_vm15, %v1546_v28, %v1610_v25 }
 0x24f   : > { %1727 = vadd.xlane.f32.xlu1 %v1726_v43  ;;  %v1626_v7 = vmul.f32 0.2, %v1562_v20  ;;  %v1548_v5 = vadd.f32 %v1516_v58, %v10602_v8  ;;  %v1517_v2 = vadd.f32 %v10648_v3, %v1446_v29  ;;  %v1729_v47 = vsel %vm889_vm6, %v1677_v4, 0.0 }
 0x250   : > { %v1693_v44 = vmul.f32 %v10643_v13, %v1657_v38  ;;  %vm1594_vm2 = vcmp.gt.f32.partialorder %v1562_v20, 0.0  ;;  %v1533_v52 = vadd.f32 %v10648_v3, %v1478_v17  ;;  %v1627_v16 = vmul.f32 0.2, %v1563_v22 }
 0x251   : > { %1730 = vadd.xlane.f32.xlu0 %v1729_v47  ;;  %v1643_v41 = vsel %vm1579_vm0, %v1547_v54, %v1611_v39  ;;  %v1774_v21 = vsel %vm889_vm6, %v1692_v19, 0.0  ;;  %v1678_v28 = vmul.f32 %v10643_v13, %v1642_v32  ;;  %vm1595_vm3 = vcmp.gt.f32.partialorder %v1563_v22, 0.0 }
 0x252   : > { %v1549_v25 = vadd.f32 %v10583_v11, %v1517_v2  ;;  %v1564_v55 = vadd.f32 %v1532_v33, %v10834_v48  ;;  %v1658_v58 = vsel %vm1594_vm2, %v1562_v20, %v1626_v7  ;;  %v1612_v4 = vmul.f32 0.2, %v1548_v5 }
 0x253   : > { %1775 = vadd.xlane.f32.xlu1 %v1774_v21  ;;  %v1518_v38 = vadd.f32 %v10682_v61, %v1446_v29  ;;  %v1777_v43 = vsel %vm889_vm6, %v1693_v44, 0.0  ;;  %v1679_v3 = vmul.f32 %v10643_v13, %v1643_v41  ;;  %vm1580_vm4 = vcmp.gt.f32.partialorder %v1548_v5, 0.0 }
 0x254   : > { %v1565_v54 = vadd.f32 %v10791_v40, %v1533_v52  ;;  %v1659_v39 = vsel %vm1595_vm3, %v1563_v22, %v1627_v16  ;;  %v1613_v19 = vmul.f32 0.2, %v1549_v25  ;;  %v1504_v32 = vadd.f32 %v10682_v61, %v10634_v26 }
 0x255   : > { %1778 = vadd.xlane.f32.xlu0 %v1777_v43  ;;  %v1732_v33 = vsel %vm889_vm6, %v1678_v28, 0.0  ;;  %v1694_v20 = vmul.f32 %v10643_v13, %v1658_v58  ;;  %vm1581_vm5 = vcmp.gt.f32.partialorder %v1549_v25, 0.0  ;;  %v1534_v29 = vadd.f32 %v10682_v61, %v1478_v17 }
 0x256   : > { %v1628_v7 = vmul.f32 0.2, %v1564_v55  ;;  %v1644_v2 = vsel %vm1580_vm4, %v1548_v5, %v1612_v4  ;;  %v1550_v47 = vadd.f32 %v10593_v27, %v1518_v38  ;;  %v10209_v44 = vmov 0  }
 0x257   : > { %1733 = vadd.xlane.f32.xlu1 %v1732_v33  ;;  %9888 = vset.pattern.permute.xlu0 %v10209_v44  ;;  %v1735_v22 = vsel %vm889_vm6, %v1679_v3, 0.0  ;;  %v1695_v52 = vmul.f32 %v10643_v13, %v1659_v39  ;;  %vm1596_vm7 = vcmp.gt.f32.partialorder %v1564_v55, 0.0  ;;  %v1629_v26 = vmul.f32 0.2, %v1565_v54 }
 0x258   : > { %9887 = vset.pattern.permute.xlu1 %v10209_v44  ;;  %v1645_v16 = vsel %vm1581_vm5, %v1549_v25, %v1613_v19  ;;  %v1536_v41 = vadd.f32 %v1504_v32, %v10541_v49  ;;  %v1780_v61 = vsel %vm889_vm6, %v1694_v20, 0.0  ;;  %v1680_v17 = vmul.f32 %v10643_v13, %v1644_v2 }
 0x259   : > { %1736 = vadd.xlane.f32.xlu0 %v1735_v22  ;;  %vm1597_vm8 = vcmp.gt.f32.partialorder %v1565_v54, 0.0  ;;  %v1566_v5 = vadd.f32 %v10821_v24, %v1534_v29  ;;  %v1660_v21 = vsel %vm1596_vm7, %v1564_v55, %v1628_v7  ;;  %v1614_v28 = vmul.f32 0.2, %v1550_v47  ;;  %v14649_v24 = vld [vmem:[#allocation15_spill] sm:$0xff] }
 0x25a   : > { %v1783_v58 = vsel %vm889_vm6, %v1695_v52, 0.0  ;;  %v1681_v4 = vmul.f32 %v10643_v13, %v1645_v16  ;;  %vm1582_vm9 = vcmp.gt.f32.partialorder %v1550_v47, 0.0  ;;  %v1661_v38 = vsel %vm1597_vm8, %v1565_v54, %v1629_v26 }
 0x25b   : > { %1781 = vadd.xlane.f32.xlu1 %v1780_v61  ;;  %v1600_v25 = vmul.f32 0.2, %v1536_v41  ;;  %v1738_v43 = vsel %vm889_vm6, %v1680_v17, 0.0  ;;  %v1696_v3 = vmul.f32 %v10643_v13, %v1660_v21  ;;  %vm1568_vm10 = vcmp.gt.f32.partialorder %v1536_v41, 0.0 }
 0x25c   : > { %v1630_v39 = vmul.f32 0.2, %v1566_v5  ;;  %v1646_v19 = vsel %vm1582_vm9, %v1550_v47, %v1614_v28  ;;  %v1741_v32 = vsel %vm889_vm6, %v1681_v4, 0.0  ;;  %v1697_v55 = vmul.f32 %v10643_v13, %v1661_v38 }
 0x25d   : > { %1784 = vadd.xlane.f32.xlu0 %v1783_v58  ;;  %vm1598_vm11 = vcmp.gt.f32.partialorder %v1566_v5, 0.0  ;;  %v1632_v33 = vsel %vm1568_vm10, %v1536_v41, %v1600_v25  ;;  %v1786_v20 = vsel %vm889_vm6, %v1696_v3, 0.0  ;;  %v1682_v54 = vmul.f32 %v10643_v13, %v1646_v19  ;;  %v14624_v19 = vld [vmem:[#allocation20_spill] sm:$0xff] }
 0x25e   : > { %v1662_v29 = vsel %vm1598_vm11, %v1566_v5, %v1630_v39  ;;  %v1789_v7 = vsel %vm889_vm6, %v1697_v55, 0.0  ;;  %v1668_v2 = vmul.f32 %v10643_v13, %v1632_v33  ;;  %v14625_v55 = vld [vmem:[#allocation30_spill] sm:$0xff]  ;;  %v14656_v56 = vlaneseq }
 0x25f   : > { %1739 = vadd.xlane.f32.xlu1 %v1738_v43  ;;  %v1744_v47 = vsel %vm889_vm6, %v1682_v54, 0.0  ;;  %v1698_v44 = vmul.f32 %v10643_v13, %v1662_v29  ;;  %v14626_v29 = vld [vmem:[#allocation24_spill] sm:$0xff]  ;;  %vm2176_vm12 = vcmask 130112   ;;  %vm2313_vm13 = vcmask 1041409  }
 0x260   : > { %v1702_v22 = vsel %vm889_vm6, %v1668_v2, 0.0  ;;  %v14627_v2 = vld [vmem:[#allocation33_spill] sm:$0xff]  ;;  %v2166_v14 = vand.u32 127, %v14656_v56  ;;  %vm2315_vm14 = vcmask 1042434   ;;  %vm2317_vm15 = vcmask 1043459  }
 0x261   : > { %1742 = vadd.xlane.f32.xlu0 %v1741_v32  ;;  %v1792_v52 = vsel %vm889_vm6, %v1698_v44, 0.0  ;;  %vm2319_vm0 = vcmask 1044484   ;;  %vm2321_vm2 = vcmask 1045509   ;;  %vm2325_vm3 = vcmask 1047559  }
 0x262   : > { %v2171_v10 = vadd.s32 4294967288, %v2166_v14  ;;  %v11028_v49 = vsub.s32 %v2166_v14, %v14657_v9  ;;  %vm2323_vm4 = vcmask 1046534   ;;  %vm2336_vm5 = vcmask 130048  }
 0x263   : > { %1787 = vadd.xlane.f32.xlu1 %v1786_v20 }
 0x264   : > { %v11023_v23 = vsub.s32 %v2171_v10, %v14657_v9  ;;  %14659 = vst [vmem:[#allocation86_spill] sm:$0xff] %v11028_v49 }
 0x265   : > { %1790 = vadd.xlane.f32.xlu0 %v1789_v7 }
 0x266   : > { %14658 = vst [vmem:[#allocation3_spill] sm:$0xff] %v11023_v23 }
 0x267   : > { %1745 = vadd.xlane.f32.xlu1 %v1744_v47 }
 0x269   : > { %1703 = vadd.xlane.f32.xlu0 %v1702_v22 }
 0x26b   : > { %1793 = vadd.xlane.f32.xlu1 %v1792_v52  ;;  %v14628_v52 = vld [vmem:[#allocation27_spill] sm:$0xff] }
 0x2b6   : > { %v1707_v26 = vpop.xlane.xlu0 %1706  ;;  %v1701_v16 = vpop.xlane.xlu1 %1700 }
 0x2b7   : > { %v10874_v41 = vadd.f32 %v10513_v31, %v1701_v16  ;;  %v10878_v17 = vadd.f32 %v10519_v35, %v1707_v26  ;;  %v14629_v16 = vld [vmem:[#allocation37_spill] sm:$0xff]  ;;  %v14645_v31 = vld [vmem:[#allocation55_spill] sm:$0xff] }
 0x2b9   : > { %2070 = vperm.xlu1 %9887, %v10874_v41  }
 0x2ba   : > { %v1749_v61 = vpop.xlane.xlu0 %1748 }
 0x2bb   : > { %v1710_v5 = vpop.xlane.xlu1 %1709  ;;  %v10881_v13 = vadd.f32 %v10523_v37, %v1749_v61 }
 0x2bc   : > { %v10886_v28 = vadd.f32 %v10517_v34, %v1710_v5 }
 0x2bd   : > { %2118 = vperm.xlu0 %9888, %v10881_v13   ;;  %2076 = vperm.xlu1 %9887, %v10878_v17  }
 0x2be   : > { %v1755_v21 = vpop.xlane.xlu0 %1754 }
 0x2bf   : > { %v10889_v58 = vadd.f32 %v10531_v42, %v1755_v21 }
 0x2c0   : > { %v1752_v4 = vpop.xlane.xlu1 %1751 }
 0x2c1   : > { %2124 = vperm.xlu0 %9888, %v10889_v58   ;;  %2079 = vperm.xlu1 %9887, %v10886_v28   ;;  %v10894_v25 = vadd.f32 %v10521_v36, %v1752_v4  ;;  %v14630_v4 = vld [vmem:[#allocation31_spill] sm:$0xff] }
 0x2c2   : > { %v1713_v38 = vpop.xlane.xlu0 %1712 }
 0x2c3   : > { %v10897_v43 = vadd.f32 %v10537_v46, %v1713_v38 }
 0x2c4   : > { %v1758_v3 = vpop.xlane.xlu1 %1757 }
 0x2c5   : > { %2082 = vperm.xlu0 %9888, %v10897_v43   ;;  %2121 = vperm.xlu1 %9887, %v10894_v25   ;;  %v10902_v32 = vadd.f32 %v14624_v19, %v1758_v3  ;;  %v14631_v3 = vld [vmem:[#allocation40_spill] sm:$0xff] }
 0x2c6   : > { %v1761_v39 = vpop.xlane.xlu0 %1760 }
 0x2c7   : > { %v10905_v33 = vadd.f32 %v14625_v55, %v1761_v39 }
 0x2c8   : > { %v1716_v20 = vpop.xlane.xlu1 %1715 }
 0x2c9   : > { %2130 = vperm.xlu0 %9888, %v10905_v33   ;;  %2127 = vperm.xlu1 %9887, %v10902_v32   ;;  %v10910_v7 = vadd.f32 %v14626_v29, %v1716_v20 }
 0x2ca   : > { %v1719_v54 = vpop.xlane.xlu0 %1718 }
 0x2cb   : > { %v10913_v47 = vadd.f32 %v14627_v2, %v1719_v54 }
 0x2cc   : > { %v1764_v44 = vpop.xlane.xlu1 %1763 }
 0x2cd   : > { %2088 = vperm.xlu0 %9888, %v10913_v47   ;;  %2085 = vperm.xlu1 %9887, %v10910_v7   ;;  %v10918_v26 = vadd.f32 %v14628_v52, %v1764_v44  ;;  %v14632_v44 = vld [vmem:[#allocation34_spill] sm:$0xff]  ;;  %v14633_v52 = vld [vmem:[#allocation44_spill] sm:$0xff] }
 0x2ce   : > { %v1767_v22 = vpop.xlane.xlu0 %1766 }
 0x2cf   : > { %v10921_v61 = vadd.f32 %v14629_v16, %v1767_v22 }
 0x2d0   : > { %v1722_v5 = vpop.xlane.xlu1 %1721 }
 0x2d1   : > { %2136 = vperm.xlu0 %9888, %v10921_v61   ;;  %2133 = vperm.xlu1 %9887, %v10918_v26   ;;  %v10926_v38 = vadd.f32 %v14630_v4, %v1722_v5 }
 0x2d2   : > { %v1725_v21 = vpop.xlane.xlu0 %1724 }
 0x2d3   : > { %v10929_v39 = vadd.f32 %v14631_v3, %v1725_v21  ;;  %v14634_v21 = vld [vmem:[#allocation38_spill] sm:$0xff]  ;;  %v14635_v3 = vld [vmem:[#allocation47_spill] sm:$0xff] }
 0x2d4   : > { %v1770_v20 = vpop.xlane.xlu1 %1769 }
 0x2d5   : > { %2094 = vperm.xlu0 %9888, %v10929_v39   ;;  %2091 = vperm.xlu1 %9887, %v10926_v38   ;;  %v10934_v22 = vadd.f32 %v14632_v44, %v1770_v20 }
 0x2d6   : > { %v1773_v54 = vpop.xlane.xlu0 %1772 }
 0x2d7   : > { %v10937_v16 = vadd.f32 %v14633_v52, %v1773_v54  ;;  %v14636_v54 = vld [vmem:[#allocation41_spill] sm:$0xff]  ;;  %v14637_v52 = vld [vmem:[#allocation51_spill] sm:$0xff] }
 0x2d8   : > { %v1728_v29 = vpop.xlane.xlu1 %1727 }
 0x2d9   : > { %2142 = vperm.xlu0 %9888, %v10937_v16   ;;  %2139 = vperm.xlu1 %9887, %v10934_v22   ;;  %v10942_v4 = vadd.f32 %v14634_v21, %v1728_v29 }
 0x2da   : > { %v1731_v5 = vpop.xlane.xlu0 %1730 }
 0x2db   : > { %v10945_v2 = vadd.f32 %v14635_v3, %v1731_v5  ;;  %v14638_v5 = vld [vmem:[#allocation45_spill] sm:$0xff]  ;;  %v14639_v3 = vld [vmem:[#allocation54_spill] sm:$0xff] }
 0x2dc   : > { %v1776_v19 = vpop.xlane.xlu1 %1775 }
 0x2dd   : > { %2100 = vperm.xlu0 %9888, %v10945_v2   ;;  %2097 = vperm.xlu1 %9887, %v10942_v4   ;;  %v10950_v44 = vadd.f32 %v14636_v54, %v1776_v19 }
 0x2de   : > { %v1779_v20 = vpop.xlane.xlu0 %1778 }
 0x2df   : > { %v10953_v55 = vadd.f32 %v14637_v52, %v1779_v20  ;;  %v14640_v20 = vld [vmem:[#allocation48_spill] sm:$0xff]  ;;  %v14641_v52 = vld [vmem:[#allocation59_spill] sm:$0xff] }
 0x2e0   : > { %v1734_v36 = vpop.xlane.xlu1 %1733 }
 0x2e1   : > { %2148 = vperm.xlu0 %9888, %v10953_v55   ;;  %2145 = vperm.xlu1 %9887, %v10950_v44   ;;  %v10958_v21 = vadd.f32 %v14638_v5, %v1734_v36 }
 0x2e2   : > { %v1737_v29 = vpop.xlane.xlu0 %1736 }
 0x2e3   : > { %v10961_v46 = vadd.f32 %v14639_v3, %v1737_v29  ;;  %v14643_v29 = vld [vmem:[#allocation52_spill] sm:$0xff] }
 0x2e4   : > { %v1782_v34 = vpop.xlane.xlu1 %1781 }
 0x2e5   : > { %2106 = vperm.xlu0 %9888, %v10961_v46   ;;  %2103 = vperm.xlu1 %9887, %v10958_v21   ;;  %v10966_v54 = vadd.f32 %v14640_v20, %v1782_v34  ;;  %v14647_v20 = vld [vmem:[#allocation60_spill] sm:$0xff] }
 0x2e6   : > { %v1785_v19 = vpop.xlane.xlu0 %1784 }
 0x2e7   : > { %v10969_v42 = vadd.f32 %v14641_v52, %v1785_v19 }
 0x2e8   : > { %v1740_v35 = vpop.xlane.xlu1 %1739 }
 0x2e9   : > { %14642 = vst [vmem:[#allocation79_spill] sm:$0xff] %v10969_v42  ;;  %2154 = vperm.xlu0 %9888, %v10969_v42   ;;  %2151 = vperm.xlu1 %9887, %v10966_v54   ;;  %v10974_v5 = vadd.f32 %v14643_v29, %v1740_v35  ;;  %v14650_v35 = vld [vmem:[#allocation62_spill] sm:$0xff] }
 0x2ea   : > { %v1743_v36 = vpop.xlane.xlu0 %1742 }
 0x2eb   : > { %14644 = vst [vmem:[#allocation80_spill] sm:$0xff] %v10974_v5  ;;  %v10990_v29 = vadd.f32 %v14650_v35, %v1743_v36 }
 0x2ec   : > { %v1788_v3 = vpop.xlane.xlu1 %1787 }
 0x2ed   : > { %2109 = vperm.xlu1 %9887, %v10974_v5   ;;  %v10978_v40 = vadd.f32 %v14645_v31, %v1788_v3  ;;  %14651 = vst [vmem:[#allocation83_spill] sm:$0xff] %v10990_v29  ;;  %v14652_v3 = vld [vmem:[#allocation63_spill] sm:$0xff] }
 0x2ee   : > { %v1791_v37 = vpop.xlane.xlu0 %1790 }
 0x2ef   : > { %14646 = vst [vmem:[#allocation81_spill] sm:$0xff] %v10978_v40 }
 0x2f0   : > { %v1746_v34 = vpop.xlane.xlu1 %1745 }
 0x2f1   : > { %2157 = vperm.xlu1 %9887, %v10978_v40   ;;  %v10982_v52 = vadd.f32 %v14647_v20, %v1746_v34  ;;  %v14654_v34 = vld [vmem:[#allocation66_spill] sm:$0xff] }
 0x2f2   : > { %v1704_v19 = vpop.xlane.xlu0 %1703  ;;  %v10998_v20 = vadd.f32 %v14654_v34, %v1791_v37 }
 0x2f3   : > { %14648 = vst [vmem:[#allocation82_spill] sm:$0xff] %v10982_v52  ;;  %v10985_v11 = vadd.f32 %v14649_v24, %v1704_v19 }
 0x2f4   : > { %v1794_v27 = vpop.xlane.xlu1 %1793  ;;  %14655 = vst [vmem:[#allocation85_spill] sm:$0xff] %v10998_v20 }
 0x2f5   : > { %2073 = vperm.xlu0 %9888, %v10985_v11   ;;  %2115 = vperm.xlu1 %9887, %v10982_v52   ;;  %v10993_v31 = vadd.f32 %v14652_v3, %v1794_v27 }
 0x2f7   : > { %14653 = vst [vmem:[#allocation84_spill] sm:$0xff] %v10993_v31 }
 0x2f9   : > { %2112 = vperm.xlu0 %9888, %v10990_v29   ;;  %2163 = vperm.xlu1 %9887, %v10993_v31  }
 0x2fd   : > { %2160 = vperm.xlu0 %9888, %v10998_v20  }
 0x334   : > { %v11001_v19 = vpop.permute.xlu1 %2070 }
 0x338   : > { %v2119_v24 = vpop.permute.xlu0 %2118  ;;  %v2077_v30 = vpop.permute.xlu1 %2076 }
 0x33c   : > { %v2125_v48 = vpop.permute.xlu0 %2124  ;;  %v2080_v15 = vpop.permute.xlu1 %2079 }
 0x33d   : > { %v2253_v56 = vrot.slane %v2125_v48, %v11028_v49  ;;  %v2185_v29 = vrot.slane %v2080_v15, %v11023_v23  ;;  %v2181_v48 = vrot.slane %v2077_v30, %v11028_v49 }
 0x340   : > { %v2083_v36 = vpop.permute.xlu0 %2082  ;;  %v2122_v35 = vpop.permute.xlu1 %2121 }
 0x341   : > { %v2248_v52 = vrot.slane %v2122_v35, %v11023_v23  ;;  %v2190_v5 = vrot.slane %v2083_v36, %v11028_v49 }
 0x344   : > { %v2131_v8 = vpop.permute.xlu0 %2130  ;;  %v2128_v27 = vpop.permute.xlu1 %2127 }
 0x345   : > { %v2257_v31 = vrot.slane %v2128_v27, %v11023_v23  ;;  %v2262_v10 = vrot.slane %v2131_v8, %v11028_v49  ;;  %v2244_v27 = vrot.slane %v2119_v24, %v11028_v49 }
 0x347   : > { %v2258_v42 = vsel %vm2176_vm12, %v2257_v31, %v2253_v56  ;;  %v2249_v24 = vsel %vm2176_vm12, %v2248_v52, %v2244_v27  ;;  %v2186_v31 = vsel %vm2176_vm12, %v2185_v29, %v2181_v48 }
 0x348   : > { %v2089_v3 = vpop.permute.xlu0 %2088  ;;  %v2086_v59 = vpop.permute.xlu1 %2085 }
 0x349   : > { %v2199_v30 = vrot.slane %v2089_v3, %v11028_v49 }
 0x34c   : > { %v2137_v60 = vpop.permute.xlu0 %2136  ;;  %v2134_v0 = vpop.permute.xlu1 %2133 }
 0x34d   : > { %v2266_v20 = vrot.slane %v2134_v0, %v11023_v23  ;;  %v2194_v0 = vrot.slane %v2086_v59, %v11023_v23  ;;  %v2271_v35 = vrot.slane %v2137_v60, %v11028_v49  ;;  %v2327_v59 = vsel %vm2313_vm13, %v2258_v42, %v2249_v24 }
 0x34f   : > { %v2267_v15 = vsel %vm2176_vm12, %v2266_v20, %v2262_v10 }
 0x350   : > { %v11003_v51 = vpop.permute.xlu0 %2094  ;;  %v2092_v37 = vpop.permute.xlu1 %2091  ;;  %v2328_v36 = vsel %vm2315_vm14, %v2267_v15, %v2327_v59 }
 0x351   : > { %v2203_v8 = vrot.slane %v2092_v37, %v11023_v23  ;;  %v2208_v42 = vrot.slane %v11003_v51, %v11028_v49 }
 0x353   : > { %v2204_v29 = vsel %vm2176_vm12, %v2203_v8, %v2199_v30 }
 0x354   : > { %v11005_v34 = vpop.permute.xlu0 %2142  ;;  %v2140_v1 = vpop.permute.xlu1 %2139 }
 0x355   : > { %v2275_v40 = vrot.slane %v2140_v1, %v11023_v23  ;;  %v2170_v1 = vrot.slane %v11001_v19, %v11028_v49  ;;  %v2195_v19 = vsel %vm2176_vm12, %v2194_v0, %v2190_v5 }
 0x357   : > { %v2276_v60 = vsel %vm2176_vm12, %v2275_v40, %v2271_v35  ;;  %v2280_v40 = vrot.slane %v11005_v34, %v11028_v49 }
 0x358   : > { %v11007_v63 = vpop.permute.xlu1 %2097  ;;  %v11009_v6 = vpop.permute.xlu0 %2100  ;;  %v2329_v5 = vsel %vm2317_vm15, %v2276_v60, %v2328_v36 }
 0x359   : > { %v2212_v3 = vrot.slane %v11007_v63, %v11023_v23  ;;  %v2217_v51 = vrot.slane %v11009_v6, %v11028_v49 }
 0x35b   : > { %v2213_v8 = vsel %vm2176_vm12, %v2212_v3, %v2208_v42 }
 0x35c   : > { %v11011_v12 = vpop.permute.xlu1 %2145  ;;  %v11013_v62 = vpop.permute.xlu0 %2148 }
 0x35d   : > { %v2284_v52 = vrot.slane %v11011_v12, %v11023_v23  ;;  %v2289_v35 = vrot.slane %v11013_v62, %v11028_v49 }
 0x360   : > { %v11015_v50 = vpop.permute.xlu1 %2103  ;;  %v11020_v57 = vpop.permute.xlu0 %2106 }
 0x361   : > { %v2221_v10 = vrot.slane %v11015_v50, %v11023_v23  ;;  %v2285_v50 = vsel %vm2176_vm12, %v2284_v52, %v2280_v40  ;;  %v2226_v6 = vrot.slane %v11020_v57, %v11028_v49 }
 0x362   : > { %v2330_v30 = vsel %vm2319_vm0, %v2285_v50, %v2329_v5 }
 0x363   : > { %v2222_v24 = vsel %vm2176_vm12, %v2221_v10, %v2217_v51  ;;  %v14660_v51 = vld [vmem:[#allocation4_spill] sm:$0xff] }
 0x364   : > { %v11018_v53 = vpop.permute.xlu1 %2151  ;;  %v2155_v9 = vpop.permute.xlu0 %2154 }
 0x365   : > { %v2293_v12 = vrot.slane %v11018_v53, %v11023_v23 }
 0x367   : > { %v2294_v62 = vsel %vm2176_vm12, %v2293_v12, %v2289_v35 }
 0x368   : > { %v11025_v45 = vpop.permute.xlu1 %2109  ;;  %v2331_v42 = vsel %vm2321_vm2, %v2294_v62, %v2330_v30 }
 0x369   : > { %v2230_v0 = vrot.slane %v11025_v45, %v11023_v23  ;;  %v2298_v45 = vrot.slane %v2155_v9, %v11028_v49 }
 0x36b   : > { %v2231_v60 = vsel %vm2176_vm12, %v2230_v0, %v2226_v6 }
 0x36c   : > { %v2158_v14 = vpop.permute.xlu1 %2157 }
 0x36d   : > { %v2302_v34 = vrot.slane %v2158_v14, %v11023_v23 }
 0x370   : > { %v2074_v20 = vpop.permute.xlu0 %2073  ;;  %v2116_v56 = vpop.permute.xlu1 %2115 }
 0x371   : > { %v2175_v37 = vrot.slane %v2074_v20, %v11023_v23  ;;  %v2303_v20 = vsel %vm2176_vm12, %v2302_v34, %v2298_v45 }
 0x372   : > { %v2332_v3 = vsel %vm2323_vm4, %v2303_v20, %v2331_v42 }
 0x373   : > { %v2177_v27 = vsel %vm2176_vm12, %v2175_v37, %v2170_v1 }
 0x374   : > { %v2314_v63 = vsel %vm2313_vm13, %v2186_v31, %v2177_v27  ;;  %v2113_v48 = vpop.permute.xlu0 %2112  ;;  %v2164_v14 = vpop.permute.xlu1 %2163  ;;  %v2239_v31 = vrot.slane %v2116_v56, %v11023_v23 }
 0x375   : > { %v2316_v53 = vsel %vm2315_vm14, %v2195_v19, %v2314_v63  ;;  %v2235_v15 = vrot.slane %v2113_v48, %v11028_v49  ;;  %v2311_v19 = vrot.slane %v2164_v14, %v11023_v23 }
 0x376   : > { %v2318_v1 = vsel %vm2317_vm15, %v2204_v29, %v2316_v53 }
 0x377   : > { %v2320_v59 = vsel %vm2319_vm0, %v2213_v8, %v2318_v1  ;;  %v2240_v52 = vsel %vm2176_vm12, %v2239_v31, %v2235_v15 }
 0x378   : > { %v2161_v57 = vpop.permute.xlu0 %2160  ;;  %v2322_v9 = vsel %vm2321_vm2, %v2222_v24, %v2320_v59 }
 0x379   : > { %v2307_v36 = vrot.slane %v2161_v57, %v11028_v49  ;;  %v2324_v37 = vsel %vm2323_vm4, %v2231_v60, %v2322_v9  ;;  %v14662_v9 = vld [vmem:[#allocation6_spill] sm:$0xff] }
 0x37a   : > { %v2326_v56 = vsel %vm2325_vm3, %v2240_v52, %v2324_v37 }
 0x37b   : > { %v2337_v29 = vsel %vm2336_vm5, %v2326_v56, -inf  ;;  %v2312_v40 = vsel %vm2176_vm12, %v2311_v19, %v2307_v36 }
 0x37c   : > { %2338 = vmax.xlane.f32.xlu0 %v2337_v29  ;;  %v2333_v5 = vsel %vm2325_vm3, %v2312_v40, %v2332_v3  ;;  %v14663_v3 = vld [vmem:[#allocation7_spill] sm:$0xff] }
 0x37d   : > { %v2340_v10 = vsel %vm2336_vm5, %v2333_v5, -inf }
 0x37e   : > { %2341 = vmax.xlane.f32.xlu1 %v2340_v10 }
 0x405   : > { %v11105_v12 = vpop.xlane.xlu0 %2338 }
 0x406   : > { %v2348_v27 = vrot.slane %v11105_v12, %v10395_v18  ;;  %v2352_v0 = vrot.slane %v11105_v12, %v14660_v51  ;;  %v2364_v5 = vrot.slane %v11105_v12, %v14663_v3 }
 0x407   : > { %v11115_v6 = vpop.xlane.xlu1 %2341 }
 0x408   : > { %v2425_v34 = vsub.f32 %v10874_v41, %v2348_v27  ;;  %v2426_v63 = vsub.f32 %v10985_v11, %v2348_v27  ;;  %v2427_v48 = vsub.f32 %v10878_v17, %v2352_v0  ;;  %v2428_v35 = vsub.f32 %v10886_v28, %v2352_v0  ;;  %v14661_v28 = vld [vmem:[#allocation5_spill] sm:$0xff] }
 0x409   : > { %v2380_v45 = vrot.slane %v11115_v6, %v10395_v18  ;;  %v2384_v11 = vrot.slane %v11115_v6, %v14660_v51  ;;  %v2356_v14 = vrot.slane %v11105_v12, %v14661_v28  ;;  %v2392_v56 = vrot.slane %v11115_v6, %v14662_v9 }
 0x40a   : > { %v2457_v50 = vmul.f32 1.442695, %v2425_v34  ;;  %v2459_v53 = vmul.f32 1.442695, %v2426_v63  ;;  %v2461_v15 = vmul.f32 1.442695, %v2427_v48  ;;  %v2396_v34 = vrot.slane %v11115_v6, %v14663_v3 }
 0x40b   : > { %v2463_v8 = vmul.f32 1.442695, %v2428_v35  ;;  %v2441_v41 = vsub.f32 %v10881_v13, %v2380_v45  ;;  %v2442_v17 = vsub.f32 %v10894_v25, %v2380_v45  ;;  %v2443_v1 = vsub.f32 %v10889_v58, %v2384_v11 }
 0x40c   : > { %9919 = vpow2.f32 %v2457_v50  ;;  %v2444_v31 = vsub.f32 %v10902_v32, %v2384_v11  ;;  %v2429_v13 = vsub.f32 %v10897_v43, %v2356_v14  ;;  %v2388_v25 = vrot.slane %v11115_v6, %v14661_v28  ;;  %v14664_v50 = vld [vmem:[#allocation8_spill] sm:$0xff] }
 0x40d   : > { %9921 = vpow2.f32 %v2459_v53  ;;  %v2489_v24 = vmul.f32 1.442695, %v2441_v41  ;;  %v2491_v59 = vmul.f32 1.442695, %v2442_v17  ;;  %v2493_v60 = vmul.f32 1.442695, %v2443_v1 }
 0x40e   : > { %9923 = vpow2.f32 %v2461_v15  ;;  %v2430_v20 = vsub.f32 %v10910_v7, %v2356_v14  ;;  %v2495_v32 = vmul.f32 1.442695, %v2444_v31  ;;  %v2360_v43 = vrot.slane %v11105_v12, %v14662_v9  ;;  %v14665_v31 = vld [vmem:[#allocation9_spill] sm:$0xff] }
 0x40f   : > { %9925 = vpow2.f32 %v2463_v8  ;;  %v2465_v19 = vmul.f32 1.442695, %v2429_v13  ;;  %v2445_v36 = vsub.f32 %v10905_v33, %v2388_v25  ;;  %v2446_v37 = vsub.f32 %v10918_v26, %v2388_v25 }
 0x410   : > { %9927 = vpow2.f32 %v2489_v24  ;;  %v2467_v52 = vmul.f32 1.442695, %v2430_v20  ;;  %v2431_v7 = vsub.f32 %v10913_v47, %v2360_v43  ;;  %v2432_v29 = vsub.f32 %v10926_v38, %v2360_v43 }
 0x411   : > { %9929 = vpow2.f32 %v2491_v59  ;;  %v2497_v42 = vmul.f32 1.442695, %v2445_v36  ;;  %v2499_v40 = vmul.f32 1.442695, %v2446_v37  ;;  %v2447_v10 = vsub.f32 %v10921_v61, %v2392_v56  ;;  %v14666_v36 = vld [vmem:[#allocation80_spill] sm:$0xff] }
 0x412   : > { %9931 = vpow2.f32 %v2493_v60  ;;  %v2469_v33 = vmul.f32 1.442695, %v2431_v7  ;;  %v2471_v27 = vmul.f32 1.442695, %v2432_v29  ;;  %v2448_v47 = vsub.f32 %v10934_v22, %v2392_v56  ;;  %v14667_v7 = vld [vmem:[#allocation10_spill] sm:$0xff] }
 0x413   : > { %9933 = vpow2.f32 %v2495_v32  ;;  %v2433_v38 = vsub.f32 %v10929_v39, %v2364_v5  ;;  %v2501_v61 = vmul.f32 1.442695, %v2447_v10  ;;  %v2434_v48 = vsub.f32 %v10942_v4, %v2364_v5 }
 0x414   : > { %9935 = vpow2.f32 %v2465_v19  ;;  %v2503_v22 = vmul.f32 1.442695, %v2448_v47  ;;  %v2368_v39 = vrot.slane %v11105_v12, %v14664_v50  ;;  %v2449_v15 = vsub.f32 %v10937_v16, %v2396_v34  ;;  %v14670_v47 = vld [vmem:[#allocation83_spill] sm:$0xff] }
 0x415   : > { %9937 = vpow2.f32 %v2467_v52  ;;  %v2473_v53 = vmul.f32 1.442695, %v2433_v38  ;;  %v2475_v45 = vmul.f32 1.442695, %v2434_v48  ;;  %v2450_v4 = vsub.f32 %v10950_v44, %v2396_v34  ;;  %v14671_v48 = vld [vmem:[#allocation82_spill] sm:$0xff] }
 0x416   : > { %9939 = vpow2.f32 %v2497_v42  ;;  %v2435_v41 = vsub.f32 %v10945_v2, %v2368_v39  ;;  %v2400_v17 = vrot.slane %v11115_v6, %v14664_v50  ;;  %v2505_v16 = vmul.f32 1.442695, %v2449_v15  ;;  %v14668_v42 = vld [vmem:[#allocation79_spill] sm:$0xff] }
 0x417   : > { %9941 = vpow2.f32 %v2499_v40  ;;  %v2436_v1 = vsub.f32 %v10958_v21, %v2368_v39  ;;  %v2507_v44 = vmul.f32 1.442695, %v2450_v4  ;;  %v2372_v2 = vrot.slane %v11105_v12, %v14665_v31 }
 0x418   : > { %9943 = vpow2.f32 %v2469_v33  ;;  %v2477_v59 = vmul.f32 1.442695, %v2435_v41  ;;  %v2451_v13 = vsub.f32 %v10953_v55, %v2400_v17  ;;  %v2452_v21 = vsub.f32 %v10966_v54, %v2400_v17  ;;  %v14669_v33 = vld [vmem:[#allocation81_spill] sm:$0xff]  ;;  %v14674_v17 = vld [vmem:[#allocation84_spill] sm:$0xff] }
 0x419   : > { %v11126_v62 = vpop.eup %9919  ;;  %9945 = vpow2.f32 %v2471_v27  ;;  %v2479_v60 = vmul.f32 1.442695, %v2436_v1  ;;  %v2437_v32 = vsub.f32 %v10961_v46, %v2372_v2  ;;  %v2404_v43 = vrot.slane %v11115_v6, %v14665_v31 }
 0x41a   : > { %v11129_v30 = vpop.eup %9921  ;;  %2554 = vperm.xlu0 %9888, %v11126_v62   ;;  %9947 = vpow2.f32 %v2501_v61  ;;  %v2509_v55 = vmul.f32 1.442695, %v2451_v13  ;;  %v2438_v52 = vsub.f32 %v14666_v36, %v2372_v2  ;;  %v2511_v54 = vmul.f32 1.442695, %v2452_v21 }
 0x41b   : > { %2557 = vperm.xlu1 %9887, %v11129_v30   ;;  %v11136_v58 = vpop.eup %9923  ;;  %9949 = vpow2.f32 %v2503_v22  ;;  %v2376_v46 = vrot.slane %v11105_v12, %v14667_v7  ;;  %v2481_v56 = vmul.f32 1.442695, %v2437_v32  ;;  %v2453_v29 = vsub.f32 %v14668_v42, %v2404_v43 }
 0x41c   : > { %v11139_v57 = vpop.eup %9925  ;;  %9951 = vpow2.f32 %v2473_v53  ;;  %v2483_v5 = vmul.f32 1.442695, %v2438_v52  ;;  %v2454_v10 = vsub.f32 %v14669_v33, %v2404_v43  ;;  %v2408_v12 = vrot.slane %v11115_v6, %v14667_v7 }
 0x41d   : > { %v11154_v26 = vpop.eup %9927  ;;  %9953 = vpow2.f32 %v2475_v45  ;;  %v2439_v38 = vsub.f32 %v14670_v47, %v2376_v46  ;;  %v2513_v34 = vmul.f32 1.442695, %v2453_v29  ;;  %v2440_v22 = vsub.f32 %v14671_v48, %v2376_v46  ;;  %v14672_v45 = vld [vmem:[#allocation85_spill] sm:$0xff] }
 0x41e   : > { %2560 = vperm.xlu0 %9888, %v11136_v58   ;;  %v11157_v0 = vpop.eup %9929  ;;  %9955 = vpow2.f32 %v2505_v16  ;;  %v2515_v39 = vmul.f32 1.442695, %v2454_v10  ;;  %v2455_v4 = vsub.f32 %v14672_v45, %v2408_v12  ;;  %v2456_v16 = vsub.f32 %v14674_v17, %v2408_v12 }
 0x41f   : > { %2563 = vperm.xlu1 %9887, %v11139_v57   ;;  %v11164_v63 = vpop.eup %9931  ;;  %9957 = vpow2.f32 %v2507_v44  ;;  %v2485_v15 = vmul.f32 1.442695, %v2439_v38  ;;  %v2487_v6 = vmul.f32 1.442695, %v2440_v22 }
 0x420   : > { %v11167_v35 = vpop.eup %9933  ;;  %9959 = vpow2.f32 %v2477_v59  ;;  %v2517_v44 = vmul.f32 1.442695, %v2455_v4  ;;  %v2519_v59 = vmul.f32 1.442695, %v2456_v16 }
 0x421   : > { %v11174_v8 = vpop.eup %9935  ;;  %9961 = vpow2.f32 %v2479_v60 }
 0x422   : > { %2602 = vperm.xlu0 %9888, %v11154_v26   ;;  %v11177_v11 = vpop.eup %9937  ;;  %9963 = vpow2.f32 %v2509_v55 }
 0x423   : > { %2605 = vperm.xlu1 %9887, %v11157_v0   ;;  %v11184_v14 = vpop.eup %9939  ;;  %9965 = vpow2.f32 %v2511_v54 }
 0x424   : > { %v11187_v24 = vpop.eup %9941  ;;  %9967 = vpow2.f32 %v2481_v56 }
 0x425   : > { %v11194_v25 = vpop.eup %9943  ;;  %9969 = vpow2.f32 %v2483_v5 }
 0x426   : > { %2608 = vperm.xlu0 %9888, %v11164_v63   ;;  %v11197_v20 = vpop.eup %9945  ;;  %9971 = vpow2.f32 %v2513_v34 }
 0x427   : > { %2611 = vperm.xlu1 %9887, %v11167_v35   ;;  %v11204_v19 = vpop.eup %9947  ;;  %9973 = vpow2.f32 %v2515_v39 }
 0x428   : > { %v11207_v37 = vpop.eup %9949  ;;  %9975 = vpow2.f32 %v2485_v15 }
 0x429   : > { %v11214_v40 = vpop.eup %9951  ;;  %9977 = vpow2.f32 %v2487_v6 }
 0x42a   : > { %2566 = vperm.xlu0 %9888, %v11174_v8   ;;  %v11217_v27 = vpop.eup %9953  ;;  %9979 = vpow2.f32 %v2517_v44 }
 0x42b   : > { %2569 = vperm.xlu1 %9887, %v11177_v11   ;;  %v11224_v61 = vpop.eup %9955  ;;  %9981 = vpow2.f32 %v2519_v59 }
 0x42c   : > { %v11227_v53 = vpop.eup %9957 }
 0x42d   : > { %v11232_v41 = vpop.eup %9959 }
 0x42e   : > { %2614 = vperm.xlu0 %9888, %v11184_v14   ;;  %14673 = vst [vmem:[#allocation80_spill] sm:$0xff] %v11232_v41  ;;  %v11235_v1 = vpop.eup %9961 }
 0x42f   : > { %2617 = vperm.xlu1 %9887, %v11187_v24   ;;  %14675 = vst [vmem:[#allocation79_spill] sm:$0xff] %v11235_v1  ;;  %v11239_v2 = vpop.eup %9963 }
 0x430   : > { %14676 = vst [vmem:[#allocation81_spill] sm:$0xff] %v11239_v2  ;;  %v11241_v13 = vpop.eup %9965 }
 0x431   : > { %14677 = vst [vmem:[#allocation83_spill] sm:$0xff] %v11241_v13  ;;  %v11245_v60 = vpop.eup %9967 }
 0x432   : > { %2572 = vperm.xlu0 %9888, %v11194_v25   ;;  %14678 = vst [vmem:[#allocation82_spill] sm:$0xff] %v11245_v60  ;;  %v11247_v21 = vpop.eup %9969 }
 0x433   : > { %2575 = vperm.xlu1 %9887, %v11197_v20   ;;  %14679 = vst [vmem:[#allocation85_spill] sm:$0xff] %v11247_v21  ;;  %v11251_v32 = vpop.eup %9971 }
 0x434   : > { %14680 = vst [vmem:[#allocation84_spill] sm:$0xff] %v11251_v32  ;;  %v11253_v43 = vpop.eup %9973 }
 0x435   : > { %14681 = vst [vmem:[#allocation87_spill] sm:$0xff] %v11253_v43  ;;  %v11257_v55 = vpop.eup %9975 }
 0x436   : > { %2620 = vperm.xlu0 %9888, %v11204_v19   ;;  %14682 = vst [vmem:[#allocation88_spill] sm:$0xff] %v11257_v55  ;;  %v11259_v36 = vpop.eup %9977 }
 0x437   : > { %2623 = vperm.xlu1 %9887, %v11207_v37   ;;  %14683 = vst [vmem:[#allocation89_spill] sm:$0xff] %v11259_v36  ;;  %v11263_v52 = vpop.eup %9979 }
 0x438   : > { %14684 = vst [vmem:[#allocation90_spill] sm:$0xff] %v11263_v52  ;;  %v11265_v54 = vpop.eup %9981 }
 0x439   : > { %14685 = vst [vmem:[#allocation91_spill] sm:$0xff] %v11265_v54 }
 0x43a   : > { %2578 = vperm.xlu0 %9888, %v11214_v40  }
 0x43b   : > { %2581 = vperm.xlu1 %9887, %v11217_v27  }
 0x43e   : > { %2626 = vperm.xlu0 %9888, %v11224_v61  }
 0x43f   : > { %2629 = vperm.xlu1 %9887, %v11227_v53  }
 0x442   : > { %2584 = vperm.xlu0 %9888, %v11232_v41  }
 0x443   : > { %2587 = vperm.xlu1 %9887, %v11235_v1  }
 0x446   : > { %2632 = vperm.xlu0 %9888, %v11239_v2  }
 0x447   : > { %2635 = vperm.xlu1 %9887, %v11241_v13  }
 0x44a   : > { %2590 = vperm.xlu0 %9888, %v11245_v60  }
 0x44b   : > { %2593 = vperm.xlu1 %9887, %v11247_v21  }
 0x44e   : > { %2638 = vperm.xlu0 %9888, %v11251_v32  }
 0x44f   : > { %2641 = vperm.xlu1 %9887, %v11253_v43  }
 0x452   : > { %2596 = vperm.xlu0 %9888, %v11257_v55  }
 0x453   : > { %2599 = vperm.xlu1 %9887, %v11259_v36  }
 0x456   : > { %2644 = vperm.xlu0 %9888, %v11263_v52  }
 0x457   : > { %2647 = vperm.xlu1 %9887, %v11265_v54  }
 0x495   : > { %v2555_v46 = vpop.permute.xlu0 %2554 }
 0x496   : > { %v2558_v56 = vpop.permute.xlu1 %2557  ;;  %v2652_v43 = vrot.slane %v2555_v46, %v11028_v49 }
 0x497   : > { %v2656_v32 = vrot.slane %v2558_v56, %v11023_v23 }
 0x499   : > { %v2561_v42 = vpop.permute.xlu0 %2560 }
 0x49a   : > { %v2564_v29 = vpop.permute.xlu1 %2563  ;;  %v2661_v52 = vrot.slane %v2561_v42, %v11028_v49  ;;  %v2657_v42 = vsel %vm2176_vm12, %v2656_v32, %v2652_v43 }
 0x49b   : > { %v2665_v36 = vrot.slane %v2564_v29, %v11023_v23 }
 0x49d   : > { %v11269_v5 = vpop.permute.xlu0 %2602  ;;  %v2666_v13 = vsel %vm2176_vm12, %v2665_v36, %v2661_v52 }
 0x49e   : > { %v11271_v33 = vpop.permute.xlu1 %2605  ;;  %v2793_v52 = vsel %vm2313_vm13, %v2666_v13, %v2657_v42 }
 0x4a1   : > { %v2609_v10 = vpop.permute.xlu0 %2608 }
 0x4a2   : > { %v2612_v47 = vpop.permute.xlu1 %2611  ;;  %v2733_v29 = vrot.slane %v2609_v10, %v11028_v49 }
 0x4a3   : > { %v2737_v46 = vrot.slane %v2612_v47, %v11023_v23 }
 0x4a5   : > { %v2567_v38 = vpop.permute.xlu0 %2566  ;;  %v2738_v13 = vsel %vm2176_vm12, %v2737_v46, %v2733_v29 }
 0x4a6   : > { %v2570_v12 = vpop.permute.xlu1 %2569  ;;  %v2670_v7 = vrot.slane %v2567_v38, %v11028_v49 }
 0x4a7   : > { %v2674_v21 = vrot.slane %v2570_v12, %v11023_v23 }
 0x4a9   : > { %v2615_v34 = vpop.permute.xlu0 %2614  ;;  %v2675_v56 = vsel %vm2176_vm12, %v2674_v21, %v2670_v7  ;;  %v2728_v7 = vrot.slane %v11271_v33, %v11023_v23 }
 0x4aa   : > { %v2618_v48 = vpop.permute.xlu1 %2617  ;;  %v2742_v38 = vrot.slane %v2615_v34, %v11028_v49 }
 0x4ab   : > { %v2746_v12 = vrot.slane %v2618_v48, %v11023_v23 }
 0x4ad   : > { %v2573_v22 = vpop.permute.xlu0 %2572 }
 0x4ae   : > { %v2576_v39 = vpop.permute.xlu1 %2575  ;;  %v2679_v2 = vrot.slane %v2573_v22, %v11028_v49  ;;  %v2724_v22 = vrot.slane %v11269_v5, %v11028_v49 }
 0x4af   : > { %v2683_v31 = vrot.slane %v2576_v39, %v11023_v23  ;;  %v2794_v39 = vsel %vm2315_vm14, %v2675_v56, %v2793_v52 }
 0x4b1   : > { %v2621_v15 = vpop.permute.xlu0 %2620  ;;  %v2684_v21 = vsel %vm2176_vm12, %v2683_v31, %v2679_v2 }
 0x4b2   : > { %v2624_v45 = vpop.permute.xlu1 %2623  ;;  %v2751_v5 = vrot.slane %v2621_v15, %v11028_v49  ;;  %v2795_v2 = vsel %vm2317_vm15, %v2684_v21, %v2794_v39 }
 0x4b5   : > { %v2579_v4 = vpop.permute.xlu0 %2578 }
 0x4b6   : > { %v2582_v6 = vpop.permute.xlu1 %2581  ;;  %v2688_v41 = vrot.slane %v2579_v4, %v11028_v49  ;;  %v2755_v4 = vrot.slane %v2624_v45, %v11023_v23 }
 0x4b7   : > { %v2692_v36 = vrot.slane %v2582_v6, %v11023_v23  ;;  %v2747_v6 = vsel %vm2176_vm12, %v2746_v12, %v2742_v38 }
 0x4b8   : > { %v2756_v46 = vsel %vm2176_vm12, %v2755_v4, %v2751_v5 }
 0x4b9   : > { %v2627_v17 = vpop.permute.xlu0 %2626 }
 0x4ba   : > { %v2630_v16 = vpop.permute.xlu1 %2629  ;;  %v2760_v33 = vrot.slane %v2627_v17, %v11028_v49 }
 0x4bb   : > { %v2764_v31 = vrot.slane %v2630_v16, %v11023_v23  ;;  %v2729_v16 = vsel %vm2176_vm12, %v2728_v7, %v2724_v22 }
 0x4bd   : > { %v2585_v44 = vpop.permute.xlu0 %2584  ;;  %v2765_v38 = vsel %vm2176_vm12, %v2764_v31, %v2760_v33 }
 0x4be   : > { %v2588_v59 = vpop.permute.xlu1 %2587  ;;  %v2697_v32 = vrot.slane %v2585_v44, %v11028_v49  ;;  %v2693_v44 = vsel %vm2176_vm12, %v2692_v36, %v2688_v41 }
 0x4bf   : > { %v2701_v43 = vrot.slane %v2588_v59, %v11023_v23  ;;  %v2796_v56 = vsel %vm2319_vm0, %v2693_v44, %v2795_v2 }
 0x4c1   : > { %v2633_v54 = vpop.permute.xlu0 %2632 }
 0x4c2   : > { %v2636_v55 = vpop.permute.xlu1 %2635 }
 0x4c3   : > { %v2773_v59 = vrot.slane %v2636_v55, %v11023_v23  ;;  %v2800_v55 = vsel %vm2313_vm13, %v2738_v13, %v2729_v16 }
 0x4c4   : > { %v2801_v36 = vsel %vm2315_vm14, %v2747_v6, %v2800_v55 }
 0x4c5   : > { %v2591_v60 = vpop.permute.xlu0 %2590 }
 0x4c6   : > { %v2594_v1 = vpop.permute.xlu1 %2593  ;;  %v2706_v47 = vrot.slane %v2591_v60, %v11028_v49  ;;  %v2769_v60 = vrot.slane %v2633_v54, %v11028_v49 }
 0x4c7   : > { %v2710_v34 = vrot.slane %v2594_v1, %v11023_v23  ;;  %v2702_v1 = vsel %vm2176_vm12, %v2701_v43, %v2697_v32 }
 0x4c8   : > { %v2797_v12 = vsel %vm2321_vm2, %v2702_v1, %v2796_v56  ;;  %v2774_v52 = vsel %vm2176_vm12, %v2773_v59, %v2769_v60 }
 0x4c9   : > { %v2639_v10 = vpop.permute.xlu0 %2638  ;;  %v2711_v15 = vsel %vm2176_vm12, %v2710_v34, %v2706_v47 }
 0x4ca   : > { %v2642_v48 = vpop.permute.xlu1 %2641  ;;  %v2778_v45 = vrot.slane %v2639_v10, %v11028_v49  ;;  %v2798_v22 = vsel %vm2323_vm4, %v2711_v15, %v2797_v12  ;;  %v2802_v10 = vsel %vm2317_vm15, %v2756_v46, %v2801_v36 }
 0x4cb   : > { %v2782_v29 = vrot.slane %v2642_v48, %v11023_v23  ;;  %v2803_v48 = vsel %vm2319_vm0, %v2765_v38, %v2802_v10 }
 0x4cc   : > { %v2804_v5 = vsel %vm2321_vm2, %v2774_v52, %v2803_v48 }
 0x4cd   : > { %v2597_v42 = vpop.permute.xlu0 %2596  ;;  %v2783_v7 = vsel %vm2176_vm12, %v2782_v29, %v2778_v45 }
 0x4ce   : > { %v2715_v41 = vrot.slane %v2597_v42, %v11028_v49  ;;  %v2600_v17 = vpop.permute.xlu1 %2599  ;;  %v2805_v6 = vsel %vm2323_vm4, %v2783_v7, %v2804_v5 }
 0x4cf   : > { %v2719_v54 = vrot.slane %v2600_v17, %v11023_v23 }
 0x4d1   : > { %v2645_v32 = vpop.permute.xlu0 %2644  ;;  %v2720_v43 = vsel %vm2176_vm12, %v2719_v54, %v2715_v41 }
 0x4d2   : > { %v2787_v21 = vrot.slane %v2645_v32, %v11028_v49  ;;  %v2648_v47 = vpop.permute.xlu1 %2647  ;;  %v2799_v34 = vsel %vm2325_vm3, %v2720_v43, %v2798_v22 }
 0x4d3   : > { %v2791_v13 = vrot.slane %v2648_v47, %v11023_v23  ;;  %v2809_v39 = vsel %vm2336_vm5, %v2799_v34, 0.0 }
 0x4d4   : > { %2810 = vadd.xlane.f32.xlu0 %v2809_v39 }
 0x4d5   : > { %v2792_v4 = vsel %vm2176_vm12, %v2791_v13, %v2787_v21 }
 0x4d6   : > { %v2806_v44 = vsel %vm2325_vm3, %v2792_v4, %v2805_v6 }
 0x4d7   : > { %v2812_v33 = vsel %vm2336_vm5, %v2806_v44, 0.0 }
 0x4d8   : > { %2813 = vadd.xlane.f32.xlu1 %v2812_v33 }
 0x55d   : > { %v2811_v31 = vpop.xlane.xlu0 %2810 }
 0x55e   : > { %9983 = vrcp.f32 %v2811_v31 }
 0x561   : > { %v2814_v2 = vpop.xlane.xlu1 %2813 }
 0x562   : > { %9985 = vrcp.f32 %v2814_v2 }
 0x56b   : > { %v11339_v1 = vpop.eup %9983 }
 0x56c   : > { %v2822_v60 = vrot.slane %v11339_v1, %v10395_v18  ;;  %v2826_v59 = vrot.slane %v11339_v1, %v14660_v51 }
 0x56e   : > { %v2899_v42 = vmul.f32 %v11126_v62, %v2822_v60  ;;  %v2900_v15 = vmul.f32 %v11129_v30, %v2822_v60  ;;  %v2901_v45 = vmul.f32 %v11136_v58, %v2826_v59  ;;  %v2902_v29 = vmul.f32 %v11139_v57, %v2826_v59 }
 0x56f   : > { %v11349_v41 = vpop.eup %9985  ;;  %v2830_v57 = vrot.slane %v11339_v1, %v14661_v28 }
 0x570   : > { %v2931_v17 = vpack.c.bf16 %v2900_v15, %v2899_v42  ;;  %v2854_v16 = vrot.slane %v11349_v41, %v10395_v18  ;;  %v2932_v46 = vpack.c.bf16 %v2902_v29, %v2901_v45  ;;  %v2858_v55 = vrot.slane %v11349_v41, %v14660_v51 }
 0x571   : > { %v2903_v32 = vmul.f32 %v11174_v8, %v2830_v57  ;;  %v2862_v10 = vrot.slane %v11349_v41, %v14661_v28  ;;  %v2866_v48 = vrot.slane %v11349_v41, %v14662_v9  ;;  %v2870_v59 = vrot.slane %v11349_v41, %v14663_v3 }
 0x572   : > { %v2968_v56 = vunpack.c.l.b16 %v2931_v17  ;;  %v2969_v54 = vunpack.c.h.b16 %v2931_v17  ;;  %v2915_v62 = vmul.f32 %v11154_v26, %v2854_v16  ;;  %v2916_v30 = vmul.f32 %v11157_v0, %v2854_v16 }
 0x573   : > { %v2970_v58 = vunpack.c.l.b16 %v2932_v46  ;;  %v2971_v38 = vunpack.c.h.b16 %v2932_v46  ;;  %v2917_v36 = vmul.f32 %v11164_v63, %v2858_v55  ;;  %v2918_v52 = vmul.f32 %v11167_v35, %v2858_v55 }
 0x574   : > { %3001 = vperm.xlu0 %9888, %v2968_v56   ;;  %3004 = vperm.xlu1 %9887, %v2969_v54   ;;  %v2939_v12 = vpack.c.bf16 %v2916_v30, %v2915_v62  ;;  %v2904_v26 = vmul.f32 %v11177_v11, %v2830_v57  ;;  %v2834_v63 = vrot.slane %v11339_v1, %v14662_v9  ;;  %v14688_v30 = vld [vmem:[#allocation9_spill] sm:$0xff] }
 0x575   : > { %v2940_v22 = vpack.c.bf16 %v2918_v52, %v2917_v36  ;;  %v2919_v47 = vmul.f32 %v11184_v14, %v2862_v10  ;;  %v2920_v8 = vmul.f32 %v11187_v24, %v2862_v10  ;;  %v2921_v6 = vmul.f32 %v11204_v19, %v2866_v48  ;;  %v14689_v57 = vld [vmem:[#allocation81_spill] sm:$0xff]  ;;  %v14691_v52 = vld [vmem:[#allocation82_spill] sm:$0xff] }
 0x576   : > { %v2985_v43 = vunpack.c.h.b16 %v2939_v12  ;;  %v2984_v0 = vunpack.c.l.b16 %v2939_v12  ;;  %v2933_v7 = vpack.c.bf16 %v2904_v26, %v2903_v32  ;;  %v2905_v11 = vmul.f32 %v11194_v25, %v2834_v63  ;;  %v14690_v12 = vld [vmem:[#allocation83_spill] sm:$0xff]  ;;  %v14692_v26 = vld [vmem:[#allocation85_spill] sm:$0xff] }
 0x577   : > { %v2987_v21 = vunpack.c.h.b16 %v2940_v22  ;;  %v2986_v35 = vunpack.c.l.b16 %v2940_v22  ;;  %v2906_v34 = vmul.f32 %v11197_v20, %v2834_v63  ;;  %v2941_v5 = vpack.c.bf16 %v2920_v8, %v2919_v47 }
 0x578   : > { %3007 = vperm.xlu0 %9888, %v2970_v58   ;;  %3010 = vperm.xlu1 %9887, %v2971_v38   ;;  %v2973_v13 = vunpack.c.h.b16 %v2933_v7  ;;  %v2972_v39 = vunpack.c.l.b16 %v2933_v7  ;;  %v2922_v14 = vmul.f32 %v11207_v37, %v2866_v48  ;;  %v2838_v25 = vrot.slane %v11339_v1, %v14663_v3  ;;  %v14695_v48 = vld [vmem:[#allocation87_spill] sm:$0xff] }
 0x579   : > { %v2934_v4 = vpack.c.bf16 %v2906_v34, %v2905_v11  ;;  %v2989_v24 = vunpack.c.h.b16 %v2941_v5  ;;  %v2988_v44 = vunpack.c.l.b16 %v2941_v5  ;;  %v2842_v37 = vrot.slane %v11339_v1, %v14664_v50  ;;  %v14694_v11 = vld [vmem:[#allocation84_spill] sm:$0xff] }
 0x57a   : > { %v2942_v33 = vpack.c.bf16 %v2922_v14, %v2921_v6  ;;  %v2907_v2 = vmul.f32 %v11214_v40, %v2838_v25  ;;  %v2908_v60 = vmul.f32 %v11217_v27, %v2838_v25  ;;  %v2923_v45 = vmul.f32 %v11224_v61, %v2870_v59  ;;  %v14686_v40 = vld [vmem:[#allocation80_spill] sm:$0xff]  ;;  %v14687_v27 = vld [vmem:[#allocation79_spill] sm:$0xff] }
 0x57b   : > { %v2975_v20 = vunpack.c.h.b16 %v2934_v4  ;;  %v2974_v31 = vunpack.c.l.b16 %v2934_v4  ;;  %v2924_v29 = vmul.f32 %v11227_v53, %v2870_v59  ;;  %v2909_v17 = vmul.f32 %v14686_v40, %v2842_v37  ;;  %v14697_v4 = vld [vmem:[#allocation89_spill] sm:$0xff] }
 0x57c   : > { %3052 = vperm.xlu1 %9887, %v2985_v43   ;;  %3049 = vperm.xlu0 %9888, %v2984_v0   ;;  %v2991_v19 = vunpack.c.h.b16 %v2942_v33  ;;  %v2990_v42 = vunpack.c.l.b16 %v2942_v33  ;;  %v2935_v15 = vpack.c.bf16 %v2908_v60, %v2907_v2  ;;  %v2910_v16 = vmul.f32 %v14687_v27, %v2842_v37  ;;  %v14699_v60 = vld [vmem:[#allocation91_spill] sm:$0xff]  ;;  %v14700_v40 = vld [vmem:[#allocation13_spill] sm:$0xff] }
 0x57d   : > { %v2943_v54 = vpack.c.bf16 %v2924_v29, %v2923_v45  ;;  %v2874_v55 = vrot.slane %v11349_v41, %v14664_v50  ;;  %v2846_v61 = vrot.slane %v11339_v1, %v14688_v30  ;;  %v2878_v7 = vrot.slane %v11349_v41, %v14688_v30 }
 0x57e   : > { %v2977_v46 = vunpack.c.h.b16 %v2935_v15  ;;  %v2976_v56 = vunpack.c.l.b16 %v2935_v15  ;;  %v2936_v62 = vpack.c.bf16 %v2910_v16, %v2909_v17  ;;  %v14701_v17 = vld [vmem:[#allocation12_spill] sm:$0xff] }
 0x57f   : > { %v2993_v58 = vunpack.c.h.b16 %v2943_v54  ;;  %v2992_v53 = vunpack.c.l.b16 %v2943_v54  ;;  %v2925_v38 = vmul.f32 %v14689_v57, %v2874_v55  ;;  %v2926_v36 = vmul.f32 %v14690_v12, %v2874_v55  ;;  %v14703_v16 = vld [vmem:[#allocation28_spill] sm:$0xff]  ;;  %v14706_v54 = vld [vmem:[#allocation21_spill] sm:$0xff] }
 0x580   : > { %3058 = vperm.xlu1 %9887, %v2987_v21   ;;  %3055 = vperm.xlu0 %9888, %v2986_v35   ;;  %v2911_v32 = vmul.f32 %v14691_v52, %v2846_v61  ;;  %v2912_v43 = vmul.f32 %v14692_v26, %v2846_v61  ;;  %v2979_v0 = vunpack.c.h.b16 %v2936_v62  ;;  %v2978_v22 = vunpack.c.l.b16 %v2936_v62  ;;  %v14693_v21 = vld [vmem:[#allocation10_spill] sm:$0xff]  ;;  %v14707_v55 = vld [vmem:[#allocation65_spill] sm:$0xff]  ;;  %v14709_v61 = vld [vmem:[#allocation64_spill] sm:$0xff] }
 0x581   : > { %v2944_v10 = vpack.c.bf16 %v2926_v36, %v2925_v38  ;;  %v2850_v35 = vrot.slane %v11339_v1, %v14693_v21  ;;  %v2927_v34 = vmul.f32 %v14694_v11, %v2878_v7  ;;  %v2882_v25 = vrot.slane %v11349_v41, %v14693_v21  ;;  %v11410_v41 = vld [vmem:[%s14286_s14 + $0x8] sm:$0x3f]  ;;  %v14708_v62 = vld [vmem:[#allocation61_spill] sm:$0xff]  ;;  %v14712_v57 = vld [vmem:[#allocation32_spill] sm:$0xff] }
 0x582   : > { %v2937_v63 = vpack.c.bf16 %v2912_v43, %v2911_v32  ;;  %v3391_v29 = vrot.slane %v11410_v41, %v14660_v51  ;;  %v14702_v27 = vpack.c.bf16 %v14700_v40, %v14701_v17  ;;  %v14713_v38 = vld [vmem:[#allocation70_spill] sm:$0xff]  ;;  %v14714_v12 = vld [vmem:[#allocation68_spill] sm:$0xff]  ;;  %v14715_v36 = vld [vmem:[#allocation35_spill] sm:$0xff] }
 0x583   : > { %v2995_v47 = vunpack.c.h.b16 %v2944_v10  ;;  %v2994_v8 = vunpack.c.l.b16 %v2944_v10  ;;  %v2914_v6 = vmul.f32 %v14697_v4, %v2850_v35  ;;  %v2930_v59 = vmul.f32 %v14699_v60, %v2882_v25  ;;  %v14716_v52 = vld [vmem:[#allocation29_spill] sm:$0xff]  ;;  %v14718_v26 = vld [vmem:[#allocation67_spill] sm:$0xff]  ;;  %v14719_v43 = vld [vmem:[#allocation46_spill] sm:$0xff] }
 0x584   : > { %3016 = vperm.xlu1 %9887, %v2973_v13   ;;  %3013 = vperm.xlu0 %9888, %v2972_v39   ;;  %v2928_v13 = vmul.f32 %v14695_v48, %v2878_v7  ;;  %v14696_v39 = vld [vmem:[#allocation88_spill] sm:$0xff]  ;;  %v2981_v14 = vunpack.c.h.b16 %v2937_v63  ;;  %v14717_v32 = vld [vmem:[#allocation69_spill] sm:$0xff]  ;;  %v14723_v7 = vld [vmem:[#allocation43_spill] sm:$0xff] }
 0x585   : > { %v2913_v5 = vmul.f32 %v14696_v39, %v2850_v35  ;;  %v14722_v10 = vld [vmem:[#allocation72_spill] sm:$0xff]  ;;  %v14725_v35 = vld [vmem:[#allocation73_spill] sm:$0xff]  ;;  %v14728_v11 = vld [vmem:[#allocation50_spill] sm:$0xff] }
 0x586   : > { %v14730_v48 = vld [vmem:[#allocation76_spill] sm:$0xff]  ;;  %v14732_v4 = vld [vmem:[#allocation49_spill] sm:$0xff] }
 0x587   : > { %v2938_v1 = vpack.c.bf16 %v2914_v6, %v2913_v5  ;;  %v14731_v5 = vld [vmem:[#allocation53_spill] sm:$0xff] }
 0x588   : > { %3064 = vperm.xlu1 %9887, %v2989_v24   ;;  %3061 = vperm.xlu0 %9888, %v2988_v44   ;;  %v2980_v24 = vunpack.c.l.b16 %v2937_v63  ;;  %v2945_v44 = vpack.c.bf16 %v2928_v13, %v2927_v34  ;;  %v14724_v63 = vld [vmem:[#allocation39_spill] sm:$0xff]  ;;  %v14729_v34 = vld [vmem:[#allocation78_spill] sm:$0xff] }
 0x589   : > { %v2982_v37 = vunpack.c.l.b16 %v2938_v1 }
 0x58a   : > { %v2996_v33 = vunpack.c.l.b16 %v2945_v44 }
 0x58c   : > { %3022 = vperm.xlu1 %9887, %v2975_v20   ;;  %3019 = vperm.xlu0 %9888, %v2974_v31   ;;  %v2997_v20 = vunpack.c.h.b16 %v2945_v44  ;;  %v14698_v31 = vld [vmem:[#allocation90_spill] sm:$0xff]  ;;  %v14734_v44 = vld [vmem:[#allocation75_spill] sm:$0xff] }
 0x58d   : > { %v2929_v2 = vmul.f32 %v14698_v31, %v2882_v25 }
 0x590   : > { %3070 = vperm.xlu1 %9887, %v2991_v19   ;;  %3067 = vperm.xlu0 %9888, %v2990_v42   ;;  %v2983_v19 = vunpack.c.h.b16 %v2938_v1  ;;  %v2946_v42 = vpack.c.bf16 %v2930_v59, %v2929_v2 }
 0x592   : > { %v2999_v15 = vunpack.c.h.b16 %v2946_v42  ;;  %v2998_v45 = vunpack.c.l.b16 %v2946_v42 }
 0x594   : > { %3028 = vperm.xlu1 %9887, %v2977_v46   ;;  %3025 = vperm.xlu0 %9888, %v2976_v56   ;;  %v14704_v46 = vld [vmem:[#allocation22_spill] sm:$0xff]  ;;  %v14705_v56 = vld [vmem:[#allocation25_spill] sm:$0xff] }
 0x598   : > { %3076 = vperm.xlu1 %9887, %v2993_v58   ;;  %3073 = vperm.xlu0 %9888, %v2992_v53   ;;  %v14710_v58 = vld [vmem:[#allocation58_spill] sm:$0xff]  ;;  %v14711_v53 = vld [vmem:[#allocation36_spill] sm:$0xff] }
 0x59c   : > { %3034 = vperm.xlu1 %9887, %v2979_v0   ;;  %3031 = vperm.xlu0 %9888, %v2978_v22   ;;  %v14720_v0 = vld [vmem:[#allocation42_spill] sm:$0xff] }
 0x59d   : > { %v14721_v22 = vld [vmem:[#allocation74_spill] sm:$0xff] }
 0x5a0   : > { %3082 = vperm.xlu1 %9887, %v2995_v47   ;;  %3079 = vperm.xlu0 %9888, %v2994_v8   ;;  %v14726_v47 = vld [vmem:[#allocation71_spill] sm:$0xff]  ;;  %v14727_v8 = vld [vmem:[#allocation57_spill] sm:$0xff] }
 0x5a4   : > { %3040 = vperm.xlu1 %9887, %v2981_v14   ;;  %3037 = vperm.xlu0 %9888, %v2980_v24   ;;  %v14733_v24 = vld [vmem:[#allocation77_spill] sm:$0xff] }
 0x5a8   : > { %3088 = vperm.xlu1 %9887, %v2997_v20   ;;  %3085 = vperm.xlu0 %9888, %v2996_v33  }
 0x5ac   : > { %3046 = vperm.xlu1 %9887, %v2983_v19   ;;  %3043 = vperm.xlu0 %9888, %v2982_v37  }
 0x5b0   : > { %3094 = vperm.xlu1 %9887, %v2999_v15   ;;  %3091 = vperm.xlu0 %9888, %v2998_v45  }
 0x5b4   : > { %3393 = vrot.lane.b32.xlu1 %v3391_v29, %s10206_s26  ;;  %3256 = vrot.lane.b32.xlu0 %v14702_v27, %s10207_s27 }
 0x5b8   : > { %3652 = vrot.lane.b32.xlu1 %v14703_v16, %s10207_s27  ;;  %3650 = vrot.lane.b32.xlu0 %v14704_v46, %s10207_s27 }
 0x5bc   : > { %3656 = vrot.lane.b32.xlu1 %v14705_v56, %s10207_s27  ;;  %3654 = vrot.lane.b32.xlu0 %v14706_v54, %s10207_s27 }
 0x5c0   : > { %3684 = vrot.lane.b32.xlu1 %v14707_v55, %s10207_s27  ;;  %3682 = vrot.lane.b32.xlu0 %v14708_v62, %s10207_s27 }
 0x5c4   : > { %3688 = vrot.lane.b32.xlu1 %v14709_v61, %s10207_s27  ;;  %3686 = vrot.lane.b32.xlu0 %v14710_v58, %s10207_s27 }
 0x5c8   : > { %3660 = vrot.lane.b32.xlu1 %v14711_v53, %s10207_s27  ;;  %3658 = vrot.lane.b32.xlu0 %v14712_v57, %s10207_s27 }
 0x5cc   : > { %3692 = vrot.lane.b32.xlu1 %v14713_v38, %s10207_s27  ;;  %3690 = vrot.lane.b32.xlu0 %v14714_v12, %s10207_s27 }
 0x5d0   : > { %3664 = vrot.lane.b32.xlu1 %v14715_v36, %s10207_s27  ;;  %3662 = vrot.lane.b32.xlu0 %v14716_v52, %s10207_s27 }
 0x5d4   : > { %3696 = vrot.lane.b32.xlu1 %v14717_v32, %s10207_s27  ;;  %3694 = vrot.lane.b32.xlu0 %v14718_v26, %s10207_s27 }
 0x5d8   : > { %3668 = vrot.lane.b32.xlu1 %v14719_v43, %s10207_s27  ;;  %3666 = vrot.lane.b32.xlu0 %v14720_v0, %s10207_s27 }
 0x5dc   : > { %3700 = vrot.lane.b32.xlu1 %v14721_v22, %s10207_s27  ;;  %3698 = vrot.lane.b32.xlu0 %v14722_v10, %s10207_s27 }
 0x5e0   : > { %3672 = vrot.lane.b32.xlu1 %v14723_v7, %s10207_s27  ;;  %3670 = vrot.lane.b32.xlu0 %v14724_v63, %s10207_s27 }
 0x5e4   : > { %3704 = vrot.lane.b32.xlu1 %v14725_v35, %s10207_s27  ;;  %3702 = vrot.lane.b32.xlu0 %v14726_v47, %s10207_s27 }
 0x5e8   : > { %3676 = vrot.lane.b32.xlu1 %v14727_v8, %s10207_s27  ;;  %3674 = vrot.lane.b32.xlu0 %v14728_v11, %s10207_s27 }
 0x5ec   : > { %3708 = vrot.lane.b32.xlu1 %v14729_v34, %s10207_s27  ;;  %3706 = vrot.lane.b32.xlu0 %v14730_v48, %s10207_s27 }
 0x5ef   : > { %v3002_v13 = vpop.permute.xlu0 %3001  ;;  %v3005_v39 = vpop.permute.xlu1 %3004 }
 0x5f0   : > { %3680 = vrot.lane.b32.xlu1 %v14731_v5, %s10207_s27  ;;  %3678 = vrot.lane.b32.xlu0 %v14732_v4, %s10207_s27  ;;  %v3099_v62 = vrot.slane %v3002_v13, %v11028_v49  ;;  %v3103_v61 = vrot.slane %v3005_v39, %v11023_v23 }
 0x5f2   : > { %v3104_v7 = vsel %vm2176_vm12, %v3103_v61, %v3099_v62 }
 0x5f3   : > { %v3008_v6 = vpop.permute.xlu0 %3007  ;;  %v3011_v14 = vpop.permute.xlu1 %3010 }
 0x5f4   : > { %3712 = vrot.lane.b32.xlu1 %v14733_v24, %s10207_s27  ;;  %3710 = vrot.lane.b32.xlu0 %v14734_v44, %s10207_s27  ;;  %v3108_v54 = vrot.slane %v3008_v6, %v11028_v49  ;;  %v3112_v55 = vrot.slane %v3011_v14, %v11023_v23 }
 0x5f6   : > { %v3113_v26 = vsel %vm2176_vm12, %v3112_v55, %v3108_v54 }
 0x5f7   : > { %v3050_v25 = vpop.permute.xlu0 %3049  ;;  %v3053_v1 = vpop.permute.xlu1 %3052  ;;  %v3240_v63 = vsel %vm2313_vm13, %v3113_v26, %v3104_v7 }
 0x5f8   : > { %v3171_v58 = vrot.slane %v3050_v25, %v11028_v49  ;;  %v3175_v53 = vrot.slane %v3053_v1, %v11023_v23 }
 0x5fa   : > { %v3176_v35 = vsel %vm2176_vm12, %v3175_v53, %v3171_v58 }
 0x5fb   : > { %v3056_v20 = vpop.permute.xlu0 %3055  ;;  %v3059_v33 = vpop.permute.xlu1 %3058 }
 0x5fc   : > { %v3180_v57 = vrot.slane %v3056_v20, %v11028_v49  ;;  %v3184_v38 = vrot.slane %v3059_v33, %v11023_v23 }
 0x5fe   : > { %v3185_v47 = vsel %vm2176_vm12, %v3184_v38, %v3180_v57 }
 0x5ff   : > { %v3014_v31 = vpop.permute.xlu0 %3013  ;;  %v3017_v2 = vpop.permute.xlu1 %3016 }
 0x600   : > { %v3117_v12 = vrot.slane %v3014_v31, %v11028_v49  ;;  %v3121_v36 = vrot.slane %v3017_v2, %v11023_v23 }
 0x602   : > { %v3122_v8 = vsel %vm2176_vm12, %v3121_v36, %v3117_v12 }
 0x603   : > { %v3062_v60 = vpop.permute.xlu0 %3061  ;;  %v3065_v59 = vpop.permute.xlu1 %3064 }
 0x604   : > { %v3189_v43 = vrot.slane %v3062_v60, %v11028_v49  ;;  %v3193_v0 = vrot.slane %v3065_v59, %v11023_v23 }
 0x606   : > { %v3194_v4 = vsel %vm2176_vm12, %v3193_v0, %v3189_v43 }
 0x607   : > { %v3020_v19 = vpop.permute.xlu0 %3019  ;;  %v3023_v37 = vpop.permute.xlu1 %3022 }
 0x608   : > { %v3126_v22 = vrot.slane %v3020_v19, %v11028_v49  ;;  %v3130_v10 = vrot.slane %v3023_v37, %v11023_v23 }
 0x60a   : > { %v3131_v6 = vsel %vm2176_vm12, %v3130_v10, %v3126_v22 }
 0x60b   : > { %v3068_v42 = vpop.permute.xlu0 %3067  ;;  %v3071_v15 = vpop.permute.xlu1 %3070 }
 0x60c   : > { %v3198_v48 = vrot.slane %v3068_v42, %v11028_v49  ;;  %v3202_v13 = vrot.slane %v3071_v15, %v11023_v23 }
 0x60e   : > { %v3203_v37 = vsel %vm2176_vm12, %v3202_v13, %v3198_v48 }
 0x60f   : > { %v3026_v45 = vpop.permute.xlu0 %3025  ;;  %v3029_v29 = vpop.permute.xlu1 %3028 }
 0x610   : > { %v3135_v39 = vrot.slane %v3026_v45, %v11028_v49  ;;  %v3139_v5 = vrot.slane %v3029_v29, %v11023_v23  ;;  %v3247_v29 = vsel %vm2313_vm13, %v3185_v47, %v3176_v35  ;;  %v14735_v35 = vmov 0.0   ;;  %v9908_v47 = vld [vmem:[%s14284_s12 + $0x8] sm:$0xff]  }
 0x612   : > { %v3140_v42 = vsel %vm2176_vm12, %v3139_v5, %v3135_v39 }
 0x613   : > { %v3074_v40 = vpop.permute.xlu0 %3073  ;;  %v3077_v17 = vpop.permute.xlu1 %3076 }
 0x614   : > { %v3207_v14 = vrot.slane %v3074_v40, %v11028_v49  ;;  %v3211_v24 = vrot.slane %v3077_v17, %v11023_v23  ;;  %v3241_v40 = vsel %vm2315_vm14, %v3122_v8, %v3240_v63  ;;  %v9909_v8 = vld [vmem:[%s14284_s12] sm:$0xff]  }
 0x616   : > { %v3212_v17 = vsel %vm2176_vm12, %v3211_v24, %v3207_v14 }
 0x617   : > { %v3032_v27 = vpop.permute.xlu0 %3031  ;;  %v3035_v16 = vpop.permute.xlu1 %3034 }
 0x618   : > { %v3144_v44 = vrot.slane %v3032_v27, %v11028_v49  ;;  %v3148_v25 = vrot.slane %v3035_v16, %v11023_v23  ;;  %v3248_v27 = vsel %vm2315_vm14, %v3194_v4, %v3247_v29  ;;  %v3242_v16 = vsel %vm2317_vm15, %v3131_v6, %v3241_v40 }
 0x619   : > { %v3249_v54 = vsel %vm2317_vm15, %v3203_v37, %v3248_v27  ;;  %v3243_v55 = vsel %vm2319_vm0, %v3140_v42, %v3242_v16 }
 0x61a   : > { %v3250_v57 = vsel %vm2319_vm0, %v3212_v17, %v3249_v54 }
 0x61b   : > { %v3080_v46 = vpop.permute.xlu0 %3079  ;;  %v3083_v56 = vpop.permute.xlu1 %3082 }
 0x61c   : > { %v3216_v1 = vrot.slane %v3080_v46, %v11028_v49  ;;  %v3220_v20 = vrot.slane %v3083_v56, %v11023_v23  ;;  %v3149_v46 = vsel %vm2176_vm12, %v3148_v25, %v3144_v44 }
 0x61e   : > { %v3221_v56 = vsel %vm2176_vm12, %v3220_v20, %v3216_v1 }
 0x61f   : > { %v3038_v52 = vpop.permute.xlu0 %3037  ;;  %v3041_v32 = vpop.permute.xlu1 %3040 }
 0x620   : > { %v3153_v33 = vrot.slane %v3038_v52, %v11028_v49  ;;  %v3157_v31 = vrot.slane %v3041_v32, %v11023_v23  ;;  %v3244_v52 = vsel %vm2321_vm2, %v3149_v46, %v3243_v55  ;;  %v3251_v32 = vsel %vm2321_vm2, %v3221_v56, %v3250_v57 }
 0x622   : > { %v3158_v62 = vsel %vm2176_vm12, %v3157_v31, %v3153_v33 }
 0x623   : > { %v3086_v11 = vpop.permute.xlu0 %3085  ;;  %v3089_v34 = vpop.permute.xlu1 %3088  ;;  %v3245_v26 = vsel %vm2323_vm4, %v3158_v62, %v3244_v52 }
 0x624   : > { %v3225_v2 = vrot.slane %v3086_v11, %v11028_v49  ;;  %v3229_v60 = vrot.slane %v3089_v34, %v11023_v23  ;;  %v10191_v11 = vld [vmem:[%s14286_s14] sm:$0x3f] }
 0x625   : > { %v2951_v34 = vrot.slane %v10191_v11, %v14662_v9  ;;  %v3312_v4 = vrot.slane %v10191_v11, %v14663_v3  ;;  %v3318_v20 = vrot.slane %v10191_v11, %v14664_v50 }
 0x626   : > { %v3230_v61 = vsel %vm2176_vm12, %v3229_v60, %v3225_v2 }
 0x627   : > { %v3044_v59 = vpop.permute.xlu0 %3043  ;;  %v3047_v19 = vpop.permute.xlu1 %3046  ;;  %v3252_v43 = vsel %vm2323_vm4, %v3230_v61, %v3251_v32 }
 0x628   : > { %v3162_v15 = vrot.slane %v3044_v59, %v11028_v49  ;;  %v3166_v45 = vrot.slane %v3047_v19, %v11023_v23 }
 0x62a   : > { %v3167_v38 = vsel %vm2176_vm12, %v3166_v45, %v3162_v15 }
 0x62b   : > { %v3092_v58 = vpop.permute.xlu0 %3091  ;;  %v3095_v53 = vpop.permute.xlu1 %3094  ;;  %v3246_v22 = vsel %vm2325_vm3, %v3167_v38, %v3245_v26 }
 0x62c   : > { %v3234_v12 = vrot.slane %v3092_v58, %v11028_v49  ;;  %v3238_v36 = vrot.slane %v3095_v53, %v11023_v23 }
 0x62e   : > { %v3239_v0 = vsel %vm2176_vm12, %v3238_v36, %v3234_v12 }
 0x62f   : > { %v3253_v10 = vsel %vm2325_vm3, %v3239_v0, %v3252_v43  ;;  %v3257_v7 = vpop.permute.xlu0 %3256  ;;  %v3394_v19 = vpop.permute.xlu1 %3393 }
 0x630   : > { %v3254_v63 = vpack.c.b16 %v3253_v10, %v3246_v22  ;;  %9802 = vmatpush3.bf16.msra.mxu1 %v3257_v7 }
 0x631   : > { %9807 = vmatprep.subr.bf16.mxu1 %v14735_v35 }
 0x633   : > { %9804 = vmatmul.mubr.msk.bf16.vlgmr.msra.gmra.mxu1 %vm2336_vm5, %v3254_v63  ;;  %v11576_v27 = vpop.permute.xlu0 %3650  ;;  %v11578_v16 = vpop.permute.xlu1 %3652 }
 0x634   : > { %9811 = vmatprep.mubr.msk.bf16.mxu1 %vm10205_vm1, %v14735_v35  ;;  %9808 = vmatpush3.bf16.msra.mxu1 %v9908_v47  ;;  %14738 = vst [vmem:[#allocation81_spill] sm:$0xff] %v11578_v16  ;;  %v3385_v47 = vrot.slane %v11410_v41, %v10395_v18 }
 0x635   : > { %9809 = vmatprep.subr.bf16.mxu1 %v14735_v35 }
 0x637   : > { %v11580_v46 = vpop.permute.xlu0 %3654  ;;  %v11582_v56 = vpop.permute.xlu1 %3656 }
 0x638   : > { %9810 = vmatpush3.bf16.msra.mxu1 %v9909_v8 }
 0x639   : > { %9815 = vmatprep.subr.bf16.mxu1 %v14735_v35 }
 0x63b   : > { %v11584_v54 = vpop.permute.xlu0 %3682  ;;  %v11586_v55 = vpop.permute.xlu1 %3684 }
 0x63f   : > { %v11588_v62 = vpop.permute.xlu0 %3686  ;;  %v11590_v61 = vpop.permute.xlu1 %3688 }
 0x643   : > { %v11592_v58 = vpop.permute.xlu0 %3658  ;;  %v11594_v53 = vpop.permute.xlu1 %3660 }
 0x647   : > { %v11596_v57 = vpop.permute.xlu0 %3690  ;;  %v11598_v38 = vpop.permute.xlu1 %3692 }
 0x64b   : > { %v11600_v12 = vpop.permute.xlu0 %3662  ;;  %v11602_v36 = vpop.permute.xlu1 %3664 }
 0x64f   : > { %v11604_v52 = vpop.permute.xlu0 %3694  ;;  %v11606_v32 = vpop.permute.xlu1 %3696 }
 0x653   : > { %v11608_v26 = vpop.permute.xlu0 %3666  ;;  %v11610_v43 = vpop.permute.xlu1 %3668 }
 0x657   : > { %v11612_v0 = vpop.permute.xlu0 %3698  ;;  %v11614_v22 = vpop.permute.xlu1 %3700 }
 0x65b   : > { %v11616_v10 = vpop.permute.xlu0 %3670  ;;  %v11618_v7 = vpop.permute.xlu1 %3672 }
 0x65f   : > { %v11620_v63 = vpop.permute.xlu0 %3702  ;;  %v11624_v8 = vpop.permute.xlu1 %3704 }
 0x663   : > { %v11626_v11 = vpop.permute.xlu0 %3674 }
 0x6f3   : > { %v3296_v48 = vpop.f32.mrf.mxu1 }
 0x6f4   : > { %v3297_v13 = vadd.f32 %v3296_v48, %v2951_v34 }
 0x6f5   : > { %v9805_v39 = vpop.f32.mrf.mxu1 }
 0x6f6   : > { %vm3303_vm7 = vcmp.gt.f32.partialorder %v3297_v13, 0.0  ;;  %v3305_v5 = vmul.f32 0.2, %v3297_v13 }
 0x6f7   : > { %v3299_v6 = vpop.f32.mrf.mxu1 }
 0x6f8   : > { %v3307_v14 = vsel %vm3303_vm7, %v3297_v13, %v3305_v5  ;;  %v3300_v24 = vadd.f32 %v3299_v6, %v2951_v34  ;;  %v14739_v13 = vld [vmem:[#allocation56_spill] sm:$0xff]  ;;  %v11631_v6 = vpop.permute.xlu0 %3706 }
 0x6f9   : > { %v9806_v44 = vpop.f32.mrf.mxu1  ;;  %v3313_v1 = vmul.f32 %v3312_v4, %v3307_v14 }
 0x6fa   : > { %vm3304_vm8 = vcmp.gt.f32.partialorder %v3300_v24, 0.0  ;;  %v3306_v25 = vmul.f32 0.2, %v3300_v24 }
 0x6fb   : > { %v3319_v2 = vadd.f32 %v3318_v20, %v3313_v1 }
 0x6fc   : > { %v3308_v33 = vsel %vm3304_vm8, %v3300_v24, %v3306_v25 }
 0x6fd   : > { %v3314_v31 = vmul.f32 %v3312_v4, %v3308_v33  ;;  %v11629_v4 = vpop.permute.xlu1 %3676  ;;  %v11638_v33 = vpop.permute.xlu0 %3678 }
 0x6ff   : > { %v3320_v60 = vadd.f32 %v3318_v20, %v3314_v31 }
 0x701   : > { %v3325_v59 = vpack.c.bf16 %v3320_v60, %v3319_v2  ;;  %v11636_v20 = vpop.permute.xlu1 %3708 }
 0x702   : > { %14740 = vst [vmem:[#allocation83_spill] sm:$0xff] %v11636_v20 }
 0x703   : > { %9812 = vmatmul.mubr.msk.bf16.vlgmr.msra.gmra.mxu1 %vm889_vm6, %v3325_v59 }
 0x704   : > { %9817 = vmatprep.mubr.msk.bf16.mxu1 %vm10205_vm1, %v14735_v35 }
 0x7c3   : > { %v3375_v37 = vpop.f32.mrf.mxu1 }
 0x7c4   : > { %v11566_v42 = vadd.f32 %v3394_v19, %v3375_v37  ;;  %v3386_v34 = vadd.f32 %v3385_v47, %v3375_v37 }
 0x7c5   : > { %v9813_v15 = vpop.f32.mrf.mxu1 }
 0x7c6   : > { %14736 = vst [vmem:[#allocation80_spill] sm:$0xff] %v11566_v42  ;;  %3580 = vrot.lane.b32.xlu0 %v11566_v42, %s10207_s27  ;;  %v3400_v48 = vcombine.high %v3386_v34, %v3386_v34  ;;  %v3407_v39 = vrot.slane %v3386_v34, %v14739_v13 }
 0x7c7   : > { %v3378_v45 = vpop.f32.mrf.mxu1 }
 0x7c8   : > { %v11570_v29 = vadd.f32 %v3394_v19, %v3378_v45  ;;  %v3387_v5 = vadd.f32 %v3385_v47, %v3378_v45  ;;  %v3414_v14 = vrot.slane %v3400_v48, %v14739_v13  ;;  %v3415_v24 = vcombine.high %v3407_v39, %v3407_v39  ;;  %v11648_v48 = vpop.permute.xlu1 %3680 }
 0x7c9   : > { %v9814_v40 = vpop.f32.mrf.mxu1  ;;  %v3423_v1 = vrot.slane %v3407_v39, %v14739_v13  ;;  %14741 = vst [vmem:[#allocation82_spill] sm:$0xff] %v11648_v48  ;;  %v11650_v39 = vpop.permute.xlu0 %3710 }
 0x7ca   : > { %14737 = vst [vmem:[#allocation79_spill] sm:$0xff] %v11570_v29  ;;  %3582 = vrot.lane.b32.xlu1 %v11570_v29, %s10207_s27  ;;  %v3456_v44 = vrot.slane %v3387_v5, %v14739_v13  ;;  %v3449_v25 = vcombine.high %v3387_v5, %v3387_v5  ;;  %v3416_v31 = vcombine.high %v3414_v14, %v3414_v14 }
 0x7cb   : > { %v3437_v2 = vrot.slane %v3415_v24, %v14739_v13  ;;  %v3430_v59 = vrot.slane %v3414_v14, %v14739_v13  ;;  %v3445_v15 = vcombine.high %v3423_v1, %v3423_v1 }
 0x7cc   : > { %v3464_v60 = vcombine.high %v3456_v44, %v3456_v44  ;;  %v3463_v19 = vrot.slane %v3449_v25, %v14739_v13  ;;  %v3472_v37 = vrot.slane %v3456_v44, %v14739_v13  ;;  %v11645_v45 = vrot.slane %v3416_v31, %v14739_v13 }
 0x7cd   : > { %v3447_v40 = vcombine.high %v3437_v2, %v3437_v2  ;;  %v3446_v34 = vcombine.high %v3430_v59, %v3430_v59  ;;  %v11657_v44 = vrot.slane %v11410_v41, %v14661_v28  ;;  %v11660_v25 = vrot.slane %v3423_v1, %v10395_v18 }
 0x7ce   : > { %v3486_v47 = vrot.slane %v3464_v60, %v14739_v13  ;;  %v3465_v5 = vcombine.high %v3463_v19, %v3463_v19  ;;  %v11653_v24 = vrot.slane %v3463_v19, %v14739_v13  ;;  %v3494_v14 = vcombine.high %v3472_v37, %v3472_v37 }
 0x7cf   : > { %v3505_v31 = vrot.slane %v3437_v2, %v10395_v18  ;;  %v11664_v60 = vrot.slane %v3445_v15, %v10395_v18  ;;  %v11669_v35 = vrot.slane %v3447_v40, %v10395_v18  ;;  %v11672_v19 = vrot.slane %v3430_v59, %v10395_v18 }
 0x7d0   : > { %v3496_v42 = vcombine.high %v3486_v47, %v3486_v47  ;;  %v11676_v41 = vrot.slane %v11645_v45, %v10395_v18  ;;  %v11679_v1 = vrot.slane %v3446_v34, %v10395_v18  ;;  %v3533_v2 = vrot.slane %v3472_v37, %v10395_v18 }
 0x7d1   : > { %v3537_v15 = vrot.slane %v3486_v47, %v10395_v18  ;;  %v11684_v17 = vrot.slane %v3465_v5, %v14739_v13  ;;  %v11689_v59 = vrot.slane %v3494_v14, %v10395_v18  ;;  %v11693_v29 = vrot.slane %v11653_v24, %v10395_v18  ;;  %v11702_v13 = vpop.permute.xlu1 %3712 }
 0x7d2   : > { %14742 = vst [vmem:[#allocation85_spill] sm:$0xff] %v11702_v13  ;;  %v11705_v14 = vrot.slane %v3496_v42, %v10395_v18 }
 0x838   : > { %v11695_v21 = vpop.permute.xlu0 %3580 }
 0x839   : > { %v3602_v34 = vadd.f32 %v11695_v21, %v3533_v2  ;;  %v3586_v37 = vadd.f32 %v11695_v21, %v11660_v25  ;;  %v3604_v47 = vadd.f32 %v11695_v21, %v3537_v15  ;;  %v3588_v5 = vadd.f32 %v11695_v21, %v3505_v31 }
 0x83a   : > { %v3590_v40 = vadd.f32 %v11695_v21, %v11664_v60  ;;  %v3606_v30 = vadd.f32 %v11695_v21, %v11689_v59  ;;  %v3592_v50 = vadd.f32 %v11695_v21, %v11669_v35  ;;  %v3608_v48 = vadd.f32 %v11695_v21, %v11705_v14 }
 0x83b   : > { %v3762_v3 = vadd.f32 %v11584_v54, %v3602_v34  ;;  %v3746_v9 = vadd.f32 %v11576_v27, %v3586_v37  ;;  %v3764_v28 = vadd.f32 %v11588_v62, %v3604_v47  ;;  %v3748_v51 = vadd.f32 %v11580_v46, %v3588_v5 }
 0x83c   : > { %v3750_v42 = vadd.f32 %v11592_v58, %v3590_v40  ;;  %v3766_v49 = vadd.f32 %v11596_v57, %v3606_v30  ;;  %v3752_v23 = vadd.f32 %v11600_v12, %v3592_v50  ;;  %v11722_v54 = vpop.permute.xlu1 %3582  ;;  %v3768_v5 = vadd.f32 %v11604_v52, %v3608_v48 }
 0x83d   : > { %vm3794_vm9 = vcmp.gt.f32.partialorder %v3762_v3, 0.0  ;;  %v3826_v13 = vmul.f32 0.2, %v3762_v3  ;;  %vm3778_vm10 = vcmp.gt.f32.partialorder %v3746_v9, 0.0  ;;  %v3810_v16 = vmul.f32 0.2, %v3746_v9 }
 0x83e   : > { %vm3796_vm11 = vcmp.gt.f32.partialorder %v3764_v28, 0.0  ;;  %v3828_v27 = vmul.f32 0.2, %v3764_v28  ;;  %vm3780_vm7 = vcmp.gt.f32.partialorder %v3748_v51, 0.0  ;;  %v3812_v62 = vmul.f32 0.2, %v3748_v51 }
 0x83f   : > { %v3858_v46 = vsel %vm3794_vm9, %v3762_v3, %v3826_v13  ;;  %v3842_v34 = vsel %vm3778_vm10, %v3746_v9, %v3810_v16  ;;  %vm3782_vm8 = vcmp.gt.f32.partialorder %v3750_v42, 0.0  ;;  %v3814_v58 = vmul.f32 0.2, %v3750_v42 }
 0x840   : > { %v3894_v30 = vmul.f32 %v11657_v44, %v3858_v46  ;;  %v3878_v50 = vmul.f32 %v11657_v44, %v3842_v34  ;;  %v3860_v57 = vsel %vm3796_vm11, %v3764_v28, %v3828_v27  ;;  %v3844_v12 = vsel %vm3780_vm7, %v3748_v51, %v3812_v62 }
 0x841   : > { %v3896_v40 = vmul.f32 %v11657_v44, %v3860_v57  ;;  %v3846_v37 = vsel %vm3782_vm8, %v3750_v42, %v3814_v58  ;;  %v3589_v47 = vadd.f32 %v11722_v54, %v3505_v31  ;;  %v3880_v9 = vmul.f32 %v11657_v44, %v3844_v12 }
 0x842   : > { %v3958_v20 = vsel %vm889_vm6, %v3894_v30, 0.0  ;;  %v3910_v3 = vsel %vm889_vm6, %v3878_v50, 0.0  ;;  %vm3798_vm9 = vcmp.gt.f32.partialorder %v3766_v49, 0.0  ;;  %v3497_v16 = vcombine.high %v11684_v17, %v11684_v17 }
 0x843   : > { %v11736_v51 = vrot.slane %v11684_v17, %v10395_v18  ;;  %3959 = vadd.xlane.f32.xlu1 %v3958_v20  ;;  %3911 = vadd.xlane.f32.xlu0 %v3910_v3  ;;  %v3749_v28 = vadd.f32 %v11582_v56, %v3589_v47  ;;  %v3830_v13 = vmul.f32 0.2, %v3766_v49  ;;  %v3882_v52 = vmul.f32 %v11657_v44, %v3846_v37 }
 0x844   : > { %v3603_v48 = vadd.f32 %v11722_v54, %v3533_v2  ;;  %vm3784_vm10 = vcmp.gt.f32.partialorder %v3752_v23, 0.0  ;;  %v3816_v31 = vmul.f32 0.2, %v3752_v23  ;;  %v3605_v62 = vadd.f32 %v11722_v54, %v3537_v15 }
 0x845   : > { %vm3781_vm11 = vcmp.gt.f32.partialorder %v3749_v28, 0.0  ;;  %v3813_v42 = vmul.f32 0.2, %v3749_v28  ;;  %v3862_v27 = vsel %vm3798_vm9, %v3766_v49, %v3830_v13  ;;  %v3964_v46 = vsel %vm889_vm6, %v3896_v40, 0.0 }
 0x846   : > { %v3916_v34 = vsel %vm889_vm6, %v3880_v9, 0.0  ;;  %v3763_v20 = vadd.f32 %v11586_v55, %v3603_v48  ;;  %vm3800_vm7 = vcmp.gt.f32.partialorder %v3768_v5, 0.0  ;;  %v3848_v58 = vsel %vm3784_vm10, %v3752_v23, %v3816_v31 }
 0x847   : > { %3965 = vadd.xlane.f32.xlu1 %v3964_v46  ;;  %3917 = vadd.xlane.f32.xlu0 %v3916_v34  ;;  %v3845_v56 = vsel %vm3781_vm11, %v3749_v28, %v3813_v42  ;;  %v3765_v2 = vadd.f32 %v11590_v61, %v3605_v62  ;;  %v3832_v30 = vmul.f32 0.2, %v3768_v5  ;;  %v3898_v49 = vmul.f32 %v11657_v44, %v3862_v27 }
 0x848   : > { %v3881_v50 = vmul.f32 %v11657_v44, %v3845_v56  ;;  %vm3795_vm8 = vcmp.gt.f32.partialorder %v3763_v20, 0.0  ;;  %v3827_v15 = vmul.f32 0.2, %v3763_v20  ;;  %v3922_v57 = vsel %vm889_vm6, %v3882_v52, 0.0 }
 0x849   : > { %vm3797_vm9 = vcmp.gt.f32.partialorder %v3765_v2, 0.0  ;;  %v3829_v12 = vmul.f32 0.2, %v3765_v2  ;;  %v3864_v40 = vsel %vm3800_vm7, %v3768_v5, %v3832_v30  ;;  %v3884_v47 = vmul.f32 %v11657_v44, %v3848_v58 }
 0x84a   : > { %v3919_v55 = vsel %vm889_vm6, %v3881_v50, 0.0  ;;  %v3859_v37 = vsel %vm3795_vm8, %v3763_v20, %v3827_v15  ;;  %v3591_v23 = vadd.f32 %v11722_v54, %v11664_v60  ;;  %v3594_v9 = vadd.f32 %v11695_v21, %v11672_v19 }
 0x84b   : > { %3923 = vadd.xlane.f32.xlu1 %v3922_v57  ;;  %3920 = vadd.xlane.f32.xlu0 %v3919_v55  ;;  %v3895_v61 = vmul.f32 %v11657_v44, %v3859_v37  ;;  %v3861_v3 = vsel %vm3797_vm9, %v3765_v2, %v3829_v12  ;;  %v3970_v28 = vsel %vm889_vm6, %v3898_v49, 0.0  ;;  %v3900_v5 = vmul.f32 %v11657_v44, %v3864_v40 }
 0x84c   : > { %v3751_v13 = vadd.f32 %v11594_v53, %v3591_v23  ;;  %v3607_v52 = vadd.f32 %v11722_v54, %v11689_v59  ;;  %v3897_v48 = vmul.f32 %v11657_v44, %v3861_v3  ;;  %v3754_v60 = vadd.f32 %v11608_v26, %v3594_v9 }
 0x84d   : > { %v3610_v31 = vadd.f32 %v11695_v21, %v11693_v29  ;;  %v3593_v42 = vadd.f32 %v11722_v54, %v11669_v35  ;;  %v3961_v27 = vsel %vm889_vm6, %v3895_v61, 0.0  ;;  %v3596_v35 = vadd.f32 %v11695_v21, %v11676_v41 }
 0x84e   : > { %vm3783_vm10 = vcmp.gt.f32.partialorder %v3751_v13, 0.0  ;;  %v3815_v62 = vmul.f32 0.2, %v3751_v13  ;;  %v3767_v46 = vadd.f32 %v11598_v38, %v3607_v52  ;;  %vm3786_vm11 = vcmp.gt.f32.partialorder %v3754_v60, 0.0 }
 0x84f   : > { %3971 = vadd.xlane.f32.xlu1 %v3970_v28  ;;  %3962 = vadd.xlane.f32.xlu0 %v3961_v27  ;;  %v3818_v53 = vmul.f32 0.2, %v3754_v60  ;;  %v3770_v59 = vadd.f32 %v11612_v0, %v3610_v31  ;;  %v3753_v26 = vadd.f32 %v11602_v36, %v3593_v42  ;;  %v3928_v38 = vsel %vm889_vm6, %v3884_v47, 0.0 }
 0x850   : > { %v3847_v34 = vsel %vm3783_vm10, %v3751_v13, %v3815_v62  ;;  %vm3799_vm7 = vcmp.gt.f32.partialorder %v3767_v46, 0.0  ;;  %v3831_v20 = vmul.f32 0.2, %v3767_v46  ;;  %v3967_v30 = vsel %vm889_vm6, %v3897_v48, 0.0 }
 0x851   : > { %v3883_v56 = vmul.f32 %v11657_v44, %v3847_v34  ;;  %v3850_v58 = vsel %vm3786_vm11, %v3754_v60, %v3818_v53  ;;  %vm3802_vm8 = vcmp.gt.f32.partialorder %v3770_v59, 0.0  ;;  %v3834_v2 = vmul.f32 0.2, %v3770_v59 }
 0x852   : > { %v3886_v50 = vmul.f32 %v11657_v44, %v3850_v58  ;;  %v3863_v0 = vsel %vm3799_vm7, %v3767_v46, %v3831_v20  ;;  %v3817_v15 = vmul.f32 0.2, %v3753_v26  ;;  %v3756_v57 = vadd.f32 %v11616_v10, %v3596_v35 }
 0x853   : > { %3929 = vadd.xlane.f32.xlu1 %v3928_v38  ;;  %3968 = vadd.xlane.f32.xlu0 %v3967_v30  ;;  %v3899_v36 = vmul.f32 %v11657_v44, %v3863_v0  ;;  %v3866_v49 = vsel %vm3802_vm8, %v3770_v59, %v3834_v2  ;;  %v14743_v12 = vcombine.high %v11653_v24, %v11653_v24  ;;  %v3976_v55 = vsel %vm889_vm6, %v3900_v5, 0.0 }
 0x854   : > { %vm3785_vm9 = vcmp.gt.f32.partialorder %v3753_v26, 0.0  ;;  %v3609_v37 = vadd.f32 %v11722_v54, %v11705_v14  ;;  %v3925_v47 = vsel %vm889_vm6, %v3883_v56, 0.0  ;;  %v3934_v23 = vsel %vm889_vm6, %v3886_v50, 0.0 }
 0x855   : > { %v11783_v40 = vrot.slane %v14743_v12, %v10395_v18  ;;  %vm3788_vm10 = vcmp.gt.f32.partialorder %v3756_v57, 0.0  ;;  %v3820_v61 = vmul.f32 0.2, %v3756_v57  ;;  %v3902_v10 = vmul.f32 %v11657_v44, %v3866_v49 }
 0x856   : > { %v3769_v3 = vadd.f32 %v11606_v32, %v3609_v37  ;;  %v3612_v24 = vadd.f32 %v11695_v21, %v11736_v51  ;;  %v3595_v9 = vadd.f32 %v11722_v54, %v11672_v19  ;;  %v3973_v14 = vsel %vm889_vm6, %v3899_v36, 0.0 }
 0x857   : > { %3977 = vadd.xlane.f32.xlu1 %v3976_v55  ;;  %3926 = vadd.xlane.f32.xlu0 %v3925_v47  ;;  %v3849_v28 = vsel %vm3785_vm9, %v3753_v26, %v3817_v15  ;;  %v3598_v5 = vadd.f32 %v11695_v21, %v11679_v1  ;;  %v3611_v13 = vadd.f32 %v11722_v54, %v11693_v29 }
 0x858   : > { %v3852_v52 = vsel %vm3788_vm10, %v3756_v57, %v3820_v61  ;;  %vm3801_vm11 = vcmp.gt.f32.partialorder %v3769_v3, 0.0  ;;  %v3833_v32 = vmul.f32 0.2, %v3769_v3  ;;  %v3772_v48 = vadd.f32 %v11620_v63, %v3612_v24 }
 0x859   : > { %v3755_v60 = vadd.f32 %v11610_v43, %v3595_v9  ;;  %v3758_v19 = vadd.f32 %v11626_v11, %v3598_v5  ;;  %v3771_v31 = vadd.f32 %v11614_v22, %v3611_v13  ;;  %v3614_v42 = vadd.f32 %v11695_v21, %v11783_v40  ;;  %v14745_v13 = vld [vmem:[#allocation83_spill] sm:$0xff] }
 0x85a   : > { %v3885_v27 = vmul.f32 %v11657_v44, %v3849_v28  ;;  %v3865_v62 = vsel %vm3801_vm11, %v3769_v3, %v3833_v32  ;;  %vm3804_vm7 = vcmp.gt.f32.partialorder %v3772_v48, 0.0  ;;  %v3836_v46 = vmul.f32 0.2, %v3772_v48 }
 0x85b   : > { %3935 = vadd.xlane.f32.xlu1 %v3934_v23  ;;  %3974 = vadd.xlane.f32.xlu0 %v3973_v14  ;;  %v3888_v29 = vmul.f32 %v11657_v44, %v3852_v52  ;;  %v3901_v63 = vmul.f32 %v11657_v44, %v3865_v62  ;;  %vm3787_vm8 = vcmp.gt.f32.partialorder %v3755_v60, 0.0  ;;  %v3819_v43 = vmul.f32 0.2, %v3755_v60 }
 0x85c   : > { %v3982_v11 = vsel %vm889_vm6, %v3902_v10, 0.0  ;;  %v3868_v53 = vsel %vm3804_vm7, %v3772_v48, %v3836_v46  ;;  %v14744_v22 = vcombine.high %v11645_v45, %v11645_v45  ;;  %v3822_v34 = vmul.f32 0.2, %v3758_v19 }
 0x85d   : > { %v3851_v26 = vsel %vm3787_vm8, %v3755_v60, %v3819_v43  ;;  %v3835_v20 = vmul.f32 0.2, %v3771_v31  ;;  %v3774_v35 = vadd.f32 %v11631_v6, %v3614_v42  ;;  %v3931_v56 = vsel %vm889_vm6, %v3885_v27, 0.0  ;;  %v14746_v60 = vld [vmem:[#allocation81_spill] sm:$0xff] }
 0x85e   : > { %v3529_v59 = vrot.slane %v14744_v22, %v10395_v18  ;;  %vm3790_vm9 = vcmp.gt.f32.partialorder %v3758_v19, 0.0  ;;  %vm3803_vm10 = vcmp.gt.f32.partialorder %v3771_v31, 0.0  ;;  %v3597_v58 = vadd.f32 %v11722_v54, %v11676_v41 }
 0x85f   : > { %3983 = vadd.xlane.f32.xlu1 %v3982_v11  ;;  %3932 = vadd.xlane.f32.xlu0 %v3931_v56  ;;  %v3940_v2 = vsel %vm889_vm6, %v3888_v29, 0.0  ;;  %v3979_v38 = vsel %vm889_vm6, %v3901_v63, 0.0  ;;  %v3561_v45 = vrot.slane %v3497_v16, %v10395_v18  ;;  %v3904_v6 = vmul.f32 %v11657_v44, %v3868_v53  ;;  %v14748_v53 = vld [vmem:[#allocation82_spill] sm:$0xff] }
 0x860   : > { %v3887_v30 = vmul.f32 %v11657_v44, %v3851_v26  ;;  %v3757_v50 = vadd.f32 %v11618_v7, %v3597_v58  ;;  %v3600_v0 = vadd.f32 %v11695_v21, %v3529_v59  ;;  %v3854_v41 = vsel %vm3790_vm9, %v3758_v19, %v3822_v34 }
 0x861   : > { %v3867_v36 = vsel %vm3803_vm10, %v3771_v31, %v3835_v20  ;;  %v3838_v49 = vmul.f32 0.2, %v3774_v35  ;;  %v3613_v15 = vadd.f32 %v11722_v54, %v11736_v51  ;;  %vm3806_vm11 = vcmp.gt.f32.partialorder %v3774_v35, 0.0  ;;  %v14747_v31 = vld [vmem:[#allocation85_spill] sm:$0xff] }
 0x862   : > { %v3821_v57 = vmul.f32 0.2, %v3757_v50  ;;  %v3760_v12 = vadd.f32 %v11638_v33, %v3600_v0  ;;  %v3616_v17 = vadd.f32 %v11695_v21, %v3561_v45  ;;  %vm3789_vm7 = vcmp.gt.f32.partialorder %v3757_v50, 0.0 }
 0x863   : > { %3941 = vadd.xlane.f32.xlu1 %v3940_v2  ;;  %3980 = vadd.xlane.f32.xlu0 %v3979_v38  ;;  %v3773_v16 = vadd.f32 %v11624_v8, %v3613_v15  ;;  %v3890_v7 = vmul.f32 %v11657_v44, %v3854_v41  ;;  %v3903_v55 = vmul.f32 %v11657_v44, %v3867_v36  ;;  %v3988_v51 = vsel %vm889_vm6, %v3904_v6, 0.0 }
 0x864   : > { %v3599_v37 = vadd.f32 %v11722_v54, %v11679_v1  ;;  %v3937_v47 = vsel %vm889_vm6, %v3887_v30, 0.0  ;;  %v3870_v23 = vsel %vm3806_vm11, %v3774_v35, %v3838_v49  ;;  %v3824_v33 = vmul.f32 0.2, %v3760_v12 }
 0x865   : > { %v3853_v61 = vsel %vm3789_vm7, %v3757_v50, %v3821_v57  ;;  %vm3792_vm8 = vcmp.gt.f32.partialorder %v3760_v12, 0.0  ;;  %v3776_v21 = vadd.f32 %v11650_v39, %v3616_v17  ;;  %v3837_v8 = vmul.f32 0.2, %v3773_v16 }
 0x866   : > { %v3759_v10 = vadd.f32 %v11629_v4, %v3599_v37  ;;  %v3615_v3 = vadd.f32 %v11722_v54, %v11783_v40  ;;  %v3946_v1 = vsel %vm889_vm6, %v3890_v7, 0.0  ;;  %v3985_v24 = vsel %vm889_vm6, %v3903_v55, 0.0  ;;  %v14750_v55 = vld [vmem:[#allocation19_spill] sm:$0xff] }
 0x867   : > { %3989 = vadd.xlane.f32.xlu1 %v3988_v51  ;;  %3938 = vadd.xlane.f32.xlu0 %v3937_v47  ;;  %vm3805_vm9 = vcmp.gt.f32.partialorder %v3773_v16, 0.0  ;;  %v3906_v9 = vmul.f32 %v11657_v44, %v3870_v23  ;;  %v3889_v14 = vmul.f32 %v11657_v44, %v3853_v61  ;;  %v3856_v28 = vsel %vm3792_vm8, %v3760_v12, %v3824_v33  ;;  %v14751_v47 = vld [vmem:[#allocation17_spill] sm:$0xff]  ;;  %v14752_v33 = vld [vmem:[#allocation23_spill] sm:$0xff] }
 0x868   : > { %v3587_v39 = vadd.f32 %v11722_v54, %v11660_v25  ;;  %v3840_v4 = vmul.f32 0.2, %v3776_v21  ;;  %v3823_v5 = vmul.f32 0.2, %v3759_v10  ;;  %v3775_v52 = vadd.f32 %v14745_v13, %v3615_v3 }
 0x869   : > { %v3617_v32 = vadd.f32 %v11722_v54, %v3561_v45  ;;  %v3869_v40 = vsel %vm3805_vm9, %v3773_v16, %v3837_v8  ;;  %vm3808_vm10 = vcmp.gt.f32.partialorder %v3776_v21, 0.0  ;;  %vm3791_vm11 = vcmp.gt.f32.partialorder %v3759_v10, 0.0  ;;  %v14749_v16 = vld [vmem:[#allocation14_spill] sm:$0xff]  ;;  %v14753_v8 = vld [vmem:[#allocation16_spill] sm:$0xff] }
 0x86a   : > { %v3601_v48 = vadd.f32 %v11722_v54, %v3529_v59  ;;  %v3747_v19 = vadd.f32 %v14746_v60, %v3587_v39  ;;  %v3994_v27 = vsel %vm889_vm6, %v3906_v9, 0.0  ;;  %v3943_v25 = vsel %vm889_vm6, %v3889_v14, 0.0 }
 0x86b   : > { %3947 = vadd.xlane.f32.xlu1 %v3946_v1  ;;  %3986 = vadd.xlane.f32.xlu0 %v3985_v24  ;;  %v3777_v42 = vadd.f32 %v14747_v31, %v3617_v32  ;;  %v3892_v62 = vmul.f32 %v11657_v44, %v3856_v28  ;;  %v3905_v46 = vmul.f32 %v11657_v44, %v3869_v40  ;;  %v3839_v43 = vmul.f32 0.2, %v3775_v52  ;;  %v14754_v1 = vld [vmem:[#allocation26_spill] sm:$0xff]  ;;  %v14757_v32 = vld [vmem:[#allocation20_spill] sm:$0xff] }
 0x86c   : > { %v3872_v29 = vsel %vm3808_vm10, %v3776_v21, %v3840_v4  ;;  %v3855_v63 = vsel %vm3791_vm11, %v3759_v10, %v3823_v5  ;;  %v3811_v11 = vmul.f32 0.2, %v3747_v19  ;;  %v3761_v54 = vadd.f32 %v14748_v53, %v3601_v48  ;;  %v14755_v28 = vld [vmem:[#allocation18_spill] sm:$0xff]  ;;  %v14758_v48 = vld [vmem:[#allocation33_spill] sm:$0xff] }
 0x86d   : > { %vm3809_vm7 = vcmp.gt.f32.partialorder %v3777_v42, 0.0  ;;  %v3841_v22 = vmul.f32 0.2, %v3777_v42  ;;  %vm3807_vm8 = vcmp.gt.f32.partialorder %v3775_v52, 0.0  ;;  %vm3779_vm9 = vcmp.gt.f32.partialorder %v3747_v19, 0.0  ;;  %v14756_v4 = vld [vmem:[#allocation30_spill] sm:$0xff] }
 0x86e   : > { %v3952_v59 = vsel %vm889_vm6, %v3892_v62, 0.0  ;;  %v3991_v34 = vsel %vm889_vm6, %v3905_v46, 0.0  ;;  %v3908_v20 = vmul.f32 %v11657_v44, %v3872_v29  ;;  %v3891_v35 = vmul.f32 %v11657_v44, %v3855_v63  ;;  %v14761_v63 = vld [vmem:[#allocation27_spill] sm:$0xff] }
 0x86f   : > { %3995 = vadd.xlane.f32.xlu1 %v3994_v27  ;;  %3944 = vadd.xlane.f32.xlu0 %v3943_v25  ;;  %v3873_v26 = vsel %vm3809_vm7, %v3777_v42, %v3841_v22  ;;  %v3871_v58 = vsel %vm3807_vm8, %v3775_v52, %v3839_v43  ;;  %v3843_v2 = vsel %vm3779_vm9, %v3747_v19, %v3811_v11  ;;  %v3825_v38 = vmul.f32 0.2, %v3761_v54  ;;  %v14759_v42 = vld [vmem:[#allocation24_spill] sm:$0xff]  ;;  %v14760_v25 = vld [vmem:[#allocation37_spill] sm:$0xff] }
 0x870   : > { %v3909_v56 = vmul.f32 %v11657_v44, %v3873_v26  ;;  %vm3793_vm10 = vcmp.gt.f32.partialorder %v3761_v54, 0.0  ;;  %v4000_v45 = vsel %vm889_vm6, %v3908_v20, 0.0  ;;  %v3949_v6 = vsel %vm889_vm6, %v3891_v35, 0.0  ;;  %v14762_v11 = vld [vmem:[#allocation40_spill] sm:$0xff] }
 0x871   : > { %v3907_v30 = vmul.f32 %v11657_v44, %v3871_v58  ;;  %v3879_v50 = vmul.f32 %v11657_v44, %v3843_v2  ;;  %v3857_v0 = vsel %vm3793_vm10, %v3761_v54, %v3825_v38  ;;  %v14765_v58 = vld [vmem:[#allocation34_spill] sm:$0xff]  ;;  %v14766_v38 = vld [vmem:[#allocation47_spill] sm:$0xff]  ;;  %vm5322_vm11 = vcmask 1043456  }
 0x872   : > { %v3893_v49 = vmul.f32 %v11657_v44, %v3857_v0  ;;  %v4003_v57 = vsel %vm889_vm6, %v3909_v56, 0.0  ;;  %vm5318_vm7 = vcmask 56320  }
 0x873   : > { %3953 = vadd.xlane.f32.xlu1 %v3952_v59  ;;  %3992 = vadd.xlane.f32.xlu0 %v3991_v34  ;;  %v3997_v41 = vsel %vm889_vm6, %v3907_v30, 0.0  ;;  %v3913_v36 = vsel %vm889_vm6, %v3879_v50, 0.0  ;;  %v14763_v59 = vld [vmem:[#allocation31_spill] sm:$0xff]  ;;  %v14764_v34 = vld [vmem:[#allocation44_spill] sm:$0xff]  ;;  %v14767_v50 = vld [vmem:[#allocation38_spill] sm:$0xff] }
 0x874   : > { %v3955_v15 = vsel %vm889_vm6, %v3893_v49, 0.0 }
 0x877   : > { %4001 = vadd.xlane.f32.xlu1 %v4000_v45  ;;  %3950 = vadd.xlane.f32.xlu0 %v3949_v6 }
 0x87b   : > { %3998 = vadd.xlane.f32.xlu0 %v3997_v41  ;;  %3914 = vadd.xlane.f32.xlu1 %v3913_v36  ;;  %v14768_v41 = vld [vmem:[#allocation51_spill] sm:$0xff] }
 0x87f   : > { %3956 = vadd.xlane.f32.xlu0 %v3955_v15 }
 0x883   : > { %4004 = vadd.xlane.f32.xlu0 %v4003_v57  ;;  %v14769_v57 = vld [vmem:[#allocation41_spill] sm:$0xff] }
 0x8cc   : > { %v3912_v12 = vpop.xlane.xlu0 %3911  ;;  %v3960_v17 = vpop.xlane.xlu1 %3959 }
 0x8cd   : > { %v11875_v7 = vadd.f32 %v3912_v12, %v14749_v16  ;;  %v11878_v37 = vadd.f32 %v3960_v17, %v14750_v55  ;;  %v14770_v17 = vld [vmem:[#allocation54_spill] sm:$0xff] }
 0x8cf   : > { %4071 = vperm.xlu1 %9887, %v11875_v7   ;;  %4119 = vperm.xlu0 %9888, %v11878_v37  }
 0x8d0   : > { %v3918_v44 = vpop.xlane.xlu0 %3917  ;;  %v3966_v51 = vpop.xlane.xlu1 %3965 }
 0x8d1   : > { %v11883_v23 = vadd.f32 %v3918_v44, %v14751_v47  ;;  %v11886_v61 = vadd.f32 %v3966_v51, %v14752_v33  ;;  %v14771_v51 = vld [vmem:[#allocation45_spill] sm:$0xff]  ;;  %v14772_v33 = vld [vmem:[#allocation59_spill] sm:$0xff] }
 0x8d3   : > { %4077 = vperm.xlu1 %9887, %v11883_v23   ;;  %4125 = vperm.xlu0 %9888, %v11886_v61  }
 0x8d4   : > { %v3921_v21 = vpop.xlane.xlu0 %3920  ;;  %v3924_v10 = vpop.xlane.xlu1 %3923 }
 0x8d5   : > { %v11891_v3 = vadd.f32 %v3921_v21, %v14753_v8  ;;  %v11894_v24 = vadd.f32 %v3924_v10, %v14754_v1  ;;  %v14774_v1 = vld [vmem:[#allocation48_spill] sm:$0xff] }
 0x8d7   : > { %4080 = vperm.xlu1 %9887, %v11891_v3   ;;  %4083 = vperm.xlu0 %9888, %v11894_v24  }
 0x8d8   : > { %v3963_v9 = vpop.xlane.xlu0 %3962  ;;  %v3972_v14 = vpop.xlane.xlu1 %3971 }
 0x8d9   : > { %v11899_v39 = vadd.f32 %v3963_v9, %v14755_v28  ;;  %v11902_v5 = vadd.f32 %v3972_v14, %v14756_v4  ;;  %v14775_v4 = vld [vmem:[#allocation52_spill] sm:$0xff] }
 0x8db   : > { %4122 = vperm.xlu1 %9887, %v11899_v39   ;;  %4131 = vperm.xlu0 %9888, %v11902_v5  }
 0x8dc   : > { %v3969_v13 = vpop.xlane.xlu0 %3968  ;;  %v3930_v52 = vpop.xlane.xlu1 %3929 }
 0x8dd   : > { %v11907_v40 = vadd.f32 %v3969_v13, %v14757_v32  ;;  %v11910_v60 = vadd.f32 %v3930_v52, %v14758_v48  ;;  %v14777_v48 = vld [vmem:[#allocation55_spill] sm:$0xff] }
 0x8df   : > { %4128 = vperm.xlu1 %9887, %v11907_v40   ;;  %4089 = vperm.xlu0 %9888, %v11910_v60  }
 0x8e0   : > { %v3927_v19 = vpop.xlane.xlu0 %3926  ;;  %v3978_v31 = vpop.xlane.xlu1 %3977 }
 0x8e1   : > { %v11915_v27 = vadd.f32 %v3927_v19, %v14759_v42  ;;  %v11918_v62 = vadd.f32 %v3978_v31, %v14760_v25  ;;  %v14779_v31 = vld [vmem:[#allocation15_spill] sm:$0xff] }
 0x8e3   : > { %4086 = vperm.xlu1 %9887, %v11915_v27   ;;  %4137 = vperm.xlu0 %9888, %v11918_v62  }
 0x8e4   : > { %v3975_v46 = vpop.xlane.xlu0 %3974  ;;  %v3936_v29 = vpop.xlane.xlu1 %3935 }
 0x8e5   : > { %v11923_v43 = vadd.f32 %v3975_v46, %v14761_v63  ;;  %v11926_v53 = vadd.f32 %v3936_v29, %v14762_v11  ;;  %v14780_v46 = vld [vmem:[#allocation62_spill] sm:$0xff]  ;;  %v14782_v63 = vld [vmem:[#allocation60_spill] sm:$0xff] }
 0x8e7   : > { %4134 = vperm.xlu1 %9887, %v11923_v43   ;;  %4095 = vperm.xlu0 %9888, %v11926_v53  }
 0x8e8   : > { %v3933_v54 = vpop.xlane.xlu0 %3932  ;;  %v3984_v22 = vpop.xlane.xlu1 %3983 }
 0x8e9   : > { %v11931_v26 = vadd.f32 %v3933_v54, %v14763_v59  ;;  %v11934_v20 = vadd.f32 %v3984_v22, %v14764_v34  ;;  %v14784_v22 = vld [vmem:[#allocation66_spill] sm:$0xff]  ;;  %v14786_v34 = vld [vmem:[#allocation63_spill] sm:$0xff] }
 0x8eb   : > { %4092 = vperm.xlu1 %9887, %v11931_v26   ;;  %4143 = vperm.xlu0 %9888, %v11934_v20  }
 0x8ec   : > { %v3981_v35 = vpop.xlane.xlu0 %3980  ;;  %v3942_v56 = vpop.xlane.xlu1 %3941 }
 0x8ed   : > { %v11939_v2 = vadd.f32 %v3981_v35, %v14765_v58  ;;  %v11942_v45 = vadd.f32 %v3942_v56, %v14766_v38 }
 0x8ef   : > { %4140 = vperm.xlu1 %9887, %v11939_v2   ;;  %4101 = vperm.xlu0 %9888, %v11942_v45  }
 0x8f0   : > { %v3939_v6 = vpop.xlane.xlu0 %3938  ;;  %v3990_v30 = vpop.xlane.xlu1 %3989 }
 0x8f1   : > { %v11947_v0 = vadd.f32 %v3939_v6, %v14767_v50  ;;  %v11950_v36 = vadd.f32 %v3990_v30, %v14768_v41 }
 0x8f3   : > { %4098 = vperm.xlu1 %9887, %v11947_v0   ;;  %4149 = vperm.xlu0 %9888, %v11950_v36  }
 0x8f4   : > { %v3987_v49 = vpop.xlane.xlu0 %3986  ;;  %v3948_v15 = vpop.xlane.xlu1 %3947 }
 0x8f5   : > { %v11955_v12 = vadd.f32 %v3987_v49, %v14769_v57  ;;  %v11958_v16 = vadd.f32 %v3948_v15, %v14770_v17 }
 0x8f7   : > { %4146 = vperm.xlu1 %9887, %v11955_v12   ;;  %4107 = vperm.xlu0 %9888, %v11958_v16  }
 0x8f8   : > { %v3945_v55 = vpop.xlane.xlu0 %3944  ;;  %v3996_v44 = vpop.xlane.xlu1 %3995 }
 0x8f9   : > { %v11963_v47 = vadd.f32 %v3945_v55, %v14771_v51  ;;  %v11966_v21 = vadd.f32 %v3996_v44, %v14772_v33 }
 0x8fb   : > { %14773 = vst [vmem:[#allocation84_spill] sm:$0xff] %v11966_v21  ;;  %4104 = vperm.xlu1 %9887, %v11963_v47   ;;  %4155 = vperm.xlu0 %9888, %v11966_v21  }
 0x8fc   : > { %v3993_v10 = vpop.xlane.xlu0 %3992  ;;  %v3954_v8 = vpop.xlane.xlu1 %3953 }
 0x8fd   : > { %v11971_v9 = vadd.f32 %v3993_v10, %v14774_v1  ;;  %v11987_v29 = vadd.f32 %v3954_v8, %v14780_v46 }
 0x8ff   : > { %4152 = vperm.xlu1 %9887, %v11971_v9   ;;  %14781 = vst [vmem:[#allocation89_spill] sm:$0xff] %v11987_v29 }
 0x900   : > { %v3951_v14 = vpop.xlane.xlu0 %3950  ;;  %v4002_v28 = vpop.xlane.xlu1 %4001 }
 0x901   : > { %v11975_v13 = vadd.f32 %v3951_v14, %v14775_v4  ;;  %v11995_v59 = vadd.f32 %v4002_v28, %v14784_v22 }
 0x903   : > { %14776 = vst [vmem:[#allocation87_spill] sm:$0xff] %v11975_v13  ;;  %4110 = vperm.xlu1 %9887, %v11975_v13   ;;  %14785 = vst [vmem:[#allocation91_spill] sm:$0xff] %v11995_v59 }
 0x904   : > { %v3999_v52 = vpop.xlane.xlu0 %3998  ;;  %v3915_v32 = vpop.xlane.xlu1 %3914 }
 0x905   : > { %v11979_v19 = vadd.f32 %v3999_v52, %v14777_v48  ;;  %v11982_v42 = vadd.f32 %v3915_v32, %v14779_v31  ;;  %v14788_v31 = vld [vmem:[#allocation3_spill] sm:$0xff] }
 0x907   : > { %14778 = vst [vmem:[#allocation88_spill] sm:$0xff] %v11979_v19  ;;  %4158 = vperm.xlu1 %9887, %v11979_v19   ;;  %4074 = vperm.xlu0 %9888, %v11982_v42  }
 0x908   : > { %v3957_v25 = vpop.xlane.xlu0 %3956 }
 0x909   : > { %v11990_v11 = vadd.f32 %v3957_v25, %v14782_v63  ;;  %v14789_v63 = vld [vmem:[#allocation86_spill] sm:$0xff] }
 0x90b   : > { %14783 = vst [vmem:[#allocation90_spill] sm:$0xff] %v11990_v11  ;;  %4116 = vperm.xlu1 %9887, %v11990_v11   ;;  %4113 = vperm.xlu0 %9888, %v11987_v29  }
 0x90c   : > { %v4005_v54 = vpop.xlane.xlu0 %4004 }
 0x90d   : > { %v11998_v35 = vadd.f32 %v4005_v54, %v14786_v34 }
 0x90f   : > { %14787 = vst [vmem:[#allocation13_spill] sm:$0xff] %v11998_v35  ;;  %4164 = vperm.xlu1 %9887, %v11998_v35   ;;  %4161 = vperm.xlu0 %9888, %v11995_v59  }
 0x94a   : > { %v4120_v56 = vpop.permute.xlu0 %4119  ;;  %v4072_v58 = vpop.permute.xlu1 %4071 }
 0x94b   : > { %v4241_v19 = vrot.slane %v4120_v56, %v14789_v63 }
 0x94e   : > { %v4126_v38 = vpop.permute.xlu0 %4125  ;;  %v4078_v6 = vpop.permute.xlu1 %4077 }
 0x94f   : > { %v4250_v54 = vrot.slane %v4126_v38, %v14789_v63  ;;  %v4178_v21 = vrot.slane %v4078_v6, %v14789_v63 }
 0x952   : > { %v4084_v30 = vpop.permute.xlu0 %4083  ;;  %v4081_v50 = vpop.permute.xlu1 %4080 }
 0x953   : > { %v4182_v22 = vrot.slane %v4081_v50, %v14788_v31 }
 0x956   : > { %v4132_v41 = vpop.permute.xlu0 %4131  ;;  %v4123_v49 = vpop.permute.xlu1 %4122 }
 0x957   : > { %v4245_v34 = vrot.slane %v4123_v49, %v14788_v31  ;;  %v4259_v35 = vrot.slane %v4132_v41, %v14789_v63  ;;  %v4169_v49 = vrot.slane %v4072_v58, %v14789_v63  ;;  %v4183_v41 = vsel %vm2176_vm12, %v4182_v22, %v4178_v21 }
 0x95a   : > { %v4090_v15 = vpop.permute.xlu0 %4089  ;;  %v4129_v57 = vpop.permute.xlu1 %4128 }
 0x95b   : > { %v4254_v25 = vrot.slane %v4129_v57, %v14788_v31  ;;  %v4196_v56 = vrot.slane %v4090_v15, %v14789_v63 }
 0x95d   : > { %v4255_v57 = vsel %vm2176_vm12, %v4254_v25, %v4250_v54 }
 0x95e   : > { %v4138_v17 = vpop.permute.xlu0 %4137  ;;  %v4087_v55 = vpop.permute.xlu1 %4086 }
 0x95f   : > { %v4191_v59 = vrot.slane %v4087_v55, %v14788_v31  ;;  %v4246_v55 = vsel %vm2176_vm12, %v4245_v34, %v4241_v19  ;;  %v4268_v25 = vrot.slane %v4138_v17, %v14789_v63 }
 0x960   : > { %v4317_v6 = vsel %vm2313_vm13, %v4255_v57, %v4246_v55 }
 0x962   : > { %v4096_v44 = vpop.permute.xlu0 %4095  ;;  %v4135_v51 = vpop.permute.xlu1 %4134 }
 0x963   : > { %v4263_v46 = vrot.slane %v4135_v51, %v14788_v31  ;;  %v4187_v51 = vrot.slane %v4084_v30, %v14789_v63 }
 0x965   : > { %v4264_v38 = vsel %vm2176_vm12, %v4263_v46, %v4259_v35  ;;  %v4192_v30 = vsel %vm2176_vm12, %v4191_v59, %v4187_v51 }
 0x966   : > { %v4144_v33 = vpop.permute.xlu0 %4143  ;;  %v4093_v10 = vpop.permute.xlu1 %4092  ;;  %v4318_v58 = vsel %vm2315_vm14, %v4264_v38, %v4317_v6 }
 0x967   : > { %v4200_v50 = vrot.slane %v4093_v10, %v14788_v31  ;;  %v4205_v10 = vrot.slane %v4096_v44, %v14789_v63 }
 0x969   : > { %v4201_v15 = vsel %vm2176_vm12, %v4200_v50, %v4196_v56 }
 0x96a   : > { %v4141_v8 = vpop.permute.xlu1 %4140  ;;  %v4102_v1 = vpop.permute.xlu0 %4101 }
 0x96b   : > { %v4272_v13 = vrot.slane %v4141_v8, %v14788_v31  ;;  %v4277_v8 = vrot.slane %v4144_v33, %v14789_v63  ;;  %v4214_v46 = vrot.slane %v4102_v1, %v14789_v63 }
 0x96d   : > { %v4273_v59 = vsel %vm2176_vm12, %v4272_v13, %v4268_v25 }
 0x96e   : > { %v4099_v14 = vpop.permute.xlu1 %4098  ;;  %v4150_v28 = vpop.permute.xlu0 %4149 }
 0x96f   : > { %v4209_v17 = vrot.slane %v4099_v14, %v14788_v31 }
 0x971   : > { %v4210_v50 = vsel %vm2176_vm12, %v4209_v17, %v4205_v10 }
 0x972   : > { %v4147_v4 = vpop.permute.xlu1 %4146  ;;  %v4108_v32 = vpop.permute.xlu0 %4107 }
 0x973   : > { %v4281_v21 = vrot.slane %v4147_v4, %v14788_v31  ;;  %v4286_v4 = vrot.slane %v4150_v28, %v14789_v63  ;;  %v4223_v28 = vrot.slane %v4108_v32, %v14789_v63 }
 0x975   : > { %v4282_v14 = vsel %vm2176_vm12, %v4281_v21, %v4277_v8 }
 0x976   : > { %v4105_v52 = vpop.permute.xlu1 %4104  ;;  %v4156_v11 = vpop.permute.xlu0 %4155 }
 0x977   : > { %v4218_v22 = vrot.slane %v4105_v52, %v14788_v31 }
 0x979   : > { %v4219_v55 = vsel %vm2176_vm12, %v4218_v22, %v4214_v46 }
 0x97a   : > { %v4153_v48 = vpop.permute.xlu1 %4152 }
 0x97b   : > { %v4290_v44 = vrot.slane %v4153_v48, %v14788_v31 }
 0x97d   : > { %v4291_v56 = vsel %vm2176_vm12, %v4290_v44, %v4286_v4 }
 0x97e   : > { %v4111_v29 = vpop.permute.xlu1 %4110 }
 0x97f   : > { %v4227_v57 = vrot.slane %v4111_v29, %v14788_v31  ;;  %v4295_v29 = vrot.slane %v4156_v11, %v14789_v63 }
 0x982   : > { %v4075_v54 = vpop.permute.xlu0 %4074  ;;  %v4159_v35 = vpop.permute.xlu1 %4158 }
 0x983   : > { %v4173_v19 = vrot.slane %v4075_v54, %v14788_v31  ;;  %v4299_v51 = vrot.slane %v4159_v35, %v14788_v31 }
 0x985   : > { %v4174_v34 = vsel %vm2176_vm12, %v4173_v19, %v4169_v49  ;;  %v4300_v54 = vsel %vm2176_vm12, %v4299_v51, %v4295_v29 }
 0x986   : > { %v4310_v33 = vsel %vm2313_vm13, %v4183_v41, %v4174_v34  ;;  %v4114_v38 = vpop.permute.xlu0 %4113  ;;  %v4117_v1 = vpop.permute.xlu1 %4116  ;;  %v4319_v41 = vsel %vm2317_vm15, %v4273_v59, %v4318_v58 }
 0x987   : > { %v4311_v13 = vsel %vm2315_vm14, %v4192_v30, %v4310_v33  ;;  %v4232_v52 = vrot.slane %v4114_v38, %v14789_v63  ;;  %v4236_v48 = vrot.slane %v4117_v1, %v14788_v31  ;;  %v4320_v25 = vsel %vm2319_vm0, %v4282_v14, %v4319_v41 }
 0x988   : > { %v4312_v49 = vsel %vm2317_vm15, %v4201_v15, %v4311_v13  ;;  %v4228_v30 = vsel %vm2176_vm12, %v4227_v57, %v4223_v28  ;;  %v4321_v15 = vsel %vm2321_vm2, %v4291_v56, %v4320_v25  ;;  %v14790_v57 = vld [vmem:[#allocation4_spill] sm:$0xff] }
 0x989   : > { %v4313_v6 = vsel %vm2319_vm0, %v4210_v50, %v4312_v49  ;;  %v4237_v21 = vsel %vm2176_vm12, %v4236_v48, %v4232_v52  ;;  %v4322_v59 = vsel %vm2323_vm4, %v4300_v54, %v4321_v15 }
 0x98a   : > { %v4162_v35 = vpop.permute.xlu0 %4161  ;;  %v4165_v32 = vpop.permute.xlu1 %4164  ;;  %v4314_v11 = vsel %vm2321_vm2, %v4219_v55, %v4313_v6 }
 0x98b   : > { %v4304_v10 = vrot.slane %v4162_v35, %v14789_v63  ;;  %v4308_v58 = vrot.slane %v4165_v32, %v14788_v31  ;;  %v4315_v19 = vsel %vm2323_vm4, %v4228_v30, %v4314_v11  ;;  %v14792_v11 = vld [vmem:[#allocation6_spill] sm:$0xff] }
 0x98c   : > { %v4316_v8 = vsel %vm2325_vm3, %v4237_v21, %v4315_v19 }
 0x98d   : > { %v4326_v46 = vsel %vm2336_vm5, %v4316_v8, -inf  ;;  %v4309_v17 = vsel %vm2176_vm12, %v4308_v58, %v4304_v10 }
 0x98e   : > { %4327 = vmax.xlane.f32.xlu0 %v4326_v46  ;;  %v4323_v22 = vsel %vm2325_vm3, %v4309_v17, %v4322_v59  ;;  %v14793_v59 = vld [vmem:[#allocation7_spill] sm:$0xff] }
 0x98f   : > { %v4329_v44 = vsel %vm2336_vm5, %v4323_v22, -inf }
 0x990   : > { %4330 = vmax.xlane.f32.xlu1 %v4329_v44 }
 0xa17   : > { %v12066_v34 = vpop.xlane.xlu0 %4327 }
 0xa18   : > { %v4337_v4 = vrot.slane %v12066_v34, %v10395_v18  ;;  %v4341_v33 = vrot.slane %v12066_v34, %v14790_v57  ;;  %v4353_v22 = vrot.slane %v12066_v34, %v14793_v59 }
 0xa19   : > { %v12076_v28 = vpop.xlane.xlu1 %4330 }
 0xa1a   : > { %v4414_v51 = vsub.f32 %v11875_v7, %v4337_v4  ;;  %v4415_v38 = vsub.f32 %v11982_v42, %v4337_v4  ;;  %v4416_v1 = vsub.f32 %v11883_v23, %v4341_v33  ;;  %v4417_v14 = vsub.f32 %v11891_v3, %v4341_v33  ;;  %v14791_v42 = vld [vmem:[#allocation5_spill] sm:$0xff] }
 0xa1b   : > { %v4369_v29 = vrot.slane %v12076_v28, %v10395_v18  ;;  %v4373_v7 = vrot.slane %v12076_v28, %v14790_v57  ;;  %v4345_v49 = vrot.slane %v12066_v34, %v14791_v42  ;;  %v4381_v8 = vrot.slane %v12076_v28, %v14792_v11 }
 0xa1c   : > { %v4446_v13 = vmul.f32 1.442695, %v4414_v51  ;;  %v4448_v52 = vmul.f32 1.442695, %v4415_v38  ;;  %v4450_v48 = vmul.f32 1.442695, %v4416_v1  ;;  %v4385_v51 = vrot.slane %v12076_v28, %v14793_v59 }
 0xa1d   : > { %v4452_v50 = vmul.f32 1.442695, %v4417_v14  ;;  %v4430_v23 = vsub.f32 %v11878_v37, %v4369_v29  ;;  %v4431_v3 = vsub.f32 %v11899_v39, %v4369_v29  ;;  %v4432_v41 = vsub.f32 %v11886_v61, %v4373_v7 }
 0xa1e   : > { %9987 = vpow2.f32 %v4446_v13  ;;  %v4433_v6 = vsub.f32 %v11907_v40, %v4373_v7  ;;  %v4418_v37 = vsub.f32 %v11894_v24, %v4345_v49  ;;  %v4377_v39 = vrot.slane %v12076_v28, %v14791_v42  ;;  %v14794_v13 = vld [vmem:[#allocation8_spill] sm:$0xff] }
 0xa1f   : > { %9989 = vpow2.f32 %v4448_v52  ;;  %v4478_v55 = vmul.f32 1.442695, %v4430_v23  ;;  %v4480_v25 = vmul.f32 1.442695, %v4431_v3  ;;  %v4482_v54 = vmul.f32 1.442695, %v4432_v41 }
 0xa20   : > { %9991 = vpow2.f32 %v4450_v48  ;;  %v4419_v35 = vsub.f32 %v11915_v27, %v4345_v49  ;;  %v4484_v40 = vmul.f32 1.442695, %v4433_v6  ;;  %v4349_v24 = vrot.slane %v12066_v34, %v14792_v11  ;;  %v14795_v6 = vld [vmem:[#allocation9_spill] sm:$0xff] }
 0xa21   : > { %9993 = vpow2.f32 %v4452_v50  ;;  %v4454_v10 = vmul.f32 1.442695, %v4418_v37  ;;  %v4434_v58 = vsub.f32 %v11902_v5, %v4377_v39  ;;  %v4435_v19 = vsub.f32 %v11923_v43, %v4377_v39 }
 0xa22   : > { %9995 = vpow2.f32 %v4478_v55  ;;  %v4456_v21 = vmul.f32 1.442695, %v4419_v35  ;;  %v4420_v27 = vsub.f32 %v11910_v60, %v4349_v24  ;;  %v4421_v46 = vsub.f32 %v11931_v26, %v4349_v24 }
 0xa23   : > { %9997 = vpow2.f32 %v4480_v25  ;;  %v4486_v15 = vmul.f32 1.442695, %v4434_v58  ;;  %v4488_v17 = vmul.f32 1.442695, %v4435_v19  ;;  %v4436_v44 = vsub.f32 %v11918_v62, %v4381_v8  ;;  %v14796_v58 = vld [vmem:[#allocation87_spill] sm:$0xff] }
 0xa24   : > { %9999 = vpow2.f32 %v4482_v54  ;;  %v4458_v5 = vmul.f32 1.442695, %v4420_v27  ;;  %v4460_v4 = vmul.f32 1.442695, %v4421_v46  ;;  %v4437_v60 = vsub.f32 %v11939_v2, %v4381_v8  ;;  %v14797_v27 = vld [vmem:[#allocation10_spill] sm:$0xff] }
 0xa25   : > { %10001 = vpow2.f32 %v4484_v40  ;;  %v4422_v26 = vsub.f32 %v11926_v53, %v4353_v22  ;;  %v4490_v62 = vmul.f32 1.442695, %v4436_v44  ;;  %v4423_v1 = vsub.f32 %v11947_v0, %v4353_v22 }
 0xa26   : > { %10003 = vpow2.f32 %v4454_v10  ;;  %v4492_v2 = vmul.f32 1.442695, %v4437_v60  ;;  %v4357_v53 = vrot.slane %v12066_v34, %v14794_v13  ;;  %v4438_v48 = vsub.f32 %v11934_v20, %v4385_v51  ;;  %v14800_v60 = vld [vmem:[#allocation89_spill] sm:$0xff] }
 0xa27   : > { %10005 = vpow2.f32 %v4456_v21  ;;  %v4462_v52 = vmul.f32 1.442695, %v4422_v26  ;;  %v4464_v29 = vmul.f32 1.442695, %v4423_v1  ;;  %v4439_v0 = vsub.f32 %v11955_v12, %v4385_v51  ;;  %v14801_v1 = vld [vmem:[#allocation90_spill] sm:$0xff] }
 0xa28   : > { %10007 = vpow2.f32 %v4486_v15  ;;  %v4424_v23 = vsub.f32 %v11942_v45, %v4357_v53  ;;  %v4389_v3 = vrot.slane %v12076_v28, %v14794_v13  ;;  %v4494_v20 = vmul.f32 1.442695, %v4438_v48  ;;  %v14798_v15 = vld [vmem:[#allocation84_spill] sm:$0xff] }
 0xa29   : > { %10009 = vpow2.f32 %v4488_v17  ;;  %v4425_v41 = vsub.f32 %v11963_v47, %v4357_v53  ;;  %v4496_v12 = vmul.f32 1.442695, %v4439_v0  ;;  %v4361_v45 = vrot.slane %v12066_v34, %v14795_v6 }
 0xa2a   : > { %10011 = vpow2.f32 %v4458_v5  ;;  %v4466_v25 = vmul.f32 1.442695, %v4424_v23  ;;  %v4440_v37 = vsub.f32 %v11950_v36, %v4389_v3  ;;  %v4441_v47 = vsub.f32 %v11971_v9, %v4389_v3  ;;  %v14799_v5 = vld [vmem:[#allocation88_spill] sm:$0xff]  ;;  %v14804_v3 = vld [vmem:[#allocation13_spill] sm:$0xff] }
 0xa2b   : > { %v12087_v56 = vpop.eup %9987  ;;  %10013 = vpow2.f32 %v4460_v4  ;;  %v4468_v54 = vmul.f32 1.442695, %v4425_v41  ;;  %v4426_v40 = vsub.f32 %v11958_v16, %v4361_v45  ;;  %v4393_v24 = vrot.slane %v12076_v28, %v14795_v6 }
 0xa2c   : > { %v12090_v30 = vpop.eup %9989  ;;  %4543 = vperm.xlu0 %9888, %v12087_v56   ;;  %10015 = vpow2.f32 %v4490_v62  ;;  %v4498_v36 = vmul.f32 1.442695, %v4440_v37  ;;  %v4427_v21 = vsub.f32 %v14796_v58, %v4361_v45  ;;  %v4500_v9 = vmul.f32 1.442695, %v4441_v47 }
 0xa2d   : > { %4546 = vperm.xlu1 %9887, %v12090_v30   ;;  %v12097_v61 = vpop.eup %9991  ;;  %10017 = vpow2.f32 %v4492_v2  ;;  %v4365_v16 = vrot.slane %v12066_v34, %v14797_v27  ;;  %v4470_v8 = vmul.f32 1.442695, %v4426_v40  ;;  %v4442_v46 = vsub.f32 %v14798_v15, %v4393_v24 }
 0xa2e   : > { %v12100_v32 = vpop.eup %9993  ;;  %10019 = vpow2.f32 %v4462_v52  ;;  %v4472_v22 = vmul.f32 1.442695, %v4427_v21  ;;  %v4443_v44 = vsub.f32 %v14799_v5, %v4393_v24  ;;  %v4397_v34 = vrot.slane %v12076_v28, %v14797_v27 }
 0xa2f   : > { %v12115_v43 = vpop.eup %9995  ;;  %10021 = vpow2.f32 %v4464_v29  ;;  %v4428_v26 = vsub.f32 %v14800_v60, %v4365_v16  ;;  %v4502_v51 = vmul.f32 1.442695, %v4442_v46  ;;  %v4429_v2 = vsub.f32 %v14801_v1, %v4365_v16  ;;  %v14802_v29 = vld [vmem:[#allocation91_spill] sm:$0xff] }
 0xa30   : > { %4549 = vperm.xlu0 %9888, %v12097_v61   ;;  %v12118_v33 = vpop.eup %9997  ;;  %10023 = vpow2.f32 %v4494_v20  ;;  %v4504_v53 = vmul.f32 1.442695, %v4443_v44  ;;  %v4444_v0 = vsub.f32 %v14802_v29, %v4397_v34  ;;  %v4445_v20 = vsub.f32 %v14804_v3, %v4397_v34 }
 0xa31   : > { %4552 = vperm.xlu1 %9887, %v12100_v32   ;;  %v12125_v38 = vpop.eup %9999  ;;  %10025 = vpow2.f32 %v4496_v12  ;;  %v4474_v48 = vmul.f32 1.442695, %v4428_v26  ;;  %v4476_v28 = vmul.f32 1.442695, %v4429_v2 }
 0xa32   : > { %v12128_v14 = vpop.eup %10001  ;;  %10027 = vpow2.f32 %v4466_v25  ;;  %v4506_v12 = vmul.f32 1.442695, %v4444_v0  ;;  %v4508_v25 = vmul.f32 1.442695, %v4445_v20 }
 0xa33   : > { %v12135_v50 = vpop.eup %10003  ;;  %10029 = vpow2.f32 %v4468_v54 }
 0xa34   : > { %4591 = vperm.xlu0 %9888, %v12115_v43   ;;  %v12138_v7 = vpop.eup %10005  ;;  %10031 = vpow2.f32 %v4498_v36 }
 0xa35   : > { %4594 = vperm.xlu1 %9887, %v12118_v33   ;;  %v12145_v49 = vpop.eup %10007  ;;  %10033 = vpow2.f32 %v4500_v9 }
 0xa36   : > { %v12148_v55 = vpop.eup %10009  ;;  %10035 = vpow2.f32 %v4470_v8 }
 0xa37   : > { %v12155_v39 = vpop.eup %10011  ;;  %10037 = vpow2.f32 %v4472_v22 }
 0xa38   : > { %4597 = vperm.xlu0 %9888, %v12125_v38   ;;  %v12158_v35 = vpop.eup %10013  ;;  %10039 = vpow2.f32 %v4502_v51 }
 0xa39   : > { %4600 = vperm.xlu1 %9887, %v12128_v14   ;;  %v12165_v10 = vpop.eup %10015  ;;  %10041 = vpow2.f32 %v4504_v53 }
 0xa3a   : > { %v12168_v19 = vpop.eup %10017  ;;  %10043 = vpow2.f32 %v4474_v48 }
 0xa3b   : > { %v12175_v17 = vpop.eup %10019  ;;  %10045 = vpow2.f32 %v4476_v28 }
 0xa3c   : > { %4555 = vperm.xlu0 %9888, %v12135_v50   ;;  %v12178_v4 = vpop.eup %10021  ;;  %10047 = vpow2.f32 %v4506_v12 }
 0xa3d   : > { %4558 = vperm.xlu1 %9887, %v12138_v7   ;;  %v12185_v62 = vpop.eup %10023  ;;  %10049 = vpow2.f32 %v4508_v25 }
 0xa3e   : > { %v12188_v52 = vpop.eup %10025 }
 0xa3f   : > { %v12193_v23 = vpop.eup %10027 }
 0xa40   : > { %4603 = vperm.xlu0 %9888, %v12145_v49   ;;  %14803 = vst [vmem:[#allocation12_spill] sm:$0xff] %v12193_v23  ;;  %v12196_v41 = vpop.eup %10029 }
 0xa41   : > { %4606 = vperm.xlu1 %9887, %v12148_v55   ;;  %14805 = vst [vmem:[#allocation28_spill] sm:$0xff] %v12196_v41  ;;  %v12200_v45 = vpop.eup %10031 }
 0xa42   : > { %14806 = vst [vmem:[#allocation22_spill] sm:$0xff] %v12200_v45  ;;  %v12202_v37 = vpop.eup %10033 }
 0xa43   : > { %14807 = vst [vmem:[#allocation25_spill] sm:$0xff] %v12202_v37  ;;  %v12206_v54 = vpop.eup %10035 }
 0xa44   : > { %4561 = vperm.xlu0 %9888, %v12155_v39   ;;  %14808 = vst [vmem:[#allocation21_spill] sm:$0xff] %v12206_v54  ;;  %v12208_v47 = vpop.eup %10037 }
 0xa45   : > { %4564 = vperm.xlu1 %9887, %v12158_v35   ;;  %14809 = vst [vmem:[#allocation65_spill] sm:$0xff] %v12208_v47  ;;  %v12212_v40 = vpop.eup %10039 }
 0xa46   : > { %14810 = vst [vmem:[#allocation61_spill] sm:$0xff] %v12212_v40  ;;  %v12214_v24 = vpop.eup %10041 }
 0xa47   : > { %14811 = vst [vmem:[#allocation64_spill] sm:$0xff] %v12214_v24  ;;  %v12218_v36 = vpop.eup %10043 }
 0xa48   : > { %4609 = vperm.xlu0 %9888, %v12165_v10   ;;  %14812 = vst [vmem:[#allocation58_spill] sm:$0xff] %v12218_v36  ;;  %v12220_v58 = vpop.eup %10045 }
 0xa49   : > { %4612 = vperm.xlu1 %9887, %v12168_v19   ;;  %14813 = vst [vmem:[#allocation36_spill] sm:$0xff] %v12220_v58  ;;  %v12224_v21 = vpop.eup %10047 }
 0xa4a   : > { %14814 = vst [vmem:[#allocation32_spill] sm:$0xff] %v12224_v21  ;;  %v12226_v9 = vpop.eup %10049 }
 0xa4b   : > { %14815 = vst [vmem:[#allocation70_spill] sm:$0xff] %v12226_v9 }
 0xa4c   : > { %4567 = vperm.xlu0 %9888, %v12175_v17  }
 0xa4d   : > { %4570 = vperm.xlu1 %9887, %v12178_v4  }
 0xa50   : > { %4615 = vperm.xlu0 %9888, %v12185_v62  }
 0xa51   : > { %4618 = vperm.xlu1 %9887, %v12188_v52  }
 0xa54   : > { %4573 = vperm.xlu0 %9888, %v12193_v23  }
 0xa55   : > { %4576 = vperm.xlu1 %9887, %v12196_v41  }
 0xa58   : > { %4621 = vperm.xlu0 %9888, %v12200_v45  }
 0xa59   : > { %4624 = vperm.xlu1 %9887, %v12202_v37  }
 0xa5c   : > { %4579 = vperm.xlu0 %9888, %v12206_v54  }
 0xa5d   : > { %4582 = vperm.xlu1 %9887, %v12208_v47  }
 0xa60   : > { %4627 = vperm.xlu0 %9888, %v12212_v40  }
 0xa61   : > { %4630 = vperm.xlu1 %9887, %v12214_v24  }
 0xa64   : > { %4585 = vperm.xlu0 %9888, %v12218_v36  }
 0xa65   : > { %4588 = vperm.xlu1 %9887, %v12220_v58  }
 0xa68   : > { %4633 = vperm.xlu0 %9888, %v12224_v21  }
 0xa69   : > { %4636 = vperm.xlu1 %9887, %v12226_v9  }
 0xaa7   : > { %v4544_v16 = vpop.permute.xlu0 %4543 }
 0xaa8   : > { %v4547_v8 = vpop.permute.xlu1 %4546  ;;  %v4641_v24 = vrot.slane %v4544_v16, %v14789_v63 }
 0xaa9   : > { %v4645_v40 = vrot.slane %v4547_v8, %v14788_v31 }
 0xaab   : > { %v4550_v15 = vpop.permute.xlu0 %4549 }
 0xaac   : > { %v4553_v46 = vpop.permute.xlu1 %4552  ;;  %v4650_v21 = vrot.slane %v4550_v15, %v14789_v63  ;;  %v4646_v15 = vsel %vm2176_vm12, %v4645_v40, %v4641_v24 }
 0xaad   : > { %v4654_v58 = vrot.slane %v4553_v46, %v14788_v31 }
 0xaaf   : > { %v12230_v22 = vpop.permute.xlu0 %4591  ;;  %v4655_v37 = vsel %vm2176_vm12, %v4654_v58, %v4650_v21 }
 0xab0   : > { %v12232_v5 = vpop.permute.xlu1 %4594  ;;  %v4782_v21 = vsel %vm2313_vm13, %v4655_v37, %v4646_v15 }
 0xab3   : > { %v4598_v44 = vpop.permute.xlu0 %4597 }
 0xab4   : > { %v4601_v60 = vpop.permute.xlu1 %4600  ;;  %v4722_v46 = vrot.slane %v4598_v44, %v14789_v63 }
 0xab5   : > { %v4726_v16 = vrot.slane %v4601_v60, %v14788_v31 }
 0xab7   : > { %v4556_v26 = vpop.permute.xlu0 %4555  ;;  %v4727_v37 = vsel %vm2176_vm12, %v4726_v16, %v4722_v46 }
 0xab8   : > { %v4559_v34 = vpop.permute.xlu1 %4558  ;;  %v4659_v27 = vrot.slane %v4556_v26, %v14789_v63 }
 0xab9   : > { %v4663_v47 = vrot.slane %v4559_v34, %v14788_v31 }
 0xabb   : > { %v4604_v51 = vpop.permute.xlu0 %4603  ;;  %v4664_v8 = vsel %vm2176_vm12, %v4663_v47, %v4659_v27  ;;  %v4717_v27 = vrot.slane %v12232_v5, %v14788_v31 }
 0xabc   : > { %v4607_v1 = vpop.permute.xlu1 %4606  ;;  %v4731_v26 = vrot.slane %v4604_v51, %v14789_v63 }
 0xabd   : > { %v4735_v34 = vrot.slane %v4607_v1, %v14788_v31 }
 0xabf   : > { %v4562_v2 = vpop.permute.xlu0 %4561 }
 0xac0   : > { %v4565_v53 = vpop.permute.xlu1 %4564  ;;  %v4668_v45 = vrot.slane %v4562_v2, %v14789_v63  ;;  %v4713_v2 = vrot.slane %v12230_v22, %v14789_v63 }
 0xac1   : > { %v4672_v6 = vrot.slane %v4565_v53, %v14788_v31  ;;  %v4783_v53 = vsel %vm2315_vm14, %v4664_v8, %v4782_v21 }
 0xac3   : > { %v4610_v48 = vpop.permute.xlu0 %4609  ;;  %v4673_v47 = vsel %vm2176_vm12, %v4672_v6, %v4668_v45 }
 0xac4   : > { %v4613_v29 = vpop.permute.xlu1 %4612  ;;  %v4740_v22 = vrot.slane %v4610_v48, %v14789_v63  ;;  %v4784_v45 = vsel %vm2317_vm15, %v4673_v47, %v4783_v53 }
 0xac7   : > { %v4568_v0 = vpop.permute.xlu0 %4567 }
 0xac8   : > { %v4571_v28 = vpop.permute.xlu1 %4570  ;;  %v4677_v23 = vrot.slane %v4568_v0, %v14789_v63  ;;  %v4744_v0 = vrot.slane %v4613_v29, %v14788_v31 }
 0xac9   : > { %v4681_v58 = vrot.slane %v4571_v28, %v14788_v31  ;;  %v4736_v28 = vsel %vm2176_vm12, %v4735_v34, %v4731_v26 }
 0xaca   : > { %v4745_v16 = vsel %vm2176_vm12, %v4744_v0, %v4740_v22 }
 0xacb   : > { %v4616_v3 = vpop.permute.xlu0 %4615 }
 0xacc   : > { %v4619_v20 = vpop.permute.xlu1 %4618  ;;  %v4749_v5 = vrot.slane %v4616_v3, %v14789_v63 }
 0xacd   : > { %v4753_v6 = vrot.slane %v4619_v20, %v14788_v31  ;;  %v4718_v20 = vsel %vm2176_vm12, %v4717_v27, %v4713_v2 }
 0xacf   : > { %v4574_v12 = vpop.permute.xlu0 %4573  ;;  %v4754_v26 = vsel %vm2176_vm12, %v4753_v6, %v4749_v5 }
 0xad0   : > { %v4577_v25 = vpop.permute.xlu1 %4576  ;;  %v4686_v40 = vrot.slane %v4574_v12, %v14789_v63  ;;  %v4682_v12 = vsel %vm2176_vm12, %v4681_v58, %v4677_v23 }
 0xad1   : > { %v4690_v24 = vrot.slane %v4577_v25, %v14788_v31  ;;  %v4785_v8 = vsel %vm2319_vm0, %v4682_v12, %v4784_v45 }
 0xad3   : > { %v4622_v9 = vpop.permute.xlu0 %4621 }
 0xad4   : > { %v4625_v36 = vpop.permute.xlu1 %4624 }
 0xad5   : > { %v4762_v25 = vrot.slane %v4625_v36, %v14788_v31  ;;  %v4789_v36 = vsel %vm2313_vm13, %v4727_v37, %v4718_v20 }
 0xad6   : > { %v4790_v58 = vsel %vm2315_vm14, %v4736_v28, %v4789_v36 }
 0xad7   : > { %v4580_v54 = vpop.permute.xlu0 %4579 }
 0xad8   : > { %v4583_v41 = vpop.permute.xlu1 %4582  ;;  %v4695_v60 = vrot.slane %v4580_v54, %v14789_v63  ;;  %v4758_v54 = vrot.slane %v4622_v9, %v14789_v63 }
 0xad9   : > { %v4699_v51 = vrot.slane %v4583_v41, %v14788_v31  ;;  %v4691_v41 = vsel %vm2176_vm12, %v4690_v24, %v4686_v40 }
 0xada   : > { %v4786_v34 = vsel %vm2321_vm2, %v4691_v41, %v4785_v8  ;;  %v4763_v21 = vsel %vm2176_vm12, %v4762_v25, %v4758_v54 }
 0xadb   : > { %v4628_v44 = vpop.permute.xlu0 %4627  ;;  %v4700_v48 = vsel %vm2176_vm12, %v4699_v51, %v4695_v60 }
 0xadc   : > { %v4631_v1 = vpop.permute.xlu1 %4630  ;;  %v4767_v29 = vrot.slane %v4628_v44, %v14789_v63  ;;  %v4787_v2 = vsel %vm2323_vm4, %v4700_v48, %v4786_v34  ;;  %v4791_v44 = vsel %vm2317_vm15, %v4745_v16, %v4790_v58 }
 0xadd   : > { %v4771_v46 = vrot.slane %v4631_v1, %v14788_v31  ;;  %v4792_v1 = vsel %vm2319_vm0, %v4754_v26, %v4791_v44 }
 0xade   : > { %v4793_v22 = vsel %vm2321_vm2, %v4763_v21, %v4792_v1 }
 0xadf   : > { %v4586_v15 = vpop.permute.xlu0 %4585  ;;  %v4772_v27 = vsel %vm2176_vm12, %v4771_v46, %v4767_v29 }
 0xae0   : > { %v4704_v23 = vrot.slane %v4586_v15, %v14789_v63  ;;  %v4589_v3 = vpop.permute.xlu1 %4588  ;;  %v4794_v28 = vsel %vm2323_vm4, %v4772_v27, %v4793_v22 }
 0xae1   : > { %v4708_v9 = vrot.slane %v4589_v3, %v14788_v31 }
 0xae3   : > { %v4634_v40 = vpop.permute.xlu0 %4633  ;;  %v4709_v24 = vsel %vm2176_vm12, %v4708_v9, %v4704_v23 }
 0xae4   : > { %v4776_v47 = vrot.slane %v4634_v40, %v14789_v63  ;;  %v4637_v60 = vpop.permute.xlu1 %4636  ;;  %v4788_v51 = vsel %vm2325_vm3, %v4709_v24, %v4787_v2 }
 0xae5   : > { %v4780_v37 = vrot.slane %v4637_v60, %v14788_v31  ;;  %v4798_v53 = vsel %vm2336_vm5, %v4788_v51, 0.0 }
 0xae6   : > { %4799 = vadd.xlane.f32.xlu0 %v4798_v53 }
 0xae7   : > { %v4781_v0 = vsel %vm2176_vm12, %v4780_v37, %v4776_v47 }
 0xae8   : > { %v4795_v12 = vsel %vm2325_vm3, %v4781_v0, %v4794_v28 }
 0xae9   : > { %v4801_v5 = vsel %vm2336_vm5, %v4795_v12, 0.0 }
 0xaea   : > { %4802 = vadd.xlane.f32.xlu1 %v4801_v5 }
 0xb6f   : > { %v4800_v6 = vpop.xlane.xlu0 %4799 }
 0xb70   : > { %10051 = vrcp.f32 %v4800_v6 }
 0xb73   : > { %v4803_v45 = vpop.xlane.xlu1 %4802 }
 0xb74   : > { %10053 = vrcp.f32 %v4803_v45 }
 0xb7d   : > { %v12300_v41 = vpop.eup %10051 }
 0xb7e   : > { %v4811_v54 = vrot.slane %v12300_v41, %v10395_v18  ;;  %v4815_v25 = vrot.slane %v12300_v41, %v14790_v57 }
 0xb80   : > { %v4888_v15 = vmul.f32 %v12087_v56, %v4811_v54  ;;  %v4889_v48 = vmul.f32 %v12090_v30, %v4811_v54  ;;  %v4890_v29 = vmul.f32 %v12097_v61, %v4815_v25  ;;  %v4891_v46 = vmul.f32 %v12100_v32, %v4815_v25 }
 0xb81   : > { %v12310_v23 = vpop.eup %10053  ;;  %v4819_v32 = vrot.slane %v12300_v41, %v14791_v42 }
 0xb82   : > { %v4920_v3 = vpack.c.bf16 %v4889_v48, %v4888_v15  ;;  %v4843_v20 = vrot.slane %v12310_v23, %v10395_v18  ;;  %v4921_v16 = vpack.c.bf16 %v4891_v46, %v4890_v29  ;;  %v4847_v36 = vrot.slane %v12310_v23, %v14790_v57 }
 0xb83   : > { %v4892_v40 = vmul.f32 %v12135_v50, %v4819_v32  ;;  %v4851_v44 = vrot.slane %v12310_v23, %v14791_v42  ;;  %v4855_v1 = vrot.slane %v12310_v23, %v14792_v11  ;;  %v4859_v25 = vrot.slane %v12310_v23, %v14793_v59 }
 0xb84   : > { %v4957_v8 = vunpack.c.l.b16 %v4920_v3  ;;  %v4958_v9 = vunpack.c.h.b16 %v4920_v3  ;;  %v4904_v56 = vmul.f32 %v12115_v43, %v4843_v20  ;;  %v4905_v30 = vmul.f32 %v12118_v33, %v4843_v20 }
 0xb85   : > { %v4959_v61 = vunpack.c.l.b16 %v4921_v16  ;;  %v4960_v26 = vunpack.c.h.b16 %v4921_v16  ;;  %v4906_v58 = vmul.f32 %v12125_v38, %v4847_v36  ;;  %v4907_v21 = vmul.f32 %v12128_v14, %v4847_v36 }
 0xb86   : > { %4990 = vperm.xlu0 %9888, %v4957_v8   ;;  %4993 = vperm.xlu1 %9887, %v4958_v9   ;;  %v4928_v34 = vpack.c.bf16 %v4905_v30, %v4904_v56  ;;  %v4893_v43 = vmul.f32 %v12138_v7, %v4819_v32  ;;  %v4823_v38 = vrot.slane %v12300_v41, %v14792_v11  ;;  %v14818_v30 = vld [vmem:[#allocation9_spill] sm:$0xff]  ;;  %v14819_v32 = vld [vmem:[#allocation22_spill] sm:$0xff] }
 0xb87   : > { %v4929_v2 = vpack.c.bf16 %v4907_v21, %v4906_v58  ;;  %v4908_v60 = vmul.f32 %v12145_v49, %v4851_v44  ;;  %v4909_v50 = vmul.f32 %v12148_v55, %v4851_v44  ;;  %v4910_v28 = vmul.f32 %v12165_v10, %v4855_v1  ;;  %v14821_v21 = vld [vmem:[#allocation21_spill] sm:$0xff] }
 0xb88   : > { %v4974_v24 = vunpack.c.h.b16 %v4928_v34  ;;  %v4973_v33 = vunpack.c.l.b16 %v4928_v34  ;;  %v4922_v27 = vpack.c.bf16 %v4893_v43, %v4892_v40  ;;  %v4894_v7 = vmul.f32 %v12155_v39, %v4823_v38  ;;  %v14820_v34 = vld [vmem:[#allocation25_spill] sm:$0xff] }
 0xb89   : > { %v4976_v47 = vunpack.c.h.b16 %v4929_v2  ;;  %v4975_v14 = vunpack.c.l.b16 %v4929_v2  ;;  %v4895_v51 = vmul.f32 %v12158_v35, %v4823_v38  ;;  %v4930_v22 = vpack.c.bf16 %v4909_v50, %v4908_v60  ;;  %v14822_v43 = vld [vmem:[#allocation65_spill] sm:$0xff] }
 0xb8a   : > { %4996 = vperm.xlu0 %9888, %v4959_v61   ;;  %4999 = vperm.xlu1 %9887, %v4960_v26   ;;  %v4962_v37 = vunpack.c.h.b16 %v4922_v27  ;;  %v4961_v53 = vunpack.c.l.b16 %v4922_v27  ;;  %v4911_v49 = vmul.f32 %v12168_v19, %v4855_v1  ;;  %v4827_v39 = vrot.slane %v12300_v41, %v14793_v59  ;;  %v14825_v1 = vld [vmem:[#allocation64_spill] sm:$0xff] }
 0xb8b   : > { %v4923_v0 = vpack.c.bf16 %v4895_v51, %v4894_v7  ;;  %v4978_v55 = vunpack.c.h.b16 %v4930_v22  ;;  %v4977_v12 = vunpack.c.l.b16 %v4930_v22  ;;  %v4831_v19 = vrot.slane %v12300_v41, %v14794_v13  ;;  %v14824_v7 = vld [vmem:[#allocation61_spill] sm:$0xff] }
 0xb8c   : > { %v4931_v5 = vpack.c.bf16 %v4911_v49, %v4910_v28  ;;  %v4896_v45 = vmul.f32 %v12175_v17, %v4827_v39  ;;  %v4897_v54 = vmul.f32 %v12178_v4, %v4827_v39  ;;  %v4912_v29 = vmul.f32 %v12185_v62, %v4859_v25  ;;  %v14816_v17 = vld [vmem:[#allocation12_spill] sm:$0xff] }
 0xb8d   : > { %v4964_v35 = vunpack.c.h.b16 %v4923_v0  ;;  %v4963_v6 = vunpack.c.l.b16 %v4923_v0  ;;  %v4913_v46 = vmul.f32 %v12188_v52, %v4859_v25  ;;  %v4898_v3 = vmul.f32 %v14816_v17, %v4831_v19  ;;  %v14817_v4 = vld [vmem:[#allocation28_spill] sm:$0xff] }
 0xb8e   : > { %5041 = vperm.xlu1 %9887, %v4974_v24   ;;  %5038 = vperm.xlu0 %9888, %v4973_v33   ;;  %v4980_v10 = vunpack.c.h.b16 %v4931_v5  ;;  %v4979_v15 = vunpack.c.l.b16 %v4931_v5  ;;  %v4924_v48 = vpack.c.bf16 %v4897_v54, %v4896_v45  ;;  %v4899_v20 = vmul.f32 %v14817_v4, %v4831_v19  ;;  %v14827_v0 = vld [vmem:[#allocation36_spill] sm:$0xff]  ;;  %v14829_v54 = vld [vmem:[#allocation70_spill] sm:$0xff] }
 0xb8f   : > { %v4932_v9 = vpack.c.bf16 %v4913_v46, %v4912_v29  ;;  %v4863_v36 = vrot.slane %v12310_v23, %v14794_v13  ;;  %v4835_v62 = vrot.slane %v12300_v41, %v14818_v30  ;;  %v4867_v27 = vrot.slane %v12310_v23, %v14818_v30  ;;  %v14830_v29 = vld [vmem:[#allocation79_spill] sm:$0xff]  ;;  %v14831_v46 = vld [vmem:[#allocation80_spill] sm:$0xff]  ;;  %v12389_v4 = vld [vmem:[%s747_s3] sm:$0xff] }
 0xb90   : > { %v4966_v16 = vunpack.c.h.b16 %v4924_v48  ;;  %v4965_v8 = vunpack.c.l.b16 %v4924_v48  ;;  %v4925_v56 = vpack.c.bf16 %v4899_v20, %v4898_v3  ;;  %v14832_v17 = vpack.c.bf16 %v14830_v29, %v14831_v46  ;;  %v12387_v3 = vld [vmem:[%s14289_s17] sm:$0x3f]  ;;  %v12391_v20 = vld [vmem:[%s747_s3 + $0x8] sm:$0xff] }
 0xb91   : > { %v4982_v61 = vunpack.c.h.b16 %v4932_v9  ;;  %v4981_v52 = vunpack.c.l.b16 %v4932_v9  ;;  %v4914_v26 = vmul.f32 %v14819_v32, %v4863_v36  ;;  %v4915_v58 = vmul.f32 %v14820_v34, %v4863_v36 }
 0xb92   : > { %5047 = vperm.xlu1 %9887, %v4976_v47   ;;  %5044 = vperm.xlu0 %9888, %v4975_v14   ;;  %v4900_v40 = vmul.f32 %v14821_v21, %v4835_v62  ;;  %v4901_v24 = vmul.f32 %v14822_v43, %v4835_v62  ;;  %v4968_v33 = vunpack.c.h.b16 %v4925_v56  ;;  %v4967_v2 = vunpack.c.l.b16 %v4925_v56  ;;  %v14823_v47 = vld [vmem:[#allocation10_spill] sm:$0xff] }
 0xb93   : > { %v4933_v44 = vpack.c.bf16 %v4915_v58, %v4914_v26  ;;  %v4839_v14 = vrot.slane %v12300_v41, %v14823_v47  ;;  %v4916_v51 = vmul.f32 %v14824_v7, %v4867_v27  ;;  %v4871_v39 = vrot.slane %v12310_v23, %v14823_v47 }
 0xb94   : > { %v4926_v38 = vpack.c.bf16 %v4901_v24, %v4900_v40  ;;  %v5926_v9 = vrot.slane %v12391_v20, %v10395_v18  ;;  %v5849_v36 = vrot.slane %v12389_v4, %v14790_v57  ;;  %v5937_v56 = vrot.slane %v12391_v20, %v14790_v57 }
 0xb95   : > { %v4984_v60 = vunpack.c.h.b16 %v4933_v44  ;;  %v4983_v50 = vunpack.c.l.b16 %v4933_v44  ;;  %v4903_v28 = vmul.f32 %v14827_v0, %v4839_v14  ;;  %v4919_v25 = vmul.f32 %v14829_v54, %v4871_v39 }
 0xb96   : > { %5005 = vperm.xlu1 %9887, %v4962_v37   ;;  %5002 = vperm.xlu0 %9888, %v4961_v53   ;;  %v4917_v37 = vmul.f32 %v14825_v1, %v4867_v27  ;;  %v14826_v53 = vld [vmem:[#allocation58_spill] sm:$0xff]  ;;  %v4970_v49 = vunpack.c.h.b16 %v4926_v38  ;;  %v5860_v62 = vrot.slane %v12389_v4, %v14791_v42  ;;  %v5959_v32 = vrot.slane %v12391_v20, %v14792_v11 }
 0xb97   : > { %v4902_v22 = vmul.f32 %v14826_v53, %v4839_v14  ;;  %v5882_v26 = vrot.slane %v12389_v4, %v14793_v59  ;;  %v5970_v34 = vrot.slane %v12391_v20, %v14793_v59  ;;  %v5893_v58 = vrot.slane %v12389_v4, %v14794_v13 }
 0xb98   : > { %v5981_v21 = vrot.slane %v12391_v20, %v14794_v13  ;;  %v5904_v40 = vrot.slane %v12389_v4, %v14818_v30  ;;  %v5992_v43 = vrot.slane %v12391_v20, %v14818_v30 }
 0xb99   : > { %v4927_v41 = vpack.c.bf16 %v4903_v28, %v4902_v22 }
 0xb9a   : > { %5053 = vperm.xlu1 %9887, %v4978_v55   ;;  %5050 = vperm.xlu0 %9888, %v4977_v12   ;;  %v4969_v55 = vunpack.c.l.b16 %v4926_v38  ;;  %v4934_v12 = vpack.c.bf16 %v4917_v37, %v4916_v51 }
 0xb9b   : > { %v4971_v19 = vunpack.c.l.b16 %v4927_v41 }
 0xb9c   : > { %v4985_v5 = vunpack.c.l.b16 %v4934_v12 }
 0xb9e   : > { %5011 = vperm.xlu1 %9887, %v4964_v35   ;;  %5008 = vperm.xlu0 %9888, %v4963_v6   ;;  %v4986_v35 = vunpack.c.h.b16 %v4934_v12  ;;  %v14828_v6 = vld [vmem:[#allocation32_spill] sm:$0xff] }
 0xb9f   : > { %v4918_v45 = vmul.f32 %v14828_v6, %v4871_v39 }
 0xba2   : > { %5059 = vperm.xlu1 %9887, %v4980_v10   ;;  %5056 = vperm.xlu0 %9888, %v4979_v15   ;;  %v4972_v10 = vunpack.c.h.b16 %v4927_v41  ;;  %v4935_v15 = vpack.c.bf16 %v4919_v25, %v4918_v45 }
 0xba4   : > { %v4988_v48 = vunpack.c.h.b16 %v4935_v15  ;;  %v4987_v23 = vunpack.c.l.b16 %v4935_v15 }
 0xba6   : > { %5017 = vperm.xlu1 %9887, %v4966_v16   ;;  %5014 = vperm.xlu0 %9888, %v4965_v8   ;;  %v5378_v16 = vrot.slane %v12387_v3, %v14790_v57  ;;  %v5838_v8 = vrot.slane %v12389_v4, %v10395_v18 }
 0xbaa   : > { %5065 = vperm.xlu1 %9887, %v4982_v61   ;;  %5062 = vperm.xlu0 %9888, %v4981_v52   ;;  %v5948_v61 = vrot.slane %v12391_v20, %v14791_v42  ;;  %v5871_v52 = vrot.slane %v12389_v4, %v14792_v11 }
 0xbae   : > { %5023 = vperm.xlu1 %9887, %v4968_v33   ;;  %5020 = vperm.xlu0 %9888, %v4967_v2  }
 0xbb2   : > { %5071 = vperm.xlu1 %9887, %v4984_v60   ;;  %5068 = vperm.xlu0 %9888, %v4983_v50  }
 0xbb6   : > { %5029 = vperm.xlu1 %9887, %v4970_v49   ;;  %5026 = vperm.xlu0 %9888, %v4969_v55  }
 0xbba   : > { %5077 = vperm.xlu1 %9887, %v4986_v35   ;;  %5074 = vperm.xlu0 %9888, %v4985_v5  }
 0xbbe   : > { %5035 = vperm.xlu1 %9887, %v4972_v10   ;;  %5032 = vperm.xlu0 %9888, %v4971_v19  }
 0xbc2   : > { %5083 = vperm.xlu1 %9887, %v4988_v48   ;;  %5080 = vperm.xlu0 %9888, %v4987_v23  }
 0xbc6   : > { %5245 = vrot.lane.b32.xlu0 %v14832_v17, %s10207_s27  ;;  %5380 = vrot.lane.b32.xlu1 %v5378_v16, %s10206_s26 }
 0xbca   : > { %5844 = vbcast.lane.b32.xlu0 %v5838_v8, 264  ;;  %5840 = vbcast.lane.b32.xlu1 %v5838_v8, 256 }
 0xbce   : > { %5928 = vbcast.lane.b32.xlu0 %v5926_v9, 256  ;;  %5851 = vbcast.lane.b32.xlu1 %v5849_v36, 256 }
 0xbd2   : > { %5939 = vbcast.lane.b32.xlu0 %v5937_v56, 256  ;;  %5855 = vbcast.lane.b32.xlu1 %v5849_v36, 264 }
 0xbd6   : > { %5862 = vbcast.lane.b32.xlu0 %v5860_v62, 256  ;;  %5932 = vbcast.lane.b32.xlu1 %v5926_v9, 264 }
 0xbda   : > { %5950 = vbcast.lane.b32.xlu0 %v5948_v61, 256  ;;  %5943 = vbcast.lane.b32.xlu1 %v5937_v56, 264 }
 0xbde   : > { %5873 = vbcast.lane.b32.xlu0 %v5871_v52, 256  ;;  %5866 = vbcast.lane.b32.xlu1 %v5860_v62, 264 }
 0xbe2   : > { %5961 = vbcast.lane.b32.xlu0 %v5959_v32, 256  ;;  %5954 = vbcast.lane.b32.xlu1 %v5948_v61, 264 }
 0xbe6   : > { %5884 = vbcast.lane.b32.xlu0 %v5882_v26, 256  ;;  %5877 = vbcast.lane.b32.xlu1 %v5871_v52, 264 }
 0xbea   : > { %5972 = vbcast.lane.b32.xlu0 %v5970_v34, 256  ;;  %5965 = vbcast.lane.b32.xlu1 %v5959_v32, 264 }
 0xbee   : > { %5895 = vbcast.lane.b32.xlu0 %v5893_v58, 256  ;;  %5888 = vbcast.lane.b32.xlu1 %v5882_v26, 264 }
 0xbf2   : > { %5983 = vbcast.lane.b32.xlu0 %v5981_v21, 256  ;;  %5976 = vbcast.lane.b32.xlu1 %v5970_v34, 264 }
 0xbf6   : > { %5906 = vbcast.lane.b32.xlu0 %v5904_v40, 256  ;;  %5899 = vbcast.lane.b32.xlu1 %v5893_v58, 264 }
 0xbfa   : > { %5994 = vbcast.lane.b32.xlu0 %v5992_v43, 256  ;;  %5987 = vbcast.lane.b32.xlu1 %v5981_v21, 264 }
 0xbfe   : > { %5910 = vbcast.lane.b32.xlu1 %v5904_v40, 264 }
 0xc01   : > { %v4991_v24 = vpop.permute.xlu0 %4990  ;;  %v4994_v33 = vpop.permute.xlu1 %4993 }
 0xc02   : > { %5998 = vbcast.lane.b32.xlu1 %v5992_v43, 264  ;;  %v5088_v54 = vrot.slane %v4991_v24, %v14789_v63  ;;  %v5092_v25 = vrot.slane %v4994_v33, %v14788_v31 }
 0xc04   : > { %v5093_v62 = vsel %vm2176_vm12, %v5092_v25, %v5088_v54 }
 0xc05   : > { %v4997_v2 = vpop.permute.xlu0 %4996  ;;  %v5000_v44 = vpop.permute.xlu1 %4999 }
 0xc06   : > { %v5097_v6 = vrot.slane %v4997_v2, %v14789_v63  ;;  %v5101_v45 = vrot.slane %v5000_v44, %v14788_v31 }
 0xc08   : > { %v5102_v16 = vsel %vm2176_vm12, %v5101_v45, %v5097_v6 }
 0xc09   : > { %v5039_v27 = vpop.permute.xlu0 %5038  ;;  %v5042_v38 = vpop.permute.xlu1 %5041  ;;  %v5229_v61 = vsel %vm2313_vm13, %v5102_v16, %v5093_v62  ;;  %v5312_v16 = vld [vmem:[%s14287_s15] sm:$0xf] }
 0xc0a   : > { %v5160_v10 = vrot.slane %v5039_v27, %v14789_v63  ;;  %v5164_v19 = vrot.slane %v5042_v38, %v14788_v31 }
 0xc0c   : > { %v5165_v52 = vsel %vm2176_vm12, %v5164_v19, %v5160_v10 }
 0xc0d   : > { %v5045_v14 = vpop.permute.xlu0 %5044  ;;  %v5048_v60 = vpop.permute.xlu1 %5047 }
 0xc0e   : > { %v5169_v15 = vrot.slane %v5045_v14, %v14789_v63  ;;  %v5173_v48 = vrot.slane %v5048_v60, %v14788_v31 }
 0xc10   : > { %v5174_v32 = vsel %vm2176_vm12, %v5173_v48, %v5169_v15 }
 0xc11   : > { %v5003_v50 = vpop.permute.xlu0 %5002  ;;  %v5006_v7 = vpop.permute.xlu1 %5005 }
 0xc12   : > { %v5106_v23 = vrot.slane %v5003_v50, %v14789_v63  ;;  %v5110_v29 = vrot.slane %v5006_v7, %v14788_v31 }
 0xc14   : > { %v5111_v26 = vsel %vm2176_vm12, %v5110_v29, %v5106_v23 }
 0xc15   : > { %v5051_v51 = vpop.permute.xlu0 %5050  ;;  %v5054_v1 = vpop.permute.xlu1 %5053 }
 0xc16   : > { %v5178_v8 = vrot.slane %v5051_v51, %v14789_v63  ;;  %v5182_v9 = vrot.slane %v5054_v1, %v14788_v31 }
 0xc18   : > { %v5183_v33 = vsel %vm2176_vm12, %v5182_v9, %v5178_v8  ;;  %v14833_v8 = vld [vmem:[#allocation2_spill] sm:$0xff] }
 0xc19   : > { %v5009_v37 = vpop.permute.xlu0 %5008  ;;  %v5012_v53 = vpop.permute.xlu1 %5011  ;;  %v5324_v9 = vsel %vm5322_vm11, %v14833_v8, 0 }
 0xc1a   : > { %v5115_v36 = vrot.slane %v5009_v37, %v14789_v63  ;;  %v5119_v56 = vrot.slane %v5012_v53, %v14788_v31 }
 0xc1c   : > { %v5120_v2 = vsel %vm2176_vm12, %v5119_v56, %v5115_v36 }
 0xc1d   : > { %v5057_v22 = vpop.permute.xlu0 %5056  ;;  %v5060_v0 = vpop.permute.xlu1 %5059 }
 0xc1e   : > { %v5187_v21 = vrot.slane %v5057_v22, %v14789_v63  ;;  %v5191_v40 = vrot.slane %v5060_v0, %v14788_v31 }
 0xc20   : > { %v5192_v0 = vsel %vm2176_vm12, %v5191_v40, %v5187_v21  ;;  %v14834_v40 = vmov 0.0  }
 0xc21   : > { %v5015_v28 = vpop.permute.xlu0 %5014  ;;  %v5018_v49 = vpop.permute.xlu1 %5017 }
 0xc22   : > { %v5124_v43 = vrot.slane %v5015_v28, %v14789_v63  ;;  %v5128_v24 = vrot.slane %v5018_v49, %v14788_v31 }
 0xc24   : > { %v5129_v28 = vsel %vm2176_vm12, %v5128_v24, %v5124_v43  ;;  %v9910_v43 = vld [vmem:[%s12377_s23] sm:$0xff]   ;;  %v5915_v24 = vrot.slane %v12389_v4, %v14823_v47 }
 0xc25   : > { %v5063_v55 = vpop.permute.xlu0 %5062  ;;  %v5066_v12 = vpop.permute.xlu1 %5065 }
 0xc26   : > { %v5196_v44 = vrot.slane %v5063_v55, %v14789_v63  ;;  %v5200_v27 = vrot.slane %v5066_v12, %v14788_v31  ;;  %v5236_v12 = vsel %vm2313_vm13, %v5174_v32, %v5165_v52  ;;  %5917 = vbcast.lane.b32.xlu0 %v5915_v24, 256  ;;  %5921 = vbcast.lane.b32.xlu1 %v5915_v24, 264 }
 0xc29   : > { %v5021_v39 = vpop.permute.xlu0 %5020  ;;  %v5024_v41 = vpop.permute.xlu1 %5023 }
 0xc2a   : > { %v5133_v38 = vrot.slane %v5021_v39, %v14789_v63  ;;  %v5137_v14 = vrot.slane %v5024_v41, %v14788_v31  ;;  %v5230_v39 = vsel %vm2315_vm14, %v5111_v26, %v5229_v61  ;;  %v5201_v41 = vsel %vm2176_vm12, %v5200_v27, %v5196_v44 }
 0xc2c   : > { %v5138_v6 = vsel %vm2176_vm12, %v5137_v14, %v5133_v38 }
 0xc2d   : > { %v5069_v35 = vpop.permute.xlu0 %5068  ;;  %v5072_v5 = vpop.permute.xlu1 %5071 }
 0xc2e   : > { %v5205_v60 = vrot.slane %v5069_v35, %v14789_v63  ;;  %v5209_v50 = vrot.slane %v5072_v5, %v14788_v31  ;;  %v5237_v35 = vsel %vm2315_vm14, %v5183_v33, %v5236_v12  ;;  %v5231_v5 = vsel %vm2317_vm15, %v5120_v2, %v5230_v39 }
 0xc2f   : > { %v5238_v54 = vsel %vm2317_vm15, %v5192_v0, %v5237_v35  ;;  %v5232_v25 = vsel %vm2319_vm0, %v5129_v28, %v5231_v5  ;;  %v6003_v33 = vrot.slane %v12391_v20, %v14823_v47 }
 0xc30   : > { %v5210_v45 = vsel %vm2176_vm12, %v5209_v50, %v5205_v60  ;;  %v5239_v23 = vsel %vm2319_vm0, %v5201_v41, %v5238_v54  ;;  %v5233_v36 = vsel %vm2321_vm2, %v5138_v6, %v5232_v25 }
 0xc31   : > { %v5027_v46 = vpop.permute.xlu0 %5026  ;;  %v5030_v17 = vpop.permute.xlu1 %5029  ;;  %v5240_v56 = vsel %vm2321_vm2, %v5210_v45, %v5239_v23  ;;  %6005 = vbcast.lane.b32.xlu0 %v6003_v33, 256  ;;  %6009 = vbcast.lane.b32.xlu1 %v6003_v33, 264 }
 0xc32   : > { %v5142_v7 = vrot.slane %v5027_v46, %v14789_v63  ;;  %v5146_v51 = vrot.slane %v5030_v17, %v14788_v31 }
 0xc34   : > { %v5147_v10 = vsel %vm2176_vm12, %v5146_v51, %v5142_v7 }
 0xc35   : > { %v5075_v34 = vpop.permute.xlu0 %5074  ;;  %v5078_v58 = vpop.permute.xlu1 %5077  ;;  %v5234_v62 = vsel %vm2323_vm4, %v5147_v10, %v5233_v36 }
 0xc36   : > { %v5214_v1 = vrot.slane %v5075_v34, %v14789_v63  ;;  %v5218_v37 = vrot.slane %v5078_v58, %v14788_v31  ;;  %v5326_v58 = vand.u32 %v5324_v9, %v5312_v16  ;;  %v5372_v16 = vrot.slane %v12387_v3, %v10395_v18 }
 0xc38   : > { %v5219_v19 = vsel %vm2176_vm12, %v5218_v37, %v5214_v1  ;;  %v12593_v1 = vrot.slane %v12387_v3, %v14791_v42 }
 0xc39   : > { %v5033_v53 = vpop.permute.xlu0 %5032  ;;  %v5036_v22 = vpop.permute.xlu1 %5035  ;;  %v5241_v61 = vsel %vm2323_vm4, %v5219_v19, %v5240_v56 }
 0xc3a   : > { %v5151_v49 = vrot.slane %v5033_v53, %v14789_v63  ;;  %v5155_v55 = vrot.slane %v5036_v22, %v14788_v31 }
 0xc3c   : > { %v5156_v29 = vsel %vm2176_vm12, %v5155_v55, %v5151_v49 }
 0xc3d   : > { %v5081_v15 = vpop.permute.xlu0 %5080  ;;  %v5084_v48 = vpop.permute.xlu1 %5083  ;;  %v5235_v32 = vsel %vm2325_vm3, %v5156_v29, %v5234_v62 }
 0xc3e   : > { %v5223_v46 = vrot.slane %v5081_v15, %v14789_v63  ;;  %v5227_v17 = vrot.slane %v5084_v48, %v14788_v31 }
 0xc40   : > { %v5228_v52 = vsel %vm2176_vm12, %v5227_v17, %v5223_v46 }
 0xc41   : > { %v5242_v26 = vsel %vm2325_vm3, %v5228_v52, %v5241_v61  ;;  %v5246_v34 = vpop.permute.xlu0 %5245  ;;  %v5381_v14 = vpop.permute.xlu1 %5380  ;;  %v14866_v61 = vld [vmem:[#allocation56_spill] sm:$0xff] }
 0xc42   : > { %v5243_v21 = vpack.c.b16 %v5242_v26, %v5235_v32  ;;  %9816 = vmatpush3.bf16.msra.mxu1 %v5246_v34 }
 0xc43   : > { %9821 = vmatprep.subr.bf16.mxu1 %v14834_v40 }
 0xc45   : > { %9818 = vmatmul.mubr.msk.bf16.vlgmr.msra.gmra.mxu1 %vm2336_vm5, %v5243_v21  ;;  %v12517_v37 = vpop.permute.xlu1 %5840  ;;  %v12521_v22 = vpop.permute.xlu0 %5844 }
 0xc46   : > { %9822 = vmatpush3.bf16.msra.mxu1 %v5326_v58  ;;  %9823 = vmatprep.mubr.msk.bf16.mxu1 %vm10205_vm1, %v14834_v40  ;;  %14839 = vst [vmem:[#allocation67_spill] sm:$0xff] %v12517_v37  ;;  %14841 = vst [vmem:[#allocation42_spill] sm:$0xff] %v12521_v22 }
 0xc47   : > { %9827 = vmatprep.subr.bf16.mxu1 %v14834_v40 }
 0xc49   : > { %v12519_v53 = vpop.permute.xlu1 %5851  ;;  %v12525_v28 = vpop.permute.xlu0 %5928 }
 0xc4a   : > { %14840 = vst [vmem:[#allocation46_spill] sm:$0xff] %v12519_v53  ;;  %14843 = vst [vmem:[#allocation72_spill] sm:$0xff] %v12525_v28 }
 0xc4d   : > { %9824 = vmatmul.mubr.msk.bf16.vlgmr.msra.gmra.mxu1 %vm5318_vm7, %v9910_v43  ;;  %v12523_v0 = vpop.permute.xlu1 %5855  ;;  %v12529_v55 = vpop.permute.xlu0 %5939 }
 0xc4e   : > { %9829 = vmatprep.mubr.msk.bf16.mxu1 %vm10205_vm1, %v14834_v40  ;;  %14842 = vst [vmem:[#allocation74_spill] sm:$0xff] %v12523_v0  ;;  %14845 = vst [vmem:[#allocation39_spill] sm:$0xff] %v12529_v55 }
 0xc51   : > { %v12527_v49 = vpop.permute.xlu1 %5932  ;;  %v12533_v39 = vpop.permute.xlu0 %5862 }
 0xc52   : > { %14844 = vst [vmem:[#allocation43_spill] sm:$0xff] %v12527_v49  ;;  %14847 = vst [vmem:[#allocation71_spill] sm:$0xff] %v12533_v39 }
 0xc55   : > { %v12531_v12 = vpop.permute.xlu1 %5943  ;;  %v12537_v35 = vpop.permute.xlu0 %5950 }
 0xc56   : > { %14846 = vst [vmem:[#allocation73_spill] sm:$0xff] %v12531_v12  ;;  %14849 = vst [vmem:[#allocation50_spill] sm:$0xff] %v12537_v35 }
 0xc59   : > { %v12535_v41 = vpop.permute.xlu1 %5866  ;;  %v12541_v6 = vpop.permute.xlu0 %5873 }
 0xc5a   : > { %14848 = vst [vmem:[#allocation57_spill] sm:$0xff] %v12535_v41  ;;  %14851 = vst [vmem:[#allocation76_spill] sm:$0xff] %v12541_v6 }
 0xc5d   : > { %v12539_v5 = vpop.permute.xlu1 %5954  ;;  %v12545_v54 = vpop.permute.xlu0 %5961 }
 0xc5e   : > { %14850 = vst [vmem:[#allocation78_spill] sm:$0xff] %v12539_v5  ;;  %14853 = vst [vmem:[#allocation49_spill] sm:$0xff] %v12545_v54 }
 0xc61   : > { %v12543_v45 = vpop.permute.xlu1 %5877  ;;  %v12549_v10 = vpop.permute.xlu0 %5884 }
 0xc62   : > { %14852 = vst [vmem:[#allocation53_spill] sm:$0xff] %v12543_v45  ;;  %14855 = vst [vmem:[#allocation75_spill] sm:$0xff] %v12549_v10 }
 0xc65   : > { %v12547_v25 = vpop.permute.xlu1 %5965  ;;  %v12553_v15 = vpop.permute.xlu0 %5972 }
 0xc66   : > { %14854 = vst [vmem:[#allocation77_spill] sm:$0xff] %v12547_v25  ;;  %14857 = vst [vmem:[#allocation81_spill] sm:$0xff] %v12553_v15 }
 0xc69   : > { %v12551_v19 = vpop.permute.xlu1 %5888  ;;  %v12557_v23 = vpop.permute.xlu0 %5895 }
 0xc6a   : > { %14856 = vst [vmem:[#allocation83_spill] sm:$0xff] %v12551_v19  ;;  %14859 = vst [vmem:[#allocation82_spill] sm:$0xff] %v12557_v23 }
 0xc6d   : > { %v12555_v48 = vpop.permute.xlu1 %5976  ;;  %v12561_v46 = vpop.permute.xlu0 %5983 }
 0xc6e   : > { %14858 = vst [vmem:[#allocation85_spill] sm:$0xff] %v12555_v48  ;;  %14861 = vst [vmem:[#allocation19_spill] sm:$0xff] %v12561_v46 }
 0xc71   : > { %v12559_v29 = vpop.permute.xlu1 %5899  ;;  %v12567_v8 = vpop.permute.xlu0 %5906 }
 0xc72   : > { %14860 = vst [vmem:[#allocation14_spill] sm:$0xff] %v12559_v29  ;;  %14863 = vst [vmem:[#allocation23_spill] sm:$0xff] %v12567_v8 }
 0xc75   : > { %v12563_v17 = vpop.permute.xlu1 %5987  ;;  %v12573_v62 = vpop.permute.xlu0 %5994 }
 0xc76   : > { %14862 = vst [vmem:[#allocation17_spill] sm:$0xff] %v12563_v17  ;;  %14865 = vst [vmem:[#allocation26_spill] sm:$0xff] %v12573_v62 }
 0xc79   : > { %v12569_v36 = vpop.permute.xlu1 %5910 }
 0xc7a   : > { %14864 = vst [vmem:[#allocation16_spill] sm:$0xff] %v12569_v36 }
 0xc7d   : > { %v12578_v26 = vpop.permute.xlu1 %5998 }
 0xc7e   : > { %14867 = vst [vmem:[#allocation18_spill] sm:$0xff] %v12578_v26 }
 0xc98   : > { %v12580_v21 = vpop.permute.xlu0 %5917 }
 0xc99   : > { %14868 = vst [vmem:[#allocation30_spill] sm:$0xff] %v12580_v21 }
 0xd05   : > { %v12503_v2 = vpop.f32.mrf.mxu1 }
 0xd06   : > { %14835 = vst [vmem:[#allocation68_spill] sm:$0xff] %v12503_v2 }
 0xd07   : > { %v9819_v44 = vpop.f32.mrf.mxu1 }
 0xd09   : > { %v12505_v27 = vpop.f32.mrf.mxu1 }
 0xd0a   : > { %14836 = vst [vmem:[#allocation35_spill] sm:$0xff] %v12505_v27 }
 0xd0b   : > { %v9820_v38 = vpop.f32.mrf.mxu1 }
 0xd0d   : > { %v5362_v60 = vpop.f32.mrf.mxu1 }
 0xd0e   : > { %v12507_v50 = vadd.f32 %v5381_v14, %v5362_v60  ;;  %v5373_v9 = vadd.f32 %v5372_v16, %v5362_v60 }
 0xd0f   : > { %v9825_v7 = vpop.f32.mrf.mxu1 }
 0xd10   : > { %14837 = vst [vmem:[#allocation29_spill] sm:$0xff] %v12507_v50  ;;  %5567 = vrot.lane.b32.xlu0 %v12507_v50, %s10207_s27  ;;  %v5394_v52 = vrot.slane %v5373_v9, %v14866_v61  ;;  %v5387_v34 = vcombine.high %v5373_v9, %v5373_v9  ;;  %v12589_v7 = vpop.permute.xlu0 %6005 }
 0xd11   : > { %v5365_v4 = vpop.f32.mrf.mxu1  ;;  %14870 = vst [vmem:[#allocation33_spill] sm:$0xff] %v12589_v7 }
 0xd12   : > { %v12511_v51 = vadd.f32 %v5381_v14, %v5365_v4  ;;  %v12571_v56 = vadd.f32 %v5372_v16, %v5365_v4  ;;  %v5402_v58 = vcombine.high %v5394_v52, %v5394_v52  ;;  %v5401_v24 = vrot.slane %v5387_v34, %v14866_v61  ;;  %v12586_v14 = vpop.permute.xlu1 %5921 }
 0xd13   : > { %v9826_v20 = vpop.f32.mrf.mxu1  ;;  %v5410_v33 = vrot.slane %v5394_v52, %v14866_v61  ;;  %14869 = vst [vmem:[#allocation20_spill] sm:$0xff] %v12586_v14 }
 0xd14   : > { %14838 = vst [vmem:[#allocation69_spill] sm:$0xff] %v12511_v51  ;;  %5569 = vrot.lane.b32.xlu1 %v12511_v51, %s10207_s27  ;;  %v5443_v32 = vrot.slane %v12571_v56, %v14866_v61  ;;  %v5424_v44 = vrot.slane %v5402_v58, %v14866_v61  ;;  %v5403_v4 = vcombine.high %v5401_v24, %v5401_v24 }
 0xd15   : > { %v5432_v20 = vcombine.high %v5410_v33, %v5410_v33  ;;  %v12596_v52 = vrot.slane %v5401_v24, %v14866_v61  ;;  %v12599_v34 = vrot.slane %v5410_v33, %v10395_v18 }
 0xd16   : > { %v5451_v43 = vcombine.high %v5443_v32, %v5443_v32  ;;  %v5459_v38 = vrot.slane %v5443_v32, %v14866_v61  ;;  %v5434_v16 = vcombine.high %v5424_v44, %v5424_v44  ;;  %v5492_v58 = vrot.slane %v5424_v44, %v10395_v18  ;;  %v12606_v40 = vpop.permute.xlu1 %6009 }
 0xd17   : > { %14871 = vst [vmem:[#allocation24_spill] sm:$0xff] %v12606_v40  ;;  %v12609_v3 = vrot.slane %v5403_v4, %v14866_v61  ;;  %v12612_v24 = vrot.slane %v5432_v20, %v10395_v18 }
 0xd18   : > { %v5473_v60 = vrot.slane %v5451_v43, %v14866_v61  ;;  %v5481_v9 = vcombine.high %v5459_v38, %v5459_v38  ;;  %v5436_v43 = vcombine.high %v12571_v56, %v12571_v56  ;;  %v5520_v27 = vrot.slane %v5459_v38, %v10395_v18 }
 0xd19   : > { %v12620_v44 = vrot.slane %v5434_v16, %v10395_v18 }
 0xd1a   : > { %v5483_v32 = vcombine.high %v5473_v60, %v5473_v60  ;;  %v5524_v2 = vrot.slane %v5473_v60, %v10395_v18  ;;  %v12615_v33 = vrot.slane %v5481_v9, %v10395_v18  ;;  %v5450_v48 = vrot.slane %v5436_v43, %v14866_v61 }
 0xd1c   : > { %v12634_v16 = vrot.slane %v5483_v32, %v10395_v18 }
 0xd82   : > { %v12617_v50 = vpop.permute.xlu0 %5567 }
 0xd83   : > { %v5589_v56 = vadd.f32 %v12617_v50, %v5520_v27  ;;  %v5573_v38 = vadd.f32 %v12617_v50, %v12599_v34  ;;  %v5591_v60 = vadd.f32 %v12617_v50, %v5524_v2  ;;  %v5575_v4 = vadd.f32 %v12617_v50, %v5492_v58 }
 0xd84   : > { %v5577_v20 = vadd.f32 %v12617_v50, %v12612_v24  ;;  %v5593_v9 = vadd.f32 %v12617_v50, %v12615_v33  ;;  %v5579_v51 = vadd.f32 %v12617_v50, %v12620_v44 }
 0xd85   : > { %vm5621_vm8 = vcmp.gt.f32.partialorder %v5589_v56, 0.0  ;;  %v5653_v47 = vmul.f32 0.2, %v5589_v56  ;;  %vm5605_vm9 = vcmp.gt.f32.partialorder %v5573_v38, 0.0  ;;  %v5637_v30 = vmul.f32 0.2, %v5573_v38 }
 0xd86   : > { %vm5623_vm10 = vcmp.gt.f32.partialorder %v5591_v60, 0.0  ;;  %v5655_v13 = vmul.f32 0.2, %v5591_v60  ;;  %vm5607_vm11 = vcmp.gt.f32.partialorder %v5575_v4, 0.0  ;;  %v5639_v59 = vmul.f32 0.2, %v5575_v4  ;;  %v12636_v11 = vpop.permute.xlu1 %5569 }
 0xd87   : > { %v5685_v42 = vsel %vm5621_vm8, %v5589_v56, %v5653_v47  ;;  %v5669_v57 = vsel %vm5605_vm9, %v5573_v38, %v5637_v30  ;;  %vm5609_vm7 = vcmp.gt.f32.partialorder %v5577_v20, 0.0  ;;  %v5641_v31 = vmul.f32 0.2, %v5577_v20 }
 0xd88   : > { %v5721_v63 = vmul.f32 %v12593_v1, %v5685_v42  ;;  %v5705_v40 = vmul.f32 %v12593_v1, %v5669_v57  ;;  %v5687_v32 = vsel %vm5623_vm10, %v5591_v60, %v5655_v13  ;;  %v5671_v14 = vsel %vm5607_vm11, %v5575_v4, %v5639_v59 }
 0xd89   : > { %v5723_v26 = vmul.f32 %v12593_v1, %v5687_v32  ;;  %v5707_v36 = vmul.f32 %v12593_v1, %v5671_v14  ;;  %v5673_v17 = vsel %vm5609_vm7, %v5577_v20, %v5641_v31  ;;  %v5576_v29 = vadd.f32 %v12636_v11, %v5492_v58 }
 0xd8a   : > { %v5785_v47 = vsel %vm889_vm6, %v5721_v63, 0.0  ;;  %v5737_v30 = vsel %vm889_vm6, %v5705_v40, 0.0  ;;  %v5595_v42 = vadd.f32 %v12617_v50, %v12634_v16  ;;  %v5709_v57 = vmul.f32 %v12593_v1, %v5673_v17 }
 0xd8b   : > { %5786 = vadd.xlane.f32.xlu1 %v5785_v47  ;;  %5738 = vadd.xlane.f32.xlu0 %v5737_v30  ;;  %vm5608_vm8 = vcmp.gt.f32.partialorder %v5576_v29, 0.0  ;;  %v5640_v59 = vmul.f32 0.2, %v5576_v29  ;;  %vm5625_vm9 = vcmp.gt.f32.partialorder %v5593_v9, 0.0  ;;  %v5791_v31 = vsel %vm889_vm6, %v5723_v26, 0.0 }
 0xd8c   : > { %v5743_v13 = vsel %vm889_vm6, %v5707_v36, 0.0  ;;  %v5657_v14 = vmul.f32 0.2, %v5593_v9  ;;  %v5590_v58 = vadd.f32 %v12636_v11, %v5520_v27  ;;  %vm5611_vm10 = vcmp.gt.f32.partialorder %v5579_v51, 0.0 }
 0xd8d   : > { %v5672_v63 = vsel %vm5608_vm8, %v5576_v29, %v5640_v59  ;;  %v5643_v40 = vmul.f32 0.2, %v5579_v51  ;;  %v5592_v43 = vadd.f32 %v12636_v11, %v5524_v2  ;;  %v5433_v60 = vcombine.high %v12596_v52, %v12596_v52 }
 0xd8e   : > { %v5708_v56 = vmul.f32 %v12593_v1, %v5672_v63  ;;  %v5689_v38 = vsel %vm5625_vm9, %v5593_v9, %v5657_v14  ;;  %vm5622_vm11 = vcmp.gt.f32.partialorder %v5590_v58, 0.0  ;;  %v5654_v17 = vmul.f32 0.2, %v5590_v58 }
 0xd8f   : > { %v12658_v26 = vrot.slane %v12596_v52, %v10395_v18  ;;  %v12661_v36 = vrot.slane %v5450_v48, %v14866_v61  ;;  %5792 = vadd.xlane.f32.xlu1 %v5791_v31  ;;  %5744 = vadd.xlane.f32.xlu0 %v5743_v13  ;;  %v5656_v27 = vmul.f32 0.2, %v5592_v43  ;;  %v5749_v2 = vsel %vm889_vm6, %v5709_v57, 0.0 }
 0xd90   : > { %v5686_v29 = vsel %vm5622_vm11, %v5590_v58, %v5654_v17  ;;  %vm5624_vm7 = vcmp.gt.f32.partialorder %v5592_v43, 0.0  ;;  %v12666_v4 = vrot.slane %v12609_v3, %v10395_v18  ;;  %v5725_v20 = vmul.f32 %v12593_v1, %v5689_v38 }
 0xd91   : > { %v5675_v9 = vsel %vm5611_vm10, %v5579_v51, %v5643_v40  ;;  %v5659_v52 = vmul.f32 0.2, %v5595_v42  ;;  %v5578_v32 = vadd.f32 %v12636_v11, %v12612_v24  ;;  %v5746_v47 = vsel %vm889_vm6, %v5708_v56, 0.0 }
 0xd92   : > { %v5722_v30 = vmul.f32 %v12593_v1, %v5686_v29  ;;  %vm5627_vm8 = vcmp.gt.f32.partialorder %v5595_v42, 0.0  ;;  %v5581_v57 = vadd.f32 %v12617_v50, %v12658_v26  ;;  %v5452_v59 = vcombine.high %v5450_v48, %v5450_v48 }
 0xd93   : > { %v12678_v31 = vrot.slane %v12661_v36, %v10395_v18  ;;  %5750 = vadd.xlane.f32.xlu1 %v5749_v2  ;;  %5747 = vadd.xlane.f32.xlu0 %v5746_v47  ;;  %v5688_v51 = vsel %vm5624_vm7, %v5592_v43, %v5656_v27  ;;  %v5642_v13 = vmul.f32 0.2, %v5578_v32  ;;  %v5711_v14 = vmul.f32 %v12593_v1, %v5675_v9 }
 0xd94   : > { %vm5610_vm9 = vcmp.gt.f32.partialorder %v5578_v32, 0.0  ;;  %v5645_v24 = vmul.f32 0.2, %v5581_v57  ;;  %v5594_v58 = vadd.f32 %v12636_v11, %v12615_v33  ;;  %v5797_v63 = vsel %vm889_vm6, %v5725_v20, 0.0 }
 0xd95   : > { %v5691_v40 = vsel %vm5627_vm8, %v5595_v42, %v5659_v52  ;;  %vm5613_vm10 = vcmp.gt.f32.partialorder %v5581_v57, 0.0  ;;  %v5597_v48 = vadd.f32 %v12617_v50, %v12678_v31  ;;  %v5788_v56 = vsel %vm889_vm6, %v5722_v30, 0.0 }
 0xd96   : > { %v5724_v38 = vmul.f32 %v12593_v1, %v5688_v51  ;;  %vm5626_vm11 = vcmp.gt.f32.partialorder %v5594_v58, 0.0  ;;  %v5658_v43 = vmul.f32 0.2, %v5594_v58  ;;  %v12689_v17 = vrot.slane %v5452_v59, %v14866_v61  ;;  %v14889_v61 = vld [vmem:[#allocation3_spill] sm:$0xff] }
 0xd97   : > { %5798 = vadd.xlane.f32.xlu1 %v5797_v63  ;;  %5789 = vadd.xlane.f32.xlu0 %v5788_v56  ;;  %v5674_v27 = vsel %vm5610_vm9, %v5578_v32, %v5642_v13  ;;  %v5580_v33 = vadd.f32 %v12636_v11, %v12620_v44  ;;  %v5727_v42 = vmul.f32 %v12593_v1, %v5691_v40  ;;  %v5661_v20 = vmul.f32 0.2, %v5597_v48 }
 0xd98   : > { %v5677_v2 = vsel %vm5613_vm10, %v5581_v57, %v5645_v24  ;;  %v5690_v29 = vsel %vm5626_vm11, %v5594_v58, %v5658_v43  ;;  %v5583_v9 = vadd.f32 %v12617_v50, %v12666_v4  ;;  %v5596_v52 = vadd.f32 %v12636_v11, %v12634_v16 }
 0xd99   : > { %v5755_v47 = vsel %vm889_vm6, %v5711_v14, 0.0  ;;  %v5794_v30 = vsel %vm889_vm6, %v5724_v38, 0.0  ;;  %v5710_v32 = vmul.f32 %v12593_v1, %v5674_v27  ;;  %vm5629_vm7 = vcmp.gt.f32.partialorder %v5597_v48, 0.0 }
 0xd9a   : > { %v5644_v44 = vmul.f32 0.2, %v5580_v33  ;;  %v5540_v57 = vrot.slane %v12689_v17, %v10395_v18  ;;  %v12704_v59 = vrot.slane %v5433_v60, %v10395_v18  ;;  %v5803_v51 = vsel %vm889_vm6, %v5727_v42, 0.0 }
 0xd9b   : > { %5756 = vadd.xlane.f32.xlu1 %v5755_v47  ;;  %5795 = vadd.xlane.f32.xlu0 %v5794_v30  ;;  %v5713_v16 = vmul.f32 %v12593_v1, %v5677_v2  ;;  %v5726_v13 = vmul.f32 %v12593_v1, %v5690_v29  ;;  %vm5612_vm8 = vcmp.gt.f32.partialorder %v5580_v33, 0.0  ;;  %v5693_v14 = vsel %vm5629_vm7, %v5597_v48, %v5661_v20 }
 0xd9c   : > { %v5647_v24 = vmul.f32 0.2, %v5583_v9  ;;  %v5660_v58 = vmul.f32 0.2, %v5596_v52  ;;  %v5599_v63 = vadd.f32 %v12617_v50, %v5540_v57  ;;  %v5752_v40 = vsel %vm889_vm6, %v5710_v32, 0.0 }
 0xd9d   : > { %vm5615_vm9 = vcmp.gt.f32.partialorder %v5583_v9, 0.0  ;;  %vm5628_vm10 = vcmp.gt.f32.partialorder %v5596_v52, 0.0  ;;  %v5582_v60 = vadd.f32 %v12636_v11, %v12658_v26  ;;  %v5482_v56 = vcombine.high %v12661_v36, %v12661_v36 }
 0xd9e   : > { %v5676_v38 = vsel %vm5612_vm8, %v5580_v33, %v5644_v44  ;;  %v5761_v43 = vsel %vm889_vm6, %v5713_v16, 0.0  ;;  %v5729_v48 = vmul.f32 %v12593_v1, %v5693_v14  ;;  %v5585_v27 = vadd.f32 %v12617_v50, %v12704_v59 }
 0xd9f   : > { %5804 = vadd.xlane.f32.xlu1 %v5803_v51  ;;  %5753 = vadd.xlane.f32.xlu0 %v5752_v40  ;;  %v5800_v42 = vsel %vm889_vm6, %v5726_v13, 0.0  ;;  %v5679_v2 = vsel %vm5615_vm9, %v5583_v9, %v5647_v24  ;;  %v5692_v29 = vsel %vm5628_vm10, %v5596_v52, %v5660_v58  ;;  %v5663_v20 = vmul.f32 0.2, %v5599_v63 }
 0xda0   : > { %v5712_v26 = vmul.f32 %v12593_v1, %v5676_v38  ;;  %vm5631_vm11 = vcmp.gt.f32.partialorder %v5599_v63, 0.0  ;;  %v5646_v47 = vmul.f32 0.2, %v5582_v60  ;;  %v5598_v36 = vadd.f32 %v12636_v11, %v12678_v31 }
 0xda1   : > { %v5435_v33 = vcombine.high %v12609_v3, %v12609_v3  ;;  %vm5614_vm7 = vcmp.gt.f32.partialorder %v5582_v60, 0.0  ;;  %v5544_v30 = vrot.slane %v5482_v56, %v10395_v18  ;;  %v5715_v32 = vmul.f32 %v12593_v1, %v5679_v2 }
 0xda2   : > { %v5728_v9 = vmul.f32 %v12593_v1, %v5692_v29  ;;  %v5649_v52 = vmul.f32 0.2, %v5585_v27  ;;  %v5695_v44 = vsel %vm5631_vm11, %v5599_v63, %v5663_v20  ;;  %vm5617_vm8 = vcmp.gt.f32.partialorder %v5585_v27, 0.0 }
 0xda3   : > { %5762 = vadd.xlane.f32.xlu1 %v5761_v43  ;;  %5801 = vadd.xlane.f32.xlu0 %v5800_v42  ;;  %v5601_v51 = vadd.f32 %v12617_v50, %v5544_v30  ;;  %v5584_v31 = vadd.f32 %v12636_v11, %v12666_v4  ;;  %v5809_v16 = vsel %vm889_vm6, %v5729_v48, 0.0  ;;  %v5758_v3 = vsel %vm889_vm6, %v5712_v26, 0.0 }
 0xda4   : > { %v5678_v13 = vsel %vm5614_vm7, %v5582_v60, %v5646_v47  ;;  %v5662_v14 = vmul.f32 0.2, %v5598_v36  ;;  %v5484_v24 = vcombine.high %v12689_v17, %v12689_v17  ;;  %vm5630_vm9 = vcmp.gt.f32.partialorder %v5598_v36, 0.0 }
 0xda5   : > { %v5516_v58 = vrot.slane %v5435_v33, %v10395_v18  ;;  %v5767_v63 = vsel %vm889_vm6, %v5715_v32, 0.0  ;;  %v5806_v40 = vsel %vm889_vm6, %v5728_v9, 0.0  ;;  %v5731_v4 = vmul.f32 %v12593_v1, %v5695_v44 }
 0xda6   : > { %v5681_v56 = vsel %vm5617_vm8, %v5585_v27, %v5649_v52  ;;  %v5714_v38 = vmul.f32 %v12593_v1, %v5678_v13  ;;  %vm5633_vm10 = vcmp.gt.f32.partialorder %v5601_v51, 0.0  ;;  %v5665_v60 = vmul.f32 0.2, %v5601_v51 }
 0xda7   : > { %5810 = vadd.xlane.f32.xlu1 %v5809_v16  ;;  %5759 = vadd.xlane.f32.xlu0 %v5758_v3  ;;  %v5648_v43 = vmul.f32 0.2, %v5584_v31  ;;  %v5694_v48 = vsel %vm5630_vm9, %v5598_v36, %v5662_v14  ;;  %vm5616_vm11 = vcmp.gt.f32.partialorder %v5584_v31, 0.0  ;;  %v5587_v17 = vadd.f32 %v12617_v50, %v5516_v58 }
 0xda8   : > { %v5600_v42 = vadd.f32 %v12636_v11, %v5540_v57  ;;  %v5815_v2 = vsel %vm889_vm6, %v5731_v4, 0.0  ;;  %v5717_v29 = vmul.f32 %v12593_v1, %v5681_v56  ;;  %v5548_v20 = vrot.slane %v5484_v24, %v10395_v18 }
 0xda9   : > { %v5764_v27 = vsel %vm889_vm6, %v5714_v38, 0.0  ;;  %v5730_v26 = vmul.f32 %v12593_v1, %v5694_v48  ;;  %v5697_v47 = vsel %vm5633_vm10, %v5601_v51, %v5665_v60  ;;  %v5680_v33 = vsel %vm5616_vm11, %v5584_v31, %v5648_v43 }
 0xdaa   : > { %v5651_v36 = vmul.f32 0.2, %v5587_v17  ;;  %v5664_v32 = vmul.f32 0.2, %v5600_v42  ;;  %v5603_v9 = vadd.f32 %v12617_v50, %v5548_v20  ;;  %v5604_v57 = vadd.f32 %v12636_v11, %v5548_v20 }
 0xdab   : > { %5768 = vadd.xlane.f32.xlu1 %v5767_v63  ;;  %5807 = vadd.xlane.f32.xlu0 %v5806_v40  ;;  %vm5619_vm7 = vcmp.gt.f32.partialorder %v5587_v17, 0.0  ;;  %vm5632_vm8 = vcmp.gt.f32.partialorder %v5600_v42, 0.0  ;;  %v5586_v52 = vadd.f32 %v12636_v11, %v12704_v59  ;;  %v5773_v44 = vsel %vm889_vm6, %v5717_v29, 0.0 }
 0xdac   : > { %v5733_v16 = vmul.f32 %v12593_v1, %v5697_v47  ;;  %v5812_v51 = vsel %vm889_vm6, %v5730_v26, 0.0  ;;  %v5716_v31 = vmul.f32 %v12593_v1, %v5680_v33  ;;  %vm5636_vm9 = vcmp.gt.f32.partialorder %v5604_v57, 0.0 }
 0xdad   : > { %v5668_v3 = vmul.f32 0.2, %v5604_v57  ;;  %v5683_v50 = vsel %vm5619_vm7, %v5587_v17, %v5651_v36  ;;  %v5696_v13 = vsel %vm5632_vm8, %v5600_v42, %v5664_v32  ;;  %vm5635_vm10 = vcmp.gt.f32.partialorder %v5603_v9, 0.0 }
 0xdae   : > { %v5667_v14 = vmul.f32 0.2, %v5603_v9  ;;  %v5650_v24 = vmul.f32 0.2, %v5586_v52  ;;  %v5602_v63 = vadd.f32 %v12636_v11, %v5544_v30  ;;  %v5574_v59 = vadd.f32 %v12636_v11, %v12599_v34 }
 0xdaf   : > { %5816 = vadd.xlane.f32.xlu1 %v5815_v2  ;;  %5765 = vadd.xlane.f32.xlu0 %v5764_v27  ;;  %v5700_v40 = vsel %vm5636_vm9, %v5604_v57, %v5668_v3  ;;  %vm5618_vm11 = vcmp.gt.f32.partialorder %v5586_v52, 0.0  ;;  %v5821_v56 = vsel %vm889_vm6, %v5733_v16, 0.0  ;;  %v5770_v38 = vsel %vm889_vm6, %v5716_v31, 0.0 }
 0xdb0   : > { %v5736_v4 = vmul.f32 %v12593_v1, %v5700_v40  ;;  %v5719_v60 = vmul.f32 %v12593_v1, %v5683_v50  ;;  %v5732_v43 = vmul.f32 %v12593_v1, %v5696_v13  ;;  %v5699_v48 = vsel %vm5635_vm10, %v5603_v9, %v5667_v14 }
 0xdb1   : > { %v5682_v17 = vsel %vm5618_vm11, %v5586_v52, %v5650_v24  ;;  %v5666_v30 = vmul.f32 0.2, %v5602_v63  ;;  %v5638_v42 = vmul.f32 0.2, %v5574_v59  ;;  %v5588_v34 = vadd.f32 %v12636_v11, %v5516_v58 }
 0xdb2   : > { %vm5634_vm7 = vcmp.gt.f32.partialorder %v5602_v63, 0.0  ;;  %vm5606_vm8 = vcmp.gt.f32.partialorder %v5574_v59, 0.0  ;;  %v5779_v2 = vsel %vm889_vm6, %v5719_v60, 0.0  ;;  %v5818_v29 = vsel %vm889_vm6, %v5732_v43, 0.0 }
 0xdb3   : > { %5774 = vadd.xlane.f32.xlu1 %v5773_v44  ;;  %5813 = vadd.xlane.f32.xlu0 %v5812_v51  ;;  %v5735_v20 = vmul.f32 %v12593_v1, %v5699_v48  ;;  %v5718_v27 = vmul.f32 %v12593_v1, %v5682_v17  ;;  %v5698_v26 = vsel %vm5634_vm7, %v5602_v63, %v5666_v30  ;;  %v5652_v33 = vmul.f32 0.2, %v5588_v34 }
 0xdb4   : > { %v5670_v47 = vsel %vm5606_vm8, %v5574_v59, %v5638_v42  ;;  %vm5620_vm9 = vcmp.gt.f32.partialorder %v5588_v34, 0.0  ;;  %v5734_v58 = vmul.f32 %v12593_v1, %v5698_v26  ;;  %v5830_v51 = vsel %vm889_vm6, %v5736_v4, 0.0 }
 0xdb5   : > { %v5827_v36 = vsel %vm889_vm6, %v5735_v20, 0.0  ;;  %v5776_v11 = vsel %vm889_vm6, %v5718_v27, 0.0  ;;  %v5706_v32 = vmul.f32 %v12593_v1, %v5670_v47  ;;  %v5684_v9 = vsel %vm5620_vm9, %v5588_v34, %v5652_v33 }
 0xdb6   : > { %v5824_v57 = vsel %vm889_vm6, %v5734_v58, 0.0  ;;  %v5720_v44 = vmul.f32 %v12593_v1, %v5684_v9 }
 0xdb7   : > { %5822 = vadd.xlane.f32.xlu1 %v5821_v56  ;;  %5771 = vadd.xlane.f32.xlu0 %v5770_v38  ;;  %v5740_v52 = vsel %vm889_vm6, %v5706_v32, 0.0 }
 0xdb8   : > { %v5782_v16 = vsel %vm889_vm6, %v5720_v44, 0.0 }
 0xdbb   : > { %5780 = vadd.xlane.f32.xlu1 %v5779_v2  ;;  %5819 = vadd.xlane.f32.xlu0 %v5818_v29 }
 0xdbf   : > { %5828 = vadd.xlane.f32.xlu1 %v5827_v36  ;;  %5777 = vadd.xlane.f32.xlu0 %v5776_v11 }
 0xdc3   : > { %5825 = vadd.xlane.f32.xlu0 %v5824_v57  ;;  %5741 = vadd.xlane.f32.xlu1 %v5740_v52 }
 0xdc7   : > { %5783 = vadd.xlane.f32.xlu0 %v5782_v16 }
 0xdcb   : > { %5831 = vadd.xlane.f32.xlu0 %v5830_v51 }
 0xe14   : > { %v5739_v31 = vpop.xlane.xlu0 %5738  ;;  %v5787_v3 = vpop.xlane.xlu1 %5786 }
 0xe15   : > { %v12778_v50 = vadd.f32 %v12517_v37, %v5739_v31  ;;  %v12786_v63 = vadd.f32 %v12525_v28, %v5787_v3 }
 0xe17   : > { %6108 = vperm.xlu0 %9888, %v12778_v50  }
 0xe18   : > { %v5745_v13 = vpop.xlane.xlu0 %5744  ;;  %v5793_v14 = vpop.xlane.xlu1 %5792 }
 0xe19   : > { %v12782_v24 = vadd.f32 %v12519_v53, %v5745_v13  ;;  %v12790_v40 = vadd.f32 %v12529_v55, %v5793_v14  ;;  %v14888_v53 = vld [vmem:[#allocation86_spill] sm:$0xff] }
 0xe1b   : > { %6114 = vperm.xlu0 %9888, %v12782_v24  }
 0xe1c   : > { %v5751_v1 = vpop.xlane.xlu1 %5750  ;;  %v5748_v42 = vpop.xlane.xlu0 %5747 }
 0xe1d   : > { %v12794_v56 = vadd.f32 %v12533_v39, %v5751_v1  ;;  %v12842_v13 = vadd.f32 %v12523_v0, %v5748_v42 }
 0xe1f   : > { %6156 = vperm.xlu0 %9888, %v12786_v63  }
 0xe20   : > { %v5799_v59 = vpop.xlane.xlu1 %5798  ;;  %v5790_v29 = vpop.xlane.xlu0 %5789 }
 0xe21   : > { %v12798_v60 = vadd.f32 %v12537_v35, %v5799_v59  ;;  %v12850_v1 = vadd.f32 %v12527_v49, %v5790_v29 }
 0xe23   : > { %6162 = vperm.xlu0 %9888, %v12790_v40  }
 0xe24   : > { %v5757_v4 = vpop.xlane.xlu1 %5756  ;;  %v5796_v33 = vpop.xlane.xlu0 %5795 }
 0xe25   : > { %v12802_v48 = vadd.f32 %v12541_v6, %v5757_v4  ;;  %v12854_v4 = vadd.f32 %v12531_v12, %v5796_v33 }
 0xe27   : > { %6120 = vperm.xlu0 %9888, %v12794_v56  }
 0xe28   : > { %v5805_v38 = vpop.xlane.xlu1 %5804  ;;  %v5754_v58 = vpop.xlane.xlu0 %5753 }
 0xe29   : > { %v12806_v30 = vadd.f32 %v12545_v54, %v5805_v38 }
 0xe2b   : > { %6168 = vperm.xlu0 %9888, %v12798_v60  }
 0xe2c   : > { %v5763_v43 = vpop.xlane.xlu1 %5762  ;;  %v5802_v44 = vpop.xlane.xlu0 %5801 }
 0xe2d   : > { %v12810_v2 = vadd.f32 %v12549_v10, %v5763_v43  ;;  %v12858_v43 = vadd.f32 %v12535_v41, %v5754_v58 }
 0xe2f   : > { %6126 = vperm.xlu0 %9888, %v12802_v48  }
 0xe30   : > { %v5811_v17 = vpop.xlane.xlu1 %5810  ;;  %v5760_v3 = vpop.xlane.xlu0 %5759 }
 0xe31   : > { %v12814_v27 = vadd.f32 %v12553_v15, %v5811_v17  ;;  %v12862_v17 = vadd.f32 %v12539_v5, %v5802_v44 }
 0xe33   : > { %6174 = vperm.xlu0 %9888, %v12806_v30  }
 0xe34   : > { %v5769_v34 = vpop.xlane.xlu1 %5768  ;;  %v5808_v59 = vpop.xlane.xlu0 %5807 }
 0xe35   : > { %v12818_v47 = vadd.f32 %v12557_v23, %v5769_v34  ;;  %v12866_v34 = vadd.f32 %v12543_v45, %v5760_v3 }
 0xe37   : > { %6132 = vperm.xlu0 %9888, %v12810_v2  }
 0xe38   : > { %v5817_v20 = vpop.xlane.xlu1 %5816  ;;  %v5766_v38 = vpop.xlane.xlu0 %5765 }
 0xe39   : > { %v12822_v11 = vadd.f32 %v12561_v46, %v5817_v20  ;;  %v12870_v20 = vadd.f32 %v12547_v25, %v5808_v59 }
 0xe3b   : > { %6180 = vperm.xlu0 %9888, %v12814_v27  }
 0xe3c   : > { %v5775_v26 = vpop.xlane.xlu1 %5774  ;;  %v5814_v42 = vpop.xlane.xlu0 %5813 }
 0xe3d   : > { %v12826_v9 = vadd.f32 %v12567_v8, %v5775_v26  ;;  %v12874_v26 = vadd.f32 %v12551_v19, %v5766_v38  ;;  %v14880_v38 = vld [vmem:[#allocation16_spill] sm:$0xff] }
 0xe3f   : > { %6138 = vperm.xlu0 %9888, %v12818_v47   ;;  %14872 = vst [vmem:[#allocation37_spill] sm:$0xff] %v12826_v9 }
 0xe40   : > { %v5823_v36 = vpop.xlane.xlu1 %5822  ;;  %v5772_v29 = vpop.xlane.xlu0 %5771 }
 0xe41   : > { %v12830_v52 = vadd.f32 %v12573_v62, %v5823_v36  ;;  %v14876_v36 = vld [vmem:[#allocation85_spill] sm:$0xff] }
 0xe42   : > { %v12878_v58 = vadd.f32 %v14876_v36, %v5814_v42 }
 0xe43   : > { %6186 = vperm.xlu0 %9888, %v12822_v11   ;;  %14873 = vst [vmem:[#allocation27_spill] sm:$0xff] %v12830_v52 }
 0xe44   : > { %v5781_v32 = vpop.xlane.xlu1 %5780  ;;  %v5820_v33 = vpop.xlane.xlu0 %5819 }
 0xe45   : > { %v12834_v51 = vadd.f32 %v12580_v21, %v5781_v32  ;;  %v14882_v21 = vld [vmem:[#allocation18_spill] sm:$0xff] }
 0xe47   : > { %6144 = vperm.xlu0 %9888, %v12826_v9   ;;  %14874 = vst [vmem:[#allocation40_spill] sm:$0xff] %v12834_v51 }
 0xe48   : > { %v5829_v57 = vpop.xlane.xlu1 %5828  ;;  %v5778_v32 = vpop.xlane.xlu0 %5777 }
 0xe49   : > { %v12845_v14 = vadd.f32 %v12589_v7, %v5829_v57  ;;  %v14877_v57 = vld [vmem:[#allocation14_spill] sm:$0xff]  ;;  %v12890_v7 = vadd.f32 %v14880_v38, %v5778_v32 }
 0xe4a   : > { %v12882_v44 = vadd.f32 %v14877_v57, %v5772_v29  ;;  %v14884_v29 = vld [vmem:[#allocation20_spill] sm:$0xff] }
 0xe4b   : > { %6192 = vperm.xlu0 %9888, %v12830_v52   ;;  %14875 = vst [vmem:[#allocation31_spill] sm:$0xff] %v12845_v14  ;;  %14881 = vst [vmem:[#allocation34_spill] sm:$0xff] %v12890_v7 }
 0xe4c   : > { %v5742_v16 = vpop.xlane.xlu1 %5741  ;;  %v5826_v59 = vpop.xlane.xlu0 %5825 }
 0xe4d   : > { %v12837_v31 = vadd.f32 %v12521_v22, %v5742_v16  ;;  %v14878_v16 = vld [vmem:[#allocation17_spill] sm:$0xff]  ;;  %v12894_v22 = vadd.f32 %v14882_v21, %v5826_v59 }
 0xe4e   : > { %v12886_v3 = vadd.f32 %v14878_v16, %v5820_v33  ;;  %v14886_v33 = vld [vmem:[#allocation24_spill] sm:$0xff] }
 0xe4f   : > { %6150 = vperm.xlu0 %9888, %v12834_v51   ;;  %6111 = vperm.xlu1 %9887, %v12837_v31   ;;  %14883 = vst [vmem:[#allocation47_spill] sm:$0xff] %v12894_v22 }
 0xe50   : > { %14879 = vst [vmem:[#allocation44_spill] sm:$0xff] %v12886_v3  ;;  %v5784_v42 = vpop.xlane.xlu0 %5783 }
 0xe51   : > { %v12898_v57 = vadd.f32 %v14884_v29, %v5784_v42 }
 0xe53   : > { %6198 = vperm.xlu0 %9888, %v12845_v14   ;;  %6117 = vperm.xlu1 %9887, %v12842_v13   ;;  %14885 = vst [vmem:[#allocation38_spill] sm:$0xff] %v12898_v57 }
 0xe54   : > { %v5832_v62 = vpop.xlane.xlu0 %5831 }
 0xe55   : > { %v12902_v16 = vadd.f32 %v14886_v33, %v5832_v62 }
 0xe57   : > { %6159 = vperm.xlu1 %9887, %v12850_v1   ;;  %14887 = vst [vmem:[#allocation51_spill] sm:$0xff] %v12902_v16 }
 0xe5b   : > { %6165 = vperm.xlu1 %9887, %v12854_v4  }
 0xe5f   : > { %6123 = vperm.xlu1 %9887, %v12858_v43  }
 0xe63   : > { %6171 = vperm.xlu1 %9887, %v12862_v17  }
 0xe67   : > { %6129 = vperm.xlu1 %9887, %v12866_v34  }
 0xe6b   : > { %6177 = vperm.xlu1 %9887, %v12870_v20  }
 0xe6f   : > { %6135 = vperm.xlu1 %9887, %v12874_v26  }
 0xe73   : > { %6183 = vperm.xlu1 %9887, %v12878_v58  }
 0xe77   : > { %6141 = vperm.xlu1 %9887, %v12882_v44  }
 0xe7b   : > { %6189 = vperm.xlu1 %9887, %v12886_v3  }
 0xe7f   : > { %6147 = vperm.xlu1 %9887, %v12890_v7  }
 0xe83   : > { %6195 = vperm.xlu1 %9887, %v12894_v22  }
 0xe87   : > { %6153 = vperm.xlu1 %9887, %v12898_v57  }
 0xe8b   : > { %6201 = vperm.xlu1 %9887, %v12902_v16  }
 0xe92   : > { %v6109_v32 = vpop.permute.xlu0 %6108 }
 0xe93   : > { %v6206_v55 = vrot.slane %v6109_v32, %v14888_v53 }
 0xe96   : > { %v6115_v38 = vpop.permute.xlu0 %6114 }
 0xe97   : > { %v6215_v37 = vrot.slane %v6115_v38, %v14888_v53 }
 0xe9a   : > { %v12905_v36 = vpop.permute.xlu0 %6156 }
 0xe9b   : > { %v6278_v28 = vrot.slane %v12905_v36, %v14888_v53 }
 0xe9e   : > { %v6163_v8 = vpop.permute.xlu0 %6162 }
 0xe9f   : > { %v6287_v14 = vrot.slane %v6163_v8, %v14888_v53 }
 0xea2   : > { %v6121_v59 = vpop.permute.xlu0 %6120 }
 0xea3   : > { %v6224_v57 = vrot.slane %v6121_v59, %v14888_v53 }
 0xea6   : > { %v6169_v21 = vpop.permute.xlu0 %6168 }
 0xea7   : > { %v6296_v51 = vrot.slane %v6169_v21, %v14888_v53 }
 0xeaa   : > { %v6127_v46 = vpop.permute.xlu0 %6126 }
 0xeab   : > { %v6233_v7 = vrot.slane %v6127_v46, %v14888_v53 }
 0xeae   : > { %v12909_v29 = vpop.permute.xlu0 %6174 }
 0xeaf   : > { %v6305_v32 = vrot.slane %v12909_v29, %v14888_v53 }
 0xeb2   : > { %v6133_v45 = vpop.permute.xlu0 %6132 }
 0xeb6   : > { %v12911_v15 = vpop.permute.xlu0 %6180 }
 0xeb7   : > { %v6314_v8 = vrot.slane %v12911_v15, %v14888_v53 }
 0xeba   : > { %v6139_v10 = vpop.permute.xlu0 %6138 }
 0xebb   : > { %v6251_v59 = vrot.slane %v6139_v10, %v14888_v53 }
 0xebe   : > { %v6187_v12 = vpop.permute.xlu0 %6186 }
 0xec2   : > { %v6145_v49 = vpop.permute.xlu0 %6144 }
 0xec6   : > { %v6193_v39 = vpop.permute.xlu0 %6192 }
 0xeca   : > { %v6112_v19 = vpop.permute.xlu1 %6111  ;;  %v6151_v9 = vpop.permute.xlu0 %6150 }
 0xecb   : > { %v6210_v38 = vrot.slane %v6112_v19, %v14889_v61 }
 0xece   : > { %v6118_v25 = vpop.permute.xlu1 %6117 }
 0xecf   : > { %v6219_v16 = vrot.slane %v6118_v25, %v14889_v61  ;;  %v6242_v25 = vrot.slane %v6133_v45, %v14888_v53 }
 0xed1   : > { %v6220_v46 = vsel %vm2176_vm12, %v6219_v16, %v6215_v37 }
 0xed2   : > { %v12907_v42 = vpop.permute.xlu1 %6159 }
 0xed6   : > { %v6166_v23 = vpop.permute.xlu1 %6165 }
 0xed7   : > { %v6291_v29 = vrot.slane %v6166_v23, %v14889_v61 }
 0xeda   : > { %v6124_v62 = vpop.permute.xlu1 %6123 }
 0xedb   : > { %v6228_v22 = vrot.slane %v6124_v62, %v14889_v61  ;;  %v6323_v62 = vrot.slane %v6187_v12, %v14888_v53  ;;  %v6282_v12 = vrot.slane %v12907_v42, %v14889_v61 }
 0xedd   : > { %v6229_v45 = vsel %vm2176_vm12, %v6228_v22, %v6224_v57 }
 0xede   : > { %v6172_v33 = vpop.permute.xlu1 %6171 }
 0xedf   : > { %v6300_v3 = vrot.slane %v6172_v33, %v14889_v61 }
 0xee2   : > { %v6130_v5 = vpop.permute.xlu1 %6129 }
 0xee3   : > { %v6237_v36 = vrot.slane %v6130_v5, %v14889_v61  ;;  %v6260_v5 = vrot.slane %v6145_v49, %v14888_v53 }
 0xee5   : > { %v6238_v37 = vsel %vm2176_vm12, %v6237_v36, %v6233_v7  ;;  %v6301_v7 = vsel %vm2176_vm12, %v6300_v3, %v6296_v51  ;;  %v6283_v36 = vsel %vm2176_vm12, %v6282_v12, %v6278_v28 }
 0xee6   : > { %v6178_v41 = vpop.permute.xlu1 %6177 }
 0xee7   : > { %v6309_v23 = vrot.slane %v6178_v41, %v14889_v61 }
 0xeea   : > { %v6136_v54 = vpop.permute.xlu1 %6135 }
 0xeeb   : > { %v6246_v21 = vrot.slane %v6136_v54, %v14889_v61  ;;  %v6211_v54 = vsel %vm2176_vm12, %v6210_v38, %v6206_v55 }
 0xeec   : > { %v6347_v49 = vsel %vm2313_vm13, %v6220_v46, %v6211_v54 }
 0xeed   : > { %v6247_v22 = vsel %vm2176_vm12, %v6246_v21, %v6242_v25  ;;  %v6348_v16 = vsel %vm2315_vm14, %v6229_v45, %v6347_v49 }
 0xeee   : > { %v6184_v6 = vpop.permute.xlu1 %6183  ;;  %v6349_v41 = vsel %vm2317_vm15, %v6238_v37, %v6348_v16 }
 0xeef   : > { %v6318_v57 = vrot.slane %v6184_v6, %v14889_v61  ;;  %v6310_v6 = vsel %vm2176_vm12, %v6309_v23, %v6305_v32 }
 0xef1   : > { %v6319_v3 = vsel %vm2176_vm12, %v6318_v57, %v6314_v8  ;;  %v14890_v57 = vld [vmem:[#allocation4_spill] sm:$0xff] }
 0xef2   : > { %v6142_v35 = vpop.permute.xlu1 %6141 }
 0xef3   : > { %v6255_v19 = vrot.slane %v6142_v35, %v14889_v61  ;;  %v6269_v35 = vrot.slane %v6151_v9, %v14888_v53 }
 0xef5   : > { %v6256_v55 = vsel %vm2176_vm12, %v6255_v19, %v6251_v59  ;;  %v6332_v59 = vrot.slane %v6193_v39, %v14888_v53 }
 0xef6   : > { %v6190_v0 = vpop.permute.xlu1 %6189 }
 0xef7   : > { %v6327_v33 = vrot.slane %v6190_v0, %v14889_v61  ;;  %v6199_v0 = vpop.permute.xlu0 %6198 }
 0xefa   : > { %v6148_v52 = vpop.permute.xlu1 %6147 }
 0xefb   : > { %v6264_v15 = vrot.slane %v6148_v52, %v14889_v61  ;;  %v6292_v52 = vsel %vm2176_vm12, %v6291_v29, %v6287_v14  ;;  %v6350_v14 = vsel %vm2319_vm0, %v6247_v22, %v6349_v41  ;;  %v6328_v29 = vsel %vm2176_vm12, %v6327_v33, %v6323_v62 }
 0xefc   : > { %v6354_v51 = vsel %vm2313_vm13, %v6292_v52, %v6283_v36  ;;  %v6351_v21 = vsel %vm2321_vm2, %v6256_v55, %v6350_v14 }
 0xefd   : > { %v6265_v9 = vsel %vm2176_vm12, %v6264_v15, %v6260_v5  ;;  %v6355_v46 = vsel %vm2315_vm14, %v6301_v7, %v6354_v51  ;;  %v6341_v15 = vrot.slane %v6199_v0, %v14888_v53 }
 0xefe   : > { %v6196_v10 = vpop.permute.xlu1 %6195  ;;  %v6352_v32 = vsel %vm2323_vm4, %v6265_v9, %v6351_v21  ;;  %v6356_v19 = vsel %vm2317_vm15, %v6310_v6, %v6355_v46 }
 0xeff   : > { %v6336_v42 = vrot.slane %v6196_v10, %v14889_v61  ;;  %v6357_v8 = vsel %vm2319_vm0, %v6319_v3, %v6356_v19 }
 0xf00   : > { %v6358_v62 = vsel %vm2321_vm2, %v6328_v29, %v6357_v8 }
 0xf01   : > { %v6337_v5 = vsel %vm2176_vm12, %v6336_v42, %v6332_v59 }
 0xf02   : > { %v6154_v38 = vpop.permute.xlu1 %6153  ;;  %v6359_v37 = vsel %vm2323_vm4, %v6337_v5, %v6358_v62  ;;  %v14893_v62 = vld [vmem:[#allocation7_spill] sm:$0xff] }
 0xf03   : > { %v6273_v25 = vrot.slane %v6154_v38, %v14889_v61 }
 0xf05   : > { %v6274_v28 = vsel %vm2176_vm12, %v6273_v25, %v6269_v35 }
 0xf06   : > { %v6202_v39 = vpop.permute.xlu1 %6201  ;;  %v6353_v45 = vsel %vm2325_vm3, %v6274_v28, %v6352_v32  ;;  %v14892_v32 = vld [vmem:[#allocation6_spill] sm:$0xff] }
 0xf07   : > { %v6345_v10 = vrot.slane %v6202_v39, %v14889_v61  ;;  %v6363_v54 = vsel %vm2336_vm5, %v6353_v45, -inf }
 0xf08   : > { %6364 = vmax.xlane.f32.xlu0 %v6363_v54 }
 0xf09   : > { %v6346_v12 = vsel %vm2176_vm12, %v6345_v10, %v6341_v15 }
 0xf0a   : > { %v6360_v23 = vsel %vm2325_vm3, %v6346_v12, %v6359_v37 }
 0xf0b   : > { %v6366_v35 = vsel %vm2336_vm5, %v6360_v23, -inf }
 0xf0c   : > { %6367 = vmax.xlane.f32.xlu1 %v6366_v35 }
 0xf91   : > { %v12981_v49 = vpop.xlane.xlu0 %6364 }
 0xf92   : > { %v6374_v22 = vrot.slane %v12981_v49, %v10395_v18  ;;  %v6378_v52 = vrot.slane %v12981_v49, %v14890_v57  ;;  %v6390_v12 = vrot.slane %v12981_v49, %v14893_v62 }
 0xf94   : > { %v6451_v16 = vsub.f32 %v12778_v50, %v6374_v22  ;;  %v6452_v55 = vsub.f32 %v12837_v31, %v6374_v22  ;;  %v6453_v33 = vsub.f32 %v12782_v24, %v6378_v52  ;;  %v6454_v7 = vsub.f32 %v12842_v13, %v6378_v52  ;;  %v14891_v13 = vld [vmem:[#allocation5_spill] sm:$0xff] }
 0xf95   : > { %v12991_v36 = vpop.xlane.xlu1 %6367  ;;  %v6382_v14 = vrot.slane %v12981_v49, %v14891_v13 }
 0xf96   : > { %v6483_v41 = vmul.f32 1.442695, %v6451_v16  ;;  %v6485_v9 = vmul.f32 1.442695, %v6452_v55  ;;  %v6487_v42 = vmul.f32 1.442695, %v6453_v33  ;;  %v6406_v6 = vrot.slane %v12991_v36, %v10395_v18 }
 0xf97   : > { %v6489_v38 = vmul.f32 1.442695, %v6454_v7  ;;  %v6410_v50 = vrot.slane %v12991_v36, %v14890_v57  ;;  %v6456_v29 = vsub.f32 %v12858_v43, %v6382_v14  ;;  %v6418_v15 = vrot.slane %v12991_v36, %v14892_v32  ;;  %v14894_v33 = vld [vmem:[#allocation8_spill] sm:$0xff] }
 0xf98   : > { %10055 = vpow2.f32 %v6483_v41  ;;  %v6467_v24 = vsub.f32 %v12786_v63, %v6406_v6  ;;  %v6468_v31 = vsub.f32 %v12850_v1, %v6406_v6  ;;  %v6455_v63 = vsub.f32 %v12794_v56, %v6382_v14 }
 0xf99   : > { %10057 = vpow2.f32 %v6485_v9  ;;  %v6469_v25 = vsub.f32 %v12790_v40, %v6410_v50  ;;  %v6470_v51 = vsub.f32 %v12854_v4, %v6410_v50  ;;  %v6414_v1 = vrot.slane %v12991_v36, %v14891_v13 }
 0xf9a   : > { %10059 = vpow2.f32 %v6487_v42  ;;  %v6515_v59 = vmul.f32 1.442695, %v6467_v24  ;;  %v6517_v3 = vmul.f32 1.442695, %v6468_v31  ;;  %v6386_v56 = vrot.slane %v12981_v49, %v14892_v32 }
 0xf9b   : > { %10061 = vpow2.f32 %v6489_v38  ;;  %v6519_v46 = vmul.f32 1.442695, %v6469_v25  ;;  %v6521_v4 = vmul.f32 1.442695, %v6470_v51  ;;  %v6491_v19 = vmul.f32 1.442695, %v6455_v63 }
 0xf9c   : > { %10063 = vpow2.f32 %v6515_v59  ;;  %v6471_v5 = vsub.f32 %v12798_v60, %v6414_v1  ;;  %v6493_v39 = vmul.f32 1.442695, %v6456_v29  ;;  %v6472_v45 = vsub.f32 %v12862_v17, %v6414_v1  ;;  %v14895_v25 = vld [vmem:[#allocation9_spill] sm:$0xff]  ;;  %v14896_v1 = vld [vmem:[#allocation44_spill] sm:$0xff] }
 0xf9d   : > { %10065 = vpow2.f32 %v6517_v3  ;;  %v6457_v43 = vsub.f32 %v12802_v48, %v6386_v56  ;;  %v6458_v10 = vsub.f32 %v12866_v34, %v6386_v56  ;;  %v6473_v37 = vsub.f32 %v12806_v30, %v6418_v15  ;;  %v14897_v29 = vld [vmem:[#allocation37_spill] sm:$0xff] }
 0xf9e   : > { %10067 = vpow2.f32 %v6519_v46  ;;  %v6523_v8 = vmul.f32 1.442695, %v6471_v5  ;;  %v6525_v54 = vmul.f32 1.442695, %v6472_v45  ;;  %v6474_v48 = vsub.f32 %v12870_v20, %v6418_v15  ;;  %v14898_v5 = vld [vmem:[#allocation34_spill] sm:$0xff] }
 0xf9f   : > { %10069 = vpow2.f32 %v6521_v4  ;;  %v6495_v60 = vmul.f32 1.442695, %v6457_v43  ;;  %v6497_v23 = vmul.f32 1.442695, %v6458_v10  ;;  %v6459_v34 = vsub.f32 %v12810_v2, %v6390_v12  ;;  %v14899_v15 = vld [vmem:[#allocation10_spill] sm:$0xff] }
 0xfa0   : > { %10071 = vpow2.f32 %v6491_v19  ;;  %v6422_v22 = vrot.slane %v12991_v36, %v14893_v62  ;;  %v6527_v30 = vmul.f32 1.442695, %v6473_v37  ;;  %v6460_v16 = vsub.f32 %v12874_v26, %v6390_v12 }
 0xfa1   : > { %10073 = vpow2.f32 %v6493_v39  ;;  %v6529_v20 = vmul.f32 1.442695, %v6474_v48  ;;  %v6394_v2 = vrot.slane %v12981_v49, %v14894_v33  ;;  %v6499_v7 = vmul.f32 1.442695, %v6459_v34 }
 0xfa2   : > { %10075 = vpow2.f32 %v6523_v8  ;;  %v6475_v41 = vsub.f32 %v12814_v27, %v6422_v22  ;;  %v6501_v42 = vmul.f32 1.442695, %v6460_v16  ;;  %v6476_v26 = vsub.f32 %v12878_v58, %v6422_v22  ;;  %v14902_v22 = vld [vmem:[#allocation40_spill] sm:$0xff] }
 0xfa3   : > { %10077 = vpow2.f32 %v6525_v54  ;;  %v6461_v6 = vsub.f32 %v12818_v47, %v6394_v2  ;;  %v6426_v50 = vrot.slane %v12991_v36, %v14894_v33  ;;  %v6462_v31 = vsub.f32 %v12882_v44, %v6394_v2  ;;  %v14900_v54 = vld [vmem:[#allocation27_spill] sm:$0xff]  ;;  %v14903_v2 = vld [vmem:[#allocation38_spill] sm:$0xff] }
 0xfa4   : > { %10079 = vpow2.f32 %v6495_v60  ;;  %v6531_v27 = vmul.f32 1.442695, %v6475_v41  ;;  %v6533_v58 = vmul.f32 1.442695, %v6476_v26  ;;  %v6398_v47 = vrot.slane %v12981_v49, %v14895_v25 }
 0xfa5   : > { %v13002_v0 = vpop.eup %10055  ;;  %10081 = vpow2.f32 %v6497_v23  ;;  %v6503_v59 = vmul.f32 1.442695, %v6461_v6  ;;  %v6477_v51 = vsub.f32 %v12822_v11, %v6426_v50  ;;  %v6505_v63 = vmul.f32 1.442695, %v6462_v31  ;;  %v14901_v23 = vld [vmem:[#allocation47_spill] sm:$0xff] }
 0xfa6   : > { %v13005_v21 = vpop.eup %10057  ;;  %6580 = vperm.xlu0 %9888, %v13002_v0   ;;  %10083 = vpow2.f32 %v6527_v30  ;;  %v6478_v44 = vsub.f32 %v14896_v1, %v6426_v50  ;;  %v6463_v4 = vsub.f32 %v14897_v29, %v6398_v47  ;;  %v6430_v56 = vrot.slane %v12991_v36, %v14895_v25  ;;  %v14904_v6 = vld [vmem:[#allocation31_spill] sm:$0xff] }
 0xfa7   : > { %6583 = vperm.xlu1 %9887, %v13005_v21   ;;  %v13012_v40 = vpop.eup %10059  ;;  %10085 = vpow2.f32 %v6529_v20  ;;  %v6535_v11 = vmul.f32 1.442695, %v6477_v51  ;;  %v6464_v39 = vsub.f32 %v14898_v5, %v6398_v47  ;;  %v6402_v8 = vrot.slane %v12981_v49, %v14899_v15  ;;  %v14906_v31 = vld [vmem:[#allocation51_spill] sm:$0xff] }
 0xfa8   : > { %v13015_v28 = vpop.eup %10061  ;;  %10087 = vpow2.f32 %v6499_v7  ;;  %v6537_v45 = vmul.f32 1.442695, %v6478_v44  ;;  %v6507_v10 = vmul.f32 1.442695, %v6463_v4  ;;  %v6479_v12 = vsub.f32 %v14900_v54, %v6430_v56 }
 0xfa9   : > { %v13030_v17 = vpop.eup %10063  ;;  %10089 = vpow2.f32 %v6501_v42  ;;  %v6509_v37 = vmul.f32 1.442695, %v6464_v39  ;;  %v6480_v48 = vsub.f32 %v14901_v23, %v6430_v56  ;;  %v6465_v30 = vsub.f32 %v14902_v22, %v6402_v8 }
 0xfaa   : > { %6586 = vperm.xlu0 %9888, %v13012_v40   ;;  %v13033_v35 = vpop.eup %10065  ;;  %10091 = vpow2.f32 %v6531_v27  ;;  %v6434_v49 = vrot.slane %v12991_v36, %v14899_v15  ;;  %v6539_v16 = vmul.f32 1.442695, %v6479_v12  ;;  %v6466_v7 = vsub.f32 %v14903_v2, %v6402_v8 }
 0xfab   : > { %6589 = vperm.xlu1 %9887, %v13015_v28   ;;  %v13040_v52 = vpop.eup %10067  ;;  %10093 = vpow2.f32 %v6533_v58  ;;  %v6541_v41 = vmul.f32 1.442695, %v6480_v48  ;;  %v6511_v26 = vmul.f32 1.442695, %v6465_v30 }
 0xfac   : > { %v13043_v55 = vpop.eup %10069  ;;  %10095 = vpow2.f32 %v6503_v59  ;;  %v6481_v50 = vsub.f32 %v14904_v6, %v6434_v49  ;;  %v6513_v36 = vmul.f32 1.442695, %v6466_v7  ;;  %v6482_v58 = vsub.f32 %v14906_v31, %v6434_v49 }
 0xfad   : > { %v13050_v9 = vpop.eup %10071  ;;  %10097 = vpow2.f32 %v6505_v63 }
 0xfae   : > { %6628 = vperm.xlu0 %9888, %v13030_v17   ;;  %v13053_v38 = vpop.eup %10073  ;;  %10099 = vpow2.f32 %v6535_v11  ;;  %v6543_v59 = vmul.f32 1.442695, %v6481_v50  ;;  %v6545_v63 = vmul.f32 1.442695, %v6482_v58 }
 0xfaf   : > { %6631 = vperm.xlu1 %9887, %v13033_v35   ;;  %v13060_v24 = vpop.eup %10075  ;;  %10101 = vpow2.f32 %v6537_v45 }
 0xfb0   : > { %v13063_v14 = vpop.eup %10077  ;;  %10103 = vpow2.f32 %v6507_v10 }
 0xfb1   : > { %v13070_v3 = vpop.eup %10079  ;;  %10105 = vpow2.f32 %v6509_v37 }
 0xfb2   : > { %6634 = vperm.xlu0 %9888, %v13040_v52   ;;  %v13073_v46 = vpop.eup %10081  ;;  %10107 = vpow2.f32 %v6539_v16 }
 0xfb3   : > { %6637 = vperm.xlu1 %9887, %v13043_v55   ;;  %v13080_v19 = vpop.eup %10083  ;;  %10109 = vpow2.f32 %v6541_v41 }
 0xfb4   : > { %v13083_v43 = vpop.eup %10085  ;;  %10111 = vpow2.f32 %v6511_v26 }
 0xfb5   : > { %v13090_v60 = vpop.eup %10087  ;;  %10113 = vpow2.f32 %v6513_v36 }
 0xfb6   : > { %6592 = vperm.xlu0 %9888, %v13050_v9   ;;  %v13093_v34 = vpop.eup %10089  ;;  %10115 = vpow2.f32 %v6543_v59 }
 0xfb7   : > { %6595 = vperm.xlu1 %9887, %v13053_v38   ;;  %v13100_v20 = vpop.eup %10091  ;;  %10117 = vpow2.f32 %v6545_v63 }
 0xfb8   : > { %v13103_v42 = vpop.eup %10093 }
 0xfb9   : > { %v13108_v27 = vpop.eup %10095 }
 0xfba   : > { %6640 = vperm.xlu0 %9888, %v13060_v24   ;;  %14905 = vst [vmem:[#allocation41_spill] sm:$0xff] %v13108_v27  ;;  %v13111_v47 = vpop.eup %10097 }
 0xfbb   : > { %6643 = vperm.xlu1 %9887, %v13063_v14   ;;  %14907 = vst [vmem:[#allocation54_spill] sm:$0xff] %v13111_v47  ;;  %v13115_v51 = vpop.eup %10099 }
 0xfbc   : > { %14908 = vst [vmem:[#allocation45_spill] sm:$0xff] %v13115_v51  ;;  %v13117_v1 = vpop.eup %10101 }
 0xfbd   : > { %14909 = vst [vmem:[#allocation59_spill] sm:$0xff] %v13117_v1  ;;  %v13121_v44 = vpop.eup %10103 }
 0xfbe   : > { %6598 = vperm.xlu0 %9888, %v13070_v3   ;;  %14910 = vst [vmem:[#allocation48_spill] sm:$0xff] %v13121_v44  ;;  %v13123_v29 = vpop.eup %10105 }
 0xfbf   : > { %6601 = vperm.xlu1 %9887, %v13073_v46   ;;  %14911 = vst [vmem:[#allocation52_spill] sm:$0xff] %v13123_v29  ;;  %v13127_v4 = vpop.eup %10107 }
 0xfc0   : > { %14912 = vst [vmem:[#allocation55_spill] sm:$0xff] %v13127_v4  ;;  %v13129_v56 = vpop.eup %10109 }
 0xfc1   : > { %14913 = vst [vmem:[#allocation15_spill] sm:$0xff] %v13129_v56  ;;  %v13133_v11 = vpop.eup %10111 }
 0xfc2   : > { %6646 = vperm.xlu0 %9888, %v13080_v19   ;;  %14914 = vst [vmem:[#allocation62_spill] sm:$0xff] %v13133_v11  ;;  %v13135_v5 = vpop.eup %10113 }
 0xfc3   : > { %6649 = vperm.xlu1 %9887, %v13083_v43   ;;  %14915 = vst [vmem:[#allocation60_spill] sm:$0xff] %v13135_v5  ;;  %v13139_v39 = vpop.eup %10115 }
 0xfc4   : > { %14916 = vst [vmem:[#allocation66_spill] sm:$0xff] %v13139_v39  ;;  %v13141_v45 = vpop.eup %10117 }
 0xfc5   : > { %14917 = vst [vmem:[#allocation63_spill] sm:$0xff] %v13141_v45 }
 0xfc6   : > { %6604 = vperm.xlu0 %9888, %v13090_v60  }
 0xfc7   : > { %6607 = vperm.xlu1 %9887, %v13093_v34  }
 0xfca   : > { %6652 = vperm.xlu0 %9888, %v13100_v20  }
 0xfcb   : > { %6655 = vperm.xlu1 %9887, %v13103_v42  }
 0xfce   : > { %6610 = vperm.xlu0 %9888, %v13108_v27  }
 0xfcf   : > { %6613 = vperm.xlu1 %9887, %v13111_v47  }
 0xfd2   : > { %6658 = vperm.xlu0 %9888, %v13115_v51  }
 0xfd3   : > { %6661 = vperm.xlu1 %9887, %v13117_v1  }
 0xfd6   : > { %6616 = vperm.xlu0 %9888, %v13121_v44  }
 0xfd7   : > { %6619 = vperm.xlu1 %9887, %v13123_v29  }
 0xfda   : > { %6664 = vperm.xlu0 %9888, %v13127_v4  }
 0xfdb   : > { %6667 = vperm.xlu1 %9887, %v13129_v56  }
 0xfde   : > { %6622 = vperm.xlu0 %9888, %v13133_v11  }
 0xfdf   : > { %6625 = vperm.xlu1 %9887, %v13135_v5  }
 0xfe2   : > { %6670 = vperm.xlu0 %9888, %v13139_v39  }
 0xfe3   : > { %6673 = vperm.xlu1 %9887, %v13141_v45  }
0x1021   : > { %v6581_v8 = vpop.permute.xlu0 %6580 }
0x1022   : > { %v6584_v10 = vpop.permute.xlu1 %6583  ;;  %v6678_v56 = vrot.slane %v6581_v8, %v14888_v53 }
0x1023   : > { %v6682_v4 = vrot.slane %v6584_v10, %v14889_v61 }
0x1025   : > { %v6587_v54 = vpop.permute.xlu0 %6586 }
0x1026   : > { %v6590_v12 = vpop.permute.xlu1 %6589  ;;  %v6687_v39 = vrot.slane %v6587_v54, %v14888_v53  ;;  %v6683_v54 = vsel %vm2176_vm12, %v6682_v4, %v6678_v56 }
0x1027   : > { %v6691_v5 = vrot.slane %v6590_v12, %v14889_v61 }
0x1029   : > { %v13145_v37 = vpop.permute.xlu0 %6628  ;;  %v6692_v1 = vsel %vm2176_vm12, %v6691_v5, %v6687_v39 }
0x102a   : > { %v13147_v23 = vpop.permute.xlu1 %6631  ;;  %v6819_v39 = vsel %vm2313_vm13, %v6692_v1, %v6683_v54 }
0x102d   : > { %v6635_v48 = vpop.permute.xlu0 %6634 }
0x102e   : > { %v6638_v22 = vpop.permute.xlu1 %6637  ;;  %v6759_v12 = vrot.slane %v6635_v48, %v14888_v53 }
0x102f   : > { %v6763_v8 = vrot.slane %v6638_v22, %v14889_v61 }
0x1031   : > { %v6593_v30 = vpop.permute.xlu0 %6592  ;;  %v6764_v1 = vsel %vm2176_vm12, %v6763_v8, %v6759_v12 }
0x1032   : > { %v6596_v49 = vpop.permute.xlu1 %6595  ;;  %v6696_v15 = vrot.slane %v6593_v30, %v14888_v53 }
0x1033   : > { %v6700_v29 = vrot.slane %v6596_v49, %v14889_v61 }
0x1035   : > { %v6641_v16 = vpop.permute.xlu0 %6640  ;;  %v6701_v10 = vsel %vm2176_vm12, %v6700_v29, %v6696_v15  ;;  %v6754_v15 = vrot.slane %v13147_v23, %v14889_v61 }
0x1036   : > { %v6644_v2 = vpop.permute.xlu1 %6643  ;;  %v6768_v30 = vrot.slane %v6641_v16, %v14888_v53 }
0x1037   : > { %v6772_v49 = vrot.slane %v6644_v2, %v14889_v61 }
0x1039   : > { %v6599_v7 = vpop.permute.xlu0 %6598 }
0x103a   : > { %v6602_v41 = vpop.permute.xlu1 %6601  ;;  %v6705_v51 = vrot.slane %v6599_v7, %v14888_v53  ;;  %v6750_v7 = vrot.slane %v13145_v37, %v14888_v53 }
0x103b   : > { %v6709_v25 = vrot.slane %v6602_v41, %v14889_v61  ;;  %v6820_v41 = vsel %vm2315_vm14, %v6701_v10, %v6819_v39 }
0x103d   : > { %v6647_v26 = vpop.permute.xlu0 %6646  ;;  %v6710_v29 = vsel %vm2176_vm12, %v6709_v25, %v6705_v51 }
0x103e   : > { %v6650_v6 = vpop.permute.xlu1 %6649  ;;  %v6777_v37 = vrot.slane %v6647_v26, %v14888_v53  ;;  %v6821_v51 = vsel %vm2317_vm15, %v6710_v29, %v6820_v41 }
0x1041   : > { %v6605_v50 = vpop.permute.xlu0 %6604 }
0x1042   : > { %v6608_v36 = vpop.permute.xlu1 %6607  ;;  %v6714_v27 = vrot.slane %v6605_v50, %v14888_v53  ;;  %v6781_v50 = vrot.slane %v6650_v6, %v14889_v61 }
0x1043   : > { %v6718_v5 = vrot.slane %v6608_v36, %v14889_v61  ;;  %v6773_v36 = vsel %vm2176_vm12, %v6772_v49, %v6768_v30 }
0x1044   : > { %v6782_v8 = vsel %vm2176_vm12, %v6781_v50, %v6777_v37 }
0x1045   : > { %v6653_v31 = vpop.permute.xlu0 %6652 }
0x1046   : > { %v6656_v58 = vpop.permute.xlu1 %6655  ;;  %v6786_v23 = vrot.slane %v6653_v31, %v14888_v53 }
0x1047   : > { %v6790_v25 = vrot.slane %v6656_v58, %v14889_v61  ;;  %v6755_v58 = vsel %vm2176_vm12, %v6754_v15, %v6750_v7 }
0x1049   : > { %v6611_v59 = vpop.permute.xlu0 %6610  ;;  %v6791_v30 = vsel %vm2176_vm12, %v6790_v25, %v6786_v23 }
0x104a   : > { %v6614_v63 = vpop.permute.xlu1 %6613  ;;  %v6723_v4 = vrot.slane %v6611_v59, %v14888_v53  ;;  %v6719_v59 = vsel %vm2176_vm12, %v6718_v5, %v6714_v27 }
0x104b   : > { %v6727_v56 = vrot.slane %v6614_v63, %v14889_v61  ;;  %v6822_v10 = vsel %vm2319_vm0, %v6719_v59, %v6821_v51 }
0x104d   : > { %v6659_v45 = vpop.permute.xlu0 %6658 }
0x104e   : > { %v6662_v11 = vpop.permute.xlu1 %6661 }
0x104f   : > { %v6799_v63 = vrot.slane %v6662_v11, %v14889_v61  ;;  %v6826_v11 = vsel %vm2313_vm13, %v6764_v1, %v6755_v58 }
0x1050   : > { %v6827_v5 = vsel %vm2315_vm14, %v6773_v36, %v6826_v11 }
0x1051   : > { %v6617_v44 = vpop.permute.xlu0 %6616 }
0x1052   : > { %v6620_v47 = vpop.permute.xlu1 %6619  ;;  %v6732_v22 = vrot.slane %v6617_v44, %v14888_v53  ;;  %v6795_v44 = vrot.slane %v6659_v45, %v14888_v53 }
0x1053   : > { %v6736_v16 = vrot.slane %v6620_v47, %v14889_v61  ;;  %v6728_v47 = vsel %vm2176_vm12, %v6727_v56, %v6723_v4 }
0x1054   : > { %v6823_v49 = vsel %vm2321_vm2, %v6728_v47, %v6822_v10  ;;  %v6800_v39 = vsel %vm2176_vm12, %v6799_v63, %v6795_v44 }
0x1055   : > { %v6665_v48 = vpop.permute.xlu0 %6664  ;;  %v6737_v26 = vsel %vm2176_vm12, %v6736_v16, %v6732_v22 }
0x1056   : > { %v6668_v2 = vpop.permute.xlu1 %6667  ;;  %v6804_v6 = vrot.slane %v6665_v48, %v14888_v53  ;;  %v6824_v7 = vsel %vm2323_vm4, %v6737_v26, %v6823_v49  ;;  %v6828_v48 = vsel %vm2317_vm15, %v6782_v8, %v6827_v5 }
0x1057   : > { %v6808_v12 = vrot.slane %v6668_v2, %v14889_v61  ;;  %v6829_v2 = vsel %vm2319_vm0, %v6791_v30, %v6828_v48 }
0x1058   : > { %v6830_v37 = vsel %vm2321_vm2, %v6800_v39, %v6829_v2 }
0x1059   : > { %v6623_v54 = vpop.permute.xlu0 %6622  ;;  %v6809_v15 = vsel %vm2176_vm12, %v6808_v12, %v6804_v6 }
0x105a   : > { %v6741_v27 = vrot.slane %v6623_v54, %v14888_v53  ;;  %v6626_v31 = vpop.permute.xlu1 %6625  ;;  %v6831_v36 = vsel %vm2323_vm4, %v6809_v15, %v6830_v37 }
0x105b   : > { %v6745_v45 = vrot.slane %v6626_v31, %v14889_v61 }
0x105d   : > { %v6671_v4 = vpop.permute.xlu0 %6670  ;;  %v6746_v56 = vsel %vm2176_vm12, %v6745_v45, %v6741_v27 }
0x105e   : > { %v6813_v29 = vrot.slane %v6671_v4, %v14888_v53  ;;  %v6674_v22 = vpop.permute.xlu1 %6673  ;;  %v6825_v16 = vsel %vm2325_vm3, %v6746_v56, %v6824_v7 }
0x105f   : > { %v6817_v1 = vrot.slane %v6674_v22, %v14889_v61  ;;  %v6835_v41 = vsel %vm2336_vm5, %v6825_v16, 0.0 }
0x1060   : > { %6836 = vadd.xlane.f32.xlu0 %v6835_v41 }
0x1061   : > { %v6818_v50 = vsel %vm2176_vm12, %v6817_v1, %v6813_v29 }
0x1062   : > { %v6832_v59 = vsel %vm2325_vm3, %v6818_v50, %v6831_v36 }
0x1063   : > { %v6838_v23 = vsel %vm2336_vm5, %v6832_v59, 0.0 }
0x1064   : > { %6839 = vadd.xlane.f32.xlu1 %v6838_v23 }
0x10e9   : > { %v6837_v25 = vpop.xlane.xlu0 %6836 }
0x10ea   : > { %10119 = vrcp.f32 %v6837_v25 }
0x10ed   : > { %v6840_v51 = vpop.xlane.xlu1 %6839 }
0x10ee   : > { %10121 = vrcp.f32 %v6840_v51 }
0x10f7   : > { %v13215_v47 = vpop.eup %10119 }
0x10f8   : > { %v6848_v44 = vrot.slane %v13215_v47, %v10395_v18  ;;  %v6852_v63 = vrot.slane %v13215_v47, %v14890_v57 }
0x10fa   : > { %v6925_v54 = vmul.f32 %v13002_v0, %v6848_v44  ;;  %v6926_v26 = vmul.f32 %v13005_v21, %v6848_v44  ;;  %v6927_v6 = vmul.f32 %v13012_v40, %v6852_v63  ;;  %v6928_v12 = vmul.f32 %v13015_v28, %v6852_v63 }
0x10fb   : > { %v13225_v27 = vpop.eup %10121  ;;  %v6856_v28 = vrot.slane %v13215_v47, %v14891_v13 }
0x10fc   : > { %v6957_v31 = vpack.c.bf16 %v6926_v26, %v6925_v54  ;;  %v6880_v58 = vrot.slane %v13225_v27, %v10395_v18  ;;  %v6958_v8 = vpack.c.bf16 %v6928_v12, %v6927_v6  ;;  %v6884_v11 = vrot.slane %v13225_v27, %v14890_v57 }
0x10fd   : > { %v6929_v4 = vmul.f32 %v13050_v9, %v6856_v28  ;;  %v6888_v48 = vrot.slane %v13225_v27, %v14891_v13  ;;  %v6892_v2 = vrot.slane %v13225_v27, %v14892_v32  ;;  %v6896_v63 = vrot.slane %v13225_v27, %v14893_v62 }
0x10fe   : > { %v6994_v10 = vunpack.c.l.b16 %v6957_v31  ;;  %v6995_v45 = vunpack.c.h.b16 %v6957_v31  ;;  %v6941_v0 = vmul.f32 %v13030_v17, %v6880_v58  ;;  %v6942_v21 = vmul.f32 %v13033_v35, %v6880_v58 }
0x10ff   : > { %v6996_v40 = vunpack.c.l.b16 %v6958_v8  ;;  %v6997_v30 = vunpack.c.h.b16 %v6958_v8  ;;  %v6943_v5 = vmul.f32 %v13040_v52, %v6884_v11  ;;  %v6944_v39 = vmul.f32 %v13043_v55, %v6884_v11 }
0x1100   : > { %7027 = vperm.xlu0 %9888, %v6994_v10   ;;  %7030 = vperm.xlu1 %9887, %v6995_v45   ;;  %v6965_v49 = vpack.c.bf16 %v6942_v21, %v6941_v0  ;;  %v6930_v17 = vmul.f32 %v13053_v38, %v6856_v28  ;;  %v6860_v52 = vrot.slane %v13215_v47, %v14892_v32  ;;  %v14920_v21 = vld [vmem:[#allocation9_spill] sm:$0xff] }
0x1101   : > { %v6966_v7 = vpack.c.bf16 %v6944_v39, %v6943_v5  ;;  %v6945_v22 = vmul.f32 %v13060_v24, %v6888_v48  ;;  %v6946_v9 = vmul.f32 %v13063_v14, %v6888_v48  ;;  %v6947_v36 = vmul.f32 %v13080_v19, %v6892_v2  ;;  %v14921_v28 = vld [vmem:[#allocation45_spill] sm:$0xff]  ;;  %v14923_v39 = vld [vmem:[#allocation48_spill] sm:$0xff] }
0x1102   : > { %v7011_v56 = vunpack.c.h.b16 %v6965_v49  ;;  %v7010_v35 = vunpack.c.l.b16 %v6965_v49  ;;  %v6959_v15 = vpack.c.bf16 %v6930_v17, %v6929_v4  ;;  %v6931_v38 = vmul.f32 %v13070_v3, %v6860_v52  ;;  %v14922_v49 = vld [vmem:[#allocation59_spill] sm:$0xff]  ;;  %v14924_v17 = vld [vmem:[#allocation52_spill] sm:$0xff] }
0x1103   : > { %v7013_v29 = vunpack.c.h.b16 %v6966_v7  ;;  %v7012_v55 = vunpack.c.l.b16 %v6966_v7  ;;  %v6932_v16 = vmul.f32 %v13073_v46, %v6860_v52  ;;  %v6967_v37 = vpack.c.bf16 %v6946_v9, %v6945_v22 }
0x1104   : > { %7033 = vperm.xlu0 %9888, %v6996_v40   ;;  %7036 = vperm.xlu1 %9887, %v6997_v30   ;;  %v6999_v1 = vunpack.c.h.b16 %v6959_v15  ;;  %v6998_v41 = vunpack.c.l.b16 %v6959_v15  ;;  %v6948_v24 = vmul.f32 %v13083_v43, %v6892_v2  ;;  %v6864_v3 = vrot.slane %v13215_v47, %v14893_v62  ;;  %v14927_v2 = vld [vmem:[#allocation15_spill] sm:$0xff] }
0x1105   : > { %v6960_v50 = vpack.c.bf16 %v6932_v16, %v6931_v38  ;;  %v7015_v14 = vunpack.c.h.b16 %v6967_v37  ;;  %v7014_v59 = vunpack.c.l.b16 %v6967_v37  ;;  %v6868_v43 = vrot.slane %v13215_v47, %v14894_v33  ;;  %v14926_v38 = vld [vmem:[#allocation55_spill] sm:$0xff] }
0x1106   : > { %v6968_v23 = vpack.c.bf16 %v6948_v24, %v6947_v36  ;;  %v6933_v51 = vmul.f32 %v13090_v60, %v6864_v3  ;;  %v6934_v44 = vmul.f32 %v13093_v34, %v6864_v3  ;;  %v6949_v6 = vmul.f32 %v13100_v20, %v6896_v63  ;;  %v14918_v60 = vld [vmem:[#allocation41_spill] sm:$0xff]  ;;  %v14919_v34 = vld [vmem:[#allocation54_spill] sm:$0xff] }
0x1107   : > { %v7001_v46 = vunpack.c.h.b16 %v6960_v50  ;;  %v7000_v25 = vunpack.c.l.b16 %v6960_v50  ;;  %v6950_v12 = vmul.f32 %v13103_v42, %v6896_v63  ;;  %v6935_v31 = vmul.f32 %v14918_v60, %v6868_v43  ;;  %v14929_v50 = vld [vmem:[#allocation60_spill] sm:$0xff] }
0x1108   : > { %7078 = vperm.xlu1 %9887, %v7011_v56   ;;  %7075 = vperm.xlu0 %9888, %v7010_v35   ;;  %v7017_v19 = vunpack.c.h.b16 %v6968_v23  ;;  %v7016_v54 = vunpack.c.l.b16 %v6968_v23  ;;  %v6961_v26 = vpack.c.bf16 %v6934_v44, %v6933_v51  ;;  %v6936_v58 = vmul.f32 %v14919_v34, %v6868_v43  ;;  %v14931_v44 = vld [vmem:[#allocation63_spill] sm:$0xff] }
0x1109   : > { %v6969_v45 = vpack.c.bf16 %v6950_v12, %v6949_v6  ;;  %v6900_v11 = vrot.slane %v13225_v27, %v14894_v33  ;;  %v6872_v20 = vrot.slane %v13215_v47, %v14920_v21  ;;  %v6904_v15 = vrot.slane %v13225_v27, %v14920_v21  ;;  %v14933_v12 = vld [vmem:[#allocation29_spill] sm:$0xff] }
0x110a   : > { %v7003_v8 = vunpack.c.h.b16 %v6961_v26  ;;  %v7002_v10 = vunpack.c.l.b16 %v6961_v26  ;;  %v6962_v0 = vpack.c.bf16 %v6936_v58, %v6935_v31 }
0x110b   : > { %v7019_v40 = vunpack.c.h.b16 %v6969_v45  ;;  %v7018_v42 = vunpack.c.l.b16 %v6969_v45  ;;  %v6951_v30 = vmul.f32 %v14921_v28, %v6900_v11  ;;  %v6952_v5 = vmul.f32 %v14922_v49, %v6900_v11 }
0x110c   : > { %7084 = vperm.xlu1 %9887, %v7013_v29   ;;  %7081 = vperm.xlu0 %9888, %v7012_v55   ;;  %v6937_v4 = vmul.f32 %v14923_v39, %v6872_v20  ;;  %v6938_v56 = vmul.f32 %v14924_v17, %v6872_v20  ;;  %v7005_v35 = vunpack.c.h.b16 %v6962_v0  ;;  %v7004_v7 = vunpack.c.l.b16 %v6962_v0  ;;  %v14925_v29 = vld [vmem:[#allocation10_spill] sm:$0xff] }
0x110d   : > { %v6970_v48 = vpack.c.bf16 %v6952_v5, %v6951_v30  ;;  %v6876_v55 = vrot.slane %v13215_v47, %v14925_v29  ;;  %v6953_v16 = vmul.f32 %v14926_v38, %v6904_v15  ;;  %v6908_v3 = vrot.slane %v13225_v27, %v14925_v29  ;;  %v14932_v27 = vld [vmem:[#allocation69_spill] sm:$0xff] }
0x110e   : > { %v6963_v52 = vpack.c.bf16 %v6938_v56, %v6937_v4  ;;  %v14934_v60 = vpack.c.bf16 %v14932_v27, %v14933_v12 }
0x110f   : > { %v7021_v22 = vunpack.c.h.b16 %v6970_v48  ;;  %v7020_v9 = vunpack.c.l.b16 %v6970_v48  ;;  %v6940_v36 = vmul.f32 %v14929_v50, %v6876_v55  ;;  %v6956_v63 = vmul.f32 %v14931_v44, %v6908_v3 }
0x1110   : > { %7042 = vperm.xlu1 %9887, %v6999_v1   ;;  %7039 = vperm.xlu0 %9888, %v6998_v41   ;;  %v6954_v1 = vmul.f32 %v14927_v2, %v6904_v15  ;;  %v14928_v41 = vld [vmem:[#allocation62_spill] sm:$0xff]  ;;  %v7007_v24 = vunpack.c.h.b16 %v6963_v52 }
0x1111   : > { %v6939_v37 = vmul.f32 %v14928_v41, %v6876_v55 }
0x1113   : > { %v6964_v47 = vpack.c.bf16 %v6940_v36, %v6939_v37 }
0x1114   : > { %7090 = vperm.xlu1 %9887, %v7015_v14   ;;  %7087 = vperm.xlu0 %9888, %v7014_v59   ;;  %v7006_v14 = vunpack.c.l.b16 %v6963_v52  ;;  %v6971_v59 = vpack.c.bf16 %v6954_v1, %v6953_v16 }
0x1115   : > { %v7008_v43 = vunpack.c.l.b16 %v6964_v47 }
0x1116   : > { %v7022_v23 = vunpack.c.l.b16 %v6971_v59 }
0x1118   : > { %7048 = vperm.xlu1 %9887, %v7001_v46   ;;  %7045 = vperm.xlu0 %9888, %v7000_v25   ;;  %v7023_v46 = vunpack.c.h.b16 %v6971_v59  ;;  %v14930_v25 = vld [vmem:[#allocation66_spill] sm:$0xff] }
0x1119   : > { %v6955_v51 = vmul.f32 %v14930_v25, %v6908_v3 }
0x111c   : > { %7096 = vperm.xlu1 %9887, %v7017_v19   ;;  %7093 = vperm.xlu0 %9888, %v7016_v54   ;;  %v7009_v19 = vunpack.c.h.b16 %v6964_v47  ;;  %v6972_v54 = vpack.c.bf16 %v6956_v63, %v6955_v51 }
0x111e   : > { %v7025_v26 = vunpack.c.h.b16 %v6972_v54  ;;  %v7024_v6 = vunpack.c.l.b16 %v6972_v54 }
0x1120   : > { %7054 = vperm.xlu1 %9887, %v7003_v8   ;;  %7051 = vperm.xlu0 %9888, %v7002_v10  }
0x1124   : > { %7102 = vperm.xlu1 %9887, %v7019_v40   ;;  %7099 = vperm.xlu0 %9888, %v7018_v42  }
0x1128   : > { %7060 = vperm.xlu1 %9887, %v7005_v35   ;;  %7057 = vperm.xlu0 %9888, %v7004_v7  }
0x112c   : > { %7108 = vperm.xlu1 %9887, %v7021_v22   ;;  %7105 = vperm.xlu0 %9888, %v7020_v9  }
0x1130   : > { %7066 = vperm.xlu1 %9887, %v7007_v24   ;;  %7063 = vperm.xlu0 %9888, %v7006_v14  }
0x1134   : > { %7114 = vperm.xlu1 %9887, %v7023_v46   ;;  %7111 = vperm.xlu0 %9888, %v7022_v23  }
0x1138   : > { %7072 = vperm.xlu1 %9887, %v7009_v19   ;;  %7069 = vperm.xlu0 %9888, %v7008_v43  }
0x113c   : > { %7120 = vperm.xlu1 %9887, %v7025_v26   ;;  %7117 = vperm.xlu0 %9888, %v7024_v6  }
0x1140   : > { %7282 = vrot.lane.b32.xlu0 %v14934_v60, %s10207_s27 }
0x117b   : > { %v7028_v31 = vpop.permute.xlu0 %7027  ;;  %v7031_v34 = vpop.permute.xlu1 %7030 }
0x117c   : > { %v7125_v9 = vrot.slane %v7028_v31, %v14888_v53  ;;  %v7129_v38 = vrot.slane %v7031_v34, %v14889_v61 }
0x117e   : > { %v7130_v23 = vsel %vm2176_vm12, %v7129_v38, %v7125_v9 }
0x117f   : > { %v7034_v58 = vpop.permute.xlu0 %7033  ;;  %v7037_v8 = vpop.permute.xlu1 %7036 }
0x1180   : > { %v7134_v55 = vrot.slane %v7034_v58, %v14888_v53  ;;  %v7138_v22 = vrot.slane %v7037_v8, %v14889_v61 }
0x1182   : > { %v7139_v14 = vsel %vm2176_vm12, %v7138_v22, %v7134_v55 }
0x1183   : > { %v7076_v10 = vpop.permute.xlu0 %7075  ;;  %v7079_v45 = vpop.permute.xlu1 %7078  ;;  %v7266_v25 = vsel %vm2313_vm13, %v7139_v14, %v7130_v23 }
0x1184   : > { %v7197_v16 = vrot.slane %v7076_v10, %v14888_v53  ;;  %v7201_v2 = vrot.slane %v7079_v45, %v14889_v61 }
0x1186   : > { %v7202_v51 = vsel %vm2176_vm12, %v7201_v2, %v7197_v16 }
0x1187   : > { %v7082_v11 = vpop.permute.xlu0 %7081  ;;  %v7085_v0 = vpop.permute.xlu1 %7084 }
0x1188   : > { %v7206_v1 = vrot.slane %v7082_v11, %v14888_v53  ;;  %v7210_v41 = vrot.slane %v7085_v0, %v14889_v61 }
0x118a   : > { %v7211_v44 = vsel %vm2176_vm12, %v7210_v41, %v7206_v1 }
0x118b   : > { %v7040_v20 = vpop.permute.xlu0 %7039  ;;  %v7043_v40 = vpop.permute.xlu1 %7042 }
0x118c   : > { %v7143_v37 = vrot.slane %v7040_v20, %v14888_v53  ;;  %v7147_v50 = vrot.slane %v7043_v40, %v14889_v61 }
0x118e   : > { %v7148_v63 = vsel %vm2176_vm12, %v7147_v50, %v7143_v37 }
0x118f   : > { %v7088_v42 = vpop.permute.xlu0 %7087  ;;  %v7091_v28 = vpop.permute.xlu1 %7090 }
0x1190   : > { %v7215_v59 = vrot.slane %v7088_v42, %v14888_v53  ;;  %v7219_v3 = vrot.slane %v7091_v28, %v14889_v61 }
0x1192   : > { %v7220_v12 = vsel %vm2176_vm12, %v7219_v3, %v7215_v59 }
0x1193   : > { %v7046_v30 = vpop.permute.xlu0 %7045  ;;  %v7049_v49 = vpop.permute.xlu1 %7048 }
0x1194   : > { %v7152_v47 = vrot.slane %v7046_v30, %v14888_v53  ;;  %v7156_v46 = vrot.slane %v7049_v49, %v14889_v61 }
0x1196   : > { %v7157_v60 = vsel %vm2176_vm12, %v7156_v46, %v7152_v47 }
0x1197   : > { %v7094_v5 = vpop.permute.xlu0 %7093  ;;  %v7097_v39 = vpop.permute.xlu1 %7096 }
0x1198   : > { %v7224_v54 = vrot.slane %v7094_v5, %v14888_v53  ;;  %v7228_v26 = vrot.slane %v7097_v39, %v14889_v61 }
0x119a   : > { %v7229_v30 = vsel %vm2176_vm12, %v7228_v26, %v7224_v54 }
0x119b   : > { %v7052_v4 = vpop.permute.xlu0 %7051  ;;  %v7055_v17 = vpop.permute.xlu1 %7054 }
0x119c   : > { %v7161_v6 = vrot.slane %v7052_v4, %v14888_v53  ;;  %v7165_v27 = vrot.slane %v7055_v17, %v14889_v61  ;;  %v7273_v4 = vsel %vm2313_vm13, %v7211_v44, %v7202_v51  ;;  %v7267_v17 = vsel %vm2315_vm14, %v7148_v63, %v7266_v25  ;;  %v9911_v51 = vld [vmem:[%s14288_s16 + $0x8] sm:$0xff]   ;;  %v9912_v44 = vld [vmem:[%s14288_s16] sm:$0xff]  }
0x119d   : > { %v14935_v25 = vmov 0.0   ;;  %v5311_v63 = vld [vmem:[%s14289_s17 + $0x8] sm:$0x3f] }
0x119e   : > { %v7166_v49 = vsel %vm2176_vm12, %v7165_v27, %v7161_v6 }
0x119f   : > { %v7100_v56 = vpop.permute.xlu0 %7099  ;;  %v7103_v35 = vpop.permute.xlu1 %7102 }
0x11a0   : > { %v7233_v31 = vrot.slane %v7100_v56, %v14888_v53  ;;  %v7237_v34 = vrot.slane %v7103_v35, %v14889_v61  ;;  %v7274_v35 = vsel %vm2315_vm14, %v7220_v12, %v7273_v4 }
0x11a2   : > { %v7238_v56 = vsel %vm2176_vm12, %v7237_v34, %v7233_v31 }
0x11a3   : > { %v7058_v7 = vpop.permute.xlu0 %7057  ;;  %v7061_v48 = vpop.permute.xlu1 %7060 }
0x11a4   : > { %v7170_v58 = vrot.slane %v7058_v7, %v14888_v53  ;;  %v7174_v8 = vrot.slane %v7061_v48, %v14889_v61  ;;  %v7268_v7 = vsel %vm2317_vm15, %v7157_v60, %v7267_v17 }
0x11a5   : > { %v7269_v55 = vsel %vm2319_vm0, %v7166_v49, %v7268_v7  ;;  %v7411_v7 = vrot.slane %v5311_v63, %v10395_v18 }
0x11a6   : > { %v7175_v48 = vsel %vm2176_vm12, %v7174_v8, %v7170_v58 }
0x11a7   : > { %v7106_v15 = vpop.permute.xlu0 %7105  ;;  %v7109_v52 = vpop.permute.xlu1 %7108  ;;  %v7270_v50 = vsel %vm2321_vm2, %v7175_v48, %v7269_v55 }
0x11a8   : > { %v7242_v10 = vrot.slane %v7106_v15, %v14888_v53  ;;  %v7246_v45 = vrot.slane %v7109_v52, %v14889_v61  ;;  %v7275_v52 = vsel %vm2317_vm15, %v7229_v30, %v7274_v35 }
0x11a9   : > { %v7276_v2 = vsel %vm2319_vm0, %v7238_v56, %v7275_v52  ;;  %v14938_v52 = vld [vmem:[#allocation56_spill] sm:$0xff] }
0x11aa   : > { %v7247_v15 = vsel %vm2176_vm12, %v7246_v45, %v7242_v10 }
0x11ab   : > { %v7064_v36 = vpop.permute.xlu0 %7063  ;;  %v7067_v24 = vpop.permute.xlu1 %7066 }
0x11ac   : > { %v7179_v11 = vrot.slane %v7064_v36, %v14888_v53  ;;  %v7183_v0 = vrot.slane %v7067_v24, %v14889_v61  ;;  %v7277_v36 = vsel %vm2321_vm2, %v7247_v15, %v7276_v2 }
0x11ae   : > { %v7184_v22 = vsel %vm2176_vm12, %v7183_v0, %v7179_v11 }
0x11af   : > { %v7112_v19 = vpop.permute.xlu0 %7111  ;;  %v7115_v43 = vpop.permute.xlu1 %7114  ;;  %v7271_v24 = vsel %vm2323_vm4, %v7184_v22, %v7270_v50 }
0x11b0   : > { %v7251_v20 = vrot.slane %v7112_v19, %v14888_v53  ;;  %v7255_v40 = vrot.slane %v7115_v43, %v14889_v61  ;;  %v7417_v19 = vrot.slane %v5311_v63, %v14890_v57  ;;  %v10192_v43 = vld [vmem:[%s14289_s17] sm:$0x3f] }
0x11b1   : > { %v6977_v54 = vrot.slane %v10192_v43, %v14892_v32  ;;  %v7338_v60 = vrot.slane %v10192_v43, %v14893_v62  ;;  %v7344_v11 = vrot.slane %v10192_v43, %v14894_v33 }
0x11b2   : > { %v7256_v9 = vsel %vm2176_vm12, %v7255_v40, %v7251_v20  ;;  %7419 = vrot.lane.b32.xlu1 %v7417_v19, %s10206_s26  ;;  %s14069_s26 = sshll.u32 %s15032_s22, 1 }
0x11b3   : > { %v7070_v42 = vpop.permute.xlu0 %7069  ;;  %v7073_v28 = vpop.permute.xlu1 %7072  ;;  %v7278_v14 = vsel %vm2323_vm4, %v7256_v9, %v7277_v36  ;;  %s737_s30 = scalar_lea.vmem %s15023_s29, %s14069_s26  ;;  %s751_s3 = scalar_lea.vmem %s14279_s7, %s14069_s26 }
0x11b4   : > { %v7188_v5 = vrot.slane %v7070_v42, %v14888_v53  ;;  %v7192_v39 = vrot.slane %v7073_v28, %v14889_v61 }
0x11b6   : > { %v7193_v1 = vsel %vm2176_vm12, %v7192_v39, %v7188_v5 }
0x11b7   : > { %v7118_v38 = vpop.permute.xlu0 %7117  ;;  %v7121_v16 = vpop.permute.xlu1 %7120  ;;  %v7272_v3 = vsel %vm2325_vm3, %v7193_v1, %v7271_v24 }
0x11b8   : > { %v7260_v41 = vrot.slane %v7118_v38, %v14888_v53  ;;  %v7264_v37 = vrot.slane %v7121_v16, %v14889_v61 }
0x11ba   : > { %v7265_v59 = vsel %vm2176_vm12, %v7264_v37, %v7260_v41 }
0x11bb   : > { %v7279_v47 = vsel %vm2325_vm3, %v7265_v59, %v7278_v14  ;;  %v7283_v46 = vpop.permute.xlu0 %7282 }
0x11bc   : > { %v7280_v23 = vpack.c.b16 %v7279_v47, %v7272_v3  ;;  %9828 = vmatpush3.bf16.msra.mxu1 %v7283_v46  ;;  %v13394_v3 = vrot.slane %v5311_v63, %v14891_v13 }
0x11bd   : > { %9833 = vmatprep.subr.bf16.mxu1 %v14935_v25 }
0x11bf   : > { %9830 = vmatmul.mubr.msk.bf16.vlgmr.msra.gmra.mxu1 %vm2336_vm5, %v7280_v23 }
0x11c0   : > { %9837 = vmatprep.mubr.msk.bf16.mxu1 %vm10205_vm1, %v14935_v25  ;;  %9834 = vmatpush3.bf16.msra.mxu1 %v9911_v51 }
0x11c1   : > { %9835 = vmatprep.subr.bf16.mxu1 %v14935_v25 }
0x11c4   : > { %9836 = vmatpush3.bf16.msra.mxu1 %v9912_v44 }
0x11c5   : > { %9841 = vmatprep.subr.bf16.mxu1 %v14935_v25 }
0x1224   : > { %v7420_v30 = vpop.permute.xlu1 %7419 }
0x127f   : > { %v7322_v26 = vpop.f32.mrf.mxu1 }
0x1280   : > { %v7323_v6 = vadd.f32 %v7322_v26, %v6977_v54 }
0x1281   : > { %v9831_v27 = vpop.f32.mrf.mxu1 }
0x1282   : > { %vm7329_vm10 = vcmp.gt.f32.partialorder %v7323_v6, 0.0  ;;  %v7331_v12 = vmul.f32 0.2, %v7323_v6 }
0x1283   : > { %v7325_v31 = vpop.f32.mrf.mxu1 }
0x1284   : > { %v7333_v34 = vsel %vm7329_vm10, %v7323_v6, %v7331_v12  ;;  %v7326_v58 = vadd.f32 %v7325_v31, %v6977_v54 }
0x1285   : > { %v9832_v8 = vpop.f32.mrf.mxu1  ;;  %v7339_v45 = vmul.f32 %v7338_v60, %v7333_v34 }
0x1286   : > { %vm7330_vm11 = vcmp.gt.f32.partialorder %v7326_v58, 0.0  ;;  %v7332_v10 = vmul.f32 0.2, %v7326_v58 }
0x1287   : > { %v7345_v40 = vadd.f32 %v7344_v11, %v7339_v45 }
0x1288   : > { %v7334_v0 = vsel %vm7330_vm11, %v7326_v58, %v7332_v10 }
0x1289   : > { %v7340_v20 = vmul.f32 %v7338_v60, %v7334_v0 }
0x128b   : > { %v7346_v42 = vadd.f32 %v7344_v11, %v7340_v20 }
0x128d   : > { %v7351_v28 = vpack.c.bf16 %v7346_v42, %v7345_v40 }
0x128f   : > { %9838 = vmatmul.mubr.msk.bf16.vlgmr.msra.gmra.mxu1 %vm889_vm6, %v7351_v28 }
0x1290   : > { %9843 = vmatprep.mubr.msk.bf16.mxu1 %vm10205_vm1, %v14935_v25 }
0x134f   : > { %v7401_v49 = vpop.f32.mrf.mxu1 }
0x1350   : > { %v13375_v5 = vadd.f32 %v7420_v30, %v7401_v49  ;;  %v7412_v48 = vadd.f32 %v7411_v7, %v7401_v49 }
0x1351   : > { %v9839_v39 = vpop.f32.mrf.mxu1 }
0x1352   : > { %14936 = vst [vmem:[#allocation87_spill] sm:$0xff] %v13375_v5  ;;  %7606 = vrot.lane.b32.xlu0 %v13375_v5, %s10207_s27  ;;  %v7433_v55 = vrot.slane %v7412_v48, %v14938_v52  ;;  %v7426_v9 = vcombine.high %v7412_v48, %v7412_v48 }
0x1353   : > { %v7404_v4 = vpop.f32.mrf.mxu1 }
0x1354   : > { %v13379_v17 = vadd.f32 %v7420_v30, %v7404_v4  ;;  %v7413_v15 = vadd.f32 %v7411_v7, %v7404_v4  ;;  %v7441_v38 = vcombine.high %v7433_v55, %v7433_v55  ;;  %v7440_v2 = vrot.slane %v7426_v9, %v14938_v52 }
0x1355   : > { %v9840_v56 = vpop.f32.mrf.mxu1  ;;  %v7449_v1 = vrot.slane %v7433_v55, %v14938_v52 }
0x1356   : > { %14937 = vst [vmem:[#allocation84_spill] sm:$0xff] %v13379_v17  ;;  %7608 = vrot.lane.b32.xlu1 %v13379_v17, %s10207_s27  ;;  %v7482_v22 = vrot.slane %v7413_v15, %v14938_v52  ;;  %v7463_v41 = vrot.slane %v7441_v38, %v14938_v52  ;;  %v7442_v36 = vcombine.high %v7440_v2, %v7440_v2 }
0x1357   : > { %v7471_v24 = vcombine.high %v7449_v1, %v7449_v1  ;;  %v13397_v47 = vrot.slane %v7440_v2, %v14938_v52  ;;  %v13400_v46 = vrot.slane %v7449_v1, %v10395_v18  ;;  %v7475_v44 = vcombine.high %v7413_v15, %v7413_v15 }
0x1358   : > { %v7490_v16 = vcombine.high %v7482_v22, %v7482_v22  ;;  %v7498_v37 = vrot.slane %v7482_v22, %v14938_v52  ;;  %v7473_v14 = vcombine.high %v7463_v41, %v7463_v41  ;;  %v7531_v51 = vrot.slane %v7463_v41, %v10395_v18 }
0x1359   : > { %v13406_v54 = vrot.slane %v7442_v36, %v14938_v52  ;;  %v13409_v63 = vrot.slane %v7471_v24, %v10395_v18  ;;  %v7489_v9 = vrot.slane %v7475_v44, %v14938_v52 }
0x135a   : > { %v7512_v50 = vrot.slane %v7490_v16, %v14938_v52  ;;  %v7520_v59 = vcombine.high %v7498_v37, %v7498_v37  ;;  %v7559_v19 = vrot.slane %v7498_v37, %v10395_v18  ;;  %v13417_v27 = vrot.slane %v7473_v14, %v10395_v18 }
0x135c   : > { %v7522_v23 = vcombine.high %v7512_v50, %v7512_v50  ;;  %v7563_v43 = vrot.slane %v7512_v50, %v10395_v18  ;;  %v13412_v26 = vrot.slane %v7520_v59, %v10395_v18 }
0x135e   : > { %v13431_v45 = vrot.slane %v7522_v23, %v10395_v18 }
0x13c4   : > { %v13414_v6 = vpop.permute.xlu0 %7606 }
0x13c5   : > { %v7628_v12 = vadd.f32 %v13414_v6, %v7559_v19  ;;  %v7612_v60 = vadd.f32 %v13414_v6, %v13400_v46  ;;  %v7630_v31 = vadd.f32 %v13414_v6, %v7563_v43  ;;  %v7614_v34 = vadd.f32 %v13414_v6, %v7531_v51 }
0x13c6   : > { %v7616_v58 = vadd.f32 %v13414_v6, %v13409_v63  ;;  %v7632_v8 = vadd.f32 %v13414_v6, %v13412_v26  ;;  %v7618_v10 = vadd.f32 %v13414_v6, %v13417_v27  ;;  %v7634_v2 = vadd.f32 %v13414_v6, %v13431_v45 }
0x13c7   : > { %vm7660_vm7 = vcmp.gt.f32.partialorder %v7628_v12, 0.0  ;;  %v7692_v11 = vmul.f32 0.2, %v7628_v12  ;;  %vm7644_vm8 = vcmp.gt.f32.partialorder %v7612_v60, 0.0  ;;  %v7676_v0 = vmul.f32 0.2, %v7612_v60 }
0x13c8   : > { %vm7662_vm9 = vcmp.gt.f32.partialorder %v7630_v31, 0.0  ;;  %v7694_v20 = vmul.f32 0.2, %v7630_v31  ;;  %vm7646_vm10 = vcmp.gt.f32.partialorder %v7614_v34, 0.0  ;;  %v7678_v40 = vmul.f32 0.2, %v7614_v34  ;;  %v13433_v42 = vpop.permute.xlu1 %7608 }
0x13c9   : > { %v7724_v28 = vsel %vm7660_vm7, %v7628_v12, %v7692_v11  ;;  %v7708_v30 = vsel %vm7644_vm8, %v7612_v60, %v7676_v0  ;;  %vm7648_vm11 = vcmp.gt.f32.partialorder %v7616_v58, 0.0  ;;  %v7680_v49 = vmul.f32 0.2, %v7616_v58 }
0x13ca   : > { %v7760_v39 = vmul.f32 %v13394_v3, %v7724_v28  ;;  %v7744_v4 = vmul.f32 %v13394_v3, %v7708_v30  ;;  %v7726_v56 = vsel %vm7662_vm9, %v7630_v31, %v7694_v20  ;;  %v7710_v7 = vsel %vm7646_vm10, %v7614_v34, %v7678_v40 }
0x13cb   : > { %v7762_v48 = vmul.f32 %v13394_v3, %v7726_v56  ;;  %v7746_v15 = vmul.f32 %v13394_v3, %v7710_v7  ;;  %v7712_v55 = vsel %vm7648_vm11, %v7616_v58, %v7680_v49  ;;  %v7615_v22 = vadd.f32 %v13433_v42, %v7531_v51 }
0x13cc   : > { %v7824_v38 = vsel %vm889_vm6, %v7760_v39, 0.0  ;;  %v7776_v16 = vsel %vm889_vm6, %v7744_v4, 0.0  ;;  %v7748_v1 = vmul.f32 %v13394_v3, %v7712_v55  ;;  %vm7664_vm8 = vcmp.gt.f32.partialorder %v7632_v8, 0.0 }
0x13cd   : > { %7825 = vadd.xlane.f32.xlu1 %v7824_v38  ;;  %7777 = vadd.xlane.f32.xlu0 %v7776_v16  ;;  %vm7647_vm7 = vcmp.gt.f32.partialorder %v7615_v22, 0.0  ;;  %v7679_v41 = vmul.f32 0.2, %v7615_v22  ;;  %v7830_v37 = vsel %vm889_vm6, %v7762_v48, 0.0  ;;  %v7782_v50 = vsel %vm889_vm6, %v7746_v15, 0.0 }
0x13ce   : > { %v7696_v36 = vmul.f32 0.2, %v7632_v8  ;;  %v7629_v24 = vadd.f32 %v13433_v42, %v7559_v19  ;;  %vm7650_vm9 = vcmp.gt.f32.partialorder %v7618_v10, 0.0  ;;  %v7682_v59 = vmul.f32 0.2, %v7618_v10 }
0x13cf   : > { %v7711_v14 = vsel %vm7647_vm7, %v7615_v22, %v7679_v41  ;;  %v7631_v23 = vadd.f32 %v13433_v42, %v7563_v43  ;;  %v7472_v60 = vcombine.high %v13397_v47, %v13397_v47  ;;  %v13455_v31 = vrot.slane %v13397_v47, %v10395_v18 }
0x13d0   : > { %v7747_v51 = vmul.f32 %v13394_v3, %v7711_v14  ;;  %v7728_v44 = vsel %vm7664_vm8, %v7632_v8, %v7696_v36  ;;  %vm7661_vm10 = vcmp.gt.f32.partialorder %v7629_v24, 0.0  ;;  %v7693_v12 = vmul.f32 0.2, %v7629_v24 }
0x13d1   : > { %v13458_v34 = vrot.slane %v7489_v9, %v14938_v52  ;;  %7831 = vadd.xlane.f32.xlu1 %v7830_v37  ;;  %7783 = vadd.xlane.f32.xlu0 %v7782_v50  ;;  %v7695_v19 = vmul.f32 0.2, %v7631_v23  ;;  %v7788_v43 = vsel %vm889_vm6, %v7748_v1, 0.0  ;;  %vm7663_vm11 = vcmp.gt.f32.partialorder %v7631_v23, 0.0 }
0x13d2   : > { %v7725_v58 = vsel %vm7661_vm10, %v7629_v24, %v7693_v12  ;;  %v13463_v8 = vrot.slane %v13406_v54, %v10395_v18  ;;  %v7764_v11 = vmul.f32 %v13394_v3, %v7728_v44  ;;  %v7714_v0 = vsel %vm7650_vm9, %v7618_v10, %v7682_v59 }
0x13d3   : > { %v7698_v47 = vmul.f32 0.2, %v7634_v2  ;;  %v7617_v20 = vadd.f32 %v13433_v42, %v13409_v63  ;;  %v7785_v40 = vsel %vm889_vm6, %v7747_v51, 0.0  ;;  %v7761_v28 = vmul.f32 %v13394_v3, %v7725_v58 }
0x13d4   : > { %vm7666_vm7 = vcmp.gt.f32.partialorder %v7634_v2, 0.0  ;;  %v7620_v30 = vadd.f32 %v13414_v6, %v13455_v31  ;;  %v7491_v49 = vcombine.high %v7489_v9, %v7489_v9  ;;  %v13475_v39 = vrot.slane %v13458_v34, %v10395_v18 }
0x13d5   : > { %7789 = vadd.xlane.f32.xlu1 %v7788_v43  ;;  %7786 = vadd.xlane.f32.xlu0 %v7785_v40  ;;  %v7727_v10 = vsel %vm7663_vm11, %v7631_v23, %v7695_v19  ;;  %v7681_v4 = vmul.f32 0.2, %v7617_v20  ;;  %v7750_v56 = vmul.f32 %v13394_v3, %v7714_v0  ;;  %vm7649_vm8 = vcmp.gt.f32.partialorder %v7617_v20, 0.0 }
0x13d6   : > { %v7684_v63 = vmul.f32 0.2, %v7620_v30  ;;  %v7633_v7 = vadd.f32 %v13433_v42, %v13412_v26  ;;  %v7836_v48 = vsel %vm889_vm6, %v7764_v11, 0.0  ;;  %v7730_v15 = vsel %vm7666_vm7, %v7634_v2, %v7698_v47 }
0x13d7   : > { %vm7652_vm9 = vcmp.gt.f32.partialorder %v7620_v30, 0.0  ;;  %v7636_v55 = vadd.f32 %v13414_v6, %v13475_v39  ;;  %v7827_v22 = vsel %vm889_vm6, %v7761_v28, 0.0  ;;  %v7763_v9 = vmul.f32 %v13394_v3, %v7727_v10 }
0x13d8   : > { %vm7665_vm10 = vcmp.gt.f32.partialorder %v7633_v7, 0.0  ;;  %v7697_v38 = vmul.f32 0.2, %v7633_v7  ;;  %v13486_v16 = vrot.slane %v7491_v49, %v14938_v52  ;;  %v7713_v1 = vsel %vm7649_vm8, %v7617_v20, %v7681_v4 }
0x13d9   : > { %7837 = vadd.xlane.f32.xlu1 %v7836_v48  ;;  %7828 = vadd.xlane.f32.xlu0 %v7827_v22  ;;  %v7619_v26 = vadd.f32 %v13433_v42, %v13417_v27  ;;  %v7766_v2 = vmul.f32 %v13394_v3, %v7730_v15  ;;  %v7716_v41 = vsel %vm7652_vm9, %v7620_v30, %v7684_v63  ;;  %v7700_v50 = vmul.f32 0.2, %v7636_v55 }
0x13da   : > { %v7729_v37 = vsel %vm7665_vm10, %v7633_v7, %v7697_v38  ;;  %v7622_v36 = vadd.f32 %v13414_v6, %v13463_v8  ;;  %v7635_v24 = vadd.f32 %v13433_v42, %v13431_v45  ;;  %v7794_v52 = vsel %vm889_vm6, %v7750_v56, 0.0 }
0x13db   : > { %v7833_v14 = vsel %vm889_vm6, %v7763_v9, 0.0  ;;  %v7749_v59 = vmul.f32 %v13394_v3, %v7713_v1  ;;  %vm7668_vm11 = vcmp.gt.f32.partialorder %v7636_v55, 0.0  ;;  %v7683_v27 = vmul.f32 0.2, %v7619_v26 }
0x13dc   : > { %v7579_v23 = vrot.slane %v13486_v16, %v10395_v18  ;;  %v13501_v51 = vrot.slane %v7472_v60, %v10395_v18  ;;  %v7842_v44 = vsel %vm889_vm6, %v7766_v2, 0.0  ;;  %v7752_v45 = vmul.f32 %v13394_v3, %v7716_v41 }
0x13dd   : > { %7795 = vadd.xlane.f32.xlu1 %v7794_v52  ;;  %7834 = vadd.xlane.f32.xlu0 %v7833_v14  ;;  %v7765_v12 = vmul.f32 %v13394_v3, %v7729_v37  ;;  %vm7651_vm7 = vcmp.gt.f32.partialorder %v7619_v26, 0.0  ;;  %v7732_v19 = vsel %vm7668_vm11, %v7636_v55, %v7700_v50  ;;  %v7686_v43 = vmul.f32 0.2, %v7622_v36 }
0x13de   : > { %v7699_v58 = vmul.f32 0.2, %v7635_v24  ;;  %v7638_v11 = vadd.f32 %v13414_v6, %v7579_v23  ;;  %v7791_v0 = vsel %vm889_vm6, %v7749_v59, 0.0  ;;  %vm7654_vm8 = vcmp.gt.f32.partialorder %v7622_v36, 0.0 }
0x13df   : > { %vm7667_vm9 = vcmp.gt.f32.partialorder %v7635_v24, 0.0  ;;  %v7621_v60 = vadd.f32 %v13433_v42, %v13455_v31  ;;  %v7521_v47 = vcombine.high %v13458_v34, %v13458_v34  ;;  %v7715_v20 = vsel %vm7651_vm7, %v7619_v26, %v7683_v27 }
0x13e0   : > { %v7800_v40 = vsel %vm889_vm6, %v7752_v45, 0.0  ;;  %v7768_v28 = vmul.f32 %v13394_v3, %v7732_v19  ;;  %v7624_v30 = vadd.f32 %v13414_v6, %v13501_v51  ;;  %v7839_v49 = vsel %vm889_vm6, %v7765_v12, 0.0 }
0x13e1   : > { %7843 = vadd.xlane.f32.xlu1 %v7842_v44  ;;  %7792 = vadd.xlane.f32.xlu0 %v7791_v0  ;;  %v7718_v10 = vsel %vm7654_vm8, %v7622_v36, %v7686_v43  ;;  %v7731_v4 = vsel %vm7667_vm9, %v7635_v24, %v7699_v58  ;;  %v7702_v56 = vmul.f32 0.2, %v7638_v11  ;;  %v7751_v31 = vmul.f32 %v13394_v3, %v7715_v20 }
0x13e2   : > { %vm7670_vm10 = vcmp.gt.f32.partialorder %v7638_v11, 0.0  ;;  %v7685_v63 = vmul.f32 0.2, %v7621_v60  ;;  %v7637_v34 = vadd.f32 %v13433_v42, %v13475_v39  ;;  %v7474_v7 = vcombine.high %v13406_v54, %v13406_v54 }
0x13e3   : > { %vm7653_vm11 = vcmp.gt.f32.partialorder %v7621_v60, 0.0  ;;  %v7583_v48 = vrot.slane %v7521_v47, %v10395_v18  ;;  %v7754_v15 = vmul.f32 %v13394_v3, %v7718_v10  ;;  %v7767_v55 = vmul.f32 %v13394_v3, %v7731_v4 }
0x13e4   : > { %v7688_v22 = vmul.f32 0.2, %v7624_v30  ;;  %v7734_v9 = vsel %vm7670_vm10, %v7638_v11, %v7702_v56  ;;  %vm7656_vm7 = vcmp.gt.f32.partialorder %v7624_v30, 0.0  ;;  %v7623_v39 = vadd.f32 %v13433_v42, %v13463_v8 }
0x13e5   : > { %7801 = vadd.xlane.f32.xlu1 %v7800_v40  ;;  %7840 = vadd.xlane.f32.xlu0 %v7839_v49  ;;  %v7640_v38 = vadd.f32 %v13414_v6, %v7583_v48  ;;  %v7848_v1 = vsel %vm889_vm6, %v7768_v28, 0.0  ;;  %v7797_v54 = vsel %vm889_vm6, %v7751_v31, 0.0  ;;  %v7717_v26 = vsel %vm7653_vm11, %v7621_v60, %v7685_v63 }
0x13e6   : > { %v7701_v2 = vmul.f32 0.2, %v7637_v34  ;;  %v7523_v41 = vcombine.high %v13486_v16, %v13486_v16  ;;  %vm7669_vm8 = vcmp.gt.f32.partialorder %v7637_v34, 0.0  ;;  %v7555_v37 = vrot.slane %v7474_v7, %v10395_v18 }
0x13e7   : > { %v7806_v50 = vsel %vm889_vm6, %v7754_v15, 0.0  ;;  %v7845_v36 = vsel %vm889_vm6, %v7767_v55, 0.0  ;;  %v7770_v8 = vmul.f32 %v13394_v3, %v7734_v9  ;;  %v7720_v24 = vsel %vm7656_vm7, %v7624_v30, %v7688_v22 }
0x13e8   : > { %v7753_v52 = vmul.f32 %v13394_v3, %v7717_v26  ;;  %vm7672_vm9 = vcmp.gt.f32.partialorder %v7640_v38, 0.0  ;;  %v7704_v14 = vmul.f32 0.2, %v7640_v38  ;;  %v7687_v59 = vmul.f32 0.2, %v7623_v39 }
0x13e9   : > { %7849 = vadd.xlane.f32.xlu1 %v7848_v1  ;;  %7798 = vadd.xlane.f32.xlu0 %v7797_v54  ;;  %v7733_v27 = vsel %vm7669_vm8, %v7637_v34, %v7701_v2  ;;  %vm7655_vm10 = vcmp.gt.f32.partialorder %v7623_v39, 0.0  ;;  %v7626_v16 = vadd.f32 %v13414_v6, %v7555_v37  ;;  %v7639_v44 = vadd.f32 %v13433_v42, %v7579_v23 }
0x13ea   : > { %v7854_v45 = vsel %vm889_vm6, %v7770_v8, 0.0  ;;  %v7756_v12 = vmul.f32 %v13394_v3, %v7720_v24  ;;  %v7587_v19 = vrot.slane %v7523_v41, %v10395_v18  ;;  %v7803_v43 = vsel %vm889_vm6, %v7753_v52, 0.0 }
0x13eb   : > { %v7769_v58 = vmul.f32 %v13394_v3, %v7733_v27  ;;  %v7736_v11 = vsel %vm7672_vm9, %v7640_v38, %v7704_v14  ;;  %v7719_v0 = vsel %vm7655_vm10, %v7623_v39, %v7687_v59  ;;  %v7690_v60 = vmul.f32 0.2, %v7626_v16 }
0x13ec   : > { %v7703_v47 = vmul.f32 0.2, %v7639_v44  ;;  %v7642_v20 = vadd.f32 %v13414_v6, %v7587_v19  ;;  %v7643_v23 = vadd.f32 %v13433_v42, %v7587_v19  ;;  %vm7658_vm11 = vcmp.gt.f32.partialorder %v7626_v16, 0.0 }
0x13ed   : > { %7807 = vadd.xlane.f32.xlu1 %v7806_v50  ;;  %7846 = vadd.xlane.f32.xlu0 %v7845_v36  ;;  %vm7671_vm7 = vcmp.gt.f32.partialorder %v7639_v44, 0.0  ;;  %v7625_v40 = vadd.f32 %v13433_v42, %v13501_v51  ;;  %v7812_v28 = vsel %vm889_vm6, %v7756_v12, 0.0  ;;  %v7772_v30 = vmul.f32 %v13394_v3, %v7736_v11 }
0x13ee   : > { %v7851_v49 = vsel %vm889_vm6, %v7769_v58, 0.0  ;;  %v7755_v10 = vmul.f32 %v13394_v3, %v7719_v0  ;;  %vm7675_vm8 = vcmp.gt.f32.partialorder %v7643_v23, 0.0  ;;  %v7707_v4 = vmul.f32 0.2, %v7643_v23  ;;  %v14939_v58 = vld [vmem:[#allocation72_spill] sm:$0xff]  ;;  %v14940_v0 = vld [vmem:[#allocation67_spill] sm:$0xff] }
0x13ef   : > { %v7722_v6 = vsel %vm7658_vm11, %v7626_v16, %v7690_v60  ;;  %v7735_v56 = vsel %vm7671_vm7, %v7639_v44, %v7703_v47  ;;  %vm7674_vm9 = vcmp.gt.f32.partialorder %v7642_v20, 0.0  ;;  %v7706_v31 = vmul.f32 0.2, %v7642_v20 }
0x13f0   : > { %v7689_v63 = vmul.f32 0.2, %v7625_v40  ;;  %v7613_v51 = vadd.f32 %v13433_v42, %v13400_v46  ;;  %v7641_v34 = vadd.f32 %v13433_v42, %v7583_v48  ;;  %v7739_v7 = vsel %vm7675_vm8, %v7643_v23, %v7707_v4 }
0x13f1   : > { %7855 = vadd.xlane.f32.xlu1 %v7854_v45  ;;  %7804 = vadd.xlane.f32.xlu0 %v7803_v43  ;;  %vm7657_vm10 = vcmp.gt.f32.partialorder %v7625_v40, 0.0  ;;  %v7775_v15 = vmul.f32 %v13394_v3, %v7739_v7  ;;  %v7860_v55 = vsel %vm889_vm6, %v7772_v30, 0.0  ;;  %v7809_v22 = vsel %vm889_vm6, %v7755_v10, 0.0  ;;  %v14943_v10 = vld [vmem:[#allocation71_spill] sm:$0xff] }
0x13f2   : > { %v7758_v9 = vmul.f32 %v13394_v3, %v7722_v6  ;;  %v7771_v38 = vmul.f32 %v13394_v3, %v7735_v56  ;;  %v7738_v39 = vsel %vm7674_vm9, %v7642_v20, %v7706_v31  ;;  %v7721_v1 = vsel %vm7657_vm10, %v7625_v40, %v7689_v63  ;;  %v14941_v20 = vld [vmem:[#allocation39_spill] sm:$0xff]  ;;  %v14942_v40 = vld [vmem:[#allocation46_spill] sm:$0xff] }
0x13f3   : > { %v7677_v54 = vmul.f32 0.2, %v7613_v51  ;;  %v7705_v46 = vmul.f32 0.2, %v7641_v34  ;;  %v7627_v48 = vadd.f32 %v13433_v42, %v7555_v37  ;;  %vm7645_vm11 = vcmp.gt.f32.partialorder %v7613_v51, 0.0  ;;  %v14944_v6 = vld [vmem:[#allocation74_spill] sm:$0xff] }
0x13f4   : > { %vm7673_vm7 = vcmp.gt.f32.partialorder %v7641_v34, 0.0  ;;  %v7818_v26 = vsel %vm889_vm6, %v7758_v9, 0.0  ;;  %v7857_v2 = vsel %vm889_vm6, %v7771_v38, 0.0  ;;  %v7774_v41 = vmul.f32 %v13394_v3, %v7738_v39  ;;  %v14946_v7 = vld [vmem:[#allocation43_spill] sm:$0xff]  ;;  %v14947_v9 = vld [vmem:[#allocation76_spill] sm:$0xff]  ;;  %v14948_v39 = vld [vmem:[#allocation73_spill] sm:$0xff] }
0x13f5   : > { %7813 = vadd.xlane.f32.xlu1 %v7812_v28  ;;  %7852 = vadd.xlane.f32.xlu0 %v7851_v49  ;;  %v7757_v50 = vmul.f32 %v13394_v3, %v7721_v1  ;;  %v7709_v36 = vsel %vm7645_vm11, %v7613_v51, %v7677_v54  ;;  %v7737_v8 = vsel %vm7673_vm7, %v7641_v34, %v7705_v46  ;;  %v7691_v24 = vmul.f32 0.2, %v7627_v48  ;;  %v14945_v51 = vld [vmem:[#allocation50_spill] sm:$0xff] }
0x13f6   : > { %vm7659_vm8 = vcmp.gt.f32.partialorder %v7627_v48, 0.0  ;;  %v7866_v52 = vsel %vm889_vm6, %v7774_v41, 0.0  ;;  %v7745_v37 = vmul.f32 %v13394_v3, %v7709_v36  ;;  %v7773_v14 = vmul.f32 %v13394_v3, %v7737_v8  ;;  %v14951_v8 = vld [vmem:[#allocation75_spill] sm:$0xff] }
0x13f7   : > { %v7815_v42 = vsel %vm889_vm6, %v7757_v50, 0.0  ;;  %v7723_v59 = vsel %vm7659_vm8, %v7627_v48, %v7691_v24  ;;  %v7869_v12 = vsel %vm889_vm6, %v7775_v15, 0.0  ;;  %v14949_v48 = vld [vmem:[#allocation49_spill] sm:$0xff] }
0x13f8   : > { %v7779_v27 = vsel %vm889_vm6, %v7745_v37, 0.0  ;;  %v7863_v16 = vsel %vm889_vm6, %v7773_v14, 0.0  ;;  %v7759_v44 = vmul.f32 %v13394_v3, %v7723_v59  ;;  %v14953_v59 = vld [vmem:[#allocation81_spill] sm:$0xff] }
0x13f9   : > { %7861 = vadd.xlane.f32.xlu1 %v7860_v55  ;;  %7810 = vadd.xlane.f32.xlu0 %v7809_v22 }
0x13fa   : > { %v7821_v45 = vsel %vm889_vm6, %v7759_v44, 0.0 }
0x13fd   : > { %7819 = vadd.xlane.f32.xlu1 %v7818_v26  ;;  %7858 = vadd.xlane.f32.xlu0 %v7857_v2  ;;  %v14950_v2 = vld [vmem:[#allocation57_spill] sm:$0xff] }
0x1401   : > { %7867 = vadd.xlane.f32.xlu1 %v7866_v52  ;;  %7816 = vadd.xlane.f32.xlu0 %v7815_v42  ;;  %v14952_v52 = vld [vmem:[#allocation78_spill] sm:$0xff] }
0x1405   : > { %7780 = vadd.xlane.f32.xlu1 %v7779_v27  ;;  %7864 = vadd.xlane.f32.xlu0 %v7863_v16  ;;  %v14954_v16 = vld [vmem:[#allocation53_spill] sm:$0xff] }
0x1409   : > { %7822 = vadd.xlane.f32.xlu0 %v7821_v45 }
0x140d   : > { %7870 = vadd.xlane.f32.xlu0 %v7869_v12 }
0x1456   : > { %v7826_v19 = vpop.xlane.xlu1 %7825  ;;  %v7778_v43 = vpop.xlane.xlu0 %7777 }
0x1457   : > { %v13575_v11 = vadd.f32 %v7826_v19, %v14939_v58  ;;  %v13578_v60 = vadd.f32 %v7778_v43, %v14940_v0  ;;  %v14955_v19 = vld [vmem:[#allocation82_spill] sm:$0xff]  ;;  %v14957_v58 = vld [vmem:[#allocation77_spill] sm:$0xff] }
0x1459   : > { %7985 = vperm.xlu0 %9888, %v13575_v11   ;;  %7937 = vperm.xlu1 %9887, %v13578_v60  }
0x145a   : > { %v7832_v3 = vpop.xlane.xlu1 %7831  ;;  %v7784_v47 = vpop.xlane.xlu0 %7783 }
0x145b   : > { %v13583_v23 = vadd.f32 %v7832_v3, %v14941_v20  ;;  %v13586_v28 = vadd.f32 %v7784_v47, %v14942_v40  ;;  %v14958_v20 = vld [vmem:[#allocation19_spill] sm:$0xff] }
0x145d   : > { %7991 = vperm.xlu0 %9888, %v13583_v23   ;;  %7943 = vperm.xlu1 %9887, %v13586_v28  }
0x145e   : > { %v7790_v30 = vpop.xlane.xlu1 %7789  ;;  %v7787_v49 = vpop.xlane.xlu0 %7786 }
0x145f   : > { %v13591_v4 = vadd.f32 %v7790_v30, %v14943_v10  ;;  %v13594_v56 = vadd.f32 %v7787_v49, %v14944_v6  ;;  %v14960_v30 = vld [vmem:[#allocation83_spill] sm:$0xff] }
0x1461   : > { %7949 = vperm.xlu0 %9888, %v13591_v4   ;;  %7946 = vperm.xlu1 %9887, %v13594_v56  }
0x1462   : > { %v7838_v31 = vpop.xlane.xlu1 %7837  ;;  %v7829_v63 = vpop.xlane.xlu0 %7828 }
0x1463   : > { %v13599_v34 = vadd.f32 %v7838_v31, %v14945_v51  ;;  %v13602_v15 = vadd.f32 %v7829_v63, %v14946_v7  ;;  %v14961_v31 = vld [vmem:[#allocation23_spill] sm:$0xff]  ;;  %v14963_v51 = vld [vmem:[#allocation85_spill] sm:$0xff] }
0x1465   : > { %7997 = vperm.xlu0 %9888, %v13599_v34   ;;  %7988 = vperm.xlu1 %9887, %v13602_v15  }
0x1466   : > { %v7796_v55 = vpop.xlane.xlu1 %7795  ;;  %v7835_v22 = vpop.xlane.xlu0 %7834 }
0x1467   : > { %v13607_v38 = vadd.f32 %v7796_v55, %v14947_v9  ;;  %v13610_v1 = vadd.f32 %v7835_v22, %v14948_v39  ;;  %v14964_v9 = vld [vmem:[#allocation26_spill] sm:$0xff] }
0x1469   : > { %7955 = vperm.xlu0 %9888, %v13607_v38   ;;  %7994 = vperm.xlu1 %9887, %v13610_v1  }
0x146a   : > { %v7844_v54 = vpop.xlane.xlu1 %7843  ;;  %v7793_v46 = vpop.xlane.xlu0 %7792 }
0x146b   : > { %v13615_v26 = vadd.f32 %v7844_v54, %v14949_v48  ;;  %v13618_v41 = vadd.f32 %v7793_v46, %v14950_v2  ;;  %v14966_v54 = vld [vmem:[#allocation14_spill] sm:$0xff] }
0x146d   : > { %8003 = vperm.xlu0 %9888, %v13615_v26   ;;  %7952 = vperm.xlu1 %9887, %v13618_v41  }
0x146e   : > { %v7802_v50 = vpop.xlane.xlu1 %7801  ;;  %v7841_v36 = vpop.xlane.xlu0 %7840 }
0x146f   : > { %v13623_v24 = vadd.f32 %v7802_v50, %v14951_v8  ;;  %v13626_v42 = vadd.f32 %v7841_v36, %v14952_v52  ;;  %v14968_v50 = vld [vmem:[#allocation17_spill] sm:$0xff] }
0x1471   : > { %7961 = vperm.xlu0 %9888, %v13623_v24   ;;  %8000 = vperm.xlu1 %9887, %v13626_v42  }
0x1472   : > { %v7850_v37 = vpop.xlane.xlu1 %7849  ;;  %v7799_v14 = vpop.xlane.xlu0 %7798 }
0x1473   : > { %v13631_v27 = vadd.f32 %v7850_v37, %v14953_v59  ;;  %v13634_v44 = vadd.f32 %v7799_v14, %v14954_v16  ;;  %v14970_v37 = vld [vmem:[#allocation16_spill] sm:$0xff] }
0x1475   : > { %8009 = vperm.xlu0 %9888, %v13631_v27   ;;  %7958 = vperm.xlu1 %9887, %v13634_v44  }
0x1476   : > { %v7808_v45 = vpop.xlane.xlu1 %7807  ;;  %v7847_v12 = vpop.xlane.xlu0 %7846 }
0x1477   : > { %v13639_v43 = vadd.f32 %v7808_v45, %v14955_v19  ;;  %v13642_v0 = vadd.f32 %v7847_v12, %v14957_v58  ;;  %v14972_v45 = vld [vmem:[#allocation42_spill] sm:$0xff] }
0x1478   : > { %v14973_v19 = vld [vmem:[#allocation18_spill] sm:$0xff] }
0x1479   : > { %14956 = vst [vmem:[#allocation88_spill] sm:$0xff] %v13639_v43  ;;  %7967 = vperm.xlu0 %9888, %v13639_v43   ;;  %8006 = vperm.xlu1 %9887, %v13642_v0  }
0x147a   : > { %v7856_v3 = vpop.xlane.xlu1 %7855  ;;  %v7805_v47 = vpop.xlane.xlu0 %7804 }
0x147b   : > { %v13647_v40 = vadd.f32 %v7856_v3, %v14958_v20  ;;  %v13650_v49 = vadd.f32 %v7805_v47, %v14960_v30  ;;  %v14975_v47 = vld [vmem:[#allocation30_spill] sm:$0xff]  ;;  %v14977_v30 = vld [vmem:[#allocation20_spill] sm:$0xff] }
0x147d   : > { %14959 = vst [vmem:[#allocation89_spill] sm:$0xff] %v13647_v40  ;;  %8015 = vperm.xlu0 %9888, %v13647_v40   ;;  %7964 = vperm.xlu1 %9887, %v13650_v49  }
0x147e   : > { %v7814_v10 = vpop.xlane.xlu1 %7813  ;;  %v7853_v6 = vpop.xlane.xlu0 %7852 }
0x147f   : > { %v13655_v63 = vadd.f32 %v7814_v10, %v14961_v31  ;;  %v13658_v7 = vadd.f32 %v7853_v6, %v14963_v51  ;;  %v14979_v31 = vld [vmem:[#allocation33_spill] sm:$0xff] }
0x1481   : > { %14962 = vst [vmem:[#allocation90_spill] sm:$0xff] %v13655_v63  ;;  %7973 = vperm.xlu0 %9888, %v13655_v63   ;;  %8012 = vperm.xlu1 %9887, %v13658_v7  }
0x1482   : > { %v7862_v55 = vpop.xlane.xlu1 %7861  ;;  %v7811_v22 = vpop.xlane.xlu0 %7810 }
0x1483   : > { %v13663_v39 = vadd.f32 %v7862_v55, %v14964_v9  ;;  %v13666_v46 = vadd.f32 %v7811_v22, %v14966_v54  ;;  %v14981_v55 = vld [vmem:[#allocation24_spill] sm:$0xff] }
0x1485   : > { %14965 = vst [vmem:[#allocation91_spill] sm:$0xff] %v13663_v39  ;;  %14967 = vst [vmem:[#allocation13_spill] sm:$0xff] %v13666_v46  ;;  %8021 = vperm.xlu0 %9888, %v13663_v39   ;;  %7970 = vperm.xlu1 %9887, %v13666_v46  }
0x1486   : > { %v7820_v48 = vpop.xlane.xlu1 %7819  ;;  %v7859_v2 = vpop.xlane.xlu0 %7858 }
0x1487   : > { %v13671_v36 = vadd.f32 %v7859_v2, %v14968_v50  ;;  %v13687_v20 = vadd.f32 %v7820_v48, %v14975_v47 }
0x1489   : > { %14969 = vst [vmem:[#allocation12_spill] sm:$0xff] %v13671_v36  ;;  %8018 = vperm.xlu1 %9887, %v13671_v36   ;;  %14976 = vst [vmem:[#allocation25_spill] sm:$0xff] %v13687_v20 }
0x148a   : > { %v7868_v8 = vpop.xlane.xlu1 %7867  ;;  %v7817_v52 = vpop.xlane.xlu0 %7816 }
0x148b   : > { %v13675_v14 = vadd.f32 %v7817_v52, %v14970_v37  ;;  %v13695_v51 = vadd.f32 %v7868_v8, %v14979_v31 }
0x148d   : > { %14971 = vst [vmem:[#allocation28_spill] sm:$0xff] %v13675_v14  ;;  %7976 = vperm.xlu1 %9887, %v13675_v14   ;;  %14980 = vst [vmem:[#allocation65_spill] sm:$0xff] %v13695_v51 }
0x148e   : > { %v7781_v59 = vpop.xlane.xlu1 %7780  ;;  %v7865_v16 = vpop.xlane.xlu0 %7864 }
0x148f   : > { %v13679_v12 = vadd.f32 %v7781_v59, %v14972_v45  ;;  %v13682_v58 = vadd.f32 %v7865_v16, %v14973_v19 }
0x1491   : > { %14974 = vst [vmem:[#allocation22_spill] sm:$0xff] %v13682_v58  ;;  %7940 = vperm.xlu0 %9888, %v13679_v12   ;;  %8024 = vperm.xlu1 %9887, %v13682_v58  }
0x1492   : > { %v7823_v3 = vpop.xlane.xlu0 %7822 }
0x1493   : > { %v13690_v10 = vadd.f32 %v7823_v3, %v14977_v30 }
0x1495   : > { %14978 = vst [vmem:[#allocation21_spill] sm:$0xff] %v13690_v10  ;;  %7979 = vperm.xlu0 %9888, %v13687_v20   ;;  %7982 = vperm.xlu1 %9887, %v13690_v10  }
0x1496   : > { %v7871_v6 = vpop.xlane.xlu0 %7870 }
0x1497   : > { %v13698_v22 = vadd.f32 %v7871_v6, %v14981_v55 }
0x1499   : > { %14982 = vst [vmem:[#allocation61_spill] sm:$0xff] %v13698_v22  ;;  %8027 = vperm.xlu0 %9888, %v13695_v51   ;;  %8030 = vperm.xlu1 %9887, %v13698_v22  }
0x14d4   : > { %v7938_v9 = vpop.permute.xlu1 %7937  ;;  %v7986_v54 = vpop.permute.xlu0 %7985 }
0x14d5   : > { %v8107_v21 = vrot.slane %v7986_v54, %v14888_v53 }
0x14d8   : > { %v7944_v48 = vpop.permute.xlu1 %7943  ;;  %v7992_v2 = vpop.permute.xlu0 %7991 }
0x14d9   : > { %v8116_v58 = vrot.slane %v7992_v2, %v14888_v53  ;;  %v8044_v46 = vrot.slane %v7944_v48, %v14888_v53 }
0x14dc   : > { %v7947_v50 = vpop.permute.xlu1 %7946  ;;  %v7950_v52 = vpop.permute.xlu0 %7949 }
0x14dd   : > { %v8048_v39 = vrot.slane %v7947_v50, %v14889_v61 }
0x14e0   : > { %v7989_v37 = vpop.permute.xlu1 %7988  ;;  %v7998_v59 = vpop.permute.xlu0 %7997 }
0x14e1   : > { %v8111_v29 = vrot.slane %v7989_v37, %v14889_v61  ;;  %v8125_v14 = vrot.slane %v7998_v59, %v14888_v53  ;;  %v8035_v37 = vrot.slane %v7938_v9, %v14888_v53  ;;  %v8049_v59 = vsel %vm2176_vm12, %v8048_v39, %v8044_v46 }
0x14e4   : > { %v7995_v16 = vpop.permute.xlu1 %7994  ;;  %v7956_v45 = vpop.permute.xlu0 %7955 }
0x14e5   : > { %v8120_v10 = vrot.slane %v7995_v16, %v14889_v61  ;;  %v8062_v48 = vrot.slane %v7956_v45, %v14888_v53 }
0x14e7   : > { %v8121_v16 = vsel %vm2176_vm12, %v8120_v10, %v8116_v58 }
0x14e8   : > { %v7953_v19 = vpop.permute.xlu1 %7952  ;;  %v8004_v8 = vpop.permute.xlu0 %8003 }
0x14e9   : > { %v8057_v63 = vrot.slane %v7953_v19, %v14889_v61  ;;  %v8112_v19 = vsel %vm2176_vm12, %v8111_v29, %v8107_v21  ;;  %v8134_v10 = vrot.slane %v8004_v8, %v14888_v53 }
0x14ea   : > { %v8183_v54 = vsel %vm2313_vm13, %v8121_v16, %v8112_v19 }
0x14ec   : > { %v8001_v3 = vpop.permute.xlu1 %8000  ;;  %v7962_v47 = vpop.permute.xlu0 %7961 }
0x14ed   : > { %v8129_v20 = vrot.slane %v8001_v3, %v14889_v61  ;;  %v8053_v3 = vrot.slane %v7950_v52, %v14888_v53  ;;  %v8071_v9 = vrot.slane %v7962_v47, %v14888_v53 }
0x14ef   : > { %v8130_v2 = vsel %vm2176_vm12, %v8129_v20, %v8125_v14  ;;  %v8058_v58 = vsel %vm2176_vm12, %v8057_v63, %v8053_v3 }
0x14f0   : > { %v7959_v30 = vpop.permute.xlu1 %7958  ;;  %v8010_v6 = vpop.permute.xlu0 %8009  ;;  %v8184_v20 = vsel %vm2315_vm14, %v8130_v2, %v8183_v54 }
0x14f1   : > { %v8066_v50 = vrot.slane %v7959_v30, %v14889_v61  ;;  %v8143_v46 = vrot.slane %v8010_v6, %v14888_v53 }
0x14f3   : > { %v8067_v29 = vsel %vm2176_vm12, %v8066_v50, %v8062_v48 }
0x14f4   : > { %v8007_v31 = vpop.permute.xlu1 %8006  ;;  %v7968_v55 = vpop.permute.xlu0 %7967 }
0x14f5   : > { %v8138_v43 = vrot.slane %v8007_v31, %v14889_v61  ;;  %v8080_v45 = vrot.slane %v7968_v55, %v14888_v53 }
0x14f7   : > { %v8139_v8 = vsel %vm2176_vm12, %v8138_v43, %v8134_v10 }
0x14f8   : > { %v7965_v35 = vpop.permute.xlu1 %7964  ;;  %v8016_v25 = vpop.permute.xlu0 %8015 }
0x14f9   : > { %v8075_v63 = vrot.slane %v7965_v35, %v14889_v61 }
0x14fb   : > { %v8076_v50 = vsel %vm2176_vm12, %v8075_v63, %v8071_v9 }
0x14fc   : > { %v8013_v5 = vpop.permute.xlu1 %8012  ;;  %v7974_v22 = vpop.permute.xlu0 %7973 }
0x14fd   : > { %v8147_v39 = vrot.slane %v8013_v5, %v14889_v61  ;;  %v8152_v5 = vrot.slane %v8016_v25, %v14888_v53  ;;  %v8089_v25 = vrot.slane %v7974_v22, %v14888_v53 }
0x14ff   : > { %v8148_v35 = vsel %vm2176_vm12, %v8147_v39, %v8143_v46 }
0x1500   : > { %v7971_v17 = vpop.permute.xlu1 %7970  ;;  %v8022_v36 = vpop.permute.xlu0 %8021 }
0x1501   : > { %v8084_v30 = vrot.slane %v7971_v17, %v14889_v61 }
0x1503   : > { %v8085_v19 = vsel %vm2176_vm12, %v8084_v30, %v8080_v45 }
0x1504   : > { %v8019_v51 = vpop.permute.xlu1 %8018 }
0x1505   : > { %v8156_v31 = vrot.slane %v8019_v51, %v14889_v61 }
0x1507   : > { %v8157_v54 = vsel %vm2176_vm12, %v8156_v31, %v8152_v5 }
0x1508   : > { %v7977_v40 = vpop.permute.xlu1 %7976 }
0x1509   : > { %v8093_v16 = vrot.slane %v7977_v40, %v14889_v61  ;;  %v8161_v40 = vrot.slane %v8022_v36, %v14888_v53 }
0x150b   : > { %v8094_v10 = vsel %vm2176_vm12, %v8093_v16, %v8089_v25 }
0x150c   : > { %v8025_v52 = vpop.permute.xlu1 %8024  ;;  %v7941_v14 = vpop.permute.xlu0 %7940 }
0x150d   : > { %v8039_v21 = vrot.slane %v7941_v14, %v14889_v61  ;;  %v8165_v3 = vrot.slane %v8025_v52, %v14889_v61 }
0x150f   : > { %v8040_v47 = vsel %vm2176_vm12, %v8039_v21, %v8035_v37  ;;  %v8166_v52 = vsel %vm2176_vm12, %v8165_v3, %v8161_v40 }
0x1510   : > { %v8176_v6 = vsel %vm2313_vm13, %v8049_v59, %v8040_v47  ;;  %v7983_v2 = vpop.permute.xlu1 %7982  ;;  %v7980_v55 = vpop.permute.xlu0 %7979  ;;  %v8185_v59 = vsel %vm2317_vm15, %v8139_v8, %v8184_v20 }
0x1511   : > { %v8177_v43 = vsel %vm2315_vm14, %v8058_v58, %v8176_v6  ;;  %v8102_v17 = vrot.slane %v7983_v2, %v14889_v61  ;;  %v8098_v51 = vrot.slane %v7980_v55, %v14888_v53  ;;  %v8186_v58 = vsel %vm2319_vm0, %v8148_v35, %v8185_v59 }
0x1512   : > { %v8178_v37 = vsel %vm2317_vm15, %v8067_v29, %v8177_v43  ;;  %v8187_v46 = vsel %vm2321_vm2, %v8157_v54, %v8186_v58 }
0x1513   : > { %v8179_v48 = vsel %vm2319_vm0, %v8076_v50, %v8178_v37  ;;  %v8103_v39 = vsel %vm2176_vm12, %v8102_v17, %v8098_v51  ;;  %v8188_v8 = vsel %vm2323_vm4, %v8166_v52, %v8187_v46 }
0x1514   : > { %v8031_v14 = vpop.permute.xlu1 %8030  ;;  %v8028_v22 = vpop.permute.xlu0 %8027  ;;  %v8180_v36 = vsel %vm2321_vm2, %v8085_v19, %v8179_v48 }
0x1515   : > { %v8174_v9 = vrot.slane %v8031_v14, %v14889_v61  ;;  %v8170_v20 = vrot.slane %v8028_v22, %v14888_v53  ;;  %v8181_v21 = vsel %vm2323_vm4, %v8094_v10, %v8180_v36 }
0x1516   : > { %v8182_v29 = vsel %vm2325_vm3, %v8103_v39, %v8181_v21 }
0x1517   : > { %v8192_v45 = vsel %vm2336_vm5, %v8182_v29, -inf  ;;  %v8175_v63 = vsel %vm2176_vm12, %v8174_v9, %v8170_v20 }
0x1518   : > { %8193 = vmax.xlane.f32.xlu0 %v8192_v45  ;;  %v8189_v30 = vsel %vm2325_vm3, %v8175_v63, %v8188_v8 }
0x1519   : > { %v8195_v31 = vsel %vm2336_vm5, %v8189_v30, -inf }
0x151a   : > { %8196 = vmax.xlane.f32.xlu1 %v8195_v31 }
0x15a1   : > { %v13766_v47 = vpop.xlane.xlu0 %8193 }
0x15a2   : > { %v8203_v5 = vrot.slane %v13766_v47, %v10395_v18  ;;  %v8207_v16 = vrot.slane %v13766_v47, %v14890_v57  ;;  %v8219_v46 = vrot.slane %v13766_v47, %v14893_v62 }
0x15a3   : > { %v13776_v50 = vpop.xlane.xlu1 %8196 }
0x15a4   : > { %v8280_v3 = vsub.f32 %v13578_v60, %v8203_v5  ;;  %v8281_v6 = vsub.f32 %v13679_v12, %v8203_v5  ;;  %v8282_v2 = vsub.f32 %v13586_v28, %v8207_v16  ;;  %v8283_v55 = vsub.f32 %v13594_v56, %v8207_v16 }
0x15a5   : > { %v8235_v25 = vrot.slane %v13776_v50, %v10395_v18  ;;  %v8239_v60 = vrot.slane %v13776_v50, %v14890_v57  ;;  %v8211_v12 = vrot.slane %v13766_v47, %v14891_v13  ;;  %v8247_v20 = vrot.slane %v13776_v50, %v14892_v32 }
0x15a6   : > { %v8312_v35 = vmul.f32 1.442695, %v8280_v3  ;;  %v8314_v43 = vmul.f32 1.442695, %v8281_v6  ;;  %v8316_v17 = vmul.f32 1.442695, %v8282_v2  ;;  %v8251_v30 = vrot.slane %v13776_v50, %v14893_v62 }
0x15a7   : > { %v8318_v51 = vmul.f32 1.442695, %v8283_v55  ;;  %v8296_v28 = vsub.f32 %v13575_v11, %v8235_v25  ;;  %v8297_v56 = vsub.f32 %v13602_v15, %v8235_v25  ;;  %v8298_v40 = vsub.f32 %v13583_v23, %v8239_v60 }
0x15a8   : > { %10123 = vpow2.f32 %v8312_v35  ;;  %v8299_v19 = vsub.f32 %v13610_v1, %v8239_v60  ;;  %v8284_v11 = vsub.f32 %v13591_v4, %v8211_v12  ;;  %v8243_v15 = vrot.slane %v13776_v50, %v14891_v13  ;;  %v14984_v60 = vld [vmem:[#allocation13_spill] sm:$0xff] }
0x15a9   : > { %10125 = vpow2.f32 %v8314_v43  ;;  %v8344_v37 = vmul.f32 1.442695, %v8296_v28  ;;  %v8346_v54 = vmul.f32 1.442695, %v8297_v56  ;;  %v8348_v58 = vmul.f32 1.442695, %v8298_v40 }
0x15aa   : > { %10127 = vpow2.f32 %v8316_v17  ;;  %v8285_v10 = vsub.f32 %v13618_v41, %v8211_v12  ;;  %v8350_v1 = vmul.f32 1.442695, %v8299_v19  ;;  %v8215_v4 = vrot.slane %v13766_v47, %v14892_v32  ;;  %v14983_v43 = vld [vmem:[#allocation88_spill] sm:$0xff]  ;;  %v14985_v12 = vld [vmem:[#allocation9_spill] sm:$0xff] }
0x15ab   : > { %10129 = vpow2.f32 %v8318_v51  ;;  %v8320_v14 = vmul.f32 1.442695, %v8284_v11  ;;  %v8300_v22 = vsub.f32 %v13599_v34, %v8243_v15  ;;  %v8301_v9 = vsub.f32 %v13626_v42, %v8243_v15  ;;  %v14986_v19 = vld [vmem:[#allocation89_spill] sm:$0xff] }
0x15ac   : > { %10131 = vpow2.f32 %v8344_v37  ;;  %v8322_v36 = vmul.f32 1.442695, %v8285_v10  ;;  %v8286_v41 = vsub.f32 %v13607_v38, %v8215_v4  ;;  %v8287_v21 = vsub.f32 %v13634_v44, %v8215_v4  ;;  %v14988_v4 = vld [vmem:[#allocation90_spill] sm:$0xff] }
0x15ad   : > { %10133 = vpow2.f32 %v8346_v54  ;;  %v8352_v39 = vmul.f32 1.442695, %v8300_v22  ;;  %v8354_v29 = vmul.f32 1.442695, %v8301_v9  ;;  %v8302_v45 = vsub.f32 %v13615_v26, %v8247_v20 }
0x15ae   : > { %10135 = vpow2.f32 %v8348_v58  ;;  %v8324_v34 = vmul.f32 1.442695, %v8286_v41  ;;  %v8326_v63 = vmul.f32 1.442695, %v8287_v21  ;;  %v8303_v38 = vsub.f32 %v13642_v0, %v8247_v20  ;;  %v14987_v58 = vld [vmem:[#allocation12_spill] sm:$0xff] }
0x15af   : > { %10137 = vpow2.f32 %v8350_v1  ;;  %v8288_v44 = vsub.f32 %v13623_v24, %v8219_v46  ;;  %v8356_v26 = vmul.f32 1.442695, %v8302_v45  ;;  %v8289_v5 = vsub.f32 %v13650_v49, %v8219_v46  ;;  %v14989_v41 = vld [vmem:[#allocation28_spill] sm:$0xff]  ;;  %v14991_v45 = vld [vmem:[#allocation91_spill] sm:$0xff] }
0x15b0   : > { %10139 = vpow2.f32 %v8320_v14  ;;  %v8358_v0 = vmul.f32 1.442695, %v8303_v38  ;;  %v8223_v24 = vrot.slane %v13766_v47, %v14894_v33  ;;  %v8304_v6 = vsub.f32 %v13631_v27, %v8251_v30 }
0x15b1   : > { %10141 = vpow2.f32 %v8322_v36  ;;  %v8328_v3 = vmul.f32 1.442695, %v8288_v44  ;;  %v8330_v55 = vmul.f32 1.442695, %v8289_v5  ;;  %v8305_v49 = vsub.f32 %v13658_v7, %v8251_v30  ;;  %v14992_v30 = vld [vmem:[#allocation22_spill] sm:$0xff] }
0x15b2   : > { %10143 = vpow2.f32 %v8352_v39  ;;  %v8290_v17 = vsub.f32 %v14983_v43, %v8223_v24  ;;  %v8255_v51 = vrot.slane %v13776_v50, %v14894_v33  ;;  %v8360_v27 = vmul.f32 1.442695, %v8304_v6 }
0x15b3   : > { %10145 = vpow2.f32 %v8354_v29  ;;  %v8291_v28 = vsub.f32 %v14984_v60, %v8223_v24  ;;  %v8362_v7 = vmul.f32 1.442695, %v8305_v49  ;;  %v8227_v40 = vrot.slane %v13766_v47, %v14985_v12  ;;  %v14990_v29 = vld [vmem:[#allocation10_spill] sm:$0xff] }
0x15b4   : > { %10147 = vpow2.f32 %v8324_v34  ;;  %v8332_v37 = vmul.f32 1.442695, %v8290_v17  ;;  %v8306_v54 = vsub.f32 %v14986_v19, %v8255_v51  ;;  %v8307_v10 = vsub.f32 %v14987_v58, %v8255_v51 }
0x15b5   : > { %v13787_v59 = vpop.eup %10123  ;;  %10149 = vpow2.f32 %v8326_v63  ;;  %v8334_v15 = vmul.f32 1.442695, %v8291_v28  ;;  %v8292_v14 = vsub.f32 %v14988_v4, %v8227_v40  ;;  %v8259_v22 = vrot.slane %v13776_v50, %v14985_v12 }
0x15b6   : > { %v13790_v48 = vpop.eup %10125  ;;  %8409 = vperm.xlu0 %9888, %v13787_v59   ;;  %10151 = vpow2.f32 %v8356_v26  ;;  %v8364_v36 = vmul.f32 1.442695, %v8306_v54  ;;  %v8293_v20 = vsub.f32 %v14989_v41, %v8227_v40  ;;  %v8366_v39 = vmul.f32 1.442695, %v8307_v10 }
0x15b7   : > { %8412 = vperm.xlu1 %9887, %v13790_v48   ;;  %v13797_v23 = vpop.eup %10127  ;;  %10153 = vpow2.f32 %v8358_v0  ;;  %v8231_v46 = vrot.slane %v13766_v47, %v14990_v29  ;;  %v8336_v34 = vmul.f32 1.442695, %v8292_v14  ;;  %v8308_v63 = vsub.f32 %v14991_v45, %v8259_v22  ;;  %v14993_v0 = vld [vmem:[#allocation25_spill] sm:$0xff] }
0x15b8   : > { %v13800_v52 = vpop.eup %10129  ;;  %10155 = vpow2.f32 %v8328_v3  ;;  %v8338_v44 = vmul.f32 1.442695, %v8293_v20  ;;  %v8309_v26 = vsub.f32 %v14992_v30, %v8259_v22  ;;  %v8263_v47 = vrot.slane %v13776_v50, %v14990_v29 }
0x15b9   : > { %v13815_v42 = vpop.eup %10131  ;;  %10157 = vpow2.f32 %v8330_v55  ;;  %v8294_v24 = vsub.f32 %v14993_v0, %v8231_v46  ;;  %v8368_v3 = vmul.f32 1.442695, %v8308_v63  ;;  %v14994_v55 = vld [vmem:[#allocation21_spill] sm:$0xff] }
0x15ba   : > { %8415 = vperm.xlu0 %9888, %v13797_v23   ;;  %v13818_v8 = vpop.eup %10133  ;;  %10159 = vpow2.f32 %v8360_v27  ;;  %v8295_v49 = vsub.f32 %v14994_v55, %v8231_v46  ;;  %v8370_v43 = vmul.f32 1.442695, %v8309_v26  ;;  %v14995_v27 = vld [vmem:[#allocation65_spill] sm:$0xff] }
0x15bb   : > { %8418 = vperm.xlu1 %9887, %v13800_v52   ;;  %v13825_v31 = vpop.eup %10135  ;;  %10161 = vpow2.f32 %v8362_v7  ;;  %v8340_v51 = vmul.f32 1.442695, %v8294_v24  ;;  %v8310_v60 = vsub.f32 %v14995_v27, %v8263_v47  ;;  %v14997_v7 = vld [vmem:[#allocation61_spill] sm:$0xff] }
0x15bc   : > { %v13828_v16 = vpop.eup %10137  ;;  %10163 = vpow2.f32 %v8332_v37  ;;  %v8342_v50 = vmul.f32 1.442695, %v8295_v49  ;;  %v8311_v40 = vsub.f32 %v14997_v7, %v8263_v47 }
0x15bd   : > { %v13835_v2 = vpop.eup %10139  ;;  %10165 = vpow2.f32 %v8334_v15  ;;  %v8372_v19 = vmul.f32 1.442695, %v8310_v60 }
0x15be   : > { %8457 = vperm.xlu0 %9888, %v13815_v42   ;;  %v13838_v35 = vpop.eup %10141  ;;  %10167 = vpow2.f32 %v8364_v36  ;;  %v8374_v15 = vmul.f32 1.442695, %v8311_v40 }
0x15bf   : > { %8460 = vperm.xlu1 %9887, %v13818_v8   ;;  %v13845_v25 = vpop.eup %10143  ;;  %10169 = vpow2.f32 %v8366_v39 }
0x15c0   : > { %v13848_v56 = vpop.eup %10145  ;;  %10171 = vpow2.f32 %v8336_v34 }
0x15c1   : > { %v13855_v11 = vpop.eup %10147  ;;  %10173 = vpow2.f32 %v8338_v44 }
0x15c2   : > { %8463 = vperm.xlu0 %9888, %v13825_v31   ;;  %v13858_v1 = vpop.eup %10149  ;;  %10175 = vpow2.f32 %v8368_v3 }
0x15c3   : > { %8466 = vperm.xlu1 %9887, %v13828_v16   ;;  %v13865_v9 = vpop.eup %10151  ;;  %10177 = vpow2.f32 %v8370_v43 }
0x15c4   : > { %v13868_v21 = vpop.eup %10153  ;;  %10179 = vpow2.f32 %v8340_v51 }
0x15c5   : > { %v13875_v38 = vpop.eup %10155  ;;  %10181 = vpow2.f32 %v8342_v50 }
0x15c6   : > { %8421 = vperm.xlu0 %9888, %v13835_v2   ;;  %v13878_v5 = vpop.eup %10157  ;;  %10183 = vpow2.f32 %v8372_v19 }
0x15c7   : > { %8424 = vperm.xlu1 %9887, %v13838_v35   ;;  %v13885_v6 = vpop.eup %10159  ;;  %10185 = vpow2.f32 %v8374_v15 }
0x15c8   : > { %v13888_v17 = vpop.eup %10161 }
0x15c9   : > { %v13893_v28 = vpop.eup %10163 }
0x15ca   : > { %8469 = vperm.xlu0 %9888, %v13845_v25   ;;  %14996 = vst [vmem:[#allocation64_spill] sm:$0xff] %v13893_v28  ;;  %v13896_v37 = vpop.eup %10165 }
0x15cb   : > { %8472 = vperm.xlu1 %9887, %v13848_v56   ;;  %14998 = vst [vmem:[#allocation58_spill] sm:$0xff] %v13896_v37  ;;  %v13900_v54 = vpop.eup %10167 }
0x15cc   : > { %14999 = vst [vmem:[#allocation36_spill] sm:$0xff] %v13900_v54  ;;  %v13902_v58 = vpop.eup %10169 }
0x15cd   : > { %15000 = vst [vmem:[#allocation32_spill] sm:$0xff] %v13902_v58  ;;  %v13906_v10 = vpop.eup %10171 }
0x15ce   : > { %8427 = vperm.xlu0 %9888, %v13855_v11   ;;  %15001 = vst [vmem:[#allocation70_spill] sm:$0xff] %v13906_v10  ;;  %v13908_v4 = vpop.eup %10173 }
0x15cf   : > { %8430 = vperm.xlu1 %9887, %v13858_v1   ;;  %15002 = vst [vmem:[#allocation79_spill] sm:$0xff] %v13908_v4  ;;  %v13912_v14 = vpop.eup %10175 }
0x15d0   : > { %15003 = vst [vmem:[#allocation80_spill] sm:$0xff] %v13912_v14  ;;  %v13914_v22 = vpop.eup %10177 }
0x15d1   : > { %15004 = vst [vmem:[#allocation2_spill] sm:$0xff] %v13914_v22  ;;  %v13918_v36 = vpop.eup %10179 }
0x15d2   : > { %8475 = vperm.xlu0 %9888, %v13865_v9   ;;  %15005 = vst [vmem:[#allocation86_spill] sm:$0xff] %v13918_v36  ;;  %v13920_v41 = vpop.eup %10181 }
0x15d3   : > { %8478 = vperm.xlu1 %9887, %v13868_v21   ;;  %15006 = vst [vmem:[#allocation3_spill] sm:$0xff] %v13920_v41  ;;  %v13924_v20 = vpop.eup %10183 }
0x15d4   : > { %15007 = vst [vmem:[#allocation4_spill] sm:$0xff] %v13924_v20  ;;  %v13926_v39 = vpop.eup %10185 }
0x15d5   : > { %15008 = vst [vmem:[#allocation5_spill] sm:$0xff] %v13926_v39 }
0x15d6   : > { %8433 = vperm.xlu0 %9888, %v13875_v38  }
0x15d7   : > { %8436 = vperm.xlu1 %9887, %v13878_v5  }
0x15da   : > { %8481 = vperm.xlu0 %9888, %v13885_v6  }
0x15db   : > { %8484 = vperm.xlu1 %9887, %v13888_v17  }
0x15de   : > { %8439 = vperm.xlu0 %9888, %v13893_v28  }
0x15df   : > { %8442 = vperm.xlu1 %9887, %v13896_v37  }
0x15e2   : > { %8487 = vperm.xlu0 %9888, %v13900_v54  }
0x15e3   : > { %8490 = vperm.xlu1 %9887, %v13902_v58  }
0x15e6   : > { %8445 = vperm.xlu0 %9888, %v13906_v10  }
0x15e7   : > { %8448 = vperm.xlu1 %9887, %v13908_v4  }
0x15ea   : > { %8493 = vperm.xlu0 %9888, %v13912_v14  }
0x15eb   : > { %8496 = vperm.xlu1 %9887, %v13914_v22  }
0x15ee   : > { %8451 = vperm.xlu0 %9888, %v13918_v36  }
0x15ef   : > { %8454 = vperm.xlu1 %9887, %v13920_v41  }
0x15f2   : > { %8499 = vperm.xlu0 %9888, %v13924_v20  }
0x15f3   : > { %8502 = vperm.xlu1 %9887, %v13926_v39  }
0x1631   : > { %v8410_v46 = vpop.permute.xlu0 %8409 }
0x1632   : > { %v8413_v34 = vpop.permute.xlu1 %8412  ;;  %v8507_v14 = vrot.slane %v8410_v46, %v14888_v53 }
0x1633   : > { %v8511_v22 = vrot.slane %v8413_v34, %v14889_v61 }
0x1635   : > { %v8416_v45 = vpop.permute.xlu0 %8415 }
0x1636   : > { %v8419_v63 = vpop.permute.xlu1 %8418  ;;  %v8516_v41 = vrot.slane %v8416_v45, %v14888_v53 }
0x1637   : > { %v8520_v20 = vrot.slane %v8419_v63, %v14889_v61  ;;  %v8512_v63 = vsel %vm2176_vm12, %v8511_v22, %v8507_v14 }
0x1639   : > { %v13930_v44 = vpop.permute.xlu0 %8457  ;;  %v8521_v58 = vsel %vm2176_vm12, %v8520_v20, %v8516_v41 }
0x163a   : > { %v13932_v30 = vpop.permute.xlu1 %8460  ;;  %v8648_v20 = vsel %vm2313_vm13, %v8521_v58, %v8512_v63 }
0x163d   : > { %v8464_v26 = vpop.permute.xlu0 %8463 }
0x163e   : > { %v8467_v0 = vpop.permute.xlu1 %8466  ;;  %v8588_v34 = vrot.slane %v8464_v26, %v14888_v53 }
0x163f   : > { %v8592_v45 = vrot.slane %v8467_v0, %v14889_v61 }
0x1641   : > { %v8422_v24 = vpop.permute.xlu0 %8421  ;;  %v8593_v58 = vsel %vm2176_vm12, %v8592_v45, %v8588_v34 }
0x1642   : > { %v8425_v47 = vpop.permute.xlu1 %8424  ;;  %v8525_v4 = vrot.slane %v8422_v24, %v14888_v53 }
0x1643   : > { %v8529_v29 = vrot.slane %v8425_v47, %v14889_v61 }
0x1645   : > { %v8470_v3 = vpop.permute.xlu0 %8469  ;;  %v8530_v46 = vsel %vm2176_vm12, %v8529_v29, %v8525_v4  ;;  %v8583_v29 = vrot.slane %v13932_v30, %v14889_v61 }
0x1646   : > { %v8473_v55 = vpop.permute.xlu1 %8472  ;;  %v8597_v24 = vrot.slane %v8470_v3, %v14888_v53 }
0x1647   : > { %v8601_v47 = vrot.slane %v8473_v55, %v14889_v61 }
0x1649   : > { %v8428_v49 = vpop.permute.xlu0 %8427 }
0x164a   : > { %v8431_v43 = vpop.permute.xlu1 %8430  ;;  %v8534_v12 = vrot.slane %v8428_v49, %v14888_v53  ;;  %v8579_v49 = vrot.slane %v13930_v44, %v14888_v53 }
0x164b   : > { %v8538_v54 = vrot.slane %v8431_v43, %v14889_v61  ;;  %v8649_v43 = vsel %vm2315_vm14, %v8530_v46, %v8648_v20 }
0x164d   : > { %v8476_v51 = vpop.permute.xlu0 %8475  ;;  %v8539_v4 = vsel %vm2176_vm12, %v8538_v54, %v8534_v12 }
0x164e   : > { %v8479_v27 = vpop.permute.xlu1 %8478 }
0x164f   : > { %v8610_v44 = vrot.slane %v8479_v27, %v14889_v61 }
0x1651   : > { %v8434_v60 = vpop.permute.xlu0 %8433 }
0x1652   : > { %v8437_v50 = vpop.permute.xlu1 %8436  ;;  %v8543_v41 = vrot.slane %v8434_v60, %v14888_v53  ;;  %v8606_v60 = vrot.slane %v8476_v51, %v14888_v53 }
0x1653   : > { %v8547_v28 = vrot.slane %v8437_v50, %v14889_v61  ;;  %v8602_v50 = vsel %vm2176_vm12, %v8601_v47, %v8597_v24 }
0x1654   : > { %v8611_v34 = vsel %vm2176_vm12, %v8610_v44, %v8606_v60 }
0x1655   : > { %v8482_v7 = vpop.permute.xlu0 %8481 }
0x1656   : > { %v8485_v40 = vpop.permute.xlu1 %8484  ;;  %v8615_v12 = vrot.slane %v8482_v7, %v14888_v53  ;;  %v8584_v7 = vsel %vm2176_vm12, %v8583_v29, %v8579_v49 }
0x1657   : > { %v8619_v30 = vrot.slane %v8485_v40, %v14889_v61 }
0x1659   : > { %v8440_v19 = vpop.permute.xlu0 %8439  ;;  %v8620_v47 = vsel %vm2176_vm12, %v8619_v30, %v8615_v12 }
0x165a   : > { %v8443_v15 = vpop.permute.xlu1 %8442  ;;  %v8552_v22 = vrot.slane %v8440_v19, %v14888_v53  ;;  %v8548_v19 = vsel %vm2176_vm12, %v8547_v28, %v8543_v41 }
0x165b   : > { %v8556_v14 = vrot.slane %v8443_v15, %v14889_v61 }
0x165d   : > { %v8488_v39 = vpop.permute.xlu0 %8487  ;;  %v8557_v54 = vsel %vm2176_vm12, %v8556_v14, %v8552_v22 }
0x165e   : > { %v8491_v36 = vpop.permute.xlu1 %8490  ;;  %v8624_v15 = vrot.slane %v8488_v39, %v14888_v53  ;;  %v8655_v39 = vsel %vm2313_vm13, %v8593_v58, %v8584_v7 }
0x165f   : > { %v8656_v41 = vsel %vm2315_vm14, %v8602_v50, %v8655_v39 }
0x1661   : > { %v8446_v10 = vpop.permute.xlu0 %8445 }
0x1662   : > { %v8449_v37 = vpop.permute.xlu1 %8448  ;;  %v8561_v3 = vrot.slane %v8446_v10, %v14888_v53  ;;  %v8628_v10 = vrot.slane %v8491_v36, %v14889_v61 }
0x1663   : > { %v8565_v0 = vrot.slane %v8449_v37, %v14889_v61  ;;  %v8650_v37 = vsel %vm2317_vm15, %v8539_v4, %v8649_v43 }
0x1664   : > { %v8651_v46 = vsel %vm2319_vm0, %v8548_v19, %v8650_v37  ;;  %v8629_v20 = vsel %vm2176_vm12, %v8628_v10, %v8624_v15 }
0x1665   : > { %v8494_v26 = vpop.permute.xlu0 %8493  ;;  %v8566_v27 = vsel %vm2176_vm12, %v8565_v0, %v8561_v3  ;;  %v8652_v24 = vsel %vm2321_vm2, %v8557_v54, %v8651_v46 }
0x1666   : > { %v8497_v55 = vpop.permute.xlu1 %8496  ;;  %v8633_v45 = vrot.slane %v8494_v26, %v14888_v53  ;;  %v8653_v49 = vsel %vm2323_vm4, %v8566_v27, %v8652_v24  ;;  %v8657_v26 = vsel %vm2317_vm15, %v8611_v34, %v8656_v41 }
0x1667   : > { %v8637_v51 = vrot.slane %v8497_v55, %v14889_v61  ;;  %v8658_v55 = vsel %vm2319_vm0, %v8620_v47, %v8657_v26 }
0x1668   : > { %v8659_v44 = vsel %vm2321_vm2, %v8629_v20, %v8658_v55 }
0x1669   : > { %v8452_v63 = vpop.permute.xlu0 %8451  ;;  %v8638_v29 = vsel %vm2176_vm12, %v8637_v51, %v8633_v45 }
0x166a   : > { %v8455_v28 = vpop.permute.xlu1 %8454  ;;  %v8570_v40 = vrot.slane %v8452_v63, %v14888_v53  ;;  %v8660_v50 = vsel %vm2323_vm4, %v8638_v29, %v8659_v44 }
0x166b   : > { %v8574_v36 = vrot.slane %v8455_v28, %v14889_v61 }
0x166d   : > { %v8500_v14 = vpop.permute.xlu0 %8499  ;;  %v8575_v22 = vsel %vm2176_vm12, %v8574_v36, %v8570_v40 }
0x166e   : > { %v8503_v4 = vpop.permute.xlu1 %8502  ;;  %v8642_v0 = vrot.slane %v8500_v14, %v14888_v53  ;;  %v8654_v3 = vsel %vm2325_vm3, %v8575_v22, %v8653_v49 }
0x166f   : > { %v8646_v58 = vrot.slane %v8503_v4, %v14889_v61  ;;  %v8664_v43 = vsel %vm2336_vm5, %v8654_v3, 0.0 }
0x1670   : > { %8665 = vadd.xlane.f32.xlu0 %v8664_v43 }
0x1671   : > { %v8647_v60 = vsel %vm2176_vm12, %v8646_v58, %v8642_v0 }
0x1672   : > { %v8661_v19 = vsel %vm2325_vm3, %v8647_v60, %v8660_v50 }
0x1673   : > { %v8667_v30 = vsel %vm2336_vm5, %v8661_v19, 0.0 }
0x1674   : > { %8668 = vadd.xlane.f32.xlu1 %v8667_v30 }
0x16f9   : > { %v8666_v12 = vpop.xlane.xlu0 %8665 }
0x16fa   : > { %10187 = vrcp.f32 %v8666_v12 }
0x16fd   : > { %v8669_v37 = vpop.xlane.xlu1 %8668 }
0x16fe   : > { %10189 = vrcp.f32 %v8669_v37 }
0x1707   : > { %v14000_v54 = vpop.eup %10187 }
0x1708   : > { %v8677_v10 = vrot.slane %v14000_v54, %v10395_v18  ;;  %v8681_v15 = vrot.slane %v14000_v54, %v14890_v57 }
0x170a   : > { %v8754_v63 = vmul.f32 %v13787_v59, %v8677_v10  ;;  %v8755_v27 = vmul.f32 %v13790_v48, %v8677_v10  ;;  %v8756_v51 = vmul.f32 %v13797_v23, %v8681_v15  ;;  %v8757_v45 = vmul.f32 %v13800_v52, %v8681_v15 }
0x170b   : > { %v14010_v28 = vpop.eup %10189  ;;  %v8685_v52 = vrot.slane %v14000_v54, %v14891_v13 }
0x170c   : > { %v8786_v40 = vpack.c.bf16 %v8755_v27, %v8754_v63  ;;  %v8709_v7 = vrot.slane %v14010_v28, %v10395_v18  ;;  %v8787_v34 = vpack.c.bf16 %v8757_v45, %v8756_v51  ;;  %v8713_v39 = vrot.slane %v14010_v28, %v14890_v57 }
0x170d   : > { %v8758_v14 = vmul.f32 %v13835_v2, %v8685_v52  ;;  %v8717_v26 = vrot.slane %v14010_v28, %v14891_v13  ;;  %v8721_v55 = vrot.slane %v14010_v28, %v14892_v32  ;;  %v8725_v15 = vrot.slane %v14010_v28, %v14893_v62 }
0x170e   : > { %v8824_v46 = vunpack.c.h.b16 %v8786_v40  ;;  %v8823_v36 = vunpack.c.l.b16 %v8786_v40  ;;  %v8770_v59 = vmul.f32 %v13815_v42, %v8709_v7  ;;  %v8771_v48 = vmul.f32 %v13818_v8, %v8709_v7 }
0x170f   : > { %v8826_v23 = vunpack.c.h.b16 %v8787_v34  ;;  %v8825_v47 = vunpack.c.l.b16 %v8787_v34  ;;  %v8772_v41 = vmul.f32 %v13825_v31, %v8713_v39  ;;  %v8773_v20 = vmul.f32 %v13828_v16, %v8713_v39 }
0x1710   : > { %8859 = vperm.xlu1 %9887, %v8824_v46   ;;  %8856 = vperm.xlu0 %9888, %v8823_v36   ;;  %v8794_v24 = vpack.c.bf16 %v8771_v48, %v8770_v59  ;;  %v8759_v42 = vmul.f32 %v13838_v35, %v8685_v52  ;;  %v8689_v31 = vrot.slane %v14000_v54, %v14892_v32  ;;  %v15011_v48 = vld [vmem:[#allocation9_spill] sm:$0xff]  ;;  %v15012_v52 = vld [vmem:[#allocation36_spill] sm:$0xff] }
0x1711   : > { %v8795_v49 = vpack.c.bf16 %v8773_v20, %v8772_v41  ;;  %v8774_v0 = vmul.f32 %v13845_v25, %v8717_v26  ;;  %v8775_v2 = vmul.f32 %v13848_v56, %v8717_v26  ;;  %v8776_v50 = vmul.f32 %v13865_v9, %v8721_v55  ;;  %v15014_v20 = vld [vmem:[#allocation70_spill] sm:$0xff] }
0x1712   : > { %v8840_v22 = vunpack.c.h.b16 %v8794_v24  ;;  %v8839_v8 = vunpack.c.l.b16 %v8794_v24  ;;  %v8788_v29 = vpack.c.bf16 %v8759_v42, %v8758_v14  ;;  %v8760_v35 = vmul.f32 %v13855_v11, %v8689_v31  ;;  %v15013_v24 = vld [vmem:[#allocation32_spill] sm:$0xff]  ;;  %v15015_v42 = vld [vmem:[#allocation79_spill] sm:$0xff] }
0x1713   : > { %v8842_v4 = vunpack.c.h.b16 %v8795_v49  ;;  %v8841_v16 = vunpack.c.l.b16 %v8795_v49  ;;  %v8761_v3 = vmul.f32 %v13858_v1, %v8689_v31  ;;  %v8796_v44 = vpack.c.bf16 %v8775_v2, %v8774_v0 }
0x1714   : > { %8865 = vperm.xlu1 %9887, %v8826_v23   ;;  %8862 = vperm.xlu0 %9888, %v8825_v47   ;;  %v8828_v58 = vunpack.c.h.b16 %v8788_v29  ;;  %v8827_v43 = vunpack.c.l.b16 %v8788_v29  ;;  %v8777_v25 = vmul.f32 %v13868_v21, %v8721_v55  ;;  %v8693_v11 = vrot.slane %v14000_v54, %v14893_v62  ;;  %v15018_v55 = vld [vmem:[#allocation2_spill] sm:$0xff] }
0x1715   : > { %v8789_v60 = vpack.c.bf16 %v8761_v3, %v8760_v35  ;;  %v8844_v56 = vunpack.c.h.b16 %v8796_v44  ;;  %v8843_v19 = vunpack.c.l.b16 %v8796_v44  ;;  %v8697_v21 = vrot.slane %v14000_v54, %v14894_v33  ;;  %v15017_v35 = vld [vmem:[#allocation80_spill] sm:$0xff] }
0x1716   : > { %v8797_v30 = vpack.c.bf16 %v8777_v25, %v8776_v50  ;;  %v8762_v37 = vmul.f32 %v13875_v38, %v8693_v11  ;;  %v8763_v10 = vmul.f32 %v13878_v5, %v8693_v11  ;;  %v8778_v51 = vmul.f32 %v13885_v6, %v8725_v15  ;;  %v15009_v38 = vld [vmem:[#allocation64_spill] sm:$0xff]  ;;  %v15010_v5 = vld [vmem:[#allocation58_spill] sm:$0xff] }
0x1717   : > { %v8830_v1 = vunpack.c.h.b16 %v8789_v60  ;;  %v8829_v12 = vunpack.c.l.b16 %v8789_v60  ;;  %v8779_v45 = vmul.f32 %v13888_v17, %v8725_v15  ;;  %v8764_v40 = vmul.f32 %v15009_v38, %v8697_v21  ;;  %v15020_v60 = vld [vmem:[#allocation3_spill] sm:$0xff]  ;;  %v15024_v38 = vld [vmem:[#allocation84_spill] sm:$0xff] }
0x1718   : > { %8907 = vperm.xlu1 %9887, %v8840_v22   ;;  %8904 = vperm.xlu0 %9888, %v8839_v8   ;;  %v8846_v9 = vunpack.c.h.b16 %v8797_v30  ;;  %v8845_v63 = vunpack.c.l.b16 %v8797_v30  ;;  %v8790_v27 = vpack.c.bf16 %v8763_v10, %v8762_v37  ;;  %v8765_v7 = vmul.f32 %v15010_v5, %v8697_v21  ;;  %v15022_v10 = vld [vmem:[#allocation5_spill] sm:$0xff] }
0x1719   : > { %v8798_v36 = vpack.c.bf16 %v8779_v45, %v8778_v51  ;;  %v8729_v39 = vrot.slane %v14010_v28, %v14894_v33  ;;  %v8701_v6 = vrot.slane %v14000_v54, %v15011_v48  ;;  %v8733_v29 = vrot.slane %v14010_v28, %v15011_v48 }
0x171a   : > { %v8832_v34 = vunpack.c.h.b16 %v8790_v27  ;;  %v8831_v46 = vunpack.c.l.b16 %v8790_v27  ;;  %v8791_v59 = vpack.c.bf16 %v8765_v7, %v8764_v40  ;;  %v15025_v40 = vld [vmem:[#allocation87_spill] sm:$0xff] }
0x171b   : > { %v8848_v23 = vunpack.c.h.b16 %v8798_v36  ;;  %v8847_v17 = vunpack.c.l.b16 %v8798_v36  ;;  %v8780_v47 = vmul.f32 %v15012_v52, %v8729_v39  ;;  %v8781_v41 = vmul.f32 %v15013_v24, %v8729_v39  ;;  %v799_v39 = vld [vmem:[%s751_s3] sm:$0x3] }
0x171c   : > { %8913 = vperm.xlu1 %9887, %v8842_v4   ;;  %8910 = vperm.xlu0 %9888, %v8841_v16   ;;  %v8766_v14 = vmul.f32 %v15014_v20, %v8701_v6  ;;  %v8767_v22 = vmul.f32 %v15015_v42, %v8701_v6  ;;  %v8834_v8 = vunpack.c.h.b16 %v8791_v59  ;;  %v8833_v49 = vunpack.c.l.b16 %v8791_v59  ;;  %v15016_v4 = vld [vmem:[#allocation10_spill] sm:$0xff] }
0x171d   : > { %v8799_v26 = vpack.c.bf16 %v8781_v41, %v8780_v47  ;;  %v8705_v16 = vrot.slane %v14000_v54, %v15016_v4  ;;  %v8782_v3 = vmul.f32 %v15017_v35, %v8733_v29  ;;  %v8737_v11 = vrot.slane %v14010_v28, %v15016_v4  ;;  %v794_v28 = vld [vmem:[%s737_s30] sm:$0x3]  ;;  %s755_s30 = scalar_lea.vmem %s14292_s20, %s14069_s26 }
0x171e   : > { %v8792_v31 = vpack.c.bf16 %v8767_v22, %v8766_v14  ;;  %v9179_v45 = vrot.slane %v794_v28, %v10395_v18  ;;  %v15026_v5 = vpack.c.bf16 %v15024_v38, %v15025_v40  ;;  %v9190_v7 = vrot.slane %v794_v28, %v14890_v57 }
0x171f   : > { %v8850_v0 = vunpack.c.h.b16 %v8799_v26  ;;  %v8849_v2 = vunpack.c.l.b16 %v8799_v26  ;;  %v8769_v50 = vmul.f32 %v15020_v60, %v8705_v16  ;;  %v8785_v15 = vmul.f32 %v15022_v10, %v8737_v11 }
0x1720   : > { %8871 = vperm.xlu1 %9887, %v8828_v58   ;;  %8868 = vperm.xlu0 %9888, %v8827_v43   ;;  %v8783_v58 = vmul.f32 %v15018_v55, %v8733_v29  ;;  %v15019_v43 = vld [vmem:[#allocation86_spill] sm:$0xff]  ;;  %v8836_v25 = vunpack.c.h.b16 %v8792_v31  ;;  %v15027_v36 = vmov 0.0   ;;  %v9223_v59 = vrot.slane %v799_v39, %v10395_v18 }
0x1721   : > { %v8768_v44 = vmul.f32 %v15019_v43, %v8705_v16  ;;  %v9234_v48 = vrot.slane %v799_v39, %v14890_v57  ;;  %v14114_v55 = vld [vmem:[%s14282_s10 + $0x4] sm:$0x7] }
0x1723   : > { %v8793_v54 = vpack.c.bf16 %v8769_v50, %v8768_v44  ;;  %v876_v50 = vrot.slane %v14114_v55, %v10395_v18 }
0x1724   : > { %8919 = vperm.xlu1 %9887, %v8844_v56   ;;  %8916 = vperm.xlu0 %9888, %v8843_v19   ;;  %v8835_v56 = vunpack.c.l.b16 %v8792_v31  ;;  %v8800_v19 = vpack.c.bf16 %v8783_v58, %v8782_v3  ;;  %v15028_v58 = vld [vmem:[#allocation68_spill] sm:$0xff] }
0x1725   : > { %v8837_v21 = vunpack.c.l.b16 %v8793_v54 }
0x1726   : > { %v8851_v30 = vunpack.c.l.b16 %v8800_v19 }
0x1728   : > { %8877 = vperm.xlu1 %9887, %v8830_v1   ;;  %8874 = vperm.xlu0 %9888, %v8829_v12   ;;  %v8852_v1 = vunpack.c.h.b16 %v8800_v19  ;;  %v15021_v12 = vld [vmem:[#allocation4_spill] sm:$0xff] }
0x1729   : > { %v8784_v37 = vmul.f32 %v15021_v12, %v8737_v11  ;;  %v15029_v11 = vld [vmem:[#allocation11_spill] sm:$0xff] }
0x172c   : > { %8925 = vperm.xlu1 %9887, %v8846_v9   ;;  %8922 = vperm.xlu0 %9888, %v8845_v63   ;;  %v8838_v9 = vunpack.c.h.b16 %v8793_v54  ;;  %v8801_v63 = vpack.c.bf16 %v8785_v15, %v8784_v37  ;;  %v14128_v54 = vadd.f32 %v15029_v11, %v876_v50  ;;  %v15030_v37 = vld [vmem:[#allocation35_spill] sm:$0xff] }
0x172e   : > { %v8854_v27 = vunpack.c.h.b16 %v8801_v63  ;;  %v8853_v51 = vunpack.c.l.b16 %v8801_v63  ;;  %vm933_vm10 = vcmp.gt.f32.partialorder %v14128_v54, 0.0 }
0x1730   : > { %8883 = vperm.xlu1 %9887, %v8832_v34   ;;  %8880 = vperm.xlu0 %9888, %v8831_v46   ;;  %v9915_v34 = vld [vmem:[%s14290_s18 + $0x18] sm:$0xff]   ;;  %v9916_v46 = vld [vmem:[%s14290_s18 + $0x10] sm:$0xff]  }
0x1731   : > { %9848 = vmatpush3.bf16.msra.mxu0 %v9915_v34 }
0x1732   : > { %9849 = vmatprep.subr.bf16.mxu0 %v15027_v36 }
0x1734   : > { %8931 = vperm.xlu1 %9887, %v8848_v23   ;;  %8928 = vperm.xlu0 %9888, %v8847_v17  }
0x1735   : > { %9850 = vmatpush3.bf16.msra.mxu0 %v9916_v46 }
0x1736   : > { %9863 = vmatprep.subr.bf16.mxu0 %v15027_v36 }
0x1738   : > { %8889 = vperm.xlu1 %9887, %v8834_v8   ;;  %8886 = vperm.xlu0 %9888, %v8833_v49  }
0x173c   : > { %8937 = vperm.xlu1 %9887, %v8850_v0   ;;  %8934 = vperm.xlu0 %9888, %v8849_v2   ;;  %v10193_v0 = vld [vmem:[%s14286_s14 + $0x8] sm:$0x3f] }
0x173d   : > { %v4940_v2 = vrot.slane %v10193_v0, %v14892_v32  ;;  %v14134_v15 = vrot.slane %v10193_v0, %v14893_v62  ;;  %v14147_v34 = vrot.slane %v10193_v0, %v14894_v33 }
0x173f   : > { %v5286_v43 = vadd.f32 %v15028_v58, %v4940_v2  ;;  %v5289_v10 = vadd.f32 %v15030_v37, %v4940_v2 }
0x1740   : > { %8895 = vperm.xlu1 %9887, %v8836_v25   ;;  %8892 = vperm.xlu0 %9888, %v8835_v56  }
0x1741   : > { %v5294_v25 = vmul.f32 0.2, %v5286_v43  ;;  %vm5292_vm9 = vcmp.gt.f32.partialorder %v5286_v43, 0.0  ;;  %vm5293_vm11 = vcmp.gt.f32.partialorder %v5289_v10, 0.0 }
0x1743   : > { %v5296_v12 = vsel %vm5292_vm9, %v5286_v43, %v5294_v25 }
0x1744   : > { %8943 = vperm.xlu1 %9887, %v8852_v1   ;;  %8940 = vperm.xlu0 %9888, %v8851_v30  }
0x1748   : > { %8901 = vperm.xlu1 %9887, %v8838_v9   ;;  %8898 = vperm.xlu0 %9888, %v8837_v21  }
0x174c   : > { %8949 = vperm.xlu1 %9887, %v8854_v27   ;;  %8946 = vperm.xlu0 %9888, %v8853_v51  }
0x1750   : > { %9111 = vrot.lane.b32.xlu0 %v15026_v5, %s10207_s27  ;;  %9181 = vbcast.lane.b32.xlu1 %v9179_v45, 256  ;;  %v934_v5 = vmul.f32 0.2, %v14128_v54 }
0x1754   : > { %9192 = vbcast.lane.b32.xlu1 %v9190_v7, 256  ;;  %9185 = vbcast.lane.b32.xlu0 %v9179_v45, 264 }
0x1758   : > { %9196 = vbcast.lane.b32.xlu0 %v9190_v7, 264  ;;  %9225 = vbcast.lane.b32.xlu1 %v9223_v59, 256 }
0x175c   : > { %9229 = vbcast.lane.b32.xlu0 %v9223_v59, 264  ;;  %9236 = vbcast.lane.b32.xlu1 %v9234_v48, 256 }
0x1760   : > { %9240 = vbcast.lane.b32.xlu0 %v9234_v48, 264 }
0x178b   : > { %v8860_v6 = vpop.permute.xlu1 %8859  ;;  %v8857_v23 = vpop.permute.xlu0 %8856 }
0x178c   : > { %v8958_v18 = vrot.slane %v8860_v6, %v14889_v61  ;;  %v8954_v9 = vrot.slane %v8857_v23, %v14888_v53  ;;  %v5295_v6 = vmul.f32 0.2, %v5289_v10 }
0x178e   : > { %v8959_v23 = vsel %vm2176_vm12, %v8958_v18, %v8954_v9 }
0x178f   : > { %v8866_v17 = vpop.permute.xlu1 %8865  ;;  %v8863_v52 = vpop.permute.xlu0 %8862 }
0x1790   : > { %v8967_v1 = vrot.slane %v8866_v17, %v14889_v61  ;;  %v8963_v30 = vrot.slane %v8863_v52, %v14888_v53  ;;  %v5302_v17 = vmul.f32 %v14134_v15, %v5296_v12 }
0x1792   : > { %v8968_v7 = vsel %vm2176_vm12, %v8967_v1, %v8963_v30 }
0x1793   : > { %v8908_v47 = vpop.permute.xlu1 %8907  ;;  %v8905_v24 = vpop.permute.xlu0 %8904  ;;  %v9095_v52 = vsel %vm2313_vm13, %v8968_v7, %v8959_v23 }
0x1794   : > { %v9030_v21 = vrot.slane %v8908_v47, %v14889_v61  ;;  %v9026_v63 = vrot.slane %v8905_v24, %v14888_v53 }
0x1796   : > { %v9031_v47 = vsel %vm2176_vm12, %v9030_v21, %v9026_v63 }
0x1797   : > { %v8914_v41 = vpop.permute.xlu1 %8913  ;;  %v8911_v20 = vpop.permute.xlu0 %8910 }
0x1798   : > { %v9039_v28 = vrot.slane %v8914_v41, %v14889_v61  ;;  %v9035_v27 = vrot.slane %v8911_v20, %v14888_v53 }
0x179a   : > { %v9040_v24 = vsel %vm2176_vm12, %v9039_v28, %v9035_v27 }
0x179b   : > { %v8872_v14 = vpop.permute.xlu1 %8871  ;;  %v8869_v42 = vpop.permute.xlu0 %8868  ;;  %v9102_v30 = vsel %vm2313_vm13, %v9040_v24, %v9031_v47 }
0x179c   : > { %v8976_v51 = vrot.slane %v8872_v14, %v14889_v61  ;;  %v8972_v45 = vrot.slane %v8869_v42, %v14888_v53 }
0x179e   : > { %v8977_v41 = vsel %vm2176_vm12, %v8976_v51, %v8972_v45 }
0x179f   : > { %v8920_v22 = vpop.permute.xlu1 %8919  ;;  %v8917_v8 = vpop.permute.xlu0 %8916  ;;  %v9096_v12 = vsel %vm2315_vm14, %v8977_v41, %v9095_v52 }
0x17a0   : > { %v9048_v46 = vrot.slane %v8920_v22, %v14889_v61  ;;  %v9044_v39 = vrot.slane %v8917_v8, %v14888_v53 }
0x17a3   : > { %v8878_v49 = vpop.permute.xlu1 %8877  ;;  %v8875_v26 = vpop.permute.xlu0 %8874 }
0x17a4   : > { %v8985_v59 = vrot.slane %v8878_v49, %v14889_v61  ;;  %v8981_v48 = vrot.slane %v8875_v26, %v14888_v53  ;;  %v9049_v26 = vsel %vm2176_vm12, %v9048_v46, %v9044_v39 }
0x17a5   : > { %v9103_v18 = vsel %vm2315_vm14, %v9049_v26, %v9102_v30  ;;  %vm9469_vm14 = vcmask 17408  }
0x17a6   : > { %v8986_v0 = vsel %vm2176_vm12, %v8985_v59, %v8981_v48  ;;  %v935_v59 = vsel %vm933_vm10, %v14128_v54, %v934_v5  ;;  %v939_v48 = vrot.slane %v14114_v55, %v14890_v57  ;;  %v5308_v57 = vadd.f32 %v14147_v34, %v5302_v17  ;;  %v9914_v17 = vld [vmem:[%s14290_s18] sm:$0xff]  }
0x17a7   : > { %v14095_v29 = vpop.permute.xlu1 %8925  ;;  %v14097_v31 = vpop.permute.xlu0 %8922  ;;  %v9097_v9 = vsel %vm2317_vm15, %v8986_v0, %v9096_v12 }
0x17a8   : > { %v9057_v42 = vrot.slane %v14095_v29, %v14889_v61  ;;  %v9053_v22 = vrot.slane %v14097_v31, %v14888_v53 }
0x17ab   : > { %v14099_v4 = vpop.permute.xlu1 %8883  ;;  %v14101_v16 = vpop.permute.xlu0 %8880 }
0x17ac   : > { %v8994_v8 = vrot.slane %v14099_v4, %v14889_v61  ;;  %v8990_v49 = vrot.slane %v14101_v16, %v14888_v53 }
0x17af   : > { %v14107_v35 = vpop.permute.xlu1 %8931  ;;  %v14109_v3 = vpop.permute.xlu0 %8928 }
0x17b0   : > { %v9066_v2 = vrot.slane %v14107_v35, %v14889_v61  ;;  %v9062_v58 = vrot.slane %v14109_v3, %v14888_v53 }
0x17b2   : > { %v9067_v37 = vsel %vm2176_vm12, %v9066_v2, %v9062_v58 }
0x17b3   : > { %v14117_v44 = vpop.permute.xlu1 %8889  ;;  %v14119_v60 = vpop.permute.xlu0 %8886 }
0x17b4   : > { %v9003_v29 = vrot.slane %v14117_v44, %v14889_v61  ;;  %v8999_v31 = vrot.slane %v14119_v60, %v14888_v53  ;;  %v9058_v44 = vsel %vm2176_vm12, %v9057_v42, %v9053_v22  ;;  %v8995_v60 = vsel %vm2176_vm12, %v8994_v8, %v8990_v49 }
0x17b5   : > { %v9104_v28 = vsel %vm2317_vm15, %v9058_v44, %v9103_v18  ;;  %v9098_v27 = vsel %vm2319_vm0, %v8995_v60, %v9097_v9  ;;  %v940_v42 = vmul.f32 %v939_v48, %v935_v59  ;;  %v944_v22 = vrot.slane %v14114_v55, %v14891_v13 }
0x17b6   : > { %v9004_v21 = vsel %vm2176_vm12, %v9003_v29, %v8999_v31 }
0x17b7   : > { %v14123_v56 = vpop.permute.xlu1 %8937  ;;  %v14125_v19 = vpop.permute.xlu0 %8934  ;;  %v945_v2 = vadd.f32 %v944_v22, %v940_v42 }
0x17b8   : > { %v9075_v4 = vrot.slane %v14123_v56, %v14889_v61  ;;  %v9071_v16 = vrot.slane %v14125_v19, %v14888_v53  ;;  %v5297_v19 = vsel %vm5293_vm11, %v5289_v10, %v5295_v6  ;;  %v9099_v6 = vsel %vm2321_vm2, %v9004_v21, %v9098_v27 }
0x17ba   : > { %v9076_v63 = vsel %vm2176_vm12, %v9075_v4, %v9071_v16  ;;  %v9265_v4 = vpack.c.bf16 %v945_v2, %v945_v2 }
0x17bb   : > { %v8896_v38 = vpop.permute.xlu1 %8895  ;;  %v8893_v40 = vpop.permute.xlu0 %8892 }
0x17bc   : > { %v9012_v43 = vrot.slane %v8896_v38, %v14889_v61  ;;  %v9008_v50 = vrot.slane %v8893_v40, %v14888_v53  ;;  %v9105_v40 = vsel %vm2319_vm0, %v9067_v37, %v9104_v28 }
0x17bd   : > { %v9106_v23 = vsel %vm2321_vm2, %v9076_v63, %v9105_v40 }
0x17be   : > { %v9013_v10 = vsel %vm2176_vm12, %v9012_v43, %v9008_v50 }
0x17bf   : > { %v8944_v20 = vpop.permute.xlu1 %8943  ;;  %v8941_v14 = vpop.permute.xlu0 %8940  ;;  %v9100_v52 = vsel %vm2323_vm4, %v9013_v10, %v9099_v6  ;;  %v9917_v10 = vld [vmem:[%s14290_s18 + $0x28] sm:$0xff]  }
0x17c0   : > { %v9084_v35 = vrot.slane %v8944_v20, %v14889_v61  ;;  %v9080_v3 = vrot.slane %v8941_v14, %v14888_v53  ;;  %v9913_v14 = vld [vmem:[%s14290_s18 + $0x8] sm:$0xff]  }
0x17c2   : > { %v9085_v51 = vsel %vm2176_vm12, %v9084_v35, %v9080_v3 }
0x17c3   : > { %v8902_v25 = vpop.permute.xlu1 %8901  ;;  %v8899_v11 = vpop.permute.xlu0 %8898  ;;  %v9107_v47 = vsel %vm2323_vm4, %v9085_v51, %v9106_v23  ;;  %v9918_v51 = vld [vmem:[%s14290_s18 + $0x20] sm:$0xff]  }
0x17c4   : > { %v9021_v1 = vrot.slane %v8902_v25, %v14889_v61  ;;  %v9017_v56 = vrot.slane %v8899_v11, %v14888_v53 }
0x17c6   : > { %v9022_v7 = vsel %vm2176_vm12, %v9021_v1, %v9017_v56 }
0x17c7   : > { %v8950_v45 = vpop.permute.xlu1 %8949  ;;  %v8947_v38 = vpop.permute.xlu0 %8946 }
0x17c8   : > { %v9093_v46 = vrot.slane %v8950_v45, %v14889_v61  ;;  %v9089_v39 = vrot.slane %v8947_v38, %v14888_v53  ;;  %v5303_v61 = vmul.f32 %v14134_v15, %v5297_v19  ;;  %v9101_v53 = vsel %vm2325_vm3, %v9022_v7, %v9100_v52  ;;  %v10194_v45 = vld [vmem:[%s14289_s17 + $0x8] sm:$0x3f] }
0x17c9   : > { %v8806_v38 = vrot.slane %v10194_v45, %v14892_v32  ;;  %v9173_v23 = vrot.slane %v10194_v45, %v14894_v33 }
0x17ca   : > { %v9094_v24 = vsel %vm2176_vm12, %v9093_v46, %v9089_v39  ;;  %v5309_v8 = vadd.f32 %v14147_v34, %v5303_v61  ;;  %v9167_v39 = vrot.slane %v10194_v45, %v14893_v62 }
0x17cb   : > { %v9108_v41 = vsel %vm2325_vm3, %v9094_v24, %v9107_v47  ;;  %v9182_v54 = vpop.permute.xlu1 %9181  ;;  %v9112_v5 = vpop.permute.xlu0 %9111 }
0x17cc   : > { %v9109_v20 = vpack.c.b16 %v9108_v41, %v9101_v53  ;;  %9842 = vmatpush3.bf16.msra.mxu1 %v9112_v5  ;;  %v9198_v15 = vadd.f32 %v9182_v54, %v5308_v57 }
0x17cd   : > { %9855 = vmatprep.subr.bf16.mxu1 %v15027_v36 }
0x17ce   : > { %v9202_v13 = vsel %vm889_vm6, %v9198_v15, -inf }
0x17cf   : > { %v9193_v49 = vpop.permute.xlu1 %9192  ;;  %9844 = vmatmul.mubr.msk.bf16.vlgmr.msra.gmra.mxu1 %vm2336_vm5, %v9109_v20  ;;  %v9186_v26 = vpop.permute.xlu0 %9185 }
0x17d0   : > { %v9199_v0 = vadd.f32 %v9186_v26, %v5309_v8  ;;  %9856 = vmatpush3.bf16.msra.mxu1 %v9913_v14  ;;  %9859 = vmatprep.mubr.msk.bf16.mxu1 %vm10205_vm1, %v15027_v36  ;;  %v9200_v55 = vadd.f32 %v9193_v49, %v5308_v57 }
0x17d1   : > { %9857 = vmatprep.subr.bf16.mxu1 %v15027_v36 }
0x17d2   : > { %v9203_v34 = vsel %vm889_vm6, %v9199_v0, -inf  ;;  %v9211_v43 = vsel %vm889_vm6, %v9200_v55, -inf }
0x17d3   : > { %v9204_v58 = vmax.f32 %v9202_v13, %v9203_v34  ;;  %v9197_v29 = vpop.permute.xlu0 %9196  ;;  %v9226_v48 = vpop.permute.xlu1 %9225 }
0x17d4   : > { %v9201_v31 = vadd.f32 %v9197_v29, %v5309_v8  ;;  %9858 = vmatpush3.bf16.msra.mxu1 %v9914_v17 }
0x17d5   : > { %v9205_v16 = vrot.slane %v9204_v58, 4 }
0x17d6   : > { %v9212_v50 = vsel %vm889_vm6, %v9201_v31, -inf }
0x17d7   : > { %v9206_v35 = vmax.f32 %v9204_v58, %v9205_v16  ;;  %v9213_v3 = vmax.f32 %v9211_v43, %v9212_v50  ;;  %9860 = vmatmul.mubr.msk.bf16.vlgmr.msra.gmra.mxu1 %vm889_vm6, %v9265_v4  ;;  %v9230_v47 = vpop.permute.xlu0 %9229  ;;  %v9237_v5 = vpop.permute.xlu1 %9236 }
0x17d9   : > { %v9207_v25 = vrot.slane %v9206_v35, 2  ;;  %v9214_v11 = vrot.slane %v9213_v3, 4 }
0x17db   : > { %v9208_v44 = vmax.f32 %v9206_v35, %v9207_v25  ;;  %v9215_v60 = vmax.f32 %v9213_v3, %v9214_v11  ;;  %v9241_v62 = vpop.permute.xlu0 %9240 }
0x17dd   : > { %v9209_v1 = vrot.slane %v9208_v44, 1  ;;  %v9216_v56 = vrot.slane %v9215_v60, 2 }
0x17df   : > { %v9210_v19 = vmax.f32 %v9208_v44, %v9209_v1  ;;  %v9217_v30 = vmax.f32 %v9215_v60, %v9216_v56 }
0x17e1   : > { %v9218_v12 = vrot.slane %v9217_v30, 1  ;;  %v9270_v37 = vpack.c.bf16 %v9210_v19, %v9210_v19 }
0x17e3   : > { %v9219_v18 = vmax.f32 %v9217_v30, %v9218_v12  ;;  %v9279_v21 = vunpack.c.l.b16 %v9270_v37 }
0x17e5   : > { %v9271_v9 = vpack.c.bf16 %v9219_v18, %v9219_v18 }
0x17e7   : > { %v9280_v63 = vunpack.c.l.b16 %v9271_v9 }
0x17e9   : > { %v9281_v28 = vsel %vm2313_vm13, %v9280_v63, %v9279_v21  ;;  %v9690_v63 = vld [vmem:[%s14291_s19] ss:$0 sm:$0xff] }
0x17ea   : > { %v9282_v27 = vpack.c.b16 %v9281_v28, %v9281_v28 }
0x17ec   : > { %9852 = vmatmul.mubr.msk.bf16.vlgmr.msra.gmra.mxu0 %vm889_vm6, %v9282_v27 }
0x17ed   : > { %9867 = vmatprep.mubr.msk.bf16.mxu0 %vm10205_vm1, %v15027_v36  ;;  %9864 = vmatpush3.bf16.msra.mxu0 %v9917_v10 }
0x17ee   : > { %9865 = vmatprep.subr.bf16.mxu0 %v15027_v36 }
0x17f1   : > { %9866 = vmatpush3.bf16.msra.mxu0 %v9918_v51 }
0x188f   : > { %v9151_v40 = vpop.f32.mrf.mxu1 }
0x1890   : > { %v9152_v7 = vadd.f32 %v9151_v40, %v8806_v38 }
0x1891   : > { %v9845_v46 = vpop.f32.mrf.mxu1 }
0x1892   : > { %vm9158_vm1 = vcmp.gt.f32.partialorder %v9152_v7, 0.0  ;;  %v9160_v59 = vmul.f32 0.2, %v9152_v7 }
0x1893   : > { %v9154_v6 = vpop.f32.mrf.mxu1 }
0x1894   : > { %v9162_v52 = vsel %vm9158_vm1, %v9152_v7, %v9160_v59  ;;  %v9155_v36 = vadd.f32 %v9154_v6, %v8806_v38 }
0x1895   : > { %v9168_v24 = vmul.f32 %v9167_v39, %v9162_v52  ;;  %v9846_v61 = vpop.f32.mrf.mxu1 }
0x1896   : > { %vm9159_vm12 = vcmp.gt.f32.partialorder %v9155_v36, 0.0  ;;  %v9161_v53 = vmul.f32 0.2, %v9155_v36 }
0x1897   : > { %v9174_v41 = vadd.f32 %v9173_v23, %v9168_v24  ;;  %v9387_v32 = vpop.f32.mrf.mxu1 }
0x1898   : > { %v9163_v54 = vsel %vm9159_vm12, %v9155_v36, %v9161_v53 }
0x1899   : > { %v9169_v20 = vmul.f32 %v9167_v39, %v9163_v54  ;;  %v9861_v57 = vpop.f32.mrf.mxu1  ;;  %v9242_v14 = vadd.f32 %v9226_v48, %v9174_v41  ;;  %v9244_v42 = vadd.f32 %v9237_v5, %v9174_v41 }
0x189b   : > { %v9175_v22 = vadd.f32 %v9173_v23, %v9169_v20  ;;  %v9390_v15 = vpop.f32.mrf.mxu1  ;;  %v9246_v26 = vsel %vm889_vm6, %v9242_v14, -inf  ;;  %v9255_v0 = vsel %vm889_vm6, %v9244_v42, -inf }
0x189d   : > { %v9243_v8 = vadd.f32 %v9230_v47, %v9175_v22  ;;  %v9245_v33 = vadd.f32 %v9241_v62, %v9175_v22  ;;  %v9862_v49 = vpop.f32.mrf.mxu1 }
0x189f   : > { %v9247_v17 = vsel %vm889_vm6, %v9243_v8, -inf  ;;  %v9256_v2 = vsel %vm889_vm6, %v9245_v33, -inf }
0x18a0   : > { %v9248_v13 = vmax.f32 %v9246_v26, %v9247_v17  ;;  %v9257_v55 = vmax.f32 %v9255_v0, %v9256_v2 }
0x18a2   : > { %v9249_v34 = vrot.slane %v9248_v13, 4  ;;  %v9258_v58 = vrot.slane %v9257_v55, 4 }
0x18a4   : > { %v9250_v29 = vmax.f32 %v9248_v13, %v9249_v34  ;;  %v9259_v31 = vmax.f32 %v9257_v55, %v9258_v58 }
0x18a6   : > { %v9251_v4 = vrot.slane %v9250_v29, 2  ;;  %v9260_v16 = vrot.slane %v9259_v31, 2 }
0x18a8   : > { %v9252_v43 = vmax.f32 %v9250_v29, %v9251_v4  ;;  %v9261_v50 = vmax.f32 %v9259_v31, %v9260_v16 }
0x18aa   : > { %v9253_v35 = vrot.slane %v9252_v43, 1  ;;  %v9262_v3 = vrot.slane %v9261_v50, 1 }
0x18ac   : > { %v9254_v25 = vmax.f32 %v9252_v43, %v9253_v35  ;;  %v9263_v11 = vmax.f32 %v9261_v50, %v9262_v3  ;;  %v9332_v44 = vpop.f32.mrf.mxu0 }
0x18ad   : > { %v9388_v60 = vadd.f32 %v9387_v32, %v9332_v44 }
0x18ae   : > { %v9393_v1 = vpack.c.bf16 %v9254_v25, %v9254_v25  ;;  %v9394_v56 = vpack.c.bf16 %v9263_v11, %v9263_v11  ;;  %v9853_v19 = vpop.f32.mrf.mxu0 }
0x18b0   : > { %v9402_v30 = vunpack.c.l.b16 %v9393_v1  ;;  %v9403_v12 = vunpack.c.l.b16 %v9394_v56  ;;  %v9335_v37 = vpop.f32.mrf.mxu0 }
0x18b2   : > { %v9854_v18 = vpop.f32.mrf.mxu0  ;;  %v9404_v9 = vsel %vm2313_vm13, %v9403_v12, %v9402_v30 }
0x18b3   : > { %v9405_v21 = vpack.c.b16 %v9404_v9, %v9404_v9 }
0x18b5   : > { %9868 = vmatmul.mubr.msk.bf16.vlgmr.msra.gmra.mxu0 %vm889_vm6, %v9405_v21 }
0x1975   : > { %v9455_v28 = vpop.f32.mrf.mxu0 }
0x1976   : > { %v9461_v27 = vadd.f32 %v9455_v28, %v9388_v60 }
0x1977   : > { %v9869_v10 = vpop.f32.mrf.mxu0 }
0x1978   : > { %v9468_v51 = vadd.f32 %v9690_v63, %v9461_v27 }
0x1979   : > { %v9458_v45 = vpop.f32.mrf.mxu0 }
0x197a   : > { %9470 = vst.msk [vmem:[%s755_s30] sm:$0x3] %vm9469_vm14, %v9468_v51 }
0x197b   : > { %v9870_v38 = vpop.f32.mrf.mxu0 }
0x197c PF: > { %s30_s1 = sadd.s32 1, %s10201_s1  }
0x197d   : > { %p27_p4 = scmp.ge.s32.totalorder %s30_s1, 6  }
0x197f   :  { %29 = sbr.rel (!%p27_p4) target bundleno = 6 (0x6), region = 153 }

</bundles_post_ra>
